<compile_context>
chip_gen: v6e
topology: v6e:2x2x1
jax: 0.10.0
libtpu: 0.0.40
codegen_flags: <defaults>
</compile_context>

<pallas_src>
import functools

import jax
import jax.numpy as jnp
import numpy as np
from jax.experimental import pallas as pl
from jax.experimental.pallas import tpu as pltpu

_HIGHEST = jax.lax.Precision.HIGHEST


def graph_reasoning_kernel(x_ref, wqk_ref, bqk_ref, wg_ref, bg_ref, o_ref,
                           *, n_nodes, node_dim):
    """One (TB, N*D) lane-dense batch tile per grid step.

    x_ref   : (TB, N*D)       input node slab for TB batch elements
    wqk_ref : (F*D, 2*F*D)    node-folded, fused [Wq^T | Wk^T]
    bqk_ref : (1, 2*F*D)      folded [bq | bk]
    wg_ref  : (F*D, F*D)      node-folded Wg^T
    bg_ref  : (1, F*D)        folded bg
    o_ref   : (TB, N*D)       output node slab
    """
    TB, ND = x_ref.shape
    N, D = n_nodes, node_dim
    FD = wg_ref.shape[0]            # folded projection width F*D
    rows = (TB * ND) // FD          # TB * N / F

    x = x_ref[...].astype(jnp.float32)                       # (TB, N*D)

    # Fused, node-folded query/key projection: one
    # (TB*N/F, F*D) @ (F*D, 2*F*D) matmul produces [q | k] at full MXU width.
    xf = x.reshape(rows, FD)
    qk = jnp.dot(xf, wqk_ref[...], precision=_HIGHEST,
                 preferred_element_type=jnp.float32) + bqk_ref[...]
    q = qk[:, :FD].reshape(TB, N, D)
    k = qk[:, FD:].reshape(TB, N, D)
    x3 = x.reshape(TB, N, D)

    # Fully-connected graph edges: contract the feature axis directly (no
    # materialized transpose of k).
    # TODO(synk): with N=8, D=32 this is TB tiny batched matmuls at low MXU
    # occupancy; if a bundle dump shows the vex push/pop path binding,
    # restructure as a VPU broadcast-multiply + reduce.
    s = jnp.einsum("bnd,bmd->bnm", q, k, precision=_HIGHEST,
                   preferred_element_type=jnp.float32)       # (TB, N, N)

    # Row softmax on a collapsed 2-D view; exact divide (the previous
    # EUP-approximate reciprocal perturbed the normalization).
    s2 = s.reshape(TB * N, N)
    m = jnp.max(s2, axis=-1, keepdims=True)
    p = jnp.exp(s2 - m)
    edge = (p / jnp.sum(p, axis=-1, keepdims=True)).reshape(TB, N, N)

    # Message passing over the original node features.
    sgr = jnp.einsum("bnm,bmd->bnd", edge, x3, precision=_HIGHEST,
                     preferred_element_type=jnp.float32)     # (TB, N, D)

    # Node-folded output projection + bias + ReLU, stored lane-dense.
    out = jnp.dot(sgr.reshape(rows, FD), wg_ref[...], precision=_HIGHEST,
                  preferred_element_type=jnp.float32) + bg_ref[...]
    o_ref[...] = jnp.maximum(out, 0.0).reshape(TB, ND).astype(o_ref.dtype)


def _device_kind():
    try:
        return jax.devices()[0].device_kind.lower()
    except Exception:
        return ""


def _mxu_width(kind):
    # v2-v5 generations: 128-wide MXU tiles; v6e/v7x: 256-wide.
    return 128 if any(t in kind for t in ("v2", "v3", "v4", "v5")) else 256


def _block_diag(w, f):
    """F copies of (d, d) `w` on the diagonal -> (f*d, f*d)."""
    if f == 1:
        return w
    d = w.shape[0]
    eye = jnp.eye(f, dtype=w.dtype)
    return jnp.einsum("fg,io->figo", eye, w).reshape(f * d, f * d)


def graph_reasoning(sim_emb, wq, bq, wk, bk, wg, bg, *, block_b=None):
    """Pallas implementation of GraphReasoning.forward.

    sim_emb : (B, N, D)   N = L+1 graph nodes, D = sim_dim
    wq/wk/wg: (D, D)      PyTorch-style Linear weights (out_features, in_features)
    bq/bk/bg: (D,)        biases
    """
    B, N, D = sim_emb.shape
    ND = N * D
    itemsize = jnp.dtype(sim_emb.dtype).itemsize
    kind = _device_kind()

    # ---- generation-aware node-fold factor (F*D ~ MXU width) ---------------
    target_w = max(_mxu_width(kind), D)
    F = 1
    for cand in range(N, 0, -1):
        if N % cand == 0 and cand * D <= target_w:
            F = cand
            break
    FD = F * D

    # ---- batch tile size ----------------------------------------------------
    if block_b is None:
        target_bytes = 2 << 20                       # ~2 MiB of input per step
        block_b = max(1, target_bytes // max(1, ND * itemsize))
        # keep the f32 working set (double-buffered in/out + temporaries)
        # comfortably inside v7x's 64 MiB physical VMEM
        vmem_budget = 40 << 20
        block_b = min(block_b, max(1, vmem_budget // (16 * ND * 4)))
    block_b = min(block_b, B)
    if "v7" in kind and B >= 16:
        # two TensorCores per chip: keep at least two grid steps
        block_b = min(block_b, pl.cdiv(B, 2))
    if block_b < B:
        block_b = max(8, (block_b // 8) * 8)         # sublane-aligned batch tile
    grid_b = pl.cdiv(B, block_b)
    Bp = grid_b * block_b

    # ---- lane-dense input slab ----------------------------------------------
    x2d = sim_emb.reshape(B, ND)
    if Bp != B:
        # zero-pad the batch; padded rows (they end up as relu(bg)) are sliced
        # off below and never exposed to the caller.
        x2d = jnp.pad(x2d, ((0, Bp - B), (0, 0)))

    # ---- weight prep: pre-transpose, node-fold (block-diag), fuse Wq|Wk ------
    f32 = jnp.float32
    wq_f = _block_diag(wq.T.astype(f32), F)
    wk_f = _block_diag(wk.T.astype(f32), F)
    wg_f = _block_diag(wg.T.astype(f32), F)
    wqk = jnp.concatenate([wq_f, wk_f], axis=1)                   # (FD, 2*FD)
    bqk = jnp.concatenate([jnp.tile(bq.astype(f32), F),
                           jnp.tile(bk.astype(f32), F)]).reshape(1, 2 * FD)
    bg2 = jnp.tile(bg.astype(f32), F).reshape(1, FD)

    cost = pl.CostEstimate(
        flops=Bp * (3 * 2 * N * D * D + 2 * 2 * N * N * D),
        transcendentals=Bp * N * N,
        bytes_accessed=(2 * Bp * ND * itemsize
                        + (3 * FD * FD + 3 * FD) * 4),
    )

    kernel = functools.partial(graph_reasoning_kernel, n_nodes=N, node_dim=D)

    out2d = pl.pallas_call(
        kernel,
        out_shape=jax.ShapeDtypeStruct((Bp, ND), sim_emb.dtype),
        grid=(grid_b,),
        in_specs=[
            pl.BlockSpec((block_b, ND), lambda b: (b, 0)),   # sim_emb slab
            pl.BlockSpec((FD, 2 * FD), lambda b: (0, 0)),    # folded [Wq|Wk]^T
            pl.BlockSpec((1, 2 * FD), lambda b: (0, 0)),     # folded [bq|bk]
            pl.BlockSpec((FD, FD), lambda b: (0, 0)),        # folded Wg^T
            pl.BlockSpec((1, FD), lambda b: (0, 0)),         # folded bg
        ],
        out_specs=pl.BlockSpec((block_b, ND), lambda b: (b, 0)),
        compiler_params=pltpu.CompilerParams(
            dimension_semantics=("parallel",),
            vmem_limit_bytes=48 * 1024 * 1024),
        cost_estimate=cost,
    )(x2d, wqk, bqk, wg_f, bg2)

    out2d = out2d[:B] if Bp != B else out2d
    return out2d.reshape(B, N, D)


def graph_reasoning_ref(sim_emb, wq, bq, wk, bk, wg, bg):
    """Pure-JAX reference mirroring the PyTorch forward exactly."""
    hp = _HIGHEST
    q = jnp.einsum("bnd,ed->bne", sim_emb, wq, precision=hp) + bq
    k = jnp.einsum("bnd,ed->bne", sim_emb, wk, precision=hp) + bk
    edge = jax.nn.softmax(jnp.einsum("bne,bme->bnm", q, k, precision=hp), axis=-1)
    sgr = jnp.einsum("bnm,bmd->bnd", edge, sim_emb, precision=hp)
    out = jnp.einsum("bnd,ed->bne", sgr, wg, precision=hp) + bg
    return jnp.maximum(out, 0.0)


if __name__ == "__main__":
    B, N, D = 8, 8, 32  # batch, L+1 graph nodes, sim_dim (small test shapes)

    key = jax.random.PRNGKey(0)
    kx, kq, kk, kg = jax.random.split(key, 4)

    sim_emb = jax.random.normal(kx, (B, N, D), dtype=jnp.float32)

    # deterministic init matching GraphReasoning.init_weights:
    #   weight ~ U(-r, r), r = sqrt(6)/sqrt(in+out); bias = 0
    r = float(np.sqrt(6.0) / np.sqrt(D + D))
    wq = jax.random.uniform(kq, (D, D), jnp.float32, minval=-r, maxval=r)
    wk = jax.random.uniform(kk, (D, D), jnp.float32, minval=-r, maxval=r)
    wg = jax.random.uniform(kg, (D, D), jnp.float32, minval=-r, maxval=r)
    bq = jnp.zeros((D,), jnp.float32)
    bk = jnp.zeros((D,), jnp.float32)
    bg = jnp.zeros((D,), jnp.float32)

    out = graph_reasoning(sim_emb, wq, bq, wk, bk, wg, bg)
    out = jax.block_until_ready(out)

    ref = graph_reasoning_ref(sim_emb, wq, bq, wk, bk, wg, bg)
    assert out.shape == (B, N, D)
    assert jnp.allclose(out, ref, atol=2e-3, rtol=2e-3), "mismatch vs reference"

    print("KERNEL_OK")
</pallas_src>

<mosaic_0001>
module attributes {stable_mosaic.version = 11 : i64} {
  func.func @graph_reasoning_kernel(%arg0: i32, %arg1: memref<8x256xf32, #tpu.memory_space<vmem>>, %arg2: memref<256x512xf32, #tpu.memory_space<vmem>>, %arg3: memref<1x512xf32, #tpu.memory_space<vmem>>, %arg4: memref<256x256xf32, #tpu.memory_space<vmem>>, %arg5: memref<1x256xf32, #tpu.memory_space<vmem>>, %arg6: memref<8x256xf32, #tpu.memory_space<vmem>>) attributes {dimension_semantics = [#tpu.dimension_semantics<parallel>], iteration_bounds = array<i64: 1>, scalar_prefetch = 0 : i64, scratch_operands = 0 : i64, tpu.core_type = #tpu.core_type<tc>, window_params = [{transform_indices = @transform_0, window_bounds = array<i64: 8, 256>}, {pipeline_mode = #tpu.pipeline_mode<synchronous>, transform_indices = @transform_1, window_bounds = array<i64: 256, 512>}, {pipeline_mode = #tpu.pipeline_mode<synchronous>, transform_indices = @transform_2, window_bounds = array<i64: 1, 512>}, {pipeline_mode = #tpu.pipeline_mode<synchronous>, transform_indices = @transform_3, window_bounds = array<i64: 256, 256>}, {pipeline_mode = #tpu.pipeline_mode<synchronous>, transform_indices = @transform_4, window_bounds = array<i64: 1, 256>}, {transform_indices = @transform_5, window_bounds = array<i64: 8, 256>}]} {
    %c0 = arith.constant 0 : index
    %c0_0 = arith.constant 0 : index
    %0 = vector.load %arg1[%c0, %c0_0] : memref<8x256xf32, #tpu.memory_space<vmem>>, vector<8x256xf32>
    %c0_1 = arith.constant 0 : index
    %c0_2 = arith.constant 0 : index
    %1 = vector.load %arg2[%c0_1, %c0_2] : memref<256x512xf32, #tpu.memory_space<vmem>>, vector<256x512xf32>
    %cst = arith.constant dense<0.000000e+00> : vector<8x512xf32>
    %2 = tpu.matmul %0, %1, %cst {dimension_numbers = #tpu.dot_dimension_numbers<[1], [0], [0], [1], [0, 0, 1, 1], [], []>, precision = #tpu.contract_precision<fp32>} : vector<8x256xf32>, vector<256x512xf32>, vector<8x512xf32> -> vector<8x512xf32>
    %c0_3 = arith.constant 0 : index
    %c0_4 = arith.constant 0 : index
    %3 = vector.load %arg3[%c0_3, %c0_4] : memref<1x512xf32, #tpu.memory_space<vmem>>, vector<1x512xf32>
    %4 = vector.broadcast %3 : vector<1x512xf32> to vector<8x512xf32>
    %5 = arith.addf %2, %4 : vector<8x512xf32>
    %6 = vector.extract_strided_slice %5 {offsets = [0, 0], sizes = [8, 256], strides = [1, 1]} : vector<8x512xf32> to vector<8x256xf32>
    %7 = vector.shape_cast %6 : vector<8x256xf32> to vector<8x8x32xf32>
    %8 = vector.extract_strided_slice %5 {offsets = [0, 256], sizes = [8, 256], strides = [1, 1]} : vector<8x512xf32> to vector<8x256xf32>
    %9 = vector.shape_cast %8 : vector<8x256xf32> to vector<8x8x32xf32>
    %10 = vector.shape_cast %0 : vector<8x256xf32> to vector<8x8x32xf32>
    "tpu.trace_start"() <{level = 10 : i32, message = "bnd,bmd->bnm"}> : () -> ()
    %cst_5 = arith.constant dense<0.000000e+00> : vector<8x8x8xf32>
    %11 = tpu.matmul %7, %9, %cst_5 {dimension_numbers = #tpu.dot_dimension_numbers<[2], [2], [1], [1], [0, 0, 0, 1, 1, 1], [0], [0]>, precision = #tpu.contract_precision<fp32>} : vector<8x8x32xf32>, vector<8x8x32xf32>, vector<8x8x8xf32> -> vector<8x8x8xf32>
    "tpu.trace_stop"() : () -> ()
    %12 = vector.shape_cast %11 : vector<8x8x8xf32> to vector<64x8xf32>
    %cst_6 = arith.constant dense<0xFF800000> : vector<64xf32>
    %13 = vector.multi_reduction <maximumf>, %12, %cst_6 [1] : vector<64x8xf32> to vector<64xf32>
    %14 = vector.shape_cast %13 : vector<64xf32> to vector<64x1xf32>
    %15 = vector.broadcast %14 : vector<64x1xf32> to vector<64x8xf32>
    %16 = arith.subf %12, %15 : vector<64x8xf32>
    %17 = math.exp %16 : vector<64x8xf32>
    %cst_7 = arith.constant dense<0.000000e+00> : vector<64xf32>
    %18 = vector.multi_reduction <add>, %17, %cst_7 [1] : vector<64x8xf32> to vector<64xf32>
    %19 = vector.shape_cast %18 : vector<64xf32> to vector<64x1xf32>
    %20 = vector.broadcast %19 : vector<64x1xf32> to vector<64x8xf32>
    %21 = arith.divf %17, %20 : vector<64x8xf32>
    %22 = vector.shape_cast %21 : vector<64x8xf32> to vector<8x8x8xf32>
    "tpu.trace_start"() <{level = 10 : i32, message = "bnm,bmd->bnd"}> : () -> ()
    %cst_8 = arith.constant dense<0.000000e+00> : vector<8x8x32xf32>
    %23 = tpu.matmul %22, %10, %cst_8 {dimension_numbers = #tpu.dot_dimension_numbers<[2], [1], [1], [2], [0, 0, 0, 1, 1, 2], [0], [0]>, precision = #tpu.contract_precision<fp32>} : vector<8x8x8xf32>, vector<8x8x32xf32>, vector<8x8x32xf32> -> vector<8x8x32xf32>
    "tpu.trace_stop"() : () -> ()
    %24 = vector.shape_cast %23 : vector<8x8x32xf32> to vector<8x256xf32>
    %c0_9 = arith.constant 0 : index
    %c0_10 = arith.constant 0 : index
    %25 = vector.load %arg4[%c0_9, %c0_10] : memref<256x256xf32, #tpu.memory_space<vmem>>, vector<256x256xf32>
    %cst_11 = arith.constant dense<0.000000e+00> : vector<8x256xf32>
    %26 = tpu.matmul %24, %25, %cst_11 {dimension_numbers = #tpu.dot_dimension_numbers<[1], [0], [0], [1], [0, 0, 1, 1], [], []>, precision = #tpu.contract_precision<fp32>} : vector<8x256xf32>, vector<256x256xf32>, vector<8x256xf32> -> vector<8x256xf32>
    %c0_12 = arith.constant 0 : index
    %c0_13 = arith.constant 0 : index
    %27 = vector.load %arg5[%c0_12, %c0_13] : memref<1x256xf32, #tpu.memory_space<vmem>>, vector<1x256xf32>
    %28 = vector.broadcast %27 : vector<1x256xf32> to vector<8x256xf32>
    %29 = arith.addf %26, %28 : vector<8x256xf32>
    %cst_14 = arith.constant 0.000000e+00 : f32
    %30 = vector.broadcast %cst_14 : f32 to vector<8x256xf32>
    %31 = arith.maximumf %29, %30 : vector<8x256xf32>
    %c0_15 = arith.constant 0 : index
    %c0_16 = arith.constant 0 : index
    %32 = vector.load %arg6[%c0_15, %c0_16] : memref<8x256xf32, #tpu.memory_space<vmem>>, vector<8x256xf32>
    tpu.vector_store %arg6[%c0_15, %c0_16], %31 {strides = array<i32>} : memref<8x256xf32, #tpu.memory_space<vmem>>, vector<8x256xf32>,
    return
  }
  func.func @transform_0(%arg0: i32) -> (i32, i32) {
    %c0_i32 = arith.constant 0 : i32
    %c0_i32_0 = arith.constant 0 : i32
    return %arg0, %c0_i32 : i32, i32
  }
  func.func @transform_1(%arg0: i32) -> (i32, i32) {
    %c0_i32 = arith.constant 0 : i32
    %c0_i32_0 = arith.constant 0 : i32
    %c0_i32_1 = arith.constant 0 : i32
    return %c0_i32, %c0_i32_0 : i32, i32
  }
  func.func @transform_2(%arg0: i32) -> (i32, i32) {
    %c0_i32 = arith.constant 0 : i32
    %c0_i32_0 = arith.constant 0 : i32
    %c0_i32_1 = arith.constant 0 : i32
    return %c0_i32, %c0_i32_0 : i32, i32
  }
  func.func @transform_3(%arg0: i32) -> (i32, i32) {
    %c0_i32 = arith.constant 0 : i32
    %c0_i32_0 = arith.constant 0 : i32
    %c0_i32_1 = arith.constant 0 : i32
    return %c0_i32, %c0_i32_0 : i32, i32
  }
  func.func @transform_4(%arg0: i32) -> (i32, i32) {
    %c0_i32 = arith.constant 0 : i32
    %c0_i32_0 = arith.constant 0 : i32
    %c0_i32_1 = arith.constant 0 : i32
    return %c0_i32, %c0_i32_0 : i32, i32
  }
  func.func @transform_5(%arg0: i32) -> (i32, i32) {
    %c0_i32 = arith.constant 0 : i32
    %c0_i32_0 = arith.constant 0 : i32
    return %arg0, %c0_i32 : i32, i32
  }
}

</mosaic_0001>

<bundles_post_ra>
// kernel: tpu_custom_call.1
= control target key start
LH: loop header
LB: loop body
LE: loop exit
PB: predicated region body
PF: predicated region fallthrough
CT: control target
= control target key end

     0   :  { %10 = vsyncpa [#allocation3], 0  ;;  %s17433_s0 = inlined_call_operand.hbm [shape: f32[8,256], index: 0, kind: input, shape index: {}]   ;;  %s17434_s1 = inlined_call_operand.hbm [shape: f32[256,512], index: 1, kind: input, shape index: {}]   ;;  %s17435_s2 = inlined_call_operand.hbm [shape: f32[1,512], index: 2, kind: input, shape index: {}]   ;;  %s17436_s3 = inlined_call_operand.hbm [shape: f32[256,256], index: 3, kind: input, shape index: {}]   ;;  %s17437_s4 = inlined_call_operand.vmem [shape: f32[1,256], index: 4, kind: input, shape index: {}]   ;;  %s17438_s5 = inlined_call_operand.hbm [shape: f32[8,256], index: 5, kind: output, shape index: {}]  }
   0x1   :  { %11 = vsyncpa [#allocation6], 0 }
   0x2   :  { %12 = vsyncpa [#allocation9], 0 }
   0x3   :  { %13 = vsyncpa [#allocation4], 0  ;;  %s12937_s18 = smov [#allocation5]  }
   0x4   :  { %s29_s19 = sshll.u32 %s12937_s18, 4  ;;  %s30_s19 = int_to_ptr.vmem [resolvable:$true] %s29_s19 }
   0x5   :  { %s12837_s20 = scalar_lea.vmem %s30_s19, 16384  ;;  %p12842_p1 = scmp.lt.s32.totalorder %s30_s19, %s30_s19 }
   0x6   :  { %p12838_p0 = scmp.ne.s32.totalorder %s30_s19, %s12837_s20  ;;  %p12843_p2 = scmp.lt.s32.totalorder %s12837_s20, %s12837_s20 }
   0x8   :  { %p12844_p3 = por %p12843_p2, %p12842_p1 }
   0xa   :  { %p12845_p4 = pnand %p12844_p3, %p12838_p0 }
   0xc   :  { %12848 = shalt.err (!%p12845_p4)
}
   0xd   :  { %s12938_s21 = smov 512   ;;  %s12939_s22 = smov 32  }
   0xe   :  { %35 = dma.hbm_to_vmem [thread:$0]  %s17434_s1, 16384, %s30_s19, [#allocation6], %s12938_s21, %s12938_s21, %s12939_s22  }
   0xf   :  { %s12940_s25 = smov [#allocation2]   ;;  %s12941_s27 = smov [#allocation7]  }
  0x10   :  { %s20_s26 = sshll.u32 %s12940_s25, 4  ;;  %s42_s28 = sshll.u32 %s12941_s27, 4  ;;  %s21_s26 = int_to_ptr.vmem [resolvable:$true] %s20_s26  ;;  %s43_s28 = int_to_ptr.vmem [resolvable:$true] %s42_s28 }
  0x11   :  { %s12857_s29 = scalar_lea.vmem %s21_s26, 256  ;;  %p12862_p6 = scmp.lt.s32.totalorder %s21_s26, %s21_s26 }
  0x12   :  { %p12858_p5 = scmp.ne.s32.totalorder %s21_s26, %s12857_s29  ;;  %p12863_p7 = scmp.lt.s32.totalorder %s12857_s29, %s12857_s29 }
  0x14   :  { %p12864_p8 = por %p12863_p7, %p12862_p6 }
  0x16   :  { %p12865_p9 = pnand %p12864_p8, %p12858_p5 }
  0x18   :  { %12868 = shalt.err (!%p12865_p9)
}
  0x19   :  { %23 = dma.hbm_to_vmem [thread:$0]  %s17433_s0, 256, %s21_s26, [#allocation3]  }
  0x1a   :  { %s12877_s7 = scalar_lea.vmem %s43_s28, 64  ;;  %p12882_p11 = scmp.lt.s32.totalorder %s43_s28, %s43_s28 }
  0x1b   :  { %p12878_p10 = scmp.ne.s32.totalorder %s43_s28, %s12877_s7  ;;  %p12883_p12 = scmp.lt.s32.totalorder %s12877_s7, %s12877_s7 }
  0x1d   :  { %p12884_p13 = por %p12883_p12, %p12882_p11 }
  0x1f   :  { %p12885_p0 = pnand %p12884_p13, %p12878_p10 }
  0x21   :  { %12888 = shalt.err (!%p12885_p0)
}
  0x22   :  { %45 = dma.hbm_to_vmem [thread:$0]  %s17435_s2, 64, %s43_s28, [#allocation6]  }
  0x23   :  { %s12942_s9 = smov [#allocation8]  }
  0x24   :  { %s51_s10 = sshll.u32 %s12942_s9, 4  ;;  %s52_s10 = int_to_ptr.vmem [resolvable:$true] %s51_s10 }
  0x25   :  { %s12897_s11 = scalar_lea.vmem %s52_s10, 8192  ;;  %p12902_p2 = scmp.lt.s32.totalorder %s52_s10, %s52_s10 }
  0x26   :  { %p12898_p1 = scmp.ne.s32.totalorder %s52_s10, %s12897_s11  ;;  %p12903_p3 = scmp.lt.s32.totalorder %s12897_s11, %s12897_s11 }
  0x28   :  { %p12904_p4 = por %p12903_p3, %p12902_p2 }
  0x2a   :  { %p12905_p5 = pnand %p12904_p4, %p12898_p1 }
  0x2c   :  { %12908 = shalt.err (!%p12905_p5)
}
  0x2d   :  { %s12943_s0 = smov 256   ;;  %s12944_s12 = smov 16  }
  0x2e   :  { %57 = dma.hbm_to_vmem [thread:$0]  %s17436_s3, 8192, %s52_s10, [#allocation9], %s12943_s0, %s12943_s0, %s12944_s12  }
  0x2f   :  { %12929 = dma.done.wait [#allocation3], 256  }
  0x30   :  { %12930 = vsyncadd [#allocation3], 4294967040 }
  0x31   :  { %12931 = dma.done.wait [#allocation6], 16448  }
  0x32   :  { %12932 = vsyncadd [#allocation6], 4294950848 }
  0x33   :  { %12933 = dma.done.wait [#allocation9], 8192  }
  0x34   :  { %12934 = vsyncadd [#allocation9], 4294959104  ;;  %v135_v0 = vld [vmem:[#allocation5 + $0x1e8] sm:$0xff]  ;;  %v134_v1 = vld [vmem:[#allocation5 + $0x1e0] sm:$0xff]  ;;  %s12945_s2 = smov 64   ;;  %s12946_s3 = smov 96  }
  0x35   :  { %v131_v2 = vld [vmem:[#allocation5 + $0x1c8] sm:$0xff]  ;;  %v12995_v3 = vand.u32 4294901760, %v135_v0  ;;  %v12997_v4 = vand.u32 4294901760, %v134_v1  ;;  %v130_v6 = vld [vmem:[#allocation5 + $0x1c0] sm:$0xff]  ;;  %vm12949_vm0 = vmmov 0   ;;  %vm3260_vm1 = vcmask 261120  }
  0x36   :  { %v12999_v5 = vand.u32 4294901760, %v131_v2  ;;  %v127_v7 = vld [vmem:[#allocation5 + $0x1a8] sm:$0xff]  ;;  %v126_v8 = vld [vmem:[#allocation5 + $0x1a0] sm:$0xff]  ;;  %v13001_v9 = vand.u32 4294901760, %v130_v6  ;;  %vm6877_vm2 = vcmask 64512   ;;  %vm10719_vm3 = vcmask 523264  }
  0x37   :  { %v13003_v10 = vand.u32 4294901760, %v127_v7  ;;  %v13005_v11 = vand.u32 4294901760, %v126_v8  ;;  %v123_v12 = vld [vmem:[#allocation5 + $0x188] sm:$0xff]  ;;  %v122_v13 = vld [vmem:[#allocation5 + $0x180] sm:$0xff]  ;;  %225 = vmatprep.subr.mxu0 %v12995_v3  ;;  %v13015_v18 = vsub.f32 %v135_v0, %v12995_v3  ;;  %v13028_v23 = vsub.f32 %v134_v1, %v12997_v4 }
  0x38   :  { %v119_v14 = vld [vmem:[#allocation5 + $0x168] sm:$0xff]  ;;  %v13008_v15 = vand.u32 4294901760, %v123_v12  ;;  %v13010_v16 = vand.u32 4294901760, %v122_v13  ;;  %v13017_v19 = vld [vmem:[#allocation5 + $0x160] sm:$0xff]  ;;  %227 = vmatpush1.msra.mxu0 %v12997_v4  ;;  %v13034_v25 = vsub.f32 %v131_v2, %v12999_v5  ;;  %v13048_v31 = vsub.f32 %v130_v6, %v13001_v9 }
  0x39   :  { %v13012_v17 = vand.u32 4294901760, %v119_v14  ;;  %v13019_v20 = vld [vmem:[#allocation5 + $0x148] sm:$0xff]  ;;  %v13021_v21 = vld [vmem:[#allocation5 + $0x140] sm:$0xff]  ;;  %v13025_v22 = vand.u32 4294901760, %v13017_v19  ;;  %229 = vmatprep.subr.mxu0 %v12999_v5  ;;  %v17452_v29 = vand.u32 4294901760, %v13015_v18  ;;  %v17450_v33 = vand.u32 4294901760, %v13028_v23 }
  0x3a   :  { %v13031_v24 = vand.u32 4294901760, %v13019_v20  ;;  %v13036_v26 = vld [vmem:[#allocation5 + $0x128] sm:$0xff]  ;;  %v13038_v27 = vld [vmem:[#allocation5 + $0x120] sm:$0xff]  ;;  %v13045_v30 = vand.u32 4294901760, %v13021_v21  ;;  %231 = vmatpush1.msra.mxu0 %v13001_v9  ;;  %v17449_v34 = vand.u32 4294901760, %v13034_v25  ;;  %v13057_v35 = vsub.f32 %v127_v7, %v13003_v10 }
  0x3b   :  { %v13040_v28 = vld [vmem:[#allocation5 + $0x108] sm:$0xff]  ;;  %v13051_v32 = vand.u32 4294901760, %v13036_v26  ;;  %v13060_v36 = vand.u32 4294901760, %v13038_v27  ;;  %v13062_v37 = vld [vmem:[#allocation5 + $0x100] sm:$0xff]  ;;  %233 = vmatprep.subr.mxu0 %v13003_v10  ;;  %v372_v38 = vsub.f32 %v13015_v18, %v17452_v29  ;;  %v17447_v39 = vand.u32 4294901760, %v13048_v31 }
  0x3c   :  { %18095 = vst [vmem:[#allocation15_spill] sm:$0xff] %v13031_v24  ;;  %18096 = vst [vmem:[#allocation16_spill] sm:$0xff] %v13045_v30  ;;  %v13070_v40 = vsub.f32 %v126_v8, %v13005_v11  ;;  %v13073_v41 = vand.u32 4294901760, %v13040_v28  ;;  %235 = vmatpush1.msra.mxu0 %v13005_v11  ;;  %v378_v42 = vsub.f32 %v13028_v23, %v17450_v33  ;;  %v17445_v44 = vand.u32 4294901760, %v13057_v35  ;;  %v13086_v46 = vld [vmem:[#allocation5 + $0xe8] sm:$0xff]  ;;  %v13096_v51 = vld [vmem:[#allocation5 + $0xe0] sm:$0xff] }
  0x3d   :  { %18097 = vst [vmem:[#allocation17_spill] sm:$0xff] %v13051_v32  ;;  %18098 = vst [vmem:[#allocation18_spill] sm:$0xff] %v13060_v36  ;;  %v384_v43 = vsub.f32 %v13034_v25, %v17449_v34  ;;  %v13084_v45 = vsub.f32 %v123_v12, %v13008_v15  ;;  %237 = vmatprep.subr.mxu0 %v13008_v15  ;;  %v373_v47 = vand.u32 4294901760, %v372_v38  ;;  %v13094_v50 = vand.u32 4294901760, %v13062_v37  ;;  %v13103_v56 = vld [vmem:[#allocation5 + $0xc8] sm:$0xff]  ;;  %v13115_v61 = vld [vmem:[#allocation5 + $0xc0] sm:$0xff] }
  0x3e   :  { %18099 = vst [vmem:[#allocation19_spill] sm:$0xff] %v13073_v41  ;;  %v390_v48 = vsub.f32 %v13048_v31, %v17447_v39  ;;  %v17444_v49 = vand.u32 4294901760, %v13070_v40  ;;  %239 = vmatpush1.msra.mxu0 %v13010_v16  ;;  %v379_v52 = vand.u32 4294901760, %v378_v42  ;;  %v396_v54 = vsub.f32 %v13057_v35, %v17445_v44  ;;  %v13127_v2 = vld [vmem:[#allocation5 + $0xa8] sm:$0xff]  ;;  %v13228_v34 = vld [vmem:[#allocation5 + $0x40] sm:$0xff] }
  0x3f   :  { %18100 = vst [vmem:[#allocation20_spill] sm:$0xff] %v13094_v50  ;;  %v385_v53 = vand.u32 4294901760, %v384_v43  ;;  %v17442_v55 = vand.u32 4294901760, %v13084_v45  ;;  %241 = vmatprep.subr.mxu0 %v13012_v17  ;;  %374 = vmatprep.subr.mxu1 %v373_v47  ;;  %v13110_v59 = vsub.f32 %v122_v13, %v13010_v16  ;;  %v13113_v60 = vand.u32 4294901760, %v13086_v46  ;;  %v13138_v13 = vld [vmem:[#allocation5 + $0xa0] sm:$0xff]  ;;  %v13218_v39 = vld [vmem:[#allocation5 + $0x48] sm:$0xff] }
  0x40   :  { %v391_v57 = vand.u32 4294901760, %v390_v48  ;;  %v402_v58 = vsub.f32 %v13070_v40, %v17444_v49  ;;  %243 = vmatpush1.msra.mxu0 %v13025_v22  ;;  %380 = vmatpush1.msra.mxu1 %v379_v52  ;;  %v397_v62 = vand.u32 4294901760, %v396_v54  ;;  %v13122_v0 = vsub.f32 %v119_v14, %v13012_v17  ;;  %v13205_v49 = vld [vmem:[#allocation5 + $0x60] sm:$0xff] }
  0x41   :  { %18101 = vst [vmem:[#allocation21_spill] sm:$0xff] %v13113_v60  ;;  %v408_v63 = vsub.f32 %v13084_v45, %v17442_v55  ;;  %v13125_v1 = vand.u32 4294901760, %v13096_v51  ;;  %245 = vmatprep.subr.mxu0 %v13031_v24  ;;  %386 = vmatprep.subr.mxu1 %v385_v53  ;;  %v17440_v7 = vand.u32 4294901760, %v13110_v59  ;;  %v13133_v8 = vsub.f32 %v13017_v19, %v13025_v22 }
  0x42   :  { %v403_v6 = vand.u32 4294901760, %v402_v58  ;;  %v13136_v12 = vand.u32 4294901760, %v13103_v56  ;;  %247 = vmatpush1.msra.mxu0 %v13045_v30  ;;  %392 = vmatpush1.msra.mxu1 %v391_v57  ;;  %v17439_v38 = vand.u32 4294901760, %v13122_v0  ;;  %v13144_v42 = vsub.f32 %v13019_v20, %v13031_v24  ;;  %v13161_v20 = vld [vmem:[#allocation5 + $0x88] sm:$0xff] }
  0x43   :  { %18102 = vst [vmem:[#allocation22_spill] sm:$0xff] %v13125_v1  ;;  %v409_v14 = vand.u32 4294901760, %v408_v63  ;;  %v13147_v43 = vand.u32 4294901760, %v13115_v61  ;;  %249 = vmatprep.subr.mxu0 %v13051_v32  ;;  %398 = vmatprep.subr.mxu1 %v397_v62  ;;  %v414_v19 = vsub.f32 %v13110_v59, %v17440_v7  ;;  %v17441_v47 = vand.u32 4294901760, %v13133_v8 }
  0x44   :  { %18103 = vst [vmem:[#allocation23_spill] sm:$0xff] %v13136_v12  ;;  %v13156_v48 = vsub.f32 %v13021_v21, %v13045_v30  ;;  %v13159_v52 = vand.u32 4294901760, %v13127_v2  ;;  %251 = vmatpush1.msra.mxu0 %v13060_v36  ;;  %404 = vmatpush1.msra.mxu1 %v403_v6  ;;  %v420_v53 = vsub.f32 %v13122_v0, %v17439_v38  ;;  %v17443_v54 = vand.u32 4294901760, %v13144_v42  ;;  %v13184_v38 = vld [vmem:[#allocation5 + $0x80] sm:$0xff] }
  0x45   :  { %18104 = vst [vmem:[#allocation24_spill] sm:$0xff] %v13147_v43  ;;  %v13170_v57 = vsub.f32 %v13036_v26, %v13051_v32  ;;  %v13173_v21 = vand.u32 4294901760, %v13138_v13  ;;  %253 = vmatprep.subr.mxu0 %v13073_v41  ;;  %410 = vmatprep.subr.mxu1 %v409_v14  ;;  %v415_v58 = vand.u32 4294901760, %v414_v19  ;;  %v426_v62 = vsub.f32 %v13133_v8, %v17441_v47  ;;  %v13194_v47 = vld [vmem:[#allocation5 + $0x68] sm:$0xff] }
  0x46   :  { %18105 = vst [vmem:[#allocation25_spill] sm:$0xff] %v13159_v52  ;;  %v17446_v63 = vand.u32 4294901760, %v13156_v48  ;;  %v13182_v6 = vsub.f32 %v13038_v27, %v13060_v36  ;;  %255 = vmatpush1.msra.mxu0 %v13094_v50  ;;  %v421_v26 = vand.u32 4294901760, %v420_v53  ;;  %v432_v14 = vsub.f32 %v13144_v42, %v17443_v54  ;;  %v13308_v36 = vld [vmem:[#allocation5 + $0x3e8] sm:$0xff] }
  0x47   :  { %18106 = vst [vmem:[#allocation26_spill] sm:$0xff] %v13173_v21  ;;  %v17448_v19 = vand.u32 4294901760, %v13170_v57  ;;  %v13192_v7 = vand.u32 4294901760, %v13161_v20  ;;  %416 = vmatpush1.msra.mxu1 %v415_v58  ;;  %257 = vmatprep.subr.mxu0 %v13113_v60  ;;  %v427_v27 = vand.u32 4294901760, %v426_v62  ;;  %v13203_v54 = vsub.f32 %v13040_v28, %v13073_v41 }
  0x48   :  { %v438_v55 = vsub.f32 %v13156_v48, %v17446_v63  ;;  %v17451_v53 = vand.u32 4294901760, %v13182_v6  ;;  %422 = vmatprep.subr.mxu1 %v421_v26  ;;  %259 = vmatpush1.msra.mxu0 %v13125_v1  ;;  %v433_v44 = vand.u32 4294901760, %v432_v14  ;;  %v13212_v62 = vand.u32 4294901760, %v13184_v38 }
  0x49   :  { %18107 = vst [vmem:[#allocation27_spill] sm:$0xff] %v13192_v7  ;;  %v444_v58 = vsub.f32 %v13170_v57, %v17448_v19  ;;  %v13216_v63 = vsub.f32 %v13062_v37, %v13094_v50  ;;  %428 = vmatpush1.msra.mxu1 %v427_v27  ;;  %261 = vmatprep.subr.mxu0 %v13136_v12  ;;  %v17455_v14 = vand.u32 4294901760, %v13203_v54  ;;  %v13226_v19 = vand.u32 4294901760, %v13194_v47 }
  0x4a   :  { %18108 = vst [vmem:[#allocation28_spill] sm:$0xff] %v13212_v62  ;;  %v439_v28 = vand.u32 4294901760, %v438_v55  ;;  %v450_v26 = vsub.f32 %v13182_v6, %v17451_v53  ;;  %434 = vmatprep.subr.mxu1 %v433_v44  ;;  %263 = vmatpush1.msra.mxu0 %v13147_v43  ;;  %v13234_v55 = vsub.f32 %v13086_v46, %v13113_v60  ;;  %v13237_v33 = vand.u32 4294901760, %v13205_v49  ;;  %v13239_v53 = vld [vmem:[#allocation5 + $0x28] sm:$0xff] }
  0x4b   :  { %18109 = vst [vmem:[#allocation29_spill] sm:$0xff] %v13226_v19  ;;  %v445_v37 = vand.u32 4294901760, %v444_v58  ;;  %v17458_v27 = vand.u32 4294901760, %v13216_v63  ;;  %265 = vmatprep.subr.mxu0 %v13159_v52  ;;  %v456_v44 = vsub.f32 %v13203_v54, %v17455_v14  ;;  %v13247_v58 = vsub.f32 %v13096_v51, %v13125_v1  ;;  %v13264_v51 = vld [vmem:[#allocation5 + $0x20] sm:$0xff] }
  0x4c   :  { %18110 = vst [vmem:[#allocation30_spill] sm:$0xff] %v13237_v33  ;;  %440 = vmatpush1.msra.mxu1 %v439_v28  ;;  %v451_v29 = vand.u32 4294901760, %v450_v26  ;;  %v13250_v46 = vand.u32 4294901760, %v13218_v39  ;;  %267 = vmatpush1.msra.mxu0 %v13173_v21  ;;  %v13259_v60 = vsub.f32 %v13103_v56, %v13136_v12  ;;  %v13262_v14 = vand.u32 4294901760, %v13228_v34  ;;  %v13275_v56 = vld [vmem:[#allocation5 + $0x8] sm:$0xff] }
  0x4d   :  { %446 = vmatprep.subr.mxu1 %v445_v37  ;;  %v462_v28 = vsub.f32 %v13216_v63, %v17458_v27  ;;  %269 = vmatprep.subr.mxu0 %v13192_v7  ;;  %v457_v37 = vand.u32 4294901760, %v456_v44  ;;  %v13270_v27 = vsub.f32 %v13115_v61, %v13147_v43  ;;  %v13273_v26 = vand.u32 4294901760, %v13239_v53  ;;  %v13298_v44 = vld [vmem:[#allocation5] sm:$0xff] }
  0x4e   :  { %18111 = vst [vmem:[#allocation31_spill] sm:$0xff] %v13250_v46  ;;  %18112 = vst [vmem:[#allocation32_spill] sm:$0xff] %v13262_v14  ;;  %452 = vmatpush1.msra.mxu1 %v451_v29  ;;  %271 = vmatpush1.msra.mxu0 %v13212_v62  ;;  %v18115_v50 = vand.u32 4294901760, %v13234_v55  ;;  %v13284_v1 = vsub.f32 %v13127_v2, %v13159_v52  ;;  %v18117_v61 = vand.u32 4294901760, %v13247_v58  ;;  %v13306_v41 = vand.u32 4294901760, %v13275_v56 }
  0x4f   :  { %18113 = vst [vmem:[#allocation33_spill] sm:$0xff] %v13270_v27  ;;  %18114 = vst [vmem:[#allocation34_spill] sm:$0xff] %v13273_v26  ;;  %v463_v12 = vand.u32 4294901760, %v462_v28  ;;  %458 = vmatprep.subr.mxu1 %v457_v37  ;;  %273 = vmatprep.subr.mxu0 %v13226_v19  ;;  %v13292_v28 = vand.u32 4294901760, %v13264_v51  ;;  %v18120_v37 = vand.u32 4294901760, %v13259_v60  ;;  %v13326_v24 = vand.u32 4294901760, %v13298_v44 }
  0x50   :  { %v468_v29 = vsub.f32 %v13234_v55, %v18115_v50  ;;  %18116 = vst [vmem:[#allocation35_spill] sm:$0xff] %v13284_v1  ;;  %v474_v43 = vsub.f32 %v13247_v58, %v18117_v61  ;;  %v13296_v50 = vsub.f32 %v13138_v13, %v13173_v21  ;;  %275 = vmatpush1.msra.mxu0 %v13237_v33  ;;  %18121 = vst [vmem:[#allocation38_spill] sm:$0xff] %v13306_v41  ;;  %vm10721_vm4 = vcmask 785408  }
  0x51   :  { %18118 = vst [vmem:[#allocation36_spill] sm:$0xff] %v13292_v28  ;;  %464 = vmatpush1.msra.mxu1 %v463_v12  ;;  %v480_v52 = vsub.f32 %v13259_v60, %v18120_v37  ;;  %277 = vmatprep.subr.mxu0 %v13250_v46  ;;  %v18122_v13 = vand.u32 4294901760, %v13270_v27  ;;  %v13317_v21 = vsub.f32 %v13161_v20, %v13192_v7  ;;  %v13319_v37 = vld [vmem:[#allocation5 + $0x3e0] sm:$0xff]  ;;  %18125 = vst [vmem:[#allocation40_spill] sm:$0xff] %v13326_v24 }
  0x52   :  { %18119 = vst [vmem:[#allocation37_spill] sm:$0xff] %v13296_v50  ;;  %v469_v2 = vand.u32 4294901760, %v468_v29  ;;  %v475_v32 = vand.u32 4294901760, %v474_v43  ;;  %279 = vmatpush1.msra.mxu0 %v13262_v14  ;;  %v18124_v43 = vand.u32 4294901760, %v13284_v1  ;;  %v13332_v29 = vld [vmem:[#allocation5 + $0x3c8] sm:$0xff] }
  0x53   :  { %v486_v12 = vsub.f32 %v13270_v27, %v18122_v13  ;;  %18123 = vst [vmem:[#allocation39_spill] sm:$0xff] %v13317_v21  ;;  %v481_v61 = vand.u32 4294901760, %v480_v52  ;;  %v13330_v13 = vsub.f32 %v13184_v38, %v13212_v62  ;;  %281 = vmatprep.subr.mxu0 %v13273_v26  ;;  %v18127_v52 = vand.u32 4294901760, %v13296_v50 }
  0x54   :  { %470 = vmatprep.subr.mxu1 %v469_v2  ;;  %v492_v30 = vsub.f32 %v13284_v1, %v18124_v43  ;;  %v13340_v43 = vand.u32 4294901760, %v13308_v36  ;;  %v13342_v1 = vld [vmem:[#allocation5 + $0x3c0] sm:$0xff]  ;;  %283 = vmatpush1.msra.mxu0 %v13292_v28  ;;  %v13351_v62 = vand.u32 4294901760, %v13319_v37 }
  0x55   :  { %18126 = vst [vmem:[#allocation41_spill] sm:$0xff] %v13330_v13  ;;  %476 = vmatpush1.msra.mxu1 %v475_v32  ;;  %v487_v20 = vand.u32 4294901760, %v486_v12  ;;  %v498_v2 = vsub.f32 %v13296_v50, %v18127_v52  ;;  %v13348_v12 = vsub.f32 %v13194_v47, %v13226_v19  ;;  %v13353_v52 = vld [vmem:[#allocation5 + $0x3a8] sm:$0xff]  ;;  %285 = vmatprep.subr.mxu0 %v13306_v41  ;;  %v13364_v47 = vand.u32 4294901760, %v13332_v29 }
  0x56   :  { %18128 = vst [vmem:[#allocation42_spill] sm:$0xff] %v13340_v43  ;;  %482 = vmatprep.subr.mxu1 %v481_v61  ;;  %v493_v38 = vand.u32 4294901760, %v492_v30  ;;  %18130 = vst [vmem:[#allocation44_spill] sm:$0xff] %v13351_v62  ;;  %v18131_v61 = vand.u32 4294901760, %v13317_v21  ;;  %v13361_v32 = vsub.f32 %v13205_v49, %v13237_v33  ;;  %287 = vmatpush1.msra.mxu0 %v13326_v24  ;;  %v18134_v19 = vand.u32 4294901760, %v13330_v13  ;;  %v13378_v49 = vld [vmem:[#allocation5 + $0x3a0] sm:$0xff] }
  0x57   :  { %18129 = vst [vmem:[#allocation43_spill] sm:$0xff] %v13348_v12  ;;  %488 = vmatpush1.msra.mxu1 %v487_v20  ;;  %v499_v7 = vand.u32 4294901760, %v498_v2  ;;  %18133 = vst [vmem:[#allocation46_spill] sm:$0xff] %v13364_v47  ;;  %v13373_v50 = vsub.f32 %v13218_v39, %v13250_v46  ;;  %289 = vmatprep.subr.mxu0 %v13340_v43  ;;  %v13387_v2 = vand.u32 4294901760, %v13353_v52  ;;  %v13389_v39 = vld [vmem:[#allocation5 + $0x388] sm:$0xff] }
  0x58   :  { %v504_v30 = vsub.f32 %v13317_v21, %v18131_v61  ;;  %18132 = vst [vmem:[#allocation45_spill] sm:$0xff] %v13361_v32  ;;  %494 = vmatprep.subr.mxu1 %v493_v38  ;;  %v510_v20 = vsub.f32 %v13330_v13, %v18134_v19  ;;  %v13376_v61 = vand.u32 4294901760, %v13342_v1  ;;  %v17501_v38 = vand.u32 4294901760, %v13361_v32  ;;  %291 = vmatpush2.msra.mxu0 %v13351_v62 }
  0x59   :  { %18135 = vst [vmem:[#allocation47_spill] sm:$0xff] %v13373_v50  ;;  %500 = vmatpush1.msra.mxu1 %v499_v7  ;;  %v13384_v19 = vsub.f32 %v13228_v34, %v13262_v14  ;;  %18138 = vst [vmem:[#allocation50_spill] sm:$0xff] %v13387_v2  ;;  %v18139_v13 = vand.u32 4294901760, %v13348_v12  ;;  %293 = vmatprep.subr.mxu0 %v13364_v47  ;;  %v13406_v14 = vand.u32 4294901760, %v13378_v49  ;;  %v13412_v7 = vld [vmem:[#allocation5 + $0x380] sm:$0xff] }
  0x5a   :  { %18136 = vst [vmem:[#allocation48_spill] sm:$0xff] %v13376_v61  ;;  %v505_v33 = vand.u32 4294901760, %v504_v30  ;;  %v511_v46 = vand.u32 4294901760, %v510_v20  ;;  %v13398_v30 = vsub.f32 %v13239_v53, %v13273_v26  ;;  %v522_v34 = vsub.f32 %v13361_v32, %v17501_v38  ;;  %295 = vmatpush2.msra.mxu0 %v13376_v61  ;;  %v13422_v32 = vld [vmem:[#allocation5 + $0x368] sm:$0xff] }
  0x5b   :  { %18137 = vst [vmem:[#allocation49_spill] sm:$0xff] %v13384_v19  ;;  %v516_v21 = vsub.f32 %v13348_v12, %v18139_v13  ;;  %18141 = vst [vmem:[#allocation52_spill] sm:$0xff] %v13406_v14  ;;  %v13410_v13 = vsub.f32 %v13264_v51, %v13292_v28  ;;  %v13420_v20 = vand.u32 4294901760, %v13389_v39  ;;  %v18145_v51 = vand.u32 4294901760, %v13384_v19  ;;  %297 = vmatprep.subr.mxu0 %v13387_v2 }
  0x5c   :  { %18140 = vst [vmem:[#allocation51_spill] sm:$0xff] %v13398_v30  ;;  %506 = vmatprep.subr.mxu1 %v505_v33  ;;  %v18143_v33 = vand.u32 4294901760, %v13373_v50  ;;  %v523_v12 = vand.u32 4294901760, %v522_v34  ;;  %299 = vmatpush2.msra.mxu0 %v13406_v14 }
  0x5d   :  { %18142 = vst [vmem:[#allocation53_spill] sm:$0xff] %v13410_v13  ;;  %512 = vmatpush1.msra.mxu1 %v511_v46  ;;  %v517_v53 = vand.u32 4294901760, %v516_v21  ;;  %18144 = vst [vmem:[#allocation54_spill] sm:$0xff] %v13420_v20  ;;  %v534_v28 = vsub.f32 %v13384_v19, %v18145_v51  ;;  %v13431_v46 = vsub.f32 %v13275_v56, %v13306_v41  ;;  %v13440_v51 = vand.u32 4294901760, %v13412_v7  ;;  %v13446_v19 = vld [vmem:[#allocation5 + $0x348] sm:$0xff] }
  0x5e   :  { %v528_v26 = vsub.f32 %v13373_v50, %v18143_v33  ;;  %v13433_v33 = vld [vmem:[#allocation5 + $0x360] sm:$0xff]  ;;  %v18147_v50 = vand.u32 4294901760, %v13398_v30  ;;  %v13444_v21 = vsub.f32 %v13298_v44, %v13326_v24  ;;  %301 = vmatprep.subr.mxu0 %v13420_v20  ;;  %v13454_v41 = vand.u32 4294901760, %v13422_v32  ;;  %v13467_v24 = vld [vmem:[#allocation5 + $0x328] sm:$0xff] }
  0x5f   :  { %18146 = vst [vmem:[#allocation55_spill] sm:$0xff] %v13431_v46  ;;  %518 = vmatprep.subr.mxu1 %v517_v53  ;;  %18148 = vst [vmem:[#allocation56_spill] sm:$0xff] %v13440_v51  ;;  %v535_v56 = vand.u32 4294901760, %v534_v28  ;;  %v18150_v53 = vand.u32 4294901760, %v13410_v13  ;;  %303 = vmatpush2.msra.mxu0 %v13440_v51  ;;  %v13462_v28 = vsub.f32 %v13308_v36, %v13340_v43  ;;  %v13478_v36 = vand.u32 4294901760, %v13446_v19 }
  0x60   :  { %v529_v38 = vand.u32 4294901760, %v528_v26  ;;  %v540_v34 = vsub.f32 %v13398_v30, %v18147_v50  ;;  %18149 = vst [vmem:[#allocation57_spill] sm:$0xff] %v13444_v21  ;;  %524 = vmatpush1.msra.mxu1 %v523_v12  ;;  %18151 = vst [vmem:[#allocation58_spill] sm:$0xff] %v13454_v41  ;;  %v13456_v30 = vld [vmem:[#allocation5 + $0x340] sm:$0xff]  ;;  %v17524_v12 = vand.u32 4294901760, %v13444_v21  ;;  %305 = vmatprep.subr.mxu0 %v13454_v41 }
  0x61   :  { %v546_v26 = vsub.f32 %v13410_v13, %v18150_v53  ;;  %18152 = vst [vmem:[#allocation59_spill] sm:$0xff] %v13462_v28  ;;  %v13465_v53 = vand.u32 4294901760, %v13433_v33  ;;  %v18154_v13 = vand.u32 4294901760, %v13431_v46  ;;  %18156 = vst [vmem:[#allocation62_spill] sm:$0xff] %v13478_v36 }
  0x62   :  { %530 = vmatprep.subr.mxu1 %v529_v38  ;;  %v541_v44 = vand.u32 4294901760, %v540_v34  ;;  %v13475_v34 = vsub.f32 %v13319_v37, %v13351_v62  ;;  %v558_v43 = vsub.f32 %v13444_v21, %v17524_v12  ;;  %v13492_v37 = vld [vmem:[#allocation5 + $0x320] sm:$0xff]  ;;  %v13498_v12 = vsub.f32 %v13342_v1, %v13376_v61 }
  0x63   :  { %18153 = vst [vmem:[#allocation60_spill] sm:$0xff] %v13465_v53  ;;  %536 = vmatpush1.msra.mxu1 %v535_v56  ;;  %v547_v50 = vand.u32 4294901760, %v546_v26  ;;  %v552_v38 = vsub.f32 %v13431_v46, %v18154_v13  ;;  %307 = vmatpush2.msra.mxu0 %v13465_v53  ;;  %v13487_v13 = vsub.f32 %v13332_v29, %v13364_v47  ;;  %v13490_v26 = vand.u32 4294901760, %v13456_v30  ;;  %v13503_v29 = vld [vmem:[#allocation5 + $0x308] sm:$0xff] }
  0x64   :  { %18155 = vst [vmem:[#allocation61_spill] sm:$0xff] %v13475_v34  ;;  %542 = vmatprep.subr.mxu1 %v541_v44  ;;  %v17535_v44 = vand.u32 4294901760, %v13475_v34  ;;  %309 = vmatprep.subr.mxu0 %v13478_v36  ;;  %18159 = vst [vmem:[#allocation65_spill] sm:$0xff] %v13498_v12  ;;  %v13501_v56 = vand.u32 4294901760, %v13467_v24  ;;  %v559_v47 = vand.u32 4294901760, %v558_v43  ;;  %v18161_v21 = vand.u32 4294901760, %v13462_v28 }
  0x65   :  { %18157 = vst [vmem:[#allocation63_spill] sm:$0xff] %v13487_v13  ;;  %18158 = vst [vmem:[#allocation64_spill] sm:$0xff] %v13490_v26  ;;  %548 = vmatpush1.msra.mxu1 %v547_v50  ;;  %v553_v62 = vand.u32 4294901760, %v552_v38  ;;  %311 = vmatpush2.msra.mxu0 %v13490_v26  ;;  %v13512_v38 = vsub.f32 %v13353_v52, %v13387_v2  ;;  %v13520_v43 = vand.u32 4294901760, %v13492_v37  ;;  %v13526_v50 = vld [vmem:[#allocation5 + $0x300] sm:$0xff]  ;;  %v13533_v61 = vand.u32 4294901760, %v13503_v29 }
  0x66   :  { %18160 = vst [vmem:[#allocation66_spill] sm:$0xff] %v13501_v56  ;;  %v564_v46 = vsub.f32 %v13462_v28, %v18161_v21  ;;  %v570_v1 = vsub.f32 %v13475_v34, %v17535_v44  ;;  %313 = vmatprep.subr.mxu0 %v13501_v56  ;;  %v13524_v21 = vsub.f32 %v13378_v49, %v13406_v14  ;;  %v13535_v34 = vld [vmem:[#allocation5 + $0x2e8] sm:$0xff]  ;;  %v18167_v27 = vand.u32 4294901760, %v13498_v12 }
  0x67   :  { %18162 = vst [vmem:[#allocation67_spill] sm:$0xff] %v13512_v38  ;;  %554 = vmatprep.subr.mxu1 %v553_v62  ;;  %18163 = vst [vmem:[#allocation68_spill] sm:$0xff] %v13520_v43  ;;  %v18165_v62 = vand.u32 4294901760, %v13487_v13  ;;  %315 = vmatpush2.msra.mxu0 %v13520_v43  ;;  %v18169_v14 = vand.u32 4294901760, %v13512_v38 }
  0x68   :  { %18164 = vst [vmem:[#allocation69_spill] sm:$0xff] %v13524_v21  ;;  %560 = vmatpush1.msra.mxu1 %v559_v47  ;;  %v565_v52 = vand.u32 4294901760, %v564_v46  ;;  %18166 = vst [vmem:[#allocation70_spill] sm:$0xff] %v13533_v61  ;;  %v571_v28 = vand.u32 4294901760, %v570_v1  ;;  %v582_v49 = vsub.f32 %v13498_v12, %v18167_v27  ;;  %v13544_v46 = vsub.f32 %v13389_v39, %v13420_v20  ;;  %v13559_v12 = vld [vmem:[#allocation5 + $0x2c8] sm:$0xff] }
  0x69   :  { %v576_v2 = vsub.f32 %v13487_v13, %v18165_v62  ;;  %v13546_v62 = vld [vmem:[#allocation5 + $0x2e0] sm:$0xff]  ;;  %v588_v1 = vsub.f32 %v13512_v38, %v18169_v14  ;;  %317 = vmatprep.subr.mxu0 %v13533_v61  ;;  %v13553_v27 = vand.u32 4294901760, %v13526_v50  ;;  %v13557_v47 = vsub.f32 %v13412_v7, %v13440_v51 }
  0x6a   :  { %18168 = vst [vmem:[#allocation71_spill] sm:$0xff] %v13544_v46  ;;  %566 = vmatprep.subr.mxu1 %v565_v52  ;;  %v583_v39 = vand.u32 4294901760, %v582_v49  ;;  %v18172_v52 = vand.u32 4294901760, %v13524_v21  ;;  %v13566_v14 = vand.u32 4294901760, %v13535_v34  ;;  %v13568_v38 = vld [vmem:[#allocation5 + $0x2c0] sm:$0xff]  ;;  %v13577_v49 = vand.u32 4294901760, %v13546_v62 }
  0x6b   :  { %v577_v44 = vand.u32 4294901760, %v576_v2  ;;  %18170 = vst [vmem:[#allocation72_spill] sm:$0xff] %v13553_v27  ;;  %18171 = vst [vmem:[#allocation73_spill] sm:$0xff] %v13557_v47  ;;  %572 = vmatpush2.msra.mxu1 %v571_v28  ;;  %v589_v13 = vand.u32 4294901760, %v588_v1  ;;  %319 = vmatpush2.msra.mxu0 %v13553_v27  ;;  %v17558_v7 = vand.u32 4294901760, %v13557_v47  ;;  %v13574_v28 = vsub.f32 %v13422_v32, %v13454_v41 }
  0x6c   :  { %v594_v2 = vsub.f32 %v13524_v21, %v18172_v52  ;;  %18173 = vst [vmem:[#allocation74_spill] sm:$0xff] %v13566_v14  ;;  %18175 = vst [vmem:[#allocation76_spill] sm:$0xff] %v13577_v49  ;;  %v13579_v52 = vld [vmem:[#allocation5 + $0x2a8] sm:$0xff]  ;;  %v18176_v51 = vand.u32 4294901760, %v13544_v46  ;;  %321 = vmatprep.subr.mxu0 %v13566_v14  ;;  %v13587_v1 = vsub.f32 %v13433_v33, %v13465_v53  ;;  %v13590_v32 = vand.u32 4294901760, %v13559_v12  ;;  %v13604_v33 = vld [vmem:[#allocation5 + $0x2a0] sm:$0xff] }
  0x6d   :  { %578 = vmatprep.subr.mxu1 %v577_v44  ;;  %18174 = vst [vmem:[#allocation75_spill] sm:$0xff] %v13574_v28  ;;  %v606_v41 = vsub.f32 %v13557_v47, %v17558_v7  ;;  %323 = vmatpush2.msra.mxu0 %v13577_v49  ;;  %v13610_v7 = vsub.f32 %v13456_v30, %v13490_v26  ;;  %v18183_v47 = vand.u32 4294901760, %v13574_v28 }
  0x6e   :  { %584 = vmatpush2.msra.mxu1 %v583_v39  ;;  %v595_v20 = vand.u32 4294901760, %v594_v2  ;;  %v600_v44 = vsub.f32 %v13544_v46, %v18176_v51  ;;  %18177 = vst [vmem:[#allocation77_spill] sm:$0xff] %v13587_v1  ;;  %18178 = vst [vmem:[#allocation78_spill] sm:$0xff] %v13590_v32  ;;  %v13599_v51 = vsub.f32 %v13446_v19, %v13478_v36  ;;  %v13602_v2 = vand.u32 4294901760, %v13568_v38  ;;  %v13615_v19 = vld [vmem:[#allocation5 + $0x288] sm:$0xff] }
  0x6f   :  { %590 = vmatprep.subr.mxu1 %v589_v13  ;;  %v17569_v13 = vand.u32 4294901760, %v13587_v1  ;;  %325 = vmatprep.subr.mxu0 %v13590_v32  ;;  %18181 = vst [vmem:[#allocation81_spill] sm:$0xff] %v13610_v7  ;;  %v13613_v39 = vand.u32 4294901760, %v13579_v52  ;;  %v607_v36 = vand.u32 4294901760, %v606_v41  ;;  %v612_v46 = vsub.f32 %v13574_v28, %v18183_v47 }
  0x70   :  { %18179 = vst [vmem:[#allocation79_spill] sm:$0xff] %v13599_v51  ;;  %18180 = vst [vmem:[#allocation80_spill] sm:$0xff] %v13602_v2  ;;  %596 = vmatpush2.msra.mxu1 %v595_v20  ;;  %v601_v53 = vand.u32 4294901760, %v600_v44  ;;  %327 = vmatpush2.msra.mxu0 %v13602_v2  ;;  %v13624_v44 = vsub.f32 %v13467_v24, %v13501_v56  ;;  %v13632_v41 = vand.u32 4294901760, %v13604_v33  ;;  %v13638_v20 = vld [vmem:[#allocation5 + $0x280] sm:$0xff]  ;;  %v13645_v26 = vand.u32 4294901760, %v13615_v19 }
  0x71   :  { %18182 = vst [vmem:[#allocation82_spill] sm:$0xff] %v13613_v39  ;;  %v618_v30 = vsub.f32 %v13587_v1, %v17569_v13  ;;  %329 = vmatprep.subr.mxu0 %v13613_v39  ;;  %v13636_v47 = vsub.f32 %v13492_v37, %v13520_v43  ;;  %v613_v24 = vand.u32 4294901760, %v612_v46  ;;  %v13647_v1 = vld [vmem:[#allocation5 + $0x268] sm:$0xff]  ;;  %v18189_v21 = vand.u32 4294901760, %v13610_v7 }
  0x72   :  { %18184 = vst [vmem:[#allocation83_spill] sm:$0xff] %v13624_v44  ;;  %602 = vmatprep.subr.mxu1 %v601_v53  ;;  %18185 = vst [vmem:[#allocation84_spill] sm:$0xff] %v13632_v41  ;;  %v18187_v53 = vand.u32 4294901760, %v13599_v51  ;;  %331 = vmatpush2.msra.mxu0 %v13632_v41  ;;  %v13656_v46 = vsub.f32 %v13503_v29, %v13533_v61  ;;  %v18191_v43 = vand.u32 4294901760, %v13624_v44 }
  0x73   :  { %18186 = vst [vmem:[#allocation85_spill] sm:$0xff] %v13636_v47  ;;  %608 = vmatpush2.msra.mxu1 %v607_v36  ;;  %18188 = vst [vmem:[#allocation86_spill] sm:$0xff] %v13645_v26  ;;  %v619_v28 = vand.u32 4294901760, %v618_v30  ;;  %v630_v37 = vsub.f32 %v13610_v7, %v18189_v21  ;;  %333 = vmatprep.subr.mxu0 %v13645_v26  ;;  %v13665_v21 = vand.u32 4294901760, %v13638_v20  ;;  %v13671_v7 = vld [vmem:[#allocation5 + $0x248] sm:$0xff] }
  0x74   :  { %v624_v56 = vsub.f32 %v13599_v51, %v18187_v53  ;;  %18190 = vst [vmem:[#allocation87_spill] sm:$0xff] %v13656_v46  ;;  %v13658_v53 = vld [vmem:[#allocation5 + $0x260] sm:$0xff]  ;;  %614 = vmatprep.subr.mxu1 %v613_v24  ;;  %v636_v30 = vsub.f32 %v13624_v44, %v18191_v43  ;;  %v13669_v36 = vsub.f32 %v13526_v50, %v13553_v27  ;;  %v18194_v24 = vand.u32 4294901760, %v13636_v47 }
  0x75   :  { %18192 = vst [vmem:[#allocation88_spill] sm:$0xff] %v13665_v21  ;;  %620 = vmatpush2.msra.mxu1 %v619_v28  ;;  %v631_v29 = vand.u32 4294901760, %v630_v37  ;;  %v13678_v43 = vand.u32 4294901760, %v13647_v1  ;;  %v13680_v44 = vld [vmem:[#allocation5 + $0x240] sm:$0xff]  ;;  %335 = vmatpush2.msra.mxu0 %v13665_v21  ;;  %v13686_v28 = vsub.f32 %v13535_v34, %v13566_v14  ;;  %v13689_v37 = vand.u32 4294901760, %v13658_v53 }
  0x76   :  { %v625_v13 = vand.u32 4294901760, %v624_v56  ;;  %18193 = vst [vmem:[#allocation89_spill] sm:$0xff] %v13669_v36  ;;  %v642_v56 = vsub.f32 %v13636_v47, %v18194_v24  ;;  %v637_v51 = vand.u32 4294901760, %v636_v30  ;;  %v17592_v50 = vand.u32 4294901760, %v13669_v36  ;;  %v13691_v24 = vld [vmem:[#allocation5 + $0x228] sm:$0xff] }
  0x77   :  { %18195 = vst [vmem:[#allocation90_spill] sm:$0xff] %v13686_v28  ;;  %v18196_v27 = vand.u32 4294901760, %v13656_v46  ;;  %337 = vmatprep.subr.mxu0 %v13678_v43  ;;  %v13699_v30 = vsub.f32 %v13546_v62, %v13577_v49  ;;  %v13702_v34 = vand.u32 4294901760, %v13671_v7  ;;  %v13716_v62 = vld [vmem:[#allocation5 + $0x220] sm:$0xff] }
  0x78   :  { %626 = vmatprep.subr.mxu1 %v625_v13  ;;  %v643_v61 = vand.u32 4294901760, %v642_v56  ;;  %v654_v14 = vsub.f32 %v13669_v36, %v17592_v50  ;;  %339 = vmatpush2.msra.mxu0 %v13689_v37  ;;  %v13714_v56 = vand.u32 4294901760, %v13680_v44  ;;  %v13722_v50 = vsub.f32 %v13568_v38, %v13602_v2 }
  0x79   :  { %632 = vmatpush2.msra.mxu1 %v631_v29  ;;  %v648_v13 = vsub.f32 %v13656_v46, %v18196_v27  ;;  %18197 = vst [vmem:[#allocation91_spill] sm:$0xff] %v13699_v30  ;;  %18198 = vst [vmem:[#allocation92_spill] sm:$0xff] %v13702_v34  ;;  %v13711_v27 = vsub.f32 %v13559_v12, %v13590_v32  ;;  %341 = vmatprep.subr.mxu0 %v13702_v34  ;;  %v13725_v29 = vand.u32 4294901760, %v13691_v24  ;;  %v13727_v12 = vld [vmem:[#allocation5 + $0x208] sm:$0xff] }
  0x7a   :  { %638 = vmatprep.subr.mxu1 %v637_v51  ;;  %18200 = vst [vmem:[#allocation94_spill] sm:$0xff] %v13714_v56  ;;  %v17603_v51 = vand.u32 4294901760, %v13699_v30  ;;  %18201 = vst [vmem:[#allocation95_spill] sm:$0xff] %v13722_v50  ;;  %v655_v32 = vand.u32 4294901760, %v654_v14  ;;  %v18203_v36 = vand.u32 4294901760, %v13686_v28  ;;  %343 = vmatpush2.msra.mxu0 %v13714_v56  ;;  %v13744_v14 = vand.u32 4294901760, %v13716_v62 }
  0x7b   :  { %18199 = vst [vmem:[#allocation93_spill] sm:$0xff] %v13711_v27  ;;  %644 = vmatpush2.msra.mxu1 %v643_v61  ;;  %v649_v49 = vand.u32 4294901760, %v648_v13  ;;  %18202 = vst [vmem:[#allocation96_spill] sm:$0xff] %v13725_v29  ;;  %v13736_v13 = vsub.f32 %v13579_v52, %v13613_v39  ;;  %345 = vmatprep.subr.mxu0 %v13725_v29  ;;  %v13750_v61 = vld [vmem:[#allocation5 + $0x200] sm:$0xff]  ;;  %v13757_v2 = vand.u32 4294901760, %v13727_v12  ;;  %v18207_v47 = vand.u32 4294901760, %v13722_v50 }
  0x7c   :  { %v660_v46 = vsub.f32 %v13686_v28, %v18203_v36  ;;  %v666_v38 = vsub.f32 %v13699_v30, %v17603_v51  ;;  %v13748_v36 = vsub.f32 %v13604_v33, %v13632_v41  ;;  %v73_v30 = vld [vmem:[#allocation2 + $0x8] sm:$0xff]  ;;  %347 = vmatpush2.msra.mxu0 %v13744_v14 }
  0x7d   :  { %18204 = vst [vmem:[#allocation97_spill] sm:$0xff] %v13736_v13  ;;  %650 = vmatprep.subr.mxu1 %v649_v49  ;;  %v18206_v49 = vand.u32 4294901760, %v13711_v27  ;;  %v678_v33 = vsub.f32 %v13722_v50, %v18207_v47  ;;  %v18209_v41 = vand.u32 4294901760, %v13736_v13  ;;  %349 = vmatprep.subr.mxu0 %v13757_v2  ;;  %v13777_v47 = vsub.f32 %v13638_v20, %v13665_v21 }
  0x7e   :  { %18205 = vst [vmem:[#allocation98_spill] sm:$0xff] %v13748_v36  ;;  %656 = vmatpush2.msra.mxu1 %v655_v32  ;;  %v661_v52 = vand.u32 4294901760, %v660_v46  ;;  %v667_v28 = vand.u32 4294901760, %v666_v38  ;;  %v13766_v46 = vsub.f32 %v13615_v19, %v13645_v26  ;;  %v13773_v38 = vand.u32 4294901760, %v13750_v61 }
  0x7f   :  { %v672_v39 = vsub.f32 %v13711_v27, %v18206_v49  ;;  %v72_v49 = vld [vmem:[#allocation2] sm:$0xff]  ;;  %v684_v27 = vsub.f32 %v13736_v13, %v18209_v41  ;;  %18210 = vst [vmem:[#allocation100_spill] sm:$0xff] %v13777_v47  ;;  %v679_v32 = vand.u32 4294901760, %v678_v33  ;;  %v18211_v19 = vand.u32 4294901760, %v13748_v36 }
  0x80   :  { %18208 = vst [vmem:[#allocation99_spill] sm:$0xff] %v13766_v46  ;;  %662 = vmatprep.subr.mxu1 %v661_v52  ;;  %v13783_v26 = vand.u32 4294901760, %v73_v30  ;;  %351 = vmatpush2.msra.mxu0 %v13773_v38  ;;  %v17620_v13 = vand.u32 4294901760, %v13777_v47  ;;  %v13789_v20 = vsub.f32 %v13647_v1, %v13678_v43 }
  0x81   :  { %v673_v51 = vand.u32 4294901760, %v672_v39  ;;  %668 = vmatpush2.msra.mxu1 %v667_v28  ;;  %v690_v52 = vsub.f32 %v13748_v36, %v18211_v19  ;;  %v17621_v39 = vand.u32 4294901760, %v13766_v46  ;;  %v685_v41 = vand.u32 4294901760, %v684_v27  ;;  %764 = vmatprep.subr.mxu0 %v13015_v18 }
  0x82   :  { %18212 = vst [vmem:[#allocation101_spill] sm:$0xff] %v13783_v26  ;;  %18213 = vst [vmem:[#allocation102_spill] sm:$0xff] %v13789_v20  ;;  %v13791_v28 = vand.u32 4294901760, %v72_v49  ;;  %v13797_v21 = vsub.f32 %v73_v30, %v13783_v26  ;;  %v13802_v27 = vsub.f32 %v13658_v53, %v13689_v37  ;;  %v702_v1 = vsub.f32 %v13777_v47, %v17620_v13 }
  0x83   :  { %674 = vmatprep.subr.mxu1 %v673_v51  ;;  %v691_v33 = vand.u32 4294901760, %v690_v52  ;;  %v696_v19 = vsub.f32 %v13766_v46, %v17621_v39  ;;  %v17624_v51 = vand.u32 4294901760, %v13789_v20  ;;  %v13813_v30 = vsub.f32 %v13671_v7, %v13702_v34  ;;  %754 = vmatprep.mubr.f32.mxu1 %v13783_v26 }
  0x84   :  { %18214 = vst [vmem:[#allocation103_spill] sm:$0xff] %v13791_v28  ;;  %680 = vmatpush2.msra.mxu1 %v679_v32  ;;  %18215 = vst [vmem:[#allocation104_spill] sm:$0xff] %v13797_v21  ;;  %v13809_v32 = vsub.f32 %v72_v49, %v13791_v28  ;;  %v13817_v53 = vand.u32 4294901760, %v13797_v21  ;;  %v13822_v13 = vsub.f32 %v13680_v44, %v13714_v56  ;;  %v703_v39 = vand.u32 4294901760, %v702_v1 }
  0x85   :  { %18216 = vst [vmem:[#allocation105_spill] sm:$0xff] %v13802_v27  ;;  %686 = vmatprep.subr.mxu1 %v685_v41  ;;  %18218 = vst [vmem:[#allocation107_spill] sm:$0xff] %v13813_v30  ;;  %v697_v52 = vand.u32 4294901760, %v696_v19  ;;  %v17629_v41 = vand.u32 4294901760, %v13802_v27  ;;  %v708_v49 = vsub.f32 %v13789_v20, %v17624_v51  ;;  %v13839_v1 = vsub.f32 %v13691_v24, %v13725_v29 }
  0x86   :  { %18217 = vst [vmem:[#allocation106_spill] sm:$0xff] %v13809_v32  ;;  %692 = vmatpush2.msra.mxu1 %v691_v33  ;;  %18219 = vst [vmem:[#allocation108_spill] sm:$0xff] %v13817_v53  ;;  %v13828_v7 = vand.u32 4294901760, %v13809_v32  ;;  %v17636_v33 = vand.u32 4294901760, %v13813_v30  ;;  %v355_v19 = vsub.f32 %v13797_v21, %v13817_v53  ;;  %v13848_v53 = vsub.f32 %v13716_v62, %v13744_v14 }
  0x87   :  { %698 = vmatprep.subr.mxu1 %v697_v52  ;;  %v714_v26 = vsub.f32 %v13802_v27, %v17629_v41  ;;  %18221 = vst [vmem:[#allocation110_spill] sm:$0xff] %v13839_v1  ;;  %v709_v51 = vand.u32 4294901760, %v708_v49  ;;  %v18224_v34 = vand.u32 4294901760, %v13822_v13  ;;  %v13869_v62 = vsub.f32 %v13750_v61, %v13773_v38 }
  0x88   :  { %18220 = vst [vmem:[#allocation109_spill] sm:$0xff] %v13828_v7  ;;  %704 = vmatpush2.msra.mxu1 %v703_v39  ;;  %v361_v56 = vsub.f32 %v13809_v32, %v13828_v7  ;;  %v720_v52 = vsub.f32 %v13813_v30, %v17636_v33  ;;  %18222 = vst [vmem:[#allocation111_spill] sm:$0xff] %v13848_v53  ;;  %v13850_v41 = vand.u32 4294901760, %v355_v19  ;;  %v17640_v39 = vand.u32 4294901760, %v13839_v1 }
  0x89   :  { %v715_v44 = vand.u32 4294901760, %v714_v26  ;;  %v726_v24 = vsub.f32 %v13822_v13, %v18224_v34  ;;  %710 = vmatprep.subr.mxu1 %v709_v51  ;;  %v17639_v29 = vand.u32 4294901760, %v13848_v53  ;;  %v13861_v33 = vsub.f32 %v13727_v12, %v13757_v2  ;;  %18226 = vst [vmem:[#allocation114_spill] sm:$0xff] %v13869_v62 }
  0x8a   :  { %18223 = vst [vmem:[#allocation112_spill] sm:$0xff] %v13850_v41  ;;  %v13856_v49 = vand.u32 4294901760, %v361_v56  ;;  %v721_v7 = vand.u32 4294901760, %v720_v52  ;;  %357 = vmatprep.mubr.f32.mxu0 %v13850_v41  ;;  %v732_v34 = vsub.f32 %v13839_v1, %v17640_v39  ;;  %v17637_v19 = vand.u32 4294901760, %v13869_v62  ;;  %v18239_v39 = vld [vmem:[#allocation21_spill] sm:$0xff]  ;;  %v18242_v41 = vld [vmem:[#allocation47_spill] sm:$0xff] }
  0x8b   :  { %716 = vmatpush2.msra.mxu1 %v715_v44  ;;  %v727_v26 = vand.u32 4294901760, %v726_v24  ;;  %v738_v56 = vsub.f32 %v13848_v53, %v17639_v29  ;;  %v17638_v12 = vand.u32 4294901760, %v13861_v33  ;;  %v18238_v29 = vld [vmem:[#allocation43_spill] sm:$0xff] }
  0x8c   :  { %18225 = vst [vmem:[#allocation113_spill] sm:$0xff] %v13856_v49  ;;  %363 = vmatmul.mubr.f32.vlgmr.msra.gmra.mxu0 %v13856_v49  ;;  %722 = vmatprep.subr.mxu1 %v721_v7  ;;  %v733_v51 = vand.u32 4294901760, %v732_v34  ;;  %v750_v7 = vsub.f32 %v13869_v62, %v17637_v19  ;;  %v18228_v34 = vld [vmem:[#allocation33_spill] sm:$0xff]  ;;  %v18241_v49 = vld [vmem:[#allocation22_spill] sm:$0xff] }
  0x8d   :  { %767 = vmatpush1.msra.mxu0 %v13028_v23  ;;  %728 = vmatpush2.msra.mxu1 %v727_v26  ;;  %v739_v44 = vand.u32 4294901760, %v738_v56  ;;  %v744_v61 = vsub.f32 %v13861_v33, %v17638_v12  ;;  %v18227_v26 = vld [vmem:[#allocation15_spill] sm:$0xff]  ;;  %v18229_v56 = vld [vmem:[#allocation16_spill] sm:$0xff]  ;;  %v18236_v19 = vld [vmem:[#allocation41_spill] sm:$0xff] }
  0x8e   :  { %770 = vmatprep.subr.mxu0 %v13034_v25  ;;  %956 = vmatprep.mubr.f32.mxu0 %v13797_v21  ;;  %v751_v24 = vand.u32 4294901760, %v750_v7  ;;  %v18233_v7 = vld [vmem:[#allocation18_spill] sm:$0xff]  ;;  %v18237_v12 = vld [vmem:[#allocation20_spill] sm:$0xff]  ;;  %v18240_v21 = vld [vmem:[#allocation45_spill] sm:$0xff] }
  0x8f   :  { %773 = vmatpush1.msra.mxu0 %v13048_v31  ;;  %734 = vmatprep.subr.mxu1 %v733_v51  ;;  %v745_v52 = vand.u32 4294901760, %v744_v61  ;;  %v18230_v51 = vld [vmem:[#allocation35_spill] sm:$0xff]  ;;  %v18232_v61 = vld [vmem:[#allocation37_spill] sm:$0xff] }
  0x90   :  { %776 = vmatprep.subr.mxu0 %v13057_v35  ;;  %740 = vmatpush2.msra.mxu1 %v739_v44  ;;  %v18231_v44 = vld [vmem:[#allocation17_spill] sm:$0xff] }
  0x91   :  { %779 = vmatpush1.msra.mxu0 %v13070_v40  ;;  %746 = vmatprep.subr.mxu1 %v745_v52  ;;  %v18234_v52 = vld [vmem:[#allocation39_spill] sm:$0xff] }
  0x92   :  { %782 = vmatprep.subr.mxu0 %v13084_v45  ;;  %752 = vmatpush2.msra.mxu1 %v751_v24  ;;  %v18235_v24 = vld [vmem:[#allocation19_spill] sm:$0xff] }
  0x93   :  { %785 = vmatpush1.msra.mxu0 %v13110_v59  ;;  %756 = vmatmul.mubr.f32.vlgmr.msra.gmra.mxu1 %v13791_v28  ;;  %v18243_v28 = vld [vmem:[#allocation23_spill] sm:$0xff] }
  0x94   :  { %788 = vmatprep.subr.mxu0 %v13122_v0  ;;  %966 = vmatprep.subr.mxu1 %v12995_v3 }
  0x95   :  { %791 = vmatpush1.msra.mxu0 %v13133_v8  ;;  %968 = vmatpush1.msra.mxu1 %v12997_v4 }
  0x96   :  { %794 = vmatprep.subr.mxu0 %v13144_v42  ;;  %970 = vmatprep.subr.mxu1 %v12999_v5 }
  0x97   :  { %797 = vmatpush1.msra.mxu0 %v13156_v48  ;;  %972 = vmatpush1.msra.mxu1 %v13001_v9 }
  0x98   :  { %800 = vmatprep.subr.mxu0 %v13170_v57  ;;  %974 = vmatprep.subr.mxu1 %v13003_v10 }
  0x99   :  { %803 = vmatpush1.msra.mxu0 %v13182_v6  ;;  %976 = vmatpush1.msra.mxu1 %v13005_v11 }
  0x9a   :  { %806 = vmatprep.subr.mxu0 %v13203_v54  ;;  %978 = vmatprep.subr.mxu1 %v13008_v15 }
  0x9b   :  { %809 = vmatpush1.msra.mxu0 %v13216_v63  ;;  %980 = vmatpush1.msra.mxu1 %v13010_v16 }
  0x9c   :  { %812 = vmatprep.subr.mxu0 %v13234_v55  ;;  %982 = vmatprep.subr.mxu1 %v13012_v17 }
  0x9d   :  { %815 = vmatpush1.msra.mxu0 %v13247_v58  ;;  %984 = vmatpush1.msra.mxu1 %v13025_v22 }
  0x9e   :  { %818 = vmatprep.subr.mxu0 %v13259_v60  ;;  %986 = vmatprep.subr.mxu1 %v18227_v26 }
  0x9f   :  { %821 = vmatpush1.msra.mxu0 %v18228_v34  ;;  %988 = vmatpush1.msra.mxu1 %v18229_v56 }
  0xa0   :  { %824 = vmatprep.subr.mxu0 %v18230_v51  ;;  %990 = vmatprep.subr.mxu1 %v18231_v44 }
  0xa1   :  { %827 = vmatpush1.msra.mxu0 %v18232_v61  ;;  %992 = vmatpush1.msra.mxu1 %v18233_v7  ;;  %v18244_v7 = vld [vmem:[#allocation49_spill] sm:$0xff] }
  0xa2   :  { %830 = vmatprep.subr.mxu0 %v18234_v52  ;;  %994 = vmatprep.subr.mxu1 %v18235_v24  ;;  %v18245_v52 = vld [vmem:[#allocation24_spill] sm:$0xff]  ;;  %v18246_v24 = vld [vmem:[#allocation51_spill] sm:$0xff] }
  0xa3   :  { %833 = vmatpush1.msra.mxu0 %v18236_v19  ;;  %996 = vmatpush1.msra.mxu1 %v18237_v12  ;;  %v18247_v19 = vld [vmem:[#allocation25_spill] sm:$0xff] }
  0xa4   :  { %836 = vmatprep.subr.mxu0 %v18238_v29  ;;  %998 = vmatprep.subr.mxu1 %v18239_v39  ;;  %v18248_v12 = vld [vmem:[#allocation53_spill] sm:$0xff]  ;;  %v18249_v29 = vld [vmem:[#allocation26_spill] sm:$0xff]  ;;  %v18250_v39 = vld [vmem:[#allocation55_spill] sm:$0xff] }
  0xa5   :  { %839 = vmatpush1.msra.mxu0 %v18240_v21  ;;  %1000 = vmatpush1.msra.mxu1 %v18241_v49  ;;  %v18251_v21 = vld [vmem:[#allocation27_spill] sm:$0xff]  ;;  %v18252_v49 = vld [vmem:[#allocation57_spill] sm:$0xff] }
  0xa6   :  { %842 = vmatprep.subr.mxu0 %v18242_v41  ;;  %1002 = vmatprep.subr.mxu1 %v18243_v28  ;;  %v18253_v41 = vld [vmem:[#allocation28_spill] sm:$0xff]  ;;  %v18254_v28 = vld [vmem:[#allocation59_spill] sm:$0xff] }
  0xa7   :  { %845 = vmatpush1.msra.mxu0 %v18244_v7  ;;  %1004 = vmatpush1.msra.mxu1 %v18245_v52  ;;  %v18255_v7 = vld [vmem:[#allocation29_spill] sm:$0xff] }
  0xa8   :  { %848 = vmatprep.subr.mxu0 %v18246_v24  ;;  %1006 = vmatprep.subr.mxu1 %v18247_v19  ;;  %v18256_v52 = vld [vmem:[#allocation61_spill] sm:$0xff]  ;;  %v18257_v24 = vld [vmem:[#allocation30_spill] sm:$0xff]  ;;  %v18258_v19 = vld [vmem:[#allocation63_spill] sm:$0xff] }
  0xa9   :  { %851 = vmatpush1.msra.mxu0 %v18248_v12  ;;  %1008 = vmatpush1.msra.mxu1 %v18249_v29  ;;  %v18259_v12 = vld [vmem:[#allocation31_spill] sm:$0xff]  ;;  %v18260_v29 = vld [vmem:[#allocation65_spill] sm:$0xff] }
  0xaa   :  { %854 = vmatprep.subr.mxu0 %v18250_v39  ;;  %1010 = vmatprep.subr.mxu1 %v18251_v21  ;;  %v18261_v39 = vld [vmem:[#allocation32_spill] sm:$0xff]  ;;  %v18262_v21 = vld [vmem:[#allocation67_spill] sm:$0xff] }
  0xab   :  { %857 = vmatpush1.msra.mxu0 %v18252_v49  ;;  %1012 = vmatpush1.msra.mxu1 %v18253_v41  ;;  %v18263_v49 = vld [vmem:[#allocation34_spill] sm:$0xff]  ;;  %v18264_v41 = vld [vmem:[#allocation69_spill] sm:$0xff] }
  0xac   :  { %860 = vmatprep.subr.mxu0 %v18254_v28  ;;  %1014 = vmatprep.subr.mxu1 %v18255_v7  ;;  %v18265_v28 = vld [vmem:[#allocation36_spill] sm:$0xff]  ;;  %v18266_v7 = vld [vmem:[#allocation71_spill] sm:$0xff] }
  0xad   :  { %863 = vmatpush2.msra.mxu0 %v18256_v52  ;;  %1016 = vmatpush1.msra.mxu1 %v18257_v24  ;;  %v18267_v52 = vld [vmem:[#allocation38_spill] sm:$0xff]  ;;  %v18268_v24 = vld [vmem:[#allocation73_spill] sm:$0xff] }
  0xae   :  { %866 = vmatprep.subr.mxu0 %v18258_v19  ;;  %1018 = vmatprep.subr.mxu1 %v18259_v12  ;;  %v18269_v19 = vld [vmem:[#allocation40_spill] sm:$0xff]  ;;  %v18270_v12 = vld [vmem:[#allocation75_spill] sm:$0xff] }
  0xaf   :  { %869 = vmatpush2.msra.mxu0 %v18260_v29  ;;  %1020 = vmatpush1.msra.mxu1 %v18261_v39  ;;  %v18271_v29 = vld [vmem:[#allocation42_spill] sm:$0xff]  ;;  %v18272_v39 = vld [vmem:[#allocation77_spill] sm:$0xff] }
  0xb0   :  { %872 = vmatprep.subr.mxu0 %v18262_v21  ;;  %1022 = vmatprep.subr.mxu1 %v18263_v49  ;;  %v18273_v21 = vld [vmem:[#allocation44_spill] sm:$0xff]  ;;  %v18274_v49 = vld [vmem:[#allocation79_spill] sm:$0xff] }
  0xb1   :  { %875 = vmatpush2.msra.mxu0 %v18264_v41  ;;  %1024 = vmatpush1.msra.mxu1 %v18265_v28  ;;  %v18275_v41 = vld [vmem:[#allocation46_spill] sm:$0xff]  ;;  %v18276_v28 = vld [vmem:[#allocation81_spill] sm:$0xff] }
  0xb2   :  { %878 = vmatprep.subr.mxu0 %v18266_v7  ;;  %1026 = vmatprep.subr.mxu1 %v18267_v52  ;;  %v18277_v7 = vld [vmem:[#allocation48_spill] sm:$0xff]  ;;  %v18278_v52 = vld [vmem:[#allocation83_spill] sm:$0xff] }
  0xb3   :  { %881 = vmatpush2.msra.mxu0 %v18268_v24  ;;  %1028 = vmatpush1.msra.mxu1 %v18269_v19  ;;  %v18279_v24 = vld [vmem:[#allocation50_spill] sm:$0xff]  ;;  %v18280_v19 = vld [vmem:[#allocation85_spill] sm:$0xff] }
  0xb4   :  { %884 = vmatprep.subr.mxu0 %v18270_v12  ;;  %1030 = vmatprep.subr.mxu1 %v18271_v29  ;;  %v18281_v12 = vld [vmem:[#allocation52_spill] sm:$0xff]  ;;  %v18282_v29 = vld [vmem:[#allocation87_spill] sm:$0xff] }
  0xb5   :  { %887 = vmatpush2.msra.mxu0 %v18272_v39  ;;  %1032 = vmatpush2.msra.mxu1 %v18273_v21  ;;  %v18283_v39 = vld [vmem:[#allocation54_spill] sm:$0xff]  ;;  %v18284_v21 = vld [vmem:[#allocation89_spill] sm:$0xff] }
  0xb6   :  { %890 = vmatprep.subr.mxu0 %v18274_v49  ;;  %1034 = vmatprep.subr.mxu1 %v18275_v41  ;;  %v18285_v49 = vld [vmem:[#allocation56_spill] sm:$0xff]  ;;  %v18286_v41 = vld [vmem:[#allocation90_spill] sm:$0xff] }
  0xb7   :  { %893 = vmatpush2.msra.mxu0 %v18276_v28  ;;  %1036 = vmatpush2.msra.mxu1 %v18277_v7  ;;  %v18287_v28 = vld [vmem:[#allocation58_spill] sm:$0xff]  ;;  %v18288_v7 = vld [vmem:[#allocation91_spill] sm:$0xff] }
  0xb8   :  { %896 = vmatprep.subr.mxu0 %v18278_v52  ;;  %1038 = vmatprep.subr.mxu1 %v18279_v24  ;;  %v18289_v52 = vld [vmem:[#allocation60_spill] sm:$0xff]  ;;  %v18290_v24 = vld [vmem:[#allocation93_spill] sm:$0xff] }
  0xb9   :  { %899 = vmatpush2.msra.mxu0 %v18280_v19  ;;  %1040 = vmatpush2.msra.mxu1 %v18281_v12  ;;  %v18291_v19 = vld [vmem:[#allocation62_spill] sm:$0xff] }
  0xba   :  { %902 = vmatprep.subr.mxu0 %v18282_v29  ;;  %1042 = vmatprep.subr.mxu1 %v18283_v39  ;;  %v18292_v29 = vld [vmem:[#allocation64_spill] sm:$0xff]  ;;  %v18293_v39 = vld [vmem:[#allocation97_spill] sm:$0xff] }
  0xbb   :  { %905 = vmatpush2.msra.mxu0 %v18284_v21  ;;  %1044 = vmatpush2.msra.mxu1 %v18285_v49  ;;  %v18294_v21 = vld [vmem:[#allocation66_spill] sm:$0xff] }
  0xbc   :  { %908 = vmatprep.subr.mxu0 %v18286_v41  ;;  %1046 = vmatprep.subr.mxu1 %v18287_v28  ;;  %v18295_v41 = vld [vmem:[#allocation68_spill] sm:$0xff] }
  0xbd   :  { %911 = vmatpush2.msra.mxu0 %v18288_v7  ;;  %1048 = vmatpush2.msra.mxu1 %v18289_v52  ;;  %v18296_v7 = vld [vmem:[#allocation70_spill] sm:$0xff] }
  0xbe   :  { %914 = vmatprep.subr.mxu0 %v18290_v24  ;;  %1050 = vmatprep.subr.mxu1 %v18291_v19  ;;  %v18297_v24 = vld [vmem:[#allocation72_spill] sm:$0xff] }
  0xbf   :  { %917 = vmatpush2.msra.mxu0 %v13722_v50  ;;  %1052 = vmatpush2.msra.mxu1 %v18292_v29  ;;  %v18298_v50 = vld [vmem:[#allocation74_spill] sm:$0xff] }
  0xc0   :  { %920 = vmatprep.subr.mxu0 %v18293_v39  ;;  %1054 = vmatprep.subr.mxu1 %v18294_v21  ;;  %v18299_v39 = vld [vmem:[#allocation76_spill] sm:$0xff] }
  0xc1   :  { %923 = vmatpush2.msra.mxu0 %v13748_v36  ;;  %1056 = vmatpush2.msra.mxu1 %v18295_v41  ;;  %v18300_v36 = vld [vmem:[#allocation78_spill] sm:$0xff] }
  0xc2   :  { %926 = vmatprep.subr.mxu0 %v13766_v46  ;;  %1058 = vmatprep.subr.mxu1 %v18296_v7  ;;  %v18301_v46 = vld [vmem:[#allocation80_spill] sm:$0xff] }
  0xc3   :  { %929 = vmatpush2.msra.mxu0 %v13777_v47  ;;  %1060 = vmatpush2.msra.mxu1 %v18297_v24  ;;  %v18302_v47 = vld [vmem:[#allocation82_spill] sm:$0xff] }
  0xc4   :  { %932 = vmatprep.subr.mxu0 %v13789_v20  ;;  %1062 = vmatprep.subr.mxu1 %v18298_v50  ;;  %v18303_v20 = vld [vmem:[#allocation84_spill] sm:$0xff] }
  0xc5   :  { %935 = vmatpush2.msra.mxu0 %v13802_v27  ;;  %1064 = vmatpush2.msra.mxu1 %v18299_v39  ;;  %v18304_v27 = vld [vmem:[#allocation86_spill] sm:$0xff] }
  0xc6   :  { %938 = vmatprep.subr.mxu0 %v13813_v30  ;;  %1066 = vmatprep.subr.mxu1 %v18300_v36  ;;  %v18305_v30 = vld [vmem:[#allocation88_spill] sm:$0xff] }
  0xc7   :  { %941 = vmatpush2.msra.mxu0 %v13822_v13  ;;  %1068 = vmatpush2.msra.mxu1 %v18301_v46 }
  0xc8   :  { %944 = vmatprep.subr.mxu0 %v13839_v1  ;;  %1070 = vmatprep.subr.mxu1 %v18302_v47  ;;  %v18306_v1 = vand.u32 4294901760, %v13015_v18  ;;  %v18313_v18 = vand.u32 4294901760, %v13057_v35  ;;  %v18319_v35 = vand.u32 4294901760, %v13122_v0  ;;  %v18323_v0 = vand.u32 4294901760, %v13170_v57  ;;  %v18339_v57 = vld [vmem:[#allocation20_spill] sm:$0xff] }
  0xc9   :  { %947 = vmatpush2.msra.mxu0 %v13848_v53  ;;  %1072 = vmatpush2.msra.mxu1 %v18303_v20  ;;  %v18307_v53 = vand.u32 4294901760, %v13028_v23  ;;  %v18308_v20 = vld [vmem:[#allocation92_spill] sm:$0xff]  ;;  %v18314_v23 = vand.u32 4294901760, %v13070_v40  ;;  %v18320_v40 = vand.u32 4294901760, %v13133_v8  ;;  %v18333_v8 = vld [vmem:[#allocation18_spill] sm:$0xff] }
  0xca   :  { %950 = vmatprep.subr.mxu0 %v13861_v33  ;;  %1074 = vmatprep.subr.mxu1 %v18304_v27  ;;  %v18309_v27 = vand.u32 4294901760, %v13034_v25  ;;  %v18315_v25 = vand.u32 4294901760, %v13084_v45  ;;  %v18321_v45 = vand.u32 4294901760, %v13144_v42  ;;  %v18336_v42 = vld [vmem:[#allocation19_spill] sm:$0xff] }
  0xcb   :  { %953 = vmatpush2.msra.mxu0 %v13869_v62  ;;  %1076 = vmatpush2.msra.mxu1 %v18305_v30  ;;  %v18310_v62 = vld [vmem:[#allocation94_spill] sm:$0xff]  ;;  %v18311_v30 = vand.u32 4294901760, %v13048_v31  ;;  %v18317_v31 = vand.u32 4294901760, %v13110_v59  ;;  %v18322_v59 = vand.u32 4294901760, %v13156_v48  ;;  %v18337_v48 = vld [vmem:[#allocation41_spill] sm:$0xff] }
  0xcc   :  { %959 = vmatmul.mubr.f32.vlgmr.msra.gmra.mxu0 %v13809_v32  ;;  %1078 = vmatprep.subr.mxu1 %v13678_v43  ;;  %v18312_v32 = vld [vmem:[#allocation96_spill] sm:$0xff] }
  0xcd   :  { %1109 = vmatprep.subr.mxu0 %v18306_v1  ;;  %1080 = vmatpush2.msra.mxu1 %v13689_v37  ;;  %v18345_v1 = vld [vmem:[#allocation22_spill] sm:$0xff] }
  0xce   :  { %1113 = vmatpush1.msra.mxu0 %v18307_v53  ;;  %1082 = vmatprep.subr.mxu1 %v18308_v20 }
  0xcf   :  { %1117 = vmatprep.subr.mxu0 %v18309_v27  ;;  %1084 = vmatpush2.msra.mxu1 %v18310_v62  ;;  %v18316_v27 = vld [vmem:[#allocation108_spill] sm:$0xff] }
  0xd0   :  { %1121 = vmatpush1.msra.mxu0 %v18311_v30  ;;  %1086 = vmatprep.subr.mxu1 %v18312_v32  ;;  %v18318_v30 = vld [vmem:[#allocation109_spill] sm:$0xff] }
  0xd1   :  { %1125 = vmatprep.subr.mxu0 %v18313_v18  ;;  %1088 = vmatpush2.msra.mxu1 %v13744_v14  ;;  %v18352_v18 = vld [vmem:[#allocation51_spill] sm:$0xff] }
  0xd2   :  { %1129 = vmatpush1.msra.mxu0 %v18314_v23  ;;  %1090 = vmatprep.subr.mxu1 %v13757_v2  ;;  %v18353_v23 = vand.u32 4294901760, %v18352_v18  ;;  %v18387_v18 = vld [vmem:[#allocation40_spill] sm:$0xff] }
  0xd3   :  { %1133 = vmatprep.subr.mxu0 %v18315_v25  ;;  %1092 = vmatpush2.msra.mxu1 %v13773_v38  ;;  %v18354_v25 = vld [vmem:[#allocation25_spill] sm:$0xff] }
  0xd4   :  { %1096 = vmatprep.mubr.f32.mxu1 %v18316_v27  ;;  %1137 = vmatpush1.msra.mxu0 %v18317_v31  ;;  %v18355_v31 = vld [vmem:[#allocation53_spill] sm:$0xff] }
  0xd5   :  { %1100 = vmatmul.mubr.f32.vlgmr.msra.gmra.mxu1 %v18318_v30  ;;  %1141 = vmatprep.subr.mxu0 %v18319_v35  ;;  %v18356_v35 = vand.u32 4294901760, %v18355_v31  ;;  %v18390_v31 = vld [vmem:[#allocation42_spill] sm:$0xff] }
  0xd6   :  { %1372 = vmatprep.subr.mxu1 %v12995_v3  ;;  %1145 = vmatpush1.msra.mxu0 %v18320_v40  ;;  %v18324_v3 = vand.u32 4294901760, %v13182_v6  ;;  %v18357_v40 = vld [vmem:[#allocation26_spill] sm:$0xff] }
  0xd7   :  { %1374 = vmatpush1.msra.mxu1 %v12997_v4  ;;  %1149 = vmatprep.subr.mxu0 %v18321_v45  ;;  %v18325_v4 = vand.u32 4294901760, %v13203_v54  ;;  %v18338_v54 = vand.u32 4294901760, %v18337_v48  ;;  %v18358_v45 = vld [vmem:[#allocation55_spill] sm:$0xff]  ;;  %v18466_v30 = vld [vmem:[#allocation114_spill] sm:$0xff] }
  0xd8   :  { %1376 = vmatprep.subr.mxu1 %v12999_v5  ;;  %1153 = vmatpush1.msra.mxu0 %v18322_v59  ;;  %v18326_v5 = vand.u32 4294901760, %v13216_v63  ;;  %v18340_v63 = vld [vmem:[#allocation43_spill] sm:$0xff]  ;;  %v18359_v59 = vand.u32 4294901760, %v18358_v45  ;;  %v18467_v27 = vand.u32 4294901760, %v18466_v30 }
  0xd9   :  { %1378 = vmatpush1.msra.mxu1 %v13001_v9  ;;  %1157 = vmatprep.subr.mxu0 %v18323_v0  ;;  %v18327_v9 = vand.u32 4294901760, %v13234_v55  ;;  %v18341_v6 = vand.u32 4294901760, %v18340_v63  ;;  %v18342_v55 = vld [vmem:[#allocation21_spill] sm:$0xff]  ;;  %v18360_v0 = vld [vmem:[#allocation27_spill] sm:$0xff] }
  0xda   :  { %1380 = vmatprep.subr.mxu1 %v13003_v10  ;;  %1161 = vmatpush1.msra.mxu0 %v18324_v3  ;;  %v18328_v10 = vand.u32 4294901760, %v13247_v58  ;;  %v18343_v58 = vld [vmem:[#allocation45_spill] sm:$0xff]  ;;  %v18474_v30 = vld [vmem:[#allocation103_spill] sm:$0xff] }
  0xdb   :  { %1382 = vmatpush1.msra.mxu1 %v13005_v11  ;;  %1165 = vmatprep.subr.mxu0 %v18325_v4  ;;  %v18329_v11 = vand.u32 4294901760, %v13259_v60  ;;  %v18344_v53 = vand.u32 4294901760, %v18343_v58  ;;  %v18361_v3 = vld [vmem:[#allocation57_spill] sm:$0xff] }
  0xdc   :  { %1384 = vmatprep.subr.mxu1 %v13008_v15  ;;  %1169 = vmatpush1.msra.mxu0 %v18326_v5  ;;  %v18330_v15 = vand.u32 4294901760, %v18228_v34  ;;  %v18362_v4 = vand.u32 4294901760, %v18361_v3  ;;  %v18363_v5 = vld [vmem:[#allocation28_spill] sm:$0xff] }
  0xdd   :  { %1386 = vmatpush1.msra.mxu1 %v13010_v16  ;;  %1173 = vmatprep.subr.mxu0 %v18327_v9  ;;  %v18331_v16 = vand.u32 4294901760, %v18230_v51  ;;  %v18349_v51 = vld [vmem:[#allocation49_spill] sm:$0xff]  ;;  %v18364_v9 = vld [vmem:[#allocation59_spill] sm:$0xff] }
  0xde   :  { %1388 = vmatprep.subr.mxu1 %v13012_v17  ;;  %1177 = vmatpush1.msra.mxu0 %v18328_v10  ;;  %v18332_v17 = vand.u32 4294901760, %v18232_v61  ;;  %v18351_v61 = vld [vmem:[#allocation24_spill] sm:$0xff]  ;;  %v18365_v10 = vand.u32 4294901760, %v18364_v9 }
  0xdf   :  { %1390 = vmatpush1.msra.mxu1 %v13025_v22  ;;  %1181 = vmatprep.subr.mxu0 %v18329_v11  ;;  %v18334_v22 = vld [vmem:[#allocation39_spill] sm:$0xff]  ;;  %v18366_v11 = vld [vmem:[#allocation29_spill] sm:$0xff] }
  0xe0   :  { %1392 = vmatprep.subr.mxu1 %v18227_v26  ;;  %1185 = vmatpush1.msra.mxu0 %v18330_v15  ;;  %v18335_v60 = vand.u32 4294901760, %v18334_v22  ;;  %v18346_v26 = vld [vmem:[#allocation47_spill] sm:$0xff]  ;;  %v18367_v15 = vld [vmem:[#allocation61_spill] sm:$0xff] }
  0xe1   :  { %1394 = vmatpush1.msra.mxu1 %v18229_v56  ;;  %1189 = vmatprep.subr.mxu0 %v18331_v16  ;;  %v18347_v34 = vand.u32 4294901760, %v18346_v26  ;;  %v18348_v56 = vld [vmem:[#allocation23_spill] sm:$0xff]  ;;  %v18368_v16 = vand.u32 4294901760, %v18367_v15 }
  0xe2   :  { %1396 = vmatprep.subr.mxu1 %v18231_v44  ;;  %1193 = vmatpush1.msra.mxu0 %v18332_v17  ;;  %v18350_v44 = vand.u32 4294901760, %v18349_v51  ;;  %v18369_v17 = vld [vmem:[#allocation30_spill] sm:$0xff] }
  0xe3   :  { %1398 = vmatpush1.msra.mxu1 %v18333_v8  ;;  %1197 = vmatprep.subr.mxu0 %v18335_v60  ;;  %v18370_v8 = vld [vmem:[#allocation63_spill] sm:$0xff] }
  0xe4   :  { %1400 = vmatprep.subr.mxu1 %v18336_v42  ;;  %1201 = vmatpush1.msra.mxu0 %v18338_v54  ;;  %v18371_v22 = vand.u32 4294901760, %v18370_v8  ;;  %v18372_v60 = vld [vmem:[#allocation31_spill] sm:$0xff]  ;;  %v18373_v42 = vld [vmem:[#allocation65_spill] sm:$0xff]  ;;  %v18375_v54 = vld [vmem:[#allocation32_spill] sm:$0xff] }
  0xe5   :  { %1402 = vmatpush1.msra.mxu1 %v18339_v57  ;;  %1205 = vmatprep.subr.mxu0 %v18341_v6  ;;  %v18374_v48 = vand.u32 4294901760, %v18373_v42  ;;  %v18376_v57 = vld [vmem:[#allocation67_spill] sm:$0xff]  ;;  %v18378_v6 = vld [vmem:[#allocation34_spill] sm:$0xff] }
  0xe6   :  { %1404 = vmatprep.subr.mxu1 %v18342_v55  ;;  %1209 = vmatpush1.msra.mxu0 %v18344_v53  ;;  %v18377_v63 = vand.u32 4294901760, %v18376_v57  ;;  %v18379_v55 = vld [vmem:[#allocation69_spill] sm:$0xff]  ;;  %v18381_v53 = vld [vmem:[#allocation36_spill] sm:$0xff]  ;;  %v136_v51 = vld [vmem:[#allocation5 + $0x1f0] sm:$0xff] }
  0xe7   :  { %1406 = vmatpush1.msra.mxu1 %v18345_v1  ;;  %1213 = vmatprep.subr.mxu0 %v18347_v34  ;;  %v18380_v58 = vand.u32 4294901760, %v18379_v55  ;;  %v18382_v1 = vld [vmem:[#allocation71_spill] sm:$0xff]  ;;  %v18384_v34 = vld [vmem:[#allocation38_spill] sm:$0xff]  ;;  %v14135_v3 = vand.u32 4294901760, %v136_v51  ;;  %v18405_v57 = vld [vmem:[#allocation85_spill] sm:$0xff] }
  0xe8   :  { %1408 = vmatprep.subr.mxu1 %v18348_v56  ;;  %1217 = vmatpush1.msra.mxu0 %v18350_v44  ;;  %v18383_v26 = vand.u32 4294901760, %v18382_v1  ;;  %v137_v56 = vld [vmem:[#allocation5 + $0x1f8] sm:$0xff]  ;;  %v18385_v44 = vld [vmem:[#allocation73_spill] sm:$0xff] }
  0xe9   :  { %1410 = vmatpush1.msra.mxu1 %v18351_v61  ;;  %1221 = vmatprep.subr.mxu0 %v18353_v23  ;;  %v18386_v61 = vand.u32 4294901760, %v18385_v44  ;;  %v18388_v23 = vld [vmem:[#allocation75_spill] sm:$0xff] }
  0xea   :  { %1412 = vmatprep.subr.mxu1 %v18354_v25  ;;  %1225 = vmatpush1.msra.mxu0 %v18356_v35  ;;  %v18389_v25 = vand.u32 4294901760, %v18388_v23  ;;  %v133_v35 = vld [vmem:[#allocation5 + $0x1d8] sm:$0xff] }
  0xeb   :  { %1414 = vmatpush1.msra.mxu1 %v18357_v40  ;;  %1229 = vmatprep.subr.mxu0 %v18359_v59  ;;  %v18391_v40 = vld [vmem:[#allocation77_spill] sm:$0xff]  ;;  %v18393_v59 = vld [vmem:[#allocation44_spill] sm:$0xff] }
  0xec   :  { %1416 = vmatprep.subr.mxu1 %v18360_v0  ;;  %1233 = vmatpush1.msra.mxu0 %v18362_v4  ;;  %v18392_v45 = vand.u32 4294901760, %v18391_v40  ;;  %v14133_v0 = vand.u32 4294901760, %v137_v56  ;;  %v132_v4 = vld [vmem:[#allocation5 + $0x1d0] sm:$0xff]  ;;  %v129_v8 = vld [vmem:[#allocation5 + $0x1b8] sm:$0xff] }
  0xed   :  { %1418 = vmatpush1.msra.mxu1 %v18363_v5  ;;  %1237 = vmatprep.subr.mxu0 %v18365_v10  ;;  %v18394_v5 = vld [vmem:[#allocation79_spill] sm:$0xff]  ;;  %v18396_v10 = vld [vmem:[#allocation46_spill] sm:$0xff] }
  0xee   :  { %1420 = vmatprep.subr.mxu1 %v18366_v11  ;;  %1241 = vmatpush2.msra.mxu0 %v18368_v16  ;;  %v18395_v9 = vand.u32 4294901760, %v18394_v5  ;;  %v18397_v11 = vld [vmem:[#allocation81_spill] sm:$0xff]  ;;  %v18399_v16 = vld [vmem:[#allocation48_spill] sm:$0xff] }
  0xef   :  { %1422 = vmatpush1.msra.mxu1 %v18369_v17  ;;  %1245 = vmatprep.subr.mxu0 %v18371_v22  ;;  %v18398_v15 = vand.u32 4294901760, %v18397_v11  ;;  %v14143_v17 = vand.u32 4294901760, %v133_v35  ;;  %v128_v22 = vld [vmem:[#allocation5 + $0x1b0] sm:$0xff]  ;;  %v125_v55 = vld [vmem:[#allocation5 + $0x198] sm:$0xff] }
  0xf0   :  { %1424 = vmatprep.subr.mxu1 %v18372_v60  ;;  %1249 = vmatpush2.msra.mxu0 %v18374_v48  ;;  %v18401_v60 = vld [vmem:[#allocation83_spill] sm:$0xff]  ;;  %v18403_v48 = vld [vmem:[#allocation50_spill] sm:$0xff]  ;;  %v14164_v44 = vand.u32 4294901760, %v128_v22 }
  0xf1   :  { %1426 = vmatpush1.msra.mxu1 %v18375_v54  ;;  %1253 = vmatprep.subr.mxu0 %v18377_v63  ;;  %18400 = vst [vmem:[#allocation15_spill] sm:$0xff] %v14143_v17  ;;  %v18402_v42 = vand.u32 4294901760, %v18401_v60  ;;  %v14148_v54 = vand.u32 4294901760, %v132_v4  ;;  %v18406_v63 = vand.u32 4294901760, %v18405_v57  ;;  %v121_v40 = vld [vmem:[#allocation5 + $0x178] sm:$0xff]  ;;  %v116_v11 = vld [vmem:[#allocation5 + $0x150] sm:$0xff] }
  0xf2   :  { %1428 = vmatprep.subr.mxu1 %v18378_v6  ;;  %1257 = vmatpush2.msra.mxu0 %v18380_v58  ;;  %v14154_v6 = vsub.f32 %v136_v51, %v14135_v3  ;;  %v14157_v58 = vsub.f32 %v137_v56, %v14133_v0  ;;  %18411 = vst [vmem:[#allocation35_spill] sm:$0xff] %v14164_v44  ;;  %v18414_v56 = vld [vmem:[#allocation90_spill] sm:$0xff]  ;;  %v14199_v60 = vand.u32 4294901760, %v121_v40 }
  0xf3   :  { %1430 = vmatpush1.msra.mxu1 %v18381_v53  ;;  %1261 = vmatprep.subr.mxu0 %v18383_v26  ;;  %18404 = vst [vmem:[#allocation33_spill] sm:$0xff] %v14148_v54  ;;  %v18407_v53 = vld [vmem:[#allocation87_spill] sm:$0xff]  ;;  %v18409_v26 = vld [vmem:[#allocation54_spill] sm:$0xff]  ;;  %v18415_v51 = vand.u32 4294901760, %v18414_v56 }
  0xf4   :  { %1432 = vmatprep.subr.mxu1 %v18384_v34  ;;  %1265 = vmatpush2.msra.mxu0 %v18386_v61  ;;  %v18408_v1 = vand.u32 4294901760, %v18407_v53  ;;  %v14162_v34 = vand.u32 4294901760, %v129_v8  ;;  %v124_v61 = vld [vmem:[#allocation5 + $0x190] sm:$0xff]  ;;  %18426 = vst [vmem:[#allocation58_spill] sm:$0xff] %v14199_v60 }
  0xf5   :  { %1434 = vmatpush1.msra.mxu1 %v18387_v18  ;;  %1269 = vmatprep.subr.mxu0 %v18389_v25  ;;  %v18412_v18 = vld [vmem:[#allocation89_spill] sm:$0xff]  ;;  %v14176_v25 = vsub.f32 %v132_v4, %v14148_v54  ;;  %v14191_v4 = vsub.f32 %v128_v22, %v14164_v44  ;;  %v18431_v53 = vld [vmem:[#allocation98_spill] sm:$0xff]  ;;  %v18435_v56 = vld [vmem:[#allocation99_spill] sm:$0xff] }
  0xf6   :  { %1436 = vmatprep.subr.mxu1 %v18390_v31  ;;  %1273 = vmatpush2.msra.mxu0 %v18392_v45  ;;  %18410 = vst [vmem:[#allocation16_spill] sm:$0xff] %v14162_v34  ;;  %v18413_v23 = vand.u32 4294901760, %v18412_v18  ;;  %v14178_v31 = vand.u32 4294901760, %v125_v55  ;;  %v120_v45 = vld [vmem:[#allocation5 + $0x170] sm:$0xff]  ;;  %v113_v18 = vld [vmem:[#allocation5 + $0x138] sm:$0xff] }
  0xf7   :  { %1438 = vmatpush2.msra.mxu1 %v18393_v59  ;;  %1277 = vmatprep.subr.mxu0 %v18395_v9  ;;  %v18417_v59 = vld [vmem:[#allocation91_spill] sm:$0xff]  ;;  %v17659_v9 = vand.u32 4294901760, %v14154_v6  ;;  %18422 = vst [vmem:[#allocation52_spill] sm:$0xff] %v14191_v4 }
  0xf8   :  { %1440 = vmatprep.subr.mxu1 %v18396_v10  ;;  %1281 = vmatpush2.msra.mxu0 %v18398_v15  ;;  %18416 = vst [vmem:[#allocation17_spill] sm:$0xff] %v14178_v31  ;;  %v18418_v5 = vand.u32 4294901760, %v18417_v59  ;;  %v18420_v10 = vld [vmem:[#allocation93_spill] sm:$0xff]  ;;  %v14194_v15 = vsub.f32 %v129_v8, %v14162_v34  ;;  %v17657_v8 = vand.u32 4294901760, %v14176_v25  ;;  %v14209_v22 = vsub.f32 %v125_v55, %v14178_v31 }
  0xf9   :  { %1442 = vmatpush2.msra.mxu1 %v18399_v16  ;;  %1285 = vmatprep.subr.mxu0 %v18402_v42  ;;  %v18424_v16 = vld [vmem:[#allocation95_spill] sm:$0xff]  ;;  %v14201_v42 = vand.u32 4294901760, %v120_v45  ;;  %v14227_v55 = vand.u32 4294901760, %v116_v11  ;;  %v17661_v59 = vand.u32 4294901760, %v14191_v4 }
  0xfa   :  { %1444 = vmatprep.subr.mxu1 %v18403_v48  ;;  %1289 = vmatpush2.msra.mxu0 %v18406_v63  ;;  %18423 = vst [vmem:[#allocation56_spill] sm:$0xff] %v14194_v15  ;;  %v117_v48 = vld [vmem:[#allocation5 + $0x158] sm:$0xff]  ;;  %18430 = vst [vmem:[#allocation62_spill] sm:$0xff] %v14209_v22 }
  0xfb   :  { %1446 = vmatpush2.msra.mxu1 %v18281_v12  ;;  %1293 = vmatprep.subr.mxu0 %v18408_v1  ;;  %v14170_v12 = vsub.f32 %v133_v35, %v14143_v17  ;;  %v17662_v35 = vand.u32 4294901760, %v14157_v58  ;;  %18427 = vst [vmem:[#allocation60_spill] sm:$0xff] %v14201_v42  ;;  %v18432_v1 = vand.u32 4294901760, %v18431_v53  ;;  %18434 = vst [vmem:[#allocation66_spill] sm:$0xff] %v14227_v55 }
  0xfc   :  { %1448 = vmatprep.subr.mxu1 %v18409_v26  ;;  %1297 = vmatpush2.msra.mxu0 %v18413_v23  ;;  %v112_v23 = vld [vmem:[#allocation5 + $0x130] sm:$0xff] }
  0xfd   :  { %1450 = vmatpush2.msra.mxu1 %v18285_v49  ;;  %1301 = vmatprep.subr.mxu0 %v18415_v51  ;;  %v14183_v49 = vand.u32 4294901760, %v124_v61  ;;  %v17658_v57 = vand.u32 4294901760, %v14170_v12  ;;  %v14220_v26 = vsub.f32 %v14157_v58, %v17662_v35  ;;  %v18436_v51 = vand.u32 4294901760, %v18435_v56  ;;  %v18454_v35 = vld [vmem:[#allocation110_spill] sm:$0xff] }
  0xfe   :  { %1452 = vmatprep.subr.mxu1 %v18287_v28  ;;  %1305 = vmatpush2.msra.mxu0 %v18418_v5  ;;  %v18421_v28 = vand.u32 4294901760, %v18420_v10  ;;  %v18438_v5 = vld [vmem:[#allocation100_spill] sm:$0xff]  ;;  %v14260_v53 = vand.u32 4294901760, %v112_v23  ;;  %v17663_v56 = vand.u32 4294901760, %v14209_v22 }
  0xff   :  { %1454 = vmatpush2.msra.mxu1 %v18289_v52  ;;  %18419 = vst [vmem:[#allocation37_spill] sm:$0xff] %v14183_v49  ;;  %v18425_v52 = vand.u32 4294901760, %v18424_v16  ;;  %v18439_v10 = vand.u32 4294901760, %v18438_v5  ;;  %v14245_v16 = vsub.f32 %v14170_v12, %v17658_v57  ;;  %v104_v57 = vld [vmem:[#allocation5 + $0xf0] sm:$0xff] }
 0x100   :  { %1309 = vmatprep.subr.mxu0 %v18421_v28  ;;  %1456 = vmatprep.subr.mxu1 %v18291_v19  ;;  %v18428_v19 = vld [vmem:[#allocation97_spill] sm:$0xff]  ;;  %v14240_v28 = vsub.f32 %v120_v45, %v14201_v42  ;;  %v14258_v45 = vand.u32 4294901760, %v113_v18  ;;  %18445 = vst [vmem:[#allocation76_spill] sm:$0xff] %v14260_v53  ;;  %v18458_v5 = vld [vmem:[#allocation111_spill] sm:$0xff] }
 0x101   :  { %1313 = vmatpush2.msra.mxu0 %v18425_v52  ;;  %1458 = vmatpush2.msra.mxu1 %v18292_v29  ;;  %v18429_v63 = vand.u32 4294901760, %v18428_v19  ;;  %v14215_v29 = vsub.f32 %v124_v61, %v14183_v49  ;;  %v17660_v61 = vand.u32 4294901760, %v14194_v15  ;;  %v14248_v52 = vsub.f32 %v121_v40, %v14199_v60  ;;  %v18442_v19 = vld [vmem:[#allocation102_spill] sm:$0xff] }
 0x102   :  { %1460 = vmatprep.subr.mxu1 %v18294_v21  ;;  %v14225_v21 = vsub.f32 %v14154_v6, %v17659_v9  ;;  %18440 = vst [vmem:[#allocation70_spill] sm:$0xff] %v14240_v28  ;;  %18444 = vst [vmem:[#allocation74_spill] sm:$0xff] %v14258_v45 }
 0x103   :  { %1317 = vmatprep.subr.mxu0 %v18429_v63  ;;  %1462 = vmatpush2.msra.mxu1 %v18295_v41  ;;  %18433 = vst [vmem:[#allocation64_spill] sm:$0xff] %v14215_v29  ;;  %v14232_v41 = vand.u32 4294901760, %v117_v48  ;;  %18441 = vst [vmem:[#allocation72_spill] sm:$0xff] %v14248_v52  ;;  %v18443_v63 = vand.u32 4294901760, %v18442_v19  ;;  %v17664_v19 = vand.u32 4294901760, %v14215_v29 }
 0x104   :  { %1321 = vmatpush2.msra.mxu0 %v18432_v1  ;;  %1464 = vmatprep.subr.mxu1 %v18296_v7  ;;  %v108_v7 = vld [vmem:[#allocation5 + $0x110] sm:$0xff]  ;;  %v109_v1 = vld [vmem:[#allocation5 + $0x118] sm:$0xff] }
 0x105   :  { %1325 = vmatprep.subr.mxu0 %v18436_v51  ;;  %18437 = vst [vmem:[#allocation68_spill] sm:$0xff] %v14232_v41  ;;  %1466 = vmatpush2.msra.mxu1 %v18297_v24  ;;  %v14256_v24 = vsub.f32 %v14176_v25, %v17657_v8  ;;  %v18446_v51 = vld [vmem:[#allocation105_spill] sm:$0xff]  ;;  %v14288_v9 = vsub.f32 %v117_v48, %v14232_v41  ;;  %v18469_v48 = vand.u32 4294901760, %v14248_v52 }
 0x106   :  { %1329 = vmatpush2.msra.mxu0 %v18439_v10  ;;  %1468 = vmatprep.subr.mxu1 %v18298_v50  ;;  %v18447_v40 = vand.u32 4294901760, %v18446_v51  ;;  %v14269_v10 = vsub.f32 %v116_v11, %v14227_v55  ;;  %v14278_v51 = vsub.f32 %v14194_v15, %v17660_v61  ;;  %v105_v11 = vld [vmem:[#allocation5 + $0xf8] sm:$0xff]  ;;  %v18455_v50 = vand.u32 4294901760, %v18454_v35  ;;  %v18464_v61 = vld [vmem:[#allocation86_spill] sm:$0xff] }
 0x107   :  { %1333 = vmatprep.subr.mxu0 %v18443_v63  ;;  %1470 = vmatpush2.msra.mxu1 %v18299_v39  ;;  %v18449_v63 = vld [vmem:[#allocation107_spill] sm:$0xff]  ;;  %v14283_v39 = vsub.f32 %v14191_v4, %v17661_v59  ;;  %18452 = vst [vmem:[#allocation82_spill] sm:$0xff] %v14288_v9  ;;  %v18459_v59 = vand.u32 4294901760, %v18458_v5  ;;  %v18460_v35 = vld [vmem:[#allocation84_spill] sm:$0xff] }
 0x108   :  { %1337 = vmatpush2.msra.mxu0 %v18447_v40  ;;  %18448 = vst [vmem:[#allocation78_spill] sm:$0xff] %v14269_v10  ;;  %v18450_v8 = vand.u32 4294901760, %v18449_v63  ;;  %1472 = vmatprep.subr.mxu1 %v18300_v36  ;;  %v14285_v40 = vand.u32 4294901760, %v108_v7  ;;  %v14294_v63 = vand.u32 4294901760, %v109_v1  ;;  %v14311_v36 = vsub.f32 %v113_v18, %v14258_v45 }
 0x109   :  { %1474 = vmatpush2.msra.mxu1 %v18301_v46  ;;  %v14308_v46 = vsub.f32 %v14209_v22, %v17663_v56  ;;  %v101_v56 = vld [vmem:[#allocation5 + $0xd8] sm:$0xff]  ;;  %v18463_v18 = vand.u32 4294901760, %v13861_v33  ;;  %v14341_v33 = vsub.f32 %v14248_v52, %v18469_v48  ;;  %v92_v22 = vld [vmem:[#allocation5 + $0x90] sm:$0xff] }
 0x10a   :  { %1341 = vmatprep.subr.mxu0 %v18450_v8  ;;  %18451 = vst [vmem:[#allocation80_spill] sm:$0xff] %v14285_v40  ;;  %v18453_v8 = vand.u32 4294901760, %v13822_v13  ;;  %1476 = vmatprep.subr.mxu1 %v18302_v47  ;;  %v14303_v13 = vsub.f32 %v112_v23, %v14260_v53  ;;  %18457 = vst [vmem:[#allocation94_spill] sm:$0xff] %v14311_v36  ;;  %v14319_v47 = vsub.f32 %v14215_v29, %v17664_v19  ;;  %v18468_v29 = vld [vmem:[#allocation101_spill] sm:$0xff]  ;;  %v93_v52 = vld [vmem:[#allocation5 + $0x98] sm:$0xff] }
 0x10b   :  { %1478 = vmatpush2.msra.mxu1 %v18460_v35  ;;  %v14321_v23 = vand.u32 4294901760, %v105_v11  ;;  %v14332_v35 = vsub.f32 %v108_v7, %v14285_v40  ;;  %1363 = vmatprep.mubr.f32.mxu0 %v18468_v29  ;;  %v97_v7 = vld [vmem:[#allocation5 + $0xb8] sm:$0xff]  ;;  %v14351_v19 = vsub.f32 %v109_v1, %v14294_v63  ;;  %v14356_v48 = vand.u32 4294901760, %v101_v56 }
 0x10c   :  { %1345 = vmatpush2.msra.mxu0 %v18453_v8  ;;  %18456 = vst [vmem:[#allocation92_spill] sm:$0xff] %v14303_v13  ;;  %v100_v8 = vld [vmem:[#allocation5 + $0xd0] sm:$0xff]  ;;  %1480 = vmatprep.subr.mxu1 %v18464_v61  ;;  %v18470_v61 = vand.u32 4294901760, %v14240_v28 }
 0x10d   :  { %1349 = vmatprep.subr.mxu0 %v18455_v50  ;;  %18461 = vst [vmem:[#allocation96_spill] sm:$0xff] %v14321_v23  ;;  %v14323_v50 = vand.u32 4294901760, %v104_v57  ;;  %18465 = vst [vmem:[#allocation39_spill] sm:$0xff] %v14332_v35  ;;  %v14348_v5 = vand.u32 4294901760, %v100_v8  ;;  %v14372_v15 = vsub.f32 %v105_v11, %v14321_v23  ;;  %v14406_v11 = vand.u32 4294901760, %v92_v22  ;;  %1500 = vmatprep.mubr.f32.mxu1 %v18468_v29 }
 0x10e   :  { %1353 = vmatpush2.msra.mxu0 %v18459_v59  ;;  %v96_v59 = vld [vmem:[#allocation5 + $0xb0] sm:$0xff]  ;;  %18472 = vst [vmem:[#allocation41_spill] sm:$0xff] %v14351_v19  ;;  %18475 = vst [vmem:[#allocation20_spill] sm:$0xff] %v14356_v48 }
 0x10f   :  { %18462 = vst [vmem:[#allocation18_spill] sm:$0xff] %v14323_v50  ;;  %1357 = vmatprep.subr.mxu0 %v18463_v18  ;;  %v14346_v18 = vsub.f32 %v14240_v28, %v18470_v61  ;;  %18471 = vst [vmem:[#allocation19_spill] sm:$0xff] %v14348_v5  ;;  %v14364_v1 = vsub.f32 %v104_v57, %v14323_v50  ;;  %v14381_v57 = vand.u32 4294901760, %v97_v7  ;;  %v14383_v61 = vand.u32 4294901760, %v96_v59 }
 0x110   :  { %1361 = vmatpush2.msra.mxu0 %v18467_v27  ;;  %v18473_v27 = vld [vmem:[#allocation88_spill] sm:$0xff]  ;;  %18478 = vst [vmem:[#allocation21_spill] sm:$0xff] %v14372_v15  ;;  %18485 = vst [vmem:[#allocation23_spill] sm:$0xff] %v14406_v11 }
 0x111   :  { %1482 = vmatpush2.msra.mxu1 %v18473_v27  ;;  %1365 = vmatmul.mubr.f32.vlgmr.msra.gmra.mxu0 %v18474_v30  ;;  %18476 = vst [vmem:[#allocation43_spill] sm:$0xff] %v14364_v1  ;;  %v18477_v27 = vand.u32 4294901760, %v14269_v10  ;;  %18480 = vst [vmem:[#allocation45_spill] sm:$0xff] %v14381_v57 }
 0x112   :  { %1484 = vmatprep.subr.mxu1 %v13678_v43  ;;  %1509 = vmatprep.subr.mxu0 %v14133_v0  ;;  %v18479_v43 = vand.u32 4294901760, %v14288_v9  ;;  %18481 = vst [vmem:[#allocation22_spill] sm:$0xff] %v14383_v61 }
 0x113   :  { %v14369_v4 = vsub.f32 %v14269_v10, %v18477_v27  ;;  %1486 = vmatpush2.msra.mxu1 %v13689_v37  ;;  %1511 = vmatpush1.msra.mxu0 %v14135_v3  ;;  %v14391_v10 = vsub.f32 %v100_v8, %v14348_v5  ;;  %v89_v8 = vld [vmem:[#allocation5 + $0x78] sm:$0xff] }
 0x114   :  { %v14379_v28 = vsub.f32 %v14288_v9, %v18479_v43  ;;  %1488 = vmatprep.subr.mxu1 %v18308_v20  ;;  %1513 = vmatprep.subr.mxu0 %v14143_v17  ;;  %v18483_v9 = vand.u32 4294901760, %v14311_v36  ;;  %v18484_v20 = vand.u32 4294901760, %v14303_v13  ;;  %v88_v17 = vld [vmem:[#allocation5 + $0x70] sm:$0xff]  ;;  %v14409_v43 = vsub.f32 %v101_v56, %v14356_v48 }
 0x115   :  { %18482 = vst [vmem:[#allocation47_spill] sm:$0xff] %v14391_v10  ;;  %1490 = vmatpush2.msra.mxu1 %v18310_v62  ;;  %1515 = vmatpush1.msra.mxu0 %v14148_v54  ;;  %v14422_v56 = vsub.f32 %v96_v59, %v14383_v61  ;;  %v84_v62 = vld [vmem:[#allocation5 + $0x50] sm:$0xff]  ;;  %v14430_v54 = vsub.f32 %v97_v7, %v14381_v57  ;;  %v14439_v59 = vand.u32 4294901760, %v89_v8 }
 0x116   :  { %v14399_v27 = vsub.f32 %v14311_v36, %v18483_v9  ;;  %v14404_v37 = vsub.f32 %v14303_v13, %v18484_v20  ;;  %18486 = vst [vmem:[#allocation49_spill] sm:$0xff] %v14409_v43  ;;  %1492 = vmatprep.subr.mxu1 %v18312_v32  ;;  %1517 = vmatprep.subr.mxu0 %v14162_v34  ;;  %v14414_v9 = vand.u32 4294901760, %v93_v52  ;;  %v18489_v32 = vand.u32 4294901760, %v14332_v35  ;;  %v85_v36 = vld [vmem:[#allocation5 + $0x58] sm:$0xff] }
 0x117   :  { %1494 = vmatpush2.msra.mxu1 %v13744_v14  ;;  %1519 = vmatpush1.msra.mxu0 %v14164_v44  ;;  %18488 = vst [vmem:[#allocation51_spill] sm:$0xff] %v14422_v56  ;;  %18490 = vst [vmem:[#allocation25_spill] sm:$0xff] %v14430_v54  ;;  %v18491_v14 = vand.u32 4294901760, %v14351_v19  ;;  %v14441_v20 = vand.u32 4294901760, %v88_v17  ;;  %v14464_v7 = vand.u32 4294901760, %v84_v62  ;;  %v14490_v44 = vsub.f32 %v89_v8, %v14439_v59 }
 0x118   :  { %18487 = vst [vmem:[#allocation24_spill] sm:$0xff] %v14414_v9  ;;  %v14427_v34 = vsub.f32 %v14332_v35, %v18489_v32  ;;  %1496 = vmatprep.subr.mxu1 %v13757_v2  ;;  %1521 = vmatprep.subr.mxu0 %v14178_v31  ;;  %18492 = vst [vmem:[#allocation53_spill] sm:$0xff] %v14439_v59  ;;  %v14449_v35 = vsub.f32 %v92_v22, %v14406_v11  ;;  %v18495_v31 = vand.u32 4294901760, %v14372_v15  ;;  %v81_v22 = vld [vmem:[#allocation5 + $0x38] sm:$0xff] }
 0x119   :  { %v14437_v13 = vsub.f32 %v14351_v19, %v18491_v14  ;;  %18493 = vst [vmem:[#allocation26_spill] sm:$0xff] %v14441_v20  ;;  %1498 = vmatpush2.msra.mxu1 %v13773_v38  ;;  %1523 = vmatpush1.msra.mxu0 %v14183_v49  ;;  %v18496_v38 = vand.u32 4294901760, %v14364_v1  ;;  %18497 = vst [vmem:[#allocation27_spill] sm:$0xff] %v14464_v7  ;;  %v80_v19 = vld [vmem:[#allocation5 + $0x30] sm:$0xff]  ;;  %v14467_v14 = vsub.f32 %v93_v52, %v14414_v9 }
 0x11a   :  { %18494 = vst [vmem:[#allocation55_spill] sm:$0xff] %v14449_v35  ;;  %1502 = vmatmul.mubr.f32.vlgmr.msra.gmra.mxu1 %v18474_v30  ;;  %v14457_v32 = vsub.f32 %v14372_v15, %v18495_v31  ;;  %1525 = vmatprep.subr.mxu0 %v14199_v60  ;;  %v18499_v49 = vand.u32 4294901760, %v14220_v26  ;;  %v14473_v15 = vand.u32 4294901760, %v85_v36  ;;  %v14482_v60 = vsub.f32 %v88_v17, %v14441_v20  ;;  %v76_v31 = vld [vmem:[#allocation5 + $0x10] sm:$0xff] }
 0x11b   :  { %v14462_v2 = vsub.f32 %v14364_v1, %v18496_v38  ;;  %18498 = vst [vmem:[#allocation57_spill] sm:$0xff] %v14467_v14  ;;  %1527 = vmatpush1.msra.mxu0 %v14201_v42  ;;  %v18501_v1 = vand.u32 4294901760, %v14225_v21  ;;  %18504 = vst [vmem:[#allocation29_spill] sm:$0xff] %v14490_v44  ;;  %v18505_v38 = vand.u32 4294901760, %v14245_v16  ;;  %v18506_v21 = vand.u32 4294901760, %v14409_v43  ;;  %v200_v16 = vld [vmem:[#allocation5 + $0x3f0] sm:$0xff]  ;;  %2038 = vmatprep.mubr.f32.mxu1 %v18468_v29 }
 0x11c   :  { %1658 = vmatprep.subr.mxu1 %v18499_v49  ;;  %18500 = vst [vmem:[#allocation28_spill] sm:$0xff] %v14473_v15  ;;  %18502 = vst [vmem:[#allocation59_spill] sm:$0xff] %v14482_v60  ;;  %v18503_v49 = vand.u32 4294901760, %v14391_v10  ;;  %1529 = vmatprep.subr.mxu0 %v14232_v41  ;;  %v14500_v17 = vand.u32 4294901760, %v81_v22  ;;  %v14502_v52 = vand.u32 4294901760, %v80_v19  ;;  %v18509_v8 = vand.u32 4294901760, %v14256_v24 }
 0x11d   :  { %1664 = vmatpush1.msra.mxu1 %v18501_v1  ;;  %v14498_v1 = vsub.f32 %v14409_v43, %v18506_v21  ;;  %1531 = vmatpush1.msra.mxu0 %v14227_v55  ;;  %v14511_v41 = vsub.f32 %v84_v62, %v14464_v7  ;;  %v18511_v43 = vand.u32 4294901760, %v14278_v51  ;;  %v18513_v24 = vand.u32 4294901760, %v14422_v56  ;;  %v201_v62 = vld [vmem:[#allocation5 + $0x3f8] sm:$0xff]  ;;  %v18656_v29 = vld [vmem:[#allocation37_spill] sm:$0xff] }
 0x11e   :  { %v14487_v26 = vsub.f32 %v14391_v10, %v18503_v49  ;;  %1670 = vmatprep.subr.mxu1 %v18505_v38  ;;  %18507 = vst [vmem:[#allocation61_spill] sm:$0xff] %v14500_v17  ;;  %18508 = vst [vmem:[#allocation30_spill] sm:$0xff] %v14502_v52  ;;  %v77_v49 = vld [vmem:[#allocation5 + $0x18] sm:$0xff]  ;;  %1533 = vmatprep.subr.mxu0 %v14258_v45  ;;  %v18512_v10 = vand.u32 4294901760, %v14430_v54  ;;  %v14527_v38 = vand.u32 4294901760, %v76_v31  ;;  %v18516_v51 = vand.u32 4294901760, %v14283_v39 }
 0x11f   :  { %1676 = vmatpush1.msra.mxu1 %v18509_v8  ;;  %18510 = vst [vmem:[#allocation63_spill] sm:$0xff] %v14511_v41  ;;  %v14525_v8 = vsub.f32 %v14422_v56, %v18513_v24  ;;  %v14530_v21 = vsub.f32 %v85_v36, %v14473_v15  ;;  %1535 = vmatpush1.msra.mxu0 %v14260_v53  ;;  %v18518_v56 = vand.u32 4294901760, %v14308_v46  ;;  %v18520_v39 = vand.u32 4294901760, %v14449_v35 }
 0x120   :  { %1682 = vmatprep.subr.mxu1 %v18511_v43  ;;  %v14520_v55 = vsub.f32 %v14430_v54, %v18512_v10  ;;  %18514 = vst [vmem:[#allocation31_spill] sm:$0xff] %v14527_v38  ;;  %v14536_v43 = vand.u32 4294901760, %v77_v49  ;;  %1537 = vmatprep.subr.mxu0 %v14294_v63  ;;  %v14545_v53 = vsub.f32 %v80_v19, %v14502_v52  ;;  %v197_v10 = vld [vmem:[#allocation5 + $0x3d8] sm:$0xff]  ;;  %v196_v54 = vld [vmem:[#allocation5 + $0x3d0] sm:$0xff]  ;;  %v18522_v46 = vand.u32 4294901760, %v14319_v47 }
 0x121   :  { %18515 = vst [vmem:[#allocation65_spill] sm:$0xff] %v14530_v21  ;;  %1688 = vmatpush1.msra.mxu1 %v18516_v51  ;;  %v14550_v51 = vsub.f32 %v14449_v35, %v18520_v39  ;;  %v14553_v45 = vsub.f32 %v81_v22, %v14500_v17  ;;  %1539 = vmatpush1.msra.mxu0 %v14285_v40  ;;  %v14563_v36 = vand.u32 4294901760, %v201_v62  ;;  %v14565_v24 = vand.u32 4294901760, %v200_v16  ;;  %v193_v40 = vld [vmem:[#allocation5 + $0x3b8] sm:$0xff] }
 0x122   :  { %18517 = vst [vmem:[#allocation32_spill] sm:$0xff] %v14536_v43  ;;  %1694 = vmatprep.subr.mxu1 %v18518_v56  ;;  %18519 = vst [vmem:[#allocation67_spill] sm:$0xff] %v14545_v53  ;;  %v18523_v56 = vand.u32 4294901760, %v14467_v14  ;;  %1541 = vmatprep.subr.mxu0 %v14321_v23  ;;  %v18526_v22 = vand.u32 4294901760, %v14341_v33  ;;  %v18528_v35 = vand.u32 4294901760, %v14346_v18  ;;  %v18529_v39 = vand.u32 4294901760, %v14490_v44 }
 0x123   :  { %18521 = vst [vmem:[#allocation34_spill] sm:$0xff] %v14553_v45  ;;  %1700 = vmatpush1.msra.mxu1 %v18522_v46  ;;  %18524 = vst [vmem:[#allocation69_spill] sm:$0xff] %v14563_v36  ;;  %v14574_v46 = vsub.f32 %v76_v31, %v14527_v38  ;;  %1543 = vmatpush1.msra.mxu0 %v14323_v50  ;;  %v18530_v33 = vand.u32 4294901760, %v14482_v60  ;;  %v14590_v47 = vand.u32 4294901760, %v197_v10  ;;  %v14592_v31 = vand.u32 4294901760, %v196_v54  ;;  %v189_v50 = vld [vmem:[#allocation5 + $0x398] sm:$0xff] }
 0x124   :  { %v14561_v19 = vsub.f32 %v14467_v14, %v18523_v56  ;;  %18525 = vst [vmem:[#allocation36_spill] sm:$0xff] %v14565_v24  ;;  %1706 = vmatprep.subr.mxu1 %v18526_v22  ;;  %v14583_v23 = vsub.f32 %v14490_v44, %v18529_v39  ;;  %v192_v56 = vld [vmem:[#allocation5 + $0x3b0] sm:$0xff]  ;;  %1545 = vmatprep.subr.mxu0 %v14356_v48  ;;  %v18535_v44 = vand.u32 4294901760, %v14369_v4  ;;  %v18539_v39 = vand.u32 4294901760, %v14399_v27 }
 0x125   :  { %18527 = vst [vmem:[#allocation71_spill] sm:$0xff] %v14574_v46  ;;  %1712 = vmatpush1.msra.mxu1 %v18528_v35  ;;  %v14588_v22 = vsub.f32 %v14482_v60, %v18530_v33  ;;  %18531 = vst [vmem:[#allocation38_spill] sm:$0xff] %v14590_v47  ;;  %v18533_v35 = vand.u32 4294901760, %v14379_v28  ;;  %v14601_v33 = vsub.f32 %v77_v49, %v14536_v43  ;;  %v188_v60 = vld [vmem:[#allocation5 + $0x390] sm:$0xff]  ;;  %1547 = vmatpush1.msra.mxu0 %v14348_v5 }
 0x126   :  { %18532 = vst [vmem:[#allocation73_spill] sm:$0xff] %v14592_v31  ;;  %v14608_v28 = vsub.f32 %v200_v16, %v14565_v24  ;;  %v14616_v49 = vsub.f32 %v201_v62, %v14563_v36  ;;  %1549 = vmatprep.subr.mxu0 %v14381_v57  ;;  %v14626_v16 = vand.u32 4294901760, %v193_v40  ;;  %v14628_v48 = vand.u32 4294901760, %v192_v56  ;;  %v185_v57 = vld [vmem:[#allocation5 + $0x378] sm:$0xff] }
 0x127   :  { %1718 = vmatprep.subr.mxu1 %v18533_v35  ;;  %18534 = vst [vmem:[#allocation40_spill] sm:$0xff] %v14601_v33  ;;  %v18537_v35 = vand.u32 4294901760, %v14511_v41  ;;  %1551 = vmatpush1.msra.mxu0 %v14383_v61  ;;  %v18543_v62 = vand.u32 4294901760, %v14404_v37  ;;  %v18546_v5 = vand.u32 4294901760, %v14437_v13  ;;  %v18548_v37 = vand.u32 4294901760, %v14545_v53 }
 0x128   :  { %1724 = vmatpush1.msra.mxu1 %v18535_v44  ;;  %18536 = vst [vmem:[#allocation75_spill] sm:$0xff] %v14608_v28  ;;  %18538 = vst [vmem:[#allocation42_spill] sm:$0xff] %v14616_v49  ;;  %v18540_v44 = vand.u32 4294901760, %v14530_v21  ;;  %1553 = vmatprep.subr.mxu0 %v14414_v9  ;;  %v14654_v27 = vand.u32 4294901760, %v189_v50  ;;  %v18550_v13 = vand.u32 4294901760, %v14427_v34  ;;  %v14671_v34 = vsub.f32 %v192_v56, %v14628_v48  ;;  %v181_v9 = vld [vmem:[#allocation5 + $0x358] sm:$0xff] }
 0x129   :  { %v14613_v18 = vsub.f32 %v14511_v41, %v18537_v35  ;;  %1730 = vmatprep.subr.mxu1 %v18539_v39  ;;  %18541 = vst [vmem:[#allocation77_spill] sm:$0xff] %v14626_v16  ;;  %18542 = vst [vmem:[#allocation44_spill] sm:$0xff] %v14628_v48  ;;  %v14637_v39 = vsub.f32 %v196_v54, %v14592_v31  ;;  %v18547_v35 = vand.u32 4294901760, %v14553_v45  ;;  %v184_v41 = vld [vmem:[#allocation5 + $0x370] sm:$0xff]  ;;  %1555 = vmatpush1.msra.mxu0 %v14406_v11 }
 0x12a   :  { %v14624_v4 = vsub.f32 %v14530_v21, %v18540_v44  ;;  %1736 = vmatpush1.msra.mxu1 %v18543_v62  ;;  %v14639_v44 = vand.u32 4294901760, %v188_v60  ;;  %v14652_v62 = vsub.f32 %v14545_v53, %v18548_v37  ;;  %18549 = vst [vmem:[#allocation81_spill] sm:$0xff] %v14654_v27  ;;  %v14664_v37 = vsub.f32 %v197_v10, %v14590_v47  ;;  %v180_v53 = vld [vmem:[#allocation5 + $0x350] sm:$0xff] }
 0x12b   :  { %18544 = vst [vmem:[#allocation79_spill] sm:$0xff] %v14637_v39  ;;  %1742 = vmatprep.subr.mxu1 %v18546_v5  ;;  %v14647_v61 = vsub.f32 %v14553_v45, %v18547_v35  ;;  %1557 = vmatprep.subr.mxu0 %v14439_v59  ;;  %v18552_v54 = vand.u32 4294901760, %v14457_v32  ;;  %18553 = vst [vmem:[#allocation83_spill] sm:$0xff] %v14671_v34  ;;  %v14679_v10 = vsub.f32 %v193_v40, %v14626_v16  ;;  %v176_v59 = vld [vmem:[#allocation5 + $0x330] sm:$0xff] }
 0x12c   :  { %18545 = vst [vmem:[#allocation46_spill] sm:$0xff] %v14639_v44  ;;  %1748 = vmatpush1.msra.mxu1 %v18550_v13  ;;  %18551 = vst [vmem:[#allocation48_spill] sm:$0xff] %v14664_v37  ;;  %v18554_v13 = vand.u32 4294901760, %v14574_v46  ;;  %1559 = vmatpush1.msra.mxu0 %v14441_v20  ;;  %v18556_v35 = vand.u32 4294901760, %v14462_v2  ;;  %v14685_v32 = vsub.f32 %v188_v60, %v14639_v44  ;;  %v14689_v56 = vand.u32 4294901760, %v184_v41 }
 0x12d   :  { %1754 = vmatprep.subr.mxu1 %v18552_v54  ;;  %18555 = vst [vmem:[#allocation50_spill] sm:$0xff] %v14679_v10  ;;  %v14687_v54 = vand.u32 4294901760, %v185_v57  ;;  %1561 = vmatprep.subr.mxu0 %v14473_v15  ;;  %v18561_v2 = vand.u32 4294901760, %v14601_v33  ;;  %v18563_v11 = vand.u32 4294901760, %v14487_v26  ;;  %v18565_v20 = vand.u32 4294901760, %v14608_v28 }
 0x12e   :  { %v14676_v5 = vsub.f32 %v14574_v46, %v18554_v13  ;;  %1760 = vmatpush1.msra.mxu1 %v18556_v35  ;;  %18557 = vst [vmem:[#allocation85_spill] sm:$0xff] %v14685_v32  ;;  %18559 = vst [vmem:[#allocation54_spill] sm:$0xff] %v14689_v56  ;;  %v18560_v13 = vand.u32 4294901760, %v14498_v1  ;;  %v14702_v35 = vand.u32 4294901760, %v180_v53  ;;  %1563 = vmatpush1.msra.mxu0 %v14464_v7  ;;  %v18564_v1 = vand.u32 4294901760, %v14616_v49  ;;  %v177_v46 = vld [vmem:[#allocation5 + $0x338] sm:$0xff] }
 0x12f   :  { %18558 = vst [vmem:[#allocation87_spill] sm:$0xff] %v14687_v54  ;;  %v14700_v60 = vsub.f32 %v14601_v33, %v18561_v2  ;;  %v14715_v40 = vsub.f32 %v14608_v28, %v18565_v20  ;;  %v14717_v2 = vand.u32 4294901760, %v181_v9  ;;  %1565 = vmatprep.subr.mxu0 %v14500_v17  ;;  %v18567_v26 = vand.u32 4294901760, %v14520_v55  ;;  %v172_v20 = vld [vmem:[#allocation5 + $0x310] sm:$0xff]  ;;  %v173_v7 = vld [vmem:[#allocation5 + $0x318] sm:$0xff] }
 0x130   :  { %1766 = vmatprep.subr.mxu1 %v18560_v13  ;;  %18562 = vst [vmem:[#allocation89_spill] sm:$0xff] %v14702_v35  ;;  %v14710_v13 = vsub.f32 %v14616_v49, %v18564_v1  ;;  %v14727_v49 = vsub.f32 %v189_v50, %v14654_v27  ;;  %1567 = vmatpush1.msra.mxu0 %v14502_v52  ;;  %v18569_v15 = vand.u32 4294901760, %v14525_v8  ;;  %v18571_v55 = vand.u32 4294901760, %v14637_v39 }
 0x131   :  { %1772 = vmatpush1.msra.mxu1 %v18563_v11  ;;  %18566 = vst [vmem:[#allocation90_spill] sm:$0xff] %v14717_v2  ;;  %v14733_v17 = vsub.f32 %v184_v41, %v14689_v56  ;;  %v14740_v11 = vand.u32 4294901760, %v176_v59  ;;  %v14743_v50 = vsub.f32 %v185_v57, %v14687_v54  ;;  %1569 = vmatprep.subr.mxu0 %v14536_v43  ;;  %v18574_v1 = vand.u32 4294901760, %v14561_v19 }
 0x132   :  { %1778 = vmatprep.subr.mxu1 %v18567_v26  ;;  %18568 = vst [vmem:[#allocation91_spill] sm:$0xff] %v14727_v49  ;;  %v14738_v26 = vsub.f32 %v14637_v39, %v18571_v55  ;;  %v14750_v41 = vsub.f32 %v180_v53, %v14702_v35  ;;  %v14752_v8 = vand.u32 4294901760, %v177_v46  ;;  %1571 = vmatpush1.msra.mxu0 %v14527_v38  ;;  %v18577_v52 = vand.u32 4294901760, %v14550_v51  ;;  %v169_v39 = vld [vmem:[#allocation5 + $0x2f8] sm:$0xff] }
 0x133   :  { %1784 = vmatpush1.msra.mxu1 %v18569_v15  ;;  %18570 = vst [vmem:[#allocation93_spill] sm:$0xff] %v14733_v17  ;;  %18572 = vst [vmem:[#allocation95_spill] sm:$0xff] %v14740_v11  ;;  %v1837_v15 = vand.u32 4294901760, %v14700_v60  ;;  %v1849_v57 = vand.u32 4294901760, %v14710_v13  ;;  %v18578_v19 = vand.u32 4294901760, %v14664_v37  ;;  %v14765_v53 = vand.u32 4294901760, %v172_v20  ;;  %1573 = vmatprep.subr.mxu0 %v14563_v36 }
 0x134   :  { %18573 = vst [vmem:[#allocation97_spill] sm:$0xff] %v14743_v50  ;;  %1790 = vmatprep.subr.mxu1 %v18574_v1  ;;  %18575 = vst [vmem:[#allocation98_spill] sm:$0xff] %v14750_v41  ;;  %v168_v1 = vld [vmem:[#allocation5 + $0x2f0] sm:$0xff]  ;;  %v18580_v55 = vand.u32 4294901760, %v14583_v23  ;;  %v18581_v51 = vand.u32 4294901760, %v14679_v10  ;;  %v18582_v13 = vand.u32 4294901760, %v14671_v34  ;;  %1575 = vmatpush2.msra.mxu0 %v14565_v24  ;;  %v14806_v36 = vsub.f32 %v177_v46, %v14752_v8 }
 0x135   :  { %18576 = vst [vmem:[#allocation99_spill] sm:$0xff] %v14752_v8  ;;  %1796 = vmatpush1.msra.mxu1 %v18577_v52  ;;  %v14763_v60 = vsub.f32 %v14664_v37, %v18578_v19  ;;  %18579 = vst [vmem:[#allocation100_spill] sm:$0xff] %v14765_v53  ;;  %v14780_v19 = vand.u32 4294901760, %v173_v7  ;;  %v18584_v23 = vand.u32 4294901760, %v14588_v22  ;;  %1577 = vmatprep.subr.mxu0 %v14590_v47  ;;  %v18587_v38 = vand.u32 4294901760, %v14624_v4 }
 0x136   :  { %1802 = vmatprep.subr.mxu1 %v18580_v55  ;;  %v14773_v52 = vsub.f32 %v14679_v10, %v18581_v51  ;;  %v14778_v43 = vsub.f32 %v14671_v34, %v18582_v13  ;;  %v14788_v51 = vsub.f32 %v176_v59, %v14740_v11  ;;  %v14792_v13 = vsub.f32 %v181_v9, %v14717_v2  ;;  %v164_v34 = vld [vmem:[#allocation5 + $0x2d0] sm:$0xff]  ;;  %v165_v55 = vld [vmem:[#allocation5 + $0x2d8] sm:$0xff] }
 0x137   :  { %18583 = vst [vmem:[#allocation102_spill] sm:$0xff] %v14780_v19  ;;  %1808 = vmatpush1.msra.mxu1 %v18584_v23  ;;  %v18588_v24 = vand.u32 4294901760, %v14685_v32  ;;  %v14802_v23 = vand.u32 4294901760, %v168_v1  ;;  %18590 = vst [vmem:[#allocation111_spill] sm:$0xff] %v14806_v36  ;;  %1579 = vmatpush2.msra.mxu0 %v14592_v31  ;;  %v18591_v9 = vand.u32 4294901760, %v14613_v18  ;;  %v14813_v4 = vsub.f32 %v172_v20, %v14765_v53 }
 0x138   :  { %18585 = vst [vmem:[#allocation105_spill] sm:$0xff] %v14788_v51  ;;  %18586 = vst [vmem:[#allocation107_spill] sm:$0xff] %v14792_v13  ;;  %1814 = vmatprep.subr.mxu1 %v18587_v38  ;;  %v1861_v38 = vand.u32 4294901760, %v14763_v60  ;;  %1581 = vmatprep.subr.mxu0 %v14626_v16  ;;  %v18594_v59 = vand.u32 4294901760, %v14647_v61  ;;  %v1873_v46 = vand.u32 4294901760, %v14773_v52  ;;  %v1879_v31 = vand.u32 4294901760, %v14778_v43 }
 0x139   :  { %v14800_v22 = vsub.f32 %v14685_v32, %v18588_v24  ;;  %18589 = vst [vmem:[#allocation110_spill] sm:$0xff] %v14802_v23  ;;  %1820 = vmatpush1.msra.mxu1 %v18591_v9  ;;  %18592 = vst [vmem:[#allocation84_spill] sm:$0xff] %v14813_v4  ;;  %v14815_v24 = vand.u32 4294901760, %v169_v39  ;;  %v18595_v18 = vand.u32 4294901760, %v14727_v49  ;;  %v14828_v20 = vand.u32 4294901760, %v164_v34  ;;  %v160_v9 = vld [vmem:[#allocation5 + $0x2b0] sm:$0xff]  ;;  %1583 = vmatpush2.msra.mxu0 %v14628_v48 }
 0x13a   :  { %1826 = vmatprep.subr.mxu1 %v18594_v59  ;;  %v18597_v47 = vand.u32 4294901760, %v14652_v62  ;;  %v18598_v61 = vand.u32 4294901760, %v14743_v50  ;;  %v14838_v52 = vand.u32 4294901760, %v165_v55  ;;  %v161_v16 = vld [vmem:[#allocation5 + $0x2b8] sm:$0xff]  ;;  %1585 = vmatprep.subr.mxu0 %v14654_v27  ;;  %v18602_v62 = vand.u32 4294901760, %v14733_v17  ;;  %v156_v43 = vld [vmem:[#allocation5 + $0x290] sm:$0xff] }
 0x13b   :  { %18593 = vst [vmem:[#allocation86_spill] sm:$0xff] %v14815_v24  ;;  %v14826_v60 = vsub.f32 %v14727_v49, %v18595_v18  ;;  %18596 = vst [vmem:[#allocation114_spill] sm:$0xff] %v14828_v20  ;;  %v14842_v18 = vsub.f32 %v173_v7, %v14780_v19  ;;  %v1891_v48 = vand.u32 4294901760, %v14800_v22  ;;  %1587 = vmatpush2.msra.mxu0 %v14639_v44  ;;  %v18603_v7 = vand.u32 4294901760, %v14676_v5  ;;  %v157_v32 = vld [vmem:[#allocation5 + $0x298] sm:$0xff] }
 0x13c   :  { %1832 = vmatpush1.msra.mxu1 %v18597_v47  ;;  %v14836_v59 = vsub.f32 %v14743_v50, %v18598_v61  ;;  %18599 = vst [vmem:[#allocation88_spill] sm:$0xff] %v14838_v52  ;;  %v14847_v47 = vsub.f32 %v168_v1, %v14802_v23  ;;  %v14852_v61 = vsub.f32 %v14733_v17, %v18602_v62  ;;  %v14863_v1 = vand.u32 4294901760, %v160_v9  ;;  %v153_v44 = vld [vmem:[#allocation5 + $0x278] sm:$0xff] }
 0x13d   :  { %18600 = vst [vmem:[#allocation115_spill] sm:$0xff] %v14842_v18  ;;  %1838 = vmatprep.subr.mxu1 %v1837_v15  ;;  %v18604_v15 = vand.u32 4294901760, %v14750_v41  ;;  %1589 = vmatprep.subr.mxu0 %v14687_v54  ;;  %v1885_v50 = vand.u32 4294901760, %v14826_v60  ;;  %v14870_v5 = vsub.f32 %v164_v34, %v14828_v20  ;;  %v18609_v27 = vand.u32 4294901760, %v14715_v40 }
 0x13e   :  { %18601 = vst [vmem:[#allocation116_spill] sm:$0xff] %v14847_v47  ;;  %1844 = vmatpush1.msra.mxu1 %v18603_v7  ;;  %18605 = vst [vmem:[#allocation117_spill] sm:$0xff] %v14863_v1  ;;  %v14872_v7 = vand.u32 4294901760, %v161_v16  ;;  %1591 = vmatpush2.msra.mxu0 %v14689_v56  ;;  %v1897_v62 = vand.u32 4294901760, %v14836_v59  ;;  %v18610_v54 = vand.u32 4294901760, %v14792_v13  ;;  %v14885_v34 = vand.u32 4294901760, %v156_v43 }
 0x13f   :  { %v14861_v22 = vsub.f32 %v14750_v41, %v18604_v15  ;;  %1850 = vmatprep.subr.mxu1 %v1849_v57  ;;  %18606 = vst [vmem:[#allocation118_spill] sm:$0xff] %v14870_v5  ;;  %v14875_v15 = vsub.f32 %v169_v39, %v14815_v24  ;;  %v152_v41 = vld [vmem:[#allocation5 + $0x270] sm:$0xff]  ;;  %1593 = vmatprep.subr.mxu0 %v14717_v2  ;;  %v1903_v39 = vand.u32 4294901760, %v14852_v61  ;;  %v18611_v40 = vand.u32 4294901760, %v14806_v36 }
 0x140   :  { %18607 = vst [vmem:[#allocation119_spill] sm:$0xff] %v14872_v7  ;;  %1856 = vmatpush2.msra.mxu1 %v18609_v27  ;;  %v1908_v57 = vsub.f32 %v14792_v13, %v18610_v54  ;;  %v14894_v59 = vand.u32 4294901760, %v157_v32  ;;  %v14897_v54 = vsub.f32 %v165_v55, %v14838_v52  ;;  %1595 = vmatpush2.msra.mxu0 %v14702_v35  ;;  %v18613_v60 = vand.u32 4294901760, %v14738_v26 }
 0x141   :  { %18608 = vst [vmem:[#allocation120_spill] sm:$0xff] %v14875_v15  ;;  %1862 = vmatprep.subr.mxu1 %v1861_v38  ;;  %v14892_v27 = vsub.f32 %v14806_v36, %v18611_v40  ;;  %v1915_v2 = vand.u32 4294901760, %v14861_v22  ;;  %v14904_v38 = vsub.f32 %v160_v9, %v14863_v1  ;;  %v18615_v61 = vand.u32 4294901760, %v14788_v51  ;;  %v148_v36 = vld [vmem:[#allocation5 + $0x250] sm:$0xff]  ;;  %1597 = vmatprep.subr.mxu0 %v14752_v8 }
 0x142   :  { %18612 = vst [vmem:[#allocation121_spill] sm:$0xff] %v14897_v54  ;;  %1868 = vmatpush2.msra.mxu1 %v18613_v60  ;;  %v18616_v56 = vand.u32 4294901760, %v14813_v4  ;;  %v14917_v26 = vand.u32 4294901760, %v153_v44  ;;  %v14920_v9 = vand.u32 4294901760, %v152_v41  ;;  %v149_v60 = vld [vmem:[#allocation5 + $0x258] sm:$0xff]  ;;  %v14923_v35 = vsub.f32 %v161_v16, %v14872_v7  ;;  %1599 = vmatpush2.msra.mxu0 %v14740_v11 }
 0x143   :  { %18614 = vst [vmem:[#allocation122_spill] sm:$0xff] %v14904_v38  ;;  %v14909_v40 = vsub.f32 %v14788_v51, %v18615_v61  ;;  %1874 = vmatprep.subr.mxu1 %v1873_v46  ;;  %v1909_v61 = vand.u32 4294901760, %v1908_v57  ;;  %v14930_v46 = vsub.f32 %v156_v43, %v14885_v34  ;;  %1601 = vmatprep.subr.mxu0 %v14780_v19  ;;  %v1921_v22 = vand.u32 4294901760, %v14892_v27  ;;  %v144_v27 = vld [vmem:[#allocation5 + $0x230] sm:$0xff] }
 0x144   :  { %v14914_v55 = vsub.f32 %v14813_v4, %v18616_v56  ;;  %18617 = vst [vmem:[#allocation123_spill] sm:$0xff] %v14923_v35  ;;  %1880 = vmatpush2.msra.mxu1 %v1879_v31  ;;  %v18618_v56 = vand.u32 4294901760, %v14842_v18  ;;  %v14936_v51 = vand.u32 4294901760, %v148_v36  ;;  %v145_v31 = vld [vmem:[#allocation5 + $0x238] sm:$0xff]  ;;  %v14939_v57 = vsub.f32 %v157_v32, %v14894_v59  ;;  %1603 = vmatpush2.msra.mxu0 %v14765_v53 }
 0x145   :  { %18619 = vst [vmem:[#allocation124_spill] sm:$0xff] %v14930_v46  ;;  %1886 = vmatprep.subr.mxu1 %v1885_v50  ;;  %v1927_v43 = vand.u32 4294901760, %v14909_v40  ;;  %v14944_v8 = vand.u32 4294901760, %v149_v60  ;;  %1605 = vmatprep.subr.mxu0 %v14815_v24  ;;  %v18621_v16 = vand.u32 4294901760, %v14875_v15  ;;  %v14952_v19 = vsub.f32 %v152_v41, %v14920_v9  ;;  %v141_v40 = vld [vmem:[#allocation5 + $0x218] sm:$0xff]  ;;  %v140_v41 = vld [vmem:[#allocation5 + $0x210] sm:$0xff] }
 0x146   :  { %v1932_v4 = vsub.f32 %v14842_v18, %v18618_v56  ;;  %18620 = vst [vmem:[#allocation125_spill] sm:$0xff] %v14939_v57  ;;  %1892 = vmatpush2.msra.mxu1 %v1891_v48  ;;  %v1939_v56 = vand.u32 4294901760, %v14914_v55  ;;  %v14956_v55 = vsub.f32 %v153_v44, %v14917_v26  ;;  %1607 = vmatpush2.msra.mxu0 %v14802_v23  ;;  %v18622_v24 = vand.u32 4294901760, %v14847_v47 }
 0x147   :  { %1898 = vmatprep.subr.mxu1 %v1897_v62  ;;  %v1944_v32 = vsub.f32 %v14875_v15, %v18621_v16  ;;  %v14962_v53 = vand.u32 4294901760, %v145_v31  ;;  %1609 = vmatprep.subr.mxu0 %v14838_v52  ;;  %v18623_v48 = vand.u32 4294901760, %v14897_v54  ;;  %v14970_v23 = vsub.f32 %v148_v36, %v14936_v51 }
 0x148   :  { %1904 = vmatpush2.msra.mxu1 %v1903_v39  ;;  %v1933_v50 = vand.u32 4294901760, %v1932_v4  ;;  %v1950_v62 = vsub.f32 %v14847_v47, %v18622_v24  ;;  %v14972_v4 = vand.u32 4294901760, %v144_v27  ;;  %1611 = vmatpush2.msra.mxu0 %v14828_v20  ;;  %v18625_v24 = vand.u32 4294901760, %v14870_v5 }
 0x149   :  { %1910 = vmatprep.subr.mxu1 %v1909_v61  ;;  %v1956_v44 = vsub.f32 %v14897_v54, %v18623_v48  ;;  %18624 = vst [vmem:[#allocation126_spill] sm:$0xff] %v14970_v23  ;;  %v14979_v52 = vand.u32 4294901760, %v141_v40  ;;  %v14983_v48 = vsub.f32 %v149_v60, %v14944_v8  ;;  %1613 = vmatprep.subr.mxu0 %v14872_v7  ;;  %v1945_v36 = vand.u32 4294901760, %v1944_v32 }
 0x14a   :  { %1916 = vmatpush2.msra.mxu1 %v1915_v2  ;;  %v1962_v16 = vsub.f32 %v14870_v5, %v18625_v24  ;;  %v18627_v39 = vand.u32 4294901760, %v14923_v35  ;;  %v14989_v2 = vand.u32 4294901760, %v140_v41  ;;  %1615 = vmatpush2.msra.mxu0 %v14863_v1  ;;  %v1951_v24 = vand.u32 4294901760, %v1950_v62 }
 0x14b   :  { %18626 = vst [vmem:[#allocation127_spill] sm:$0xff] %v14983_v48  ;;  %1922 = vmatprep.subr.mxu1 %v1921_v22  ;;  %v18628_v61 = vand.u32 4294901760, %v14904_v38  ;;  %v14997_v7 = vsub.f32 %v145_v31, %v14962_v53  ;;  %1617 = vmatprep.subr.mxu0 %v14894_v59  ;;  %v1957_v22 = vand.u32 4294901760, %v1956_v44  ;;  %v15001_v32 = vsub.f32 %v144_v27, %v14972_v4 }
 0x14c   :  { %v1968_v20 = vsub.f32 %v14923_v35, %v18627_v39  ;;  %1928 = vmatpush2.msra.mxu1 %v1927_v43  ;;  %v18629_v39 = vand.u32 4294901760, %v14939_v57  ;;  %1619 = vmatpush2.msra.mxu0 %v14885_v34  ;;  %v1963_v62 = vand.u32 4294901760, %v1962_v16  ;;  %v18630_v31 = vand.u32 4294901760, %v14930_v46 }
 0x14d   :  { %v1974_v60 = vsub.f32 %v14904_v38, %v18628_v61  ;;  %1934 = vmatprep.subr.mxu1 %v1933_v50  ;;  %v15013_v44 = vsub.f32 %v141_v40, %v14979_v52  ;;  %1621 = vmatprep.subr.mxu0 %v14917_v26  ;;  %v18632_v43 = vand.u32 4294901760, %v14956_v55  ;;  %v17829_v40 = vand.u32 4294901760, %v14997_v7 }
 0x14e   :  { %v1980_v11 = vsub.f32 %v14939_v57, %v18629_v39  ;;  %1940 = vmatpush2.msra.mxu1 %v1939_v56  ;;  %v1986_v61 = vsub.f32 %v14930_v46, %v18630_v31  ;;  %v1969_v27 = vand.u32 4294901760, %v1968_v20  ;;  %v15017_v39 = vsub.f32 %v140_v41, %v14989_v2  ;;  %1623 = vmatpush2.msra.mxu0 %v14920_v9 }
 0x14f   :  { %1946 = vmatprep.subr.mxu1 %v1945_v36  ;;  %v1992_v56 = vsub.f32 %v14956_v55, %v18632_v43  ;;  %v1975_v31 = vand.u32 4294901760, %v1974_v60  ;;  %1625 = vmatprep.subr.mxu0 %v14944_v8  ;;  %v18633_v20 = vand.u32 4294901760, %v14952_v19  ;;  %v18634_v16 = vand.u32 4294901760, %v14983_v48 }
 0x150   :  { %18631 = vst [vmem:[#allocation128_spill] sm:$0xff] %v15017_v39  ;;  %1952 = vmatpush2.msra.mxu1 %v1951_v24  ;;  %v1981_v36 = vand.u32 4294901760, %v1980_v11  ;;  %1627 = vmatpush2.msra.mxu0 %v14936_v51  ;;  %v1987_v43 = vand.u32 4294901760, %v1986_v61  ;;  %v17831_v60 = vand.u32 4294901760, %v15013_v44  ;;  %v17830_v50 = vand.u32 4294901760, %v15017_v39 }
 0x151   :  { %1958 = vmatprep.subr.mxu1 %v1957_v22  ;;  %v1998_v41 = vsub.f32 %v14952_v19, %v18633_v20  ;;  %v2004_v24 = vsub.f32 %v14983_v48, %v18634_v16  ;;  %1629 = vmatprep.subr.mxu0 %v14962_v53  ;;  %v1993_v11 = vand.u32 4294901760, %v1992_v56  ;;  %v18635_v22 = vand.u32 4294901760, %v14970_v23 }
 0x152   :  { %1964 = vmatpush2.msra.mxu1 %v1963_v62  ;;  %1631 = vmatpush2.msra.mxu0 %v14972_v4  ;;  %v2016_v62 = vsub.f32 %v14997_v7, %v17829_v40 }
 0x153   :  { %1970 = vmatprep.subr.mxu1 %v1969_v27  ;;  %v2010_v20 = vsub.f32 %v14970_v23, %v18635_v22  ;;  %1633 = vmatprep.subr.mxu0 %v14979_v52  ;;  %v1999_v61 = vand.u32 4294901760, %v1998_v41  ;;  %v18636_v27 = vand.u32 4294901760, %v15001_v32  ;;  %v2005_v16 = vand.u32 4294901760, %v2004_v24  ;;  %v18637_v22 = vld [vmem:[#allocation112_spill] sm:$0xff]  ;;  %v18638_v41 = vld [vmem:[#allocation113_spill] sm:$0xff] }
 0x154   :  { %1976 = vmatpush2.msra.mxu1 %v1975_v31  ;;  %1635 = vmatpush2.msra.mxu0 %v14989_v2  ;;  %v2028_v31 = vsub.f32 %v15013_v44, %v17831_v60  ;;  %v18654_v60 = vld [vmem:[#allocation17_spill] sm:$0xff] }
 0x155   :  { %1982 = vmatprep.subr.mxu1 %v1981_v36  ;;  %v2022_v56 = vsub.f32 %v15001_v32, %v18636_v27  ;;  %1641 = vmatprep.mubr.f32.mxu0 %v18637_v22  ;;  %v2011_v40 = vand.u32 4294901760, %v2010_v20  ;;  %v2034_v36 = vsub.f32 %v15017_v39, %v17830_v50  ;;  %v2017_v27 = vand.u32 4294901760, %v2016_v62  ;;  %v18639_v20 = vld [vmem:[#allocation56_spill] sm:$0xff]  ;;  %v18641_v62 = vld [vmem:[#allocation62_spill] sm:$0xff]  ;;  %v18653_v50 = vld [vmem:[#allocation41_spill] sm:$0xff] }
 0x156   :  { %1988 = vmatpush2.msra.mxu1 %v1987_v43  ;;  %2048 = vmatprep.subr.mxu0 %v14157_v58  ;;  %v2029_v24 = vand.u32 4294901760, %v2028_v31  ;;  %v18640_v22 = vld [vmem:[#allocation52_spill] sm:$0xff]  ;;  %v18646_v31 = vld [vmem:[#allocation15_spill] sm:$0xff] }
 0x157   :  { %1994 = vmatprep.subr.mxu1 %v1993_v11  ;;  %1647 = vmatmul.mubr.f32.vlgmr.msra.gmra.mxu0 %v18638_v41  ;;  %v2023_v43 = vand.u32 4294901760, %v2022_v56  ;;  %v2035_v11 = vand.u32 4294901760, %v2034_v36  ;;  %v18644_v56 = vld [vmem:[#allocation70_spill] sm:$0xff]  ;;  %v18648_v41 = vld [vmem:[#allocation33_spill] sm:$0xff] }
 0x158   :  { %2000 = vmatpush2.msra.mxu1 %v1999_v61  ;;  %2051 = vmatpush1.msra.mxu0 %v14154_v6  ;;  %v18642_v61 = vld [vmem:[#allocation64_spill] sm:$0xff]  ;;  %v18647_v36 = vld [vmem:[#allocation78_spill] sm:$0xff] }
 0x159   :  { %2006 = vmatprep.subr.mxu1 %v2005_v16  ;;  %2054 = vmatprep.subr.mxu0 %v14170_v12  ;;  %v18645_v16 = vld [vmem:[#allocation82_spill] sm:$0xff] }
 0x15a   :  { %2012 = vmatpush2.msra.mxu1 %v2011_v40  ;;  %2057 = vmatpush1.msra.mxu0 %v14176_v25  ;;  %v18643_v40 = vld [vmem:[#allocation72_spill] sm:$0xff] }
 0x15b   :  { %2018 = vmatprep.subr.mxu1 %v2017_v27  ;;  %2060 = vmatprep.subr.mxu0 %v18639_v20  ;;  %v18649_v27 = vld [vmem:[#allocation94_spill] sm:$0xff] }
 0x15c   :  { %2024 = vmatpush2.msra.mxu1 %v2023_v43  ;;  %2063 = vmatpush1.msra.mxu0 %v18640_v22  ;;  %v18650_v43 = vld [vmem:[#allocation16_spill] sm:$0xff] }
 0x15d   :  { %2030 = vmatprep.subr.mxu1 %v2029_v24  ;;  %2066 = vmatprep.subr.mxu0 %v18641_v62  ;;  %v18651_v24 = vld [vmem:[#allocation92_spill] sm:$0xff] }
 0x15e   :  { %2036 = vmatpush2.msra.mxu1 %v2035_v11  ;;  %2069 = vmatpush1.msra.mxu0 %v18642_v61  ;;  %v18652_v11 = vld [vmem:[#allocation35_spill] sm:$0xff] }
 0x15f   :  { %2040 = vmatmul.mubr.f32.vlgmr.msra.gmra.mxu1 %v18474_v30  ;;  %2072 = vmatprep.subr.mxu0 %v18643_v40  ;;  %v18655_v30 = vld [vmem:[#allocation39_spill] sm:$0xff] }
 0x160   :  { %2250 = vmatprep.subr.mxu1 %v14133_v0  ;;  %2075 = vmatpush1.msra.mxu0 %v18644_v56 }
 0x161   :  { %2252 = vmatpush1.msra.mxu1 %v14135_v3  ;;  %2078 = vmatprep.subr.mxu0 %v18645_v16 }
 0x162   :  { %2254 = vmatprep.subr.mxu1 %v18646_v31  ;;  %2081 = vmatpush1.msra.mxu0 %v18647_v36  ;;  %v18657_v31 = vld [vmem:[#allocation21_spill] sm:$0xff]  ;;  %v18658_v36 = vld [vmem:[#allocation58_spill] sm:$0xff] }
 0x163   :  { %2256 = vmatpush1.msra.mxu1 %v18648_v41  ;;  %2084 = vmatprep.subr.mxu0 %v18649_v27  ;;  %v18659_v41 = vld [vmem:[#allocation43_spill] sm:$0xff] }
 0x164   :  { %2258 = vmatprep.subr.mxu1 %v18650_v43  ;;  %2087 = vmatpush1.msra.mxu0 %v18651_v24  ;;  %v18660_v43 = vld [vmem:[#allocation49_spill] sm:$0xff]  ;;  %v18661_v24 = vld [vmem:[#allocation68_spill] sm:$0xff] }
 0x165   :  { %2260 = vmatpush1.msra.mxu1 %v18652_v11  ;;  %2090 = vmatprep.subr.mxu0 %v18653_v50  ;;  %v18662_v11 = vld [vmem:[#allocation47_spill] sm:$0xff]  ;;  %v18663_v50 = vld [vmem:[#allocation66_spill] sm:$0xff] }
 0x166   :  { %2262 = vmatprep.subr.mxu1 %v18654_v60  ;;  %2093 = vmatpush1.msra.mxu0 %v18655_v30  ;;  %v18664_v60 = vld [vmem:[#allocation25_spill] sm:$0xff]  ;;  %v18665_v30 = vld [vmem:[#allocation74_spill] sm:$0xff] }
 0x167   :  { %2264 = vmatpush1.msra.mxu1 %v18656_v29  ;;  %2096 = vmatprep.subr.mxu0 %v18657_v31  ;;  %v18666_v29 = vld [vmem:[#allocation51_spill] sm:$0xff]  ;;  %v18667_v31 = vld [vmem:[#allocation76_spill] sm:$0xff] }
 0x168   :  { %2266 = vmatprep.subr.mxu1 %v18658_v36  ;;  %2099 = vmatpush1.msra.mxu0 %v18659_v41 }
 0x169   :  { %2268 = vmatpush1.msra.mxu1 %v14201_v42  ;;  %2102 = vmatprep.subr.mxu0 %v18660_v43  ;;  %v18668_v42 = vld [vmem:[#allocation55_spill] sm:$0xff]  ;;  %v18669_v43 = vld [vmem:[#allocation80_spill] sm:$0xff] }
 0x16a   :  { %2270 = vmatprep.subr.mxu1 %v18661_v24  ;;  %2105 = vmatpush1.msra.mxu0 %v18662_v11  ;;  %v18670_v24 = vld [vmem:[#allocation29_spill] sm:$0xff]  ;;  %v18671_v11 = vld [vmem:[#allocation96_spill] sm:$0xff] }
 0x16b   :  { %2272 = vmatpush1.msra.mxu1 %v18663_v50  ;;  %2108 = vmatprep.subr.mxu0 %v18664_v60  ;;  %v18672_v50 = vld [vmem:[#allocation59_spill] sm:$0xff]  ;;  %v18673_v60 = vld [vmem:[#allocation18_spill] sm:$0xff] }
 0x16c   :  { %2274 = vmatprep.subr.mxu1 %v18665_v30  ;;  %2111 = vmatpush1.msra.mxu0 %v18666_v29  ;;  %v18674_v29 = vld [vmem:[#allocation20_spill] sm:$0xff] }
 0x16d   :  { %2276 = vmatpush1.msra.mxu1 %v18667_v31  ;;  %2114 = vmatprep.subr.mxu0 %v14467_v14  ;;  %v18675_v31 = vld [vmem:[#allocation63_spill] sm:$0xff] }
 0x16e   :  { %2278 = vmatprep.subr.mxu1 %v14294_v63  ;;  %2117 = vmatpush1.msra.mxu0 %v18668_v42  ;;  %v18676_v14 = vld [vmem:[#allocation19_spill] sm:$0xff]  ;;  %v18677_v42 = vld [vmem:[#allocation45_spill] sm:$0xff] }
 0x16f   :  { %2280 = vmatpush1.msra.mxu1 %v18669_v43  ;;  %2120 = vmatprep.subr.mxu0 %v18670_v24  ;;  %v18678_v43 = vld [vmem:[#allocation67_spill] sm:$0xff]  ;;  %v18679_v24 = vld [vmem:[#allocation22_spill] sm:$0xff] }
 0x170   :  { %2282 = vmatprep.subr.mxu1 %v18671_v11  ;;  %2123 = vmatpush1.msra.mxu0 %v18672_v50  ;;  %v18680_v50 = vld [vmem:[#allocation24_spill] sm:$0xff] }
 0x171   :  { %2284 = vmatpush1.msra.mxu1 %v18673_v60  ;;  %2126 = vmatprep.subr.mxu0 %v14530_v21  ;;  %v18681_v60 = vld [vmem:[#allocation71_spill] sm:$0xff] }
 0x172   :  { %2286 = vmatprep.subr.mxu1 %v18674_v29  ;;  %2129 = vmatpush1.msra.mxu0 %v18675_v31  ;;  %v18682_v21 = vld [vmem:[#allocation23_spill] sm:$0xff]  ;;  %v18683_v29 = vld [vmem:[#allocation42_spill] sm:$0xff]  ;;  %v18684_v31 = vld [vmem:[#allocation53_spill] sm:$0xff] }
 0x173   :  { %2288 = vmatpush1.msra.mxu1 %v18676_v14  ;;  %2132 = vmatprep.subr.mxu0 %v14553_v45  ;;  %v18685_v45 = vld [vmem:[#allocation26_spill] sm:$0xff] }
 0x174   :  { %2290 = vmatprep.subr.mxu1 %v18677_v42  ;;  %2135 = vmatpush1.msra.mxu0 %v18678_v43  ;;  %v18686_v43 = vld [vmem:[#allocation28_spill] sm:$0xff] }
 0x175   :  { %2292 = vmatpush1.msra.mxu1 %v18679_v24  ;;  %2138 = vmatprep.subr.mxu0 %v14601_v33  ;;  %v18687_v24 = vld [vmem:[#allocation79_spill] sm:$0xff] }
 0x176   :  { %2294 = vmatprep.subr.mxu1 %v18680_v50  ;;  %2141 = vmatpush1.msra.mxu0 %v18681_v60  ;;  %v18688_v33 = vld [vmem:[#allocation27_spill] sm:$0xff]  ;;  %v18689_v60 = vld [vmem:[#allocation61_spill] sm:$0xff] }
 0x177   :  { %2296 = vmatpush1.msra.mxu1 %v18682_v21  ;;  %2144 = vmatprep.subr.mxu0 %v18683_v29  ;;  %v18690_v21 = vld [vmem:[#allocation83_spill] sm:$0xff]  ;;  %v18691_v29 = vld [vmem:[#allocation30_spill] sm:$0xff] }
 0x178   :  { %2298 = vmatprep.subr.mxu1 %v18684_v31  ;;  %2147 = vmatpush2.msra.mxu0 %v14608_v28  ;;  %v18692_v28 = vld [vmem:[#allocation32_spill] sm:$0xff] }
 0x179   :  { %2300 = vmatpush1.msra.mxu1 %v18685_v45  ;;  %2150 = vmatprep.subr.mxu0 %v14664_v37  ;;  %v18693_v45 = vld [vmem:[#allocation85_spill] sm:$0xff]  ;;  %v18694_v37 = vld [vmem:[#allocation31_spill] sm:$0xff] }
 0x17a   :  { %2302 = vmatprep.subr.mxu1 %v18686_v43  ;;  %2153 = vmatpush2.msra.mxu0 %v18687_v24  ;;  %v18695_v43 = vld [vmem:[#allocation97_spill] sm:$0xff] }
 0x17b   :  { %2304 = vmatpush1.msra.mxu1 %v18688_v33  ;;  %2156 = vmatprep.subr.mxu0 %v14679_v10  ;;  %v18696_v24 = vld [vmem:[#allocation69_spill] sm:$0xff]  ;;  %v18697_v10 = vld [vmem:[#allocation36_spill] sm:$0xff] }
 0x17c   :  { %2306 = vmatprep.subr.mxu1 %v18689_v60  ;;  %2159 = vmatpush2.msra.mxu0 %v18690_v21  ;;  %v18698_v21 = vld [vmem:[#allocation38_spill] sm:$0xff] }
 0x17d   :  { %2308 = vmatpush1.msra.mxu1 %v18691_v29  ;;  %2162 = vmatprep.subr.mxu0 %v14727_v49  ;;  %v18699_v29 = vld [vmem:[#allocation98_spill] sm:$0xff]  ;;  %v18700_v49 = vld [vmem:[#allocation73_spill] sm:$0xff] }
 0x17e   :  { %2310 = vmatprep.subr.mxu1 %v18692_v28  ;;  %2165 = vmatpush2.msra.mxu0 %v18693_v45  ;;  %v18701_v28 = vld [vmem:[#allocation111_spill] sm:$0xff]  ;;  %v18702_v45 = vld [vmem:[#allocation77_spill] sm:$0xff] }
 0x17f   :  { %2312 = vmatpush1.msra.mxu1 %v18694_v37  ;;  %2168 = vmatprep.subr.mxu0 %v18695_v43  ;;  %v18703_v37 = vld [vmem:[#allocation105_spill] sm:$0xff]  ;;  %v18704_v43 = vld [vmem:[#allocation44_spill] sm:$0xff] }
 0x180   :  { %2314 = vmatprep.subr.mxu1 %v18696_v24  ;;  %2171 = vmatpush2.msra.mxu0 %v14733_v17  ;;  %v18705_v17 = vld [vmem:[#allocation81_spill] sm:$0xff] }
 0x181   :  { %2316 = vmatpush2.msra.mxu1 %v18697_v10  ;;  %2174 = vmatprep.subr.mxu0 %v14792_v13  ;;  %v18706_v10 = vld [vmem:[#allocation84_spill] sm:$0xff]  ;;  %v18707_v13 = vld [vmem:[#allocation46_spill] sm:$0xff] }
 0x182   :  { %2318 = vmatprep.subr.mxu1 %v18698_v21  ;;  %2177 = vmatpush2.msra.mxu0 %v18699_v29  ;;  %v18708_v29 = vld [vmem:[#allocation87_spill] sm:$0xff] }
 0x183   :  { %2320 = vmatpush2.msra.mxu1 %v18700_v49  ;;  %2180 = vmatprep.subr.mxu0 %v18701_v28  ;;  %v18709_v28 = vld [vmem:[#allocation54_spill] sm:$0xff] }
 0x184   :  { %2322 = vmatprep.subr.mxu1 %v18702_v45  ;;  %2183 = vmatpush2.msra.mxu0 %v18703_v37  ;;  %v18710_v37 = vld [vmem:[#allocation90_spill] sm:$0xff] }
 0x185   :  { %2324 = vmatpush2.msra.mxu1 %v18704_v43  ;;  %2186 = vmatprep.subr.mxu0 %v14842_v18  ;;  %v18711_v18 = vld [vmem:[#allocation89_spill] sm:$0xff] }
 0x186   :  { %2326 = vmatprep.subr.mxu1 %v18705_v17  ;;  %2189 = vmatpush2.msra.mxu0 %v18706_v10  ;;  %v18712_v10 = vld [vmem:[#allocation99_spill] sm:$0xff] }
 0x187   :  { %2328 = vmatpush2.msra.mxu1 %v18707_v13  ;;  %2192 = vmatprep.subr.mxu0 %v14875_v15  ;;  %v18713_v15 = vld [vmem:[#allocation95_spill] sm:$0xff] }
 0x188   :  { %2330 = vmatprep.subr.mxu1 %v18708_v29  ;;  %2195 = vmatpush2.msra.mxu0 %v14847_v47  ;;  %v18714_v47 = vld [vmem:[#allocation102_spill] sm:$0xff] }
 0x189   :  { %2332 = vmatpush2.msra.mxu1 %v18709_v28  ;;  %2198 = vmatprep.subr.mxu0 %v14897_v54  ;;  %v18715_v54 = vld [vmem:[#allocation100_spill] sm:$0xff] }
 0x18a   :  { %2334 = vmatprep.subr.mxu1 %v18710_v37  ;;  %2201 = vmatpush2.msra.mxu0 %v14870_v5  ;;  %v18716_v5 = vld [vmem:[#allocation86_spill] sm:$0xff] }
 0x18b   :  { %2336 = vmatpush2.msra.mxu1 %v18711_v18  ;;  %2204 = vmatprep.subr.mxu0 %v14923_v35  ;;  %v18717_v35 = vld [vmem:[#allocation110_spill] sm:$0xff] }
 0x18c   :  { %2338 = vmatprep.subr.mxu1 %v18712_v10  ;;  %2207 = vmatpush2.msra.mxu0 %v14904_v38  ;;  %v18718_v38 = vld [vmem:[#allocation88_spill] sm:$0xff] }
 0x18d   :  { %2340 = vmatpush2.msra.mxu1 %v18713_v15  ;;  %2210 = vmatprep.subr.mxu0 %v14939_v57  ;;  %v18719_v57 = vld [vmem:[#allocation114_spill] sm:$0xff] }
 0x18e   :  { %2342 = vmatprep.subr.mxu1 %v18714_v47  ;;  %2213 = vmatpush2.msra.mxu0 %v14930_v46  ;;  %v18720_v46 = vld [vmem:[#allocation119_spill] sm:$0xff] }
 0x18f   :  { %2344 = vmatpush2.msra.mxu1 %v18715_v54  ;;  %2216 = vmatprep.subr.mxu0 %v14956_v55 }
 0x190   :  { %2346 = vmatprep.subr.mxu1 %v18716_v5  ;;  %2219 = vmatpush2.msra.mxu0 %v14952_v19 }
 0x191   :  { %2348 = vmatpush2.msra.mxu1 %v18717_v35  ;;  %2222 = vmatprep.subr.mxu0 %v14983_v48  ;;  %v18721_v48 = vld [vmem:[#allocation104_spill] sm:$0xff] }
 0x192   :  { %2350 = vmatprep.subr.mxu1 %v18718_v38  ;;  %2225 = vmatpush2.msra.mxu0 %v14970_v23  ;;  %v18722_v23 = vld [vmem:[#allocation106_spill] sm:$0xff] }
 0x193   :  { %2352 = vmatpush2.msra.mxu1 %v18719_v57  ;;  %2228 = vmatprep.subr.mxu0 %v14997_v7 }
 0x194   :  { %2354 = vmatprep.subr.mxu1 %v18720_v46  ;;  %2231 = vmatpush2.msra.mxu0 %v15001_v32  ;;  %v18723_v46 = vand.u32 4294901760, %v14157_v58  ;;  %v18727_v58 = vand.u32 4294901760, %v18639_v20  ;;  %v18735_v20 = vand.u32 4294901760, %v18645_v16 }
 0x195   :  { %2356 = vmatpush2.msra.mxu1 %v14863_v1  ;;  %2234 = vmatprep.subr.mxu0 %v15013_v44  ;;  %v18724_v1 = vand.u32 4294901760, %v14154_v6  ;;  %v18728_v6 = vand.u32 4294901760, %v18640_v22  ;;  %v18736_v22 = vld [vmem:[#allocation15_spill] sm:$0xff] }
 0x196   :  { %2358 = vmatprep.subr.mxu1 %v14894_v59  ;;  %2237 = vmatpush2.msra.mxu0 %v15017_v39  ;;  %v18725_v39 = vand.u32 4294901760, %v14170_v12  ;;  %v18729_v12 = vand.u32 4294901760, %v18641_v62  ;;  %v18737_v62 = vld [vmem:[#allocation78_spill] sm:$0xff] }
 0x197   :  { %2240 = vmatprep.mubr.f32.mxu0 %v18721_v48  ;;  %2360 = vmatpush2.msra.mxu1 %v14885_v34  ;;  %v18726_v48 = vand.u32 4294901760, %v14176_v25  ;;  %v18731_v25 = vand.u32 4294901760, %v18642_v61  ;;  %v18738_v61 = vand.u32 4294901760, %v18737_v62 }
 0x198   :  { %2243 = vmatmul.mubr.f32.vlgmr.msra.gmra.mxu0 %v18722_v23  ;;  %2362 = vmatprep.subr.mxu1 %v14917_v26  ;;  %v18730_v23 = vld [vmem:[#allocation108_spill] sm:$0xff] }
 0x199   :  { %2393 = vmatprep.subr.mxu0 %v18723_v46  ;;  %2364 = vmatpush2.msra.mxu1 %v14920_v9  ;;  %v18733_v46 = vand.u32 4294901760, %v18643_v40  ;;  %v18740_v40 = vand.u32 4294901760, %v18649_v27 }
 0x19a   :  { %2397 = vmatpush1.msra.mxu0 %v18724_v1  ;;  %2366 = vmatprep.subr.mxu1 %v14944_v8  ;;  %v18732_v1 = vld [vmem:[#allocation109_spill] sm:$0xff] }
 0x19b   :  { %2401 = vmatprep.subr.mxu0 %v18725_v39  ;;  %2368 = vmatpush2.msra.mxu1 %v14936_v51  ;;  %v18734_v39 = vand.u32 4294901760, %v18644_v56 }
 0x19c   :  { %2405 = vmatpush1.msra.mxu0 %v18726_v48  ;;  %2370 = vmatprep.subr.mxu1 %v14962_v53  ;;  %v18739_v48 = vld [vmem:[#allocation33_spill] sm:$0xff] }
 0x19d   :  { %2409 = vmatprep.subr.mxu0 %v18727_v58  ;;  %2372 = vmatpush2.msra.mxu1 %v14972_v4  ;;  %v18741_v58 = vld [vmem:[#allocation16_spill] sm:$0xff] }
 0x19e   :  { %2413 = vmatpush1.msra.mxu0 %v18728_v6  ;;  %2374 = vmatprep.subr.mxu1 %v14979_v52  ;;  %v18744_v6 = vld [vmem:[#allocation35_spill] sm:$0xff] }
 0x19f   :  { %2417 = vmatprep.subr.mxu0 %v18729_v12  ;;  %2376 = vmatpush2.msra.mxu1 %v14989_v2  ;;  %v18747_v12 = vld [vmem:[#allocation17_spill] sm:$0xff] }
 0x1a0   :  { %2380 = vmatprep.mubr.f32.mxu1 %v18730_v23  ;;  %2421 = vmatpush1.msra.mxu0 %v18731_v25  ;;  %v18748_v23 = vld [vmem:[#allocation39_spill] sm:$0xff] }
 0x1a1   :  { %2384 = vmatmul.mubr.f32.vlgmr.msra.gmra.mxu1 %v18732_v1  ;;  %2425 = vmatprep.subr.mxu0 %v18733_v46  ;;  %v18749_v25 = vand.u32 4294901760, %v18748_v23  ;;  %v18750_v1 = vld [vmem:[#allocation37_spill] sm:$0xff] }
 0x1a2   :  { %2656 = vmatprep.subr.mxu1 %v14133_v0  ;;  %2429 = vmatpush1.msra.mxu0 %v18734_v39  ;;  %v18742_v0 = vld [vmem:[#allocation92_spill] sm:$0xff]  ;;  %v18751_v46 = vld [vmem:[#allocation21_spill] sm:$0xff]  ;;  %v18753_v39 = vand.u32 4294901760, %v18659_v41 }
 0x1a3   :  { %2658 = vmatpush1.msra.mxu1 %v14135_v3  ;;  %2433 = vmatprep.subr.mxu0 %v18735_v20  ;;  %v18743_v56 = vand.u32 4294901760, %v18742_v0  ;;  %v18745_v3 = vld [vmem:[#allocation41_spill] sm:$0xff]  ;;  %v18752_v27 = vand.u32 4294901760, %v18751_v46  ;;  %v18754_v20 = vld [vmem:[#allocation60_spill] sm:$0xff] }
 0x1a4   :  { %2660 = vmatprep.subr.mxu1 %v18736_v22  ;;  %2437 = vmatpush1.msra.mxu0 %v18738_v61  ;;  %v18746_v16 = vand.u32 4294901760, %v18745_v3  ;;  %v18755_v22 = vld [vmem:[#allocation49_spill] sm:$0xff]  ;;  %v18757_v61 = vld [vmem:[#allocation68_spill] sm:$0xff] }
 0x1a5   :  { %2662 = vmatpush1.msra.mxu1 %v18739_v48  ;;  %2441 = vmatprep.subr.mxu0 %v18740_v40  ;;  %v18756_v62 = vand.u32 4294901760, %v18755_v22  ;;  %v18758_v48 = vld [vmem:[#allocation47_spill] sm:$0xff]  ;;  %v18761_v0 = vld [vmem:[#allocation25_spill] sm:$0xff] }
 0x1a6   :  { %2664 = vmatprep.subr.mxu1 %v18741_v58  ;;  %2445 = vmatpush1.msra.mxu0 %v18743_v56  ;;  %v18759_v40 = vand.u32 4294901760, %v18758_v48  ;;  %v18760_v58 = vld [vmem:[#allocation66_spill] sm:$0xff]  ;;  %v18762_v56 = vand.u32 4294901760, %v18761_v0  ;;  %v18766_v3 = vld [vmem:[#allocation57_spill] sm:$0xff] }
 0x1a7   :  { %2666 = vmatpush1.msra.mxu1 %v18744_v6  ;;  %2449 = vmatprep.subr.mxu0 %v18746_v16  ;;  %v18765_v6 = vld [vmem:[#allocation76_spill] sm:$0xff]  ;;  %v18767_v16 = vand.u32 4294901760, %v18766_v3  ;;  %v18781_v48 = vld [vmem:[#allocation34_spill] sm:$0xff]  ;;  %v18790_v3 = vld [vmem:[#allocation23_spill] sm:$0xff] }
 0x1a8   :  { %2668 = vmatprep.subr.mxu1 %v18747_v12  ;;  %2453 = vmatpush1.msra.mxu0 %v18749_v25  ;;  %v18768_v12 = vld [vmem:[#allocation55_spill] sm:$0xff]  ;;  %v18770_v25 = vld [vmem:[#allocation80_spill] sm:$0xff]  ;;  %v18785_v0 = vld [vmem:[#allocation22_spill] sm:$0xff] }
 0x1a9   :  { %2670 = vmatpush1.msra.mxu1 %v18750_v1  ;;  %2457 = vmatprep.subr.mxu0 %v18752_v27  ;;  %v18769_v23 = vand.u32 4294901760, %v18768_v12  ;;  %v18771_v1 = vld [vmem:[#allocation29_spill] sm:$0xff] }
 0x1aa   :  { %2672 = vmatprep.subr.mxu1 %v18658_v36  ;;  %2461 = vmatpush1.msra.mxu0 %v18753_v39  ;;  %v18763_v36 = vld [vmem:[#allocation51_spill] sm:$0xff]  ;;  %v18772_v46 = vand.u32 4294901760, %v18771_v1  ;;  %v18775_v39 = vld [vmem:[#allocation18_spill] sm:$0xff] }
 0x1ab   :  { %2674 = vmatpush1.msra.mxu1 %v18754_v20  ;;  %2465 = vmatprep.subr.mxu0 %v18756_v62  ;;  %v18764_v41 = vand.u32 4294901760, %v18763_v36  ;;  %v18776_v20 = vld [vmem:[#allocation65_spill] sm:$0xff]  ;;  %v18778_v62 = vld [vmem:[#allocation20_spill] sm:$0xff] }
 0x1ac   :  { %2676 = vmatprep.subr.mxu1 %v18757_v61  ;;  %2469 = vmatpush1.msra.mxu0 %v18759_v40  ;;  %v18777_v22 = vand.u32 4294901760, %v18776_v20  ;;  %v18782_v40 = vand.u32 4294901760, %v18781_v48  ;;  %v18809_v48 = vld [vmem:[#allocation85_spill] sm:$0xff] }
 0x1ad   :  { %2678 = vmatpush1.msra.mxu1 %v18760_v58  ;;  %2473 = vmatprep.subr.mxu0 %v18762_v56  ;;  %v18786_v56 = vld [vmem:[#allocation40_spill] sm:$0xff] }
 0x1ae   :  { %2680 = vmatprep.subr.mxu1 %v18665_v30  ;;  %2477 = vmatpush1.msra.mxu0 %v18764_v41  ;;  %v18773_v30 = vld [vmem:[#allocation59_spill] sm:$0xff]  ;;  %v18787_v36 = vand.u32 4294901760, %v18786_v56 }
 0x1af   :  { %2682 = vmatpush1.msra.mxu1 %v18765_v6  ;;  %2481 = vmatprep.subr.mxu0 %v18767_v16  ;;  %v18774_v27 = vand.u32 4294901760, %v18773_v30  ;;  %v18788_v41 = vld [vmem:[#allocation71_spill] sm:$0xff] }
 0x1b0   :  { %2684 = vmatprep.subr.mxu1 %v14294_v63  ;;  %2485 = vmatpush1.msra.mxu0 %v18769_v23  ;;  %v18779_v63 = vld [vmem:[#allocation63_spill] sm:$0xff]  ;;  %v18789_v6 = vand.u32 4294901760, %v18788_v41  ;;  %v18795_v23 = vld [vmem:[#allocation26_spill] sm:$0xff] }
 0x1b1   :  { %2686 = vmatpush1.msra.mxu1 %v18770_v25  ;;  %2489 = vmatprep.subr.mxu0 %v18772_v46  ;;  %v18780_v61 = vand.u32 4294901760, %v18779_v63  ;;  %v18796_v25 = vld [vmem:[#allocation48_spill] sm:$0xff]  ;;  %v18817_v41 = vld [vmem:[#allocation107_spill] sm:$0xff] }
 0x1b2   :  { %2688 = vmatprep.subr.mxu1 %v18671_v11  ;;  %2493 = vmatpush1.msra.mxu0 %v18774_v27  ;;  %v18783_v11 = vld [vmem:[#allocation67_spill] sm:$0xff]  ;;  %v18797_v1 = vand.u32 4294901760, %v18796_v25  ;;  %v18798_v46 = vld [vmem:[#allocation28_spill] sm:$0xff]  ;;  %v18801_v27 = vld [vmem:[#allocation50_spill] sm:$0xff] }
 0x1b3   :  { %2690 = vmatpush1.msra.mxu1 %v18775_v39  ;;  %2497 = vmatprep.subr.mxu0 %v18777_v22  ;;  %v18784_v58 = vand.u32 4294901760, %v18783_v11  ;;  %v18802_v39 = vand.u32 4294901760, %v18801_v27  ;;  %v18805_v22 = vld [vmem:[#allocation30_spill] sm:$0xff]  ;;  %v18811_v11 = vld [vmem:[#allocation31_spill] sm:$0xff] }
 0x1b4   :  { %2692 = vmatprep.subr.mxu1 %v18778_v62  ;;  %2501 = vmatpush1.msra.mxu0 %v18780_v61  ;;  %v18806_v62 = vld [vmem:[#allocation91_spill] sm:$0xff]  ;;  %v18808_v61 = vld [vmem:[#allocation32_spill] sm:$0xff] }
 0x1b5   :  { %2694 = vmatpush1.msra.mxu1 %v18676_v14  ;;  %2505 = vmatprep.subr.mxu0 %v18782_v40  ;;  %v18791_v14 = vld [vmem:[#allocation42_spill] sm:$0xff]  ;;  %v18807_v63 = vand.u32 4294901760, %v18806_v62  ;;  %v18810_v40 = vand.u32 4294901760, %v18809_v48  ;;  %v18826_v25 = vld [vmem:[#allocation115_spill] sm:$0xff] }
 0x1b6   :  { %2696 = vmatprep.subr.mxu1 %v18677_v42  ;;  %2509 = vmatpush1.msra.mxu0 %v18784_v58  ;;  %v18792_v16 = vand.u32 4294901760, %v18791_v14  ;;  %v18793_v42 = vld [vmem:[#allocation75_spill] sm:$0xff]  ;;  %v18812_v58 = vld [vmem:[#allocation97_spill] sm:$0xff] }
 0x1b7   :  { %2698 = vmatpush1.msra.mxu1 %v18785_v0  ;;  %2513 = vmatprep.subr.mxu0 %v18787_v36  ;;  %v18794_v12 = vand.u32 4294901760, %v18793_v42  ;;  %v18813_v0 = vand.u32 4294901760, %v18812_v58  ;;  %v18816_v36 = vld [vmem:[#allocation36_spill] sm:$0xff]  ;;  %v18822_v42 = vld [vmem:[#allocation111_spill] sm:$0xff] }
 0x1b8   :  { %2700 = vmatprep.subr.mxu1 %v18680_v50  ;;  %2517 = vmatpush1.msra.mxu0 %v18789_v6  ;;  %v18799_v50 = vld [vmem:[#allocation79_spill] sm:$0xff]  ;;  %v18818_v6 = vand.u32 4294901760, %v18817_v41 }
 0x1b9   :  { %2702 = vmatpush1.msra.mxu1 %v18790_v3  ;;  %2521 = vmatprep.subr.mxu0 %v18792_v16  ;;  %v18800_v30 = vand.u32 4294901760, %v18799_v50  ;;  %v18819_v3 = vld [vmem:[#allocation98_spill] sm:$0xff]  ;;  %v18830_v50 = vld [vmem:[#allocation120_spill] sm:$0xff]  ;;  %v18838_v62 = vld [vmem:[#allocation123_spill] sm:$0xff] }
 0x1ba   :  { %2704 = vmatprep.subr.mxu1 %v18684_v31  ;;  %2525 = vmatpush2.msra.mxu0 %v18794_v12  ;;  %v18803_v31 = vld [vmem:[#allocation83_spill] sm:$0xff]  ;;  %v18820_v14 = vand.u32 4294901760, %v18819_v3  ;;  %v18823_v12 = vand.u32 4294901760, %v18822_v42  ;;  %v18855_v42 = vld [vmem:[#allocation117_spill] sm:$0xff] }
 0x1bb   :  { %2706 = vmatpush1.msra.mxu1 %v18795_v23  ;;  %2529 = vmatprep.subr.mxu0 %v18797_v1  ;;  %v18804_v20 = vand.u32 4294901760, %v18803_v31  ;;  %v18827_v1 = vand.u32 4294901760, %v18826_v25  ;;  %v18836_v31 = vld [vmem:[#allocation118_spill] sm:$0xff] }
 0x1bc   :  { %2708 = vmatprep.subr.mxu1 %v18798_v46  ;;  %2533 = vmatpush2.msra.mxu0 %v18800_v30  ;;  %v18831_v30 = vand.u32 4294901760, %v18830_v50 }
 0x1bd   :  { %2710 = vmatpush1.msra.mxu1 %v18688_v33  ;;  %2537 = vmatprep.subr.mxu0 %v18802_v39  ;;  %v204_v33 = vlaneseq }
 0x1be   :  { %2712 = vmatprep.subr.mxu1 %v18689_v60  ;;  %2541 = vmatpush2.msra.mxu0 %v18804_v20  ;;  %v18814_v60 = vld [vmem:[#allocation93_spill] sm:$0xff]  ;;  %v18837_v20 = vand.u32 4294901760, %v18836_v31 }
 0x1bf   :  { %2714 = vmatpush1.msra.mxu1 %v18805_v22  ;;  %2545 = vmatprep.subr.mxu0 %v18807_v63  ;;  %v18815_v56 = vand.u32 4294901760, %v18814_v60  ;;  %v15315_v16 = vshrl.u32 %v204_v33, 7  ;;  %v18839_v63 = vand.u32 4294901760, %v18838_v62  ;;  %v18848_v60 = vld [vmem:[#allocation127_spill] sm:$0xff] }
 0x1c0   :  { %2716 = vmatprep.subr.mxu1 %v18808_v61  ;;  %2549 = vmatpush2.msra.mxu0 %v18810_v40  ;;  %v757_v40 = vpop.f32.mrf.mxu1 }
 0x1c1   :  { %2718 = vmatpush1.msra.mxu1 %v18811_v11  ;;  %2553 = vmatprep.subr.mxu0 %v18813_v0  ;;  %18821 = vst [vmem:[#allocation112_spill] sm:$0xff] %v15315_v16  ;;  %v17858_v22 = vsub.s32 1, %v15315_v16  ;;  %v18844_v11 = vld [vmem:[#allocation124_spill] sm:$0xff]  ;;  %v18846_v0 = vand.u32 4294901760, %v14956_v55  ;;  %v214_v62 = vsub.s32 2, %v15315_v16 }
 0x1c2   :  { %2720 = vmatprep.subr.mxu1 %v18696_v24  ;;  %2557 = vmatpush2.msra.mxu0 %v18815_v56  ;;  %v18824_v24 = vld [vmem:[#allocation105_spill] sm:$0xff]  ;;  %v18845_v33 = vand.u32 4294901760, %v18844_v11  ;;  %v18849_v56 = vand.u32 4294901760, %v18848_v60 }
 0x1c3   :  { %2722 = vmatpush2.msra.mxu1 %v18816_v36  ;;  %2561 = vmatprep.subr.mxu0 %v18818_v6  ;;  %v18825_v23 = vand.u32 4294901760, %v18824_v24  ;;  %v18850_v36 = vld [vmem:[#allocation126_spill] sm:$0xff] }
 0x1c4   :  { %2724 = vmatprep.subr.mxu1 %v18698_v21  ;;  %2565 = vmatpush2.msra.mxu0 %v18820_v14  ;;  %v18828_v21 = vld [vmem:[#allocation84_spill] sm:$0xff]  ;;  %v18851_v41 = vand.u32 4294901760, %v18850_v36  ;;  %v18854_v14 = vand.u32 4294901760, %v15001_v32  ;;  %v18860_v32 = vld [vmem:[#allocation103_spill] sm:$0xff] }
 0x1c5   :  { %2726 = vmatpush2.msra.mxu1 %v18700_v49  ;;  %2569 = vmatprep.subr.mxu0 %v18823_v12  ;;  %v18829_v46 = vand.u32 4294901760, %v18828_v21  ;;  %v17859_v49 = vsub.s32 0, %v15315_v16  ;;  %v18856_v12 = vand.u32 4294901760, %v15013_v44 }
 0x1c6   :  { %2728 = vmatprep.subr.mxu1 %v18702_v45  ;;  %2573 = vmatpush2.msra.mxu0 %v18825_v23  ;;  %v15333_v45 = vld [vmem:[#allocation7] sm:$0xf] }
 0x1c7   :  { %2730 = vmatpush2.msra.mxu1 %v18704_v43  ;;  %2577 = vmatprep.subr.mxu0 %v18827_v1  ;;  %v18832_v43 = vld [vmem:[#allocation116_spill] sm:$0xff] }
 0x1c8   :  { %2732 = vmatprep.subr.mxu1 %v18705_v17  ;;  %2581 = vmatpush2.msra.mxu0 %v18829_v46  ;;  %v18833_v27 = vand.u32 4294901760, %v18832_v43  ;;  %v18834_v17 = vld [vmem:[#allocation121_spill] sm:$0xff] }
 0x1c9   :  { %2734 = vmatpush2.msra.mxu1 %v18707_v13  ;;  %2585 = vmatprep.subr.mxu0 %v18831_v30  ;;  %v18835_v39 = vand.u32 4294901760, %v18834_v17  ;;  %v364_v13 = vpop.f32.mrf.mxu0 }
 0x1ca   :  { %2736 = vmatprep.subr.mxu1 %v18708_v29  ;;  %2589 = vmatpush2.msra.mxu0 %v18833_v27  ;;  %v207_v29 = vrot.slane %v15333_v45, %v17859_v49 }
 0x1cb   :  { %2738 = vmatpush2.msra.mxu1 %v18709_v28  ;;  %2593 = vmatprep.subr.mxu0 %v18835_v39  ;;  %v18840_v28 = vld [vmem:[#allocation122_spill] sm:$0xff] }
 0x1cc   :  { %2740 = vmatprep.subr.mxu1 %v18710_v37  ;;  %2597 = vmatpush2.msra.mxu0 %v18837_v20  ;;  %v18841_v61 = vand.u32 4294901760, %v18840_v28  ;;  %v18842_v37 = vld [vmem:[#allocation125_spill] sm:$0xff]  ;;  %v365_v58 = vadd.f32 %v364_v13, %v207_v29  ;;  %v215_v28 = vrot.slane %v15333_v45, %v214_v62 }
 0x1cd   :  { %2742 = vmatpush2.msra.mxu1 %v18711_v18  ;;  %2601 = vmatprep.subr.mxu0 %v18839_v63  ;;  %v18843_v48 = vand.u32 4294901760, %v18842_v37  ;;  %v366_v18 = vpop.f32.mrf.mxu0 }
 0x1ce   :  { %2744 = vmatprep.subr.mxu1 %v18712_v10  ;;  %2605 = vmatpush2.msra.mxu0 %v18841_v61  ;;  %v211_v10 = vrot.slane %v15333_v45, %v17858_v22  ;;  %v758_v6 = vadd.f32 %v757_v40, %v365_v58  ;;  %v218_v61 = vsub.s32 3, %v15315_v16  ;;  %v10739_v22 = vld [vmem:[#allocation8 + $0x68] sm:$0xff] }
 0x1cf   :  { %2746 = vmatpush2.msra.mxu1 %v18713_v15  ;;  %2609 = vmatprep.subr.mxu0 %v18843_v48  ;;  %v960_v15 = vpop.f32.mrf.mxu0 }
 0x1d0   :  { %2748 = vmatprep.subr.mxu1 %v18714_v47  ;;  %2613 = vmatpush2.msra.mxu0 %v18845_v33  ;;  %v18847_v47 = vand.u32 4294901760, %v14952_v19  ;;  %v367_v55 = vadd.f32 %v366_v18, %v211_v10  ;;  %v18853_v19 = vld [vmem:[#allocation119_spill] sm:$0xff]  ;;  %v219_v40 = vrot.slane %v15333_v45, %v218_v61 }
 0x1d1   :  { %2750 = vmatpush2.msra.mxu1 %v18715_v54  ;;  %2617 = vmatprep.subr.mxu0 %v18846_v0  ;;  %v759_v54 = vpop.f32.mrf.mxu1  ;;  %v962_v3 = vpop.f32.mrf.mxu0 }
 0x1d2   :  { %2752 = vmatprep.subr.mxu1 %v18716_v5  ;;  %2621 = vmatpush2.msra.mxu0 %v18847_v47  ;;  %v18852_v5 = vand.u32 4294901760, %v14997_v7  ;;  %v18859_v7 = vld [vmem:[#allocation101_spill] sm:$0xff]  ;;  %v760_v25 = vadd.f32 %v759_v54, %v367_v55 }
 0x1d3   :  { %2754 = vmatpush2.msra.mxu1 %v18717_v35  ;;  %2625 = vmatprep.subr.mxu0 %v18849_v56  ;;  %v1101_v35 = vpop.f32.mrf.mxu1  ;;  %v1366_v23 = vpop.f32.mrf.mxu0 }
 0x1d4   :  { %2756 = vmatprep.subr.mxu1 %v18718_v38  ;;  %2629 = vmatpush2.msra.mxu0 %v18851_v41  ;;  %v961_v38 = vadd.f32 %v960_v15, %v758_v6  ;;  %v963_v44 = vadd.f32 %v962_v3, %v760_v25  ;;  %v12950_v25 = vmov 1934713408  }
 0x1d5   :  { %2758 = vmatpush2.msra.mxu1 %v18719_v57  ;;  %2633 = vmatprep.subr.mxu0 %v18852_v5  ;;  %v18857_v57 = vld [vmem:[#allocation128_spill] sm:$0xff]  ;;  %v1103_v21 = vpop.f32.mrf.mxu1 }
 0x1d6   :  { %2760 = vmatprep.subr.mxu1 %v18853_v19  ;;  %2637 = vmatpush2.msra.mxu0 %v18854_v14  ;;  %v18858_v24 = vand.u32 4294901760, %v18857_v57  ;;  %v1102_v1 = vadd.f32 %v1101_v35, %v961_v38  ;;  %v1104_v30 = vadd.f32 %v1103_v21, %v963_v44  ;;  %v15460_v38 = vld [vmem:[#allocation2] sm:$0xff] }
 0x1d7   :  { %2762 = vmatpush2.msra.mxu1 %v18855_v42  ;;  %2641 = vmatprep.subr.mxu0 %v18856_v12  ;;  %v12948_v42 = vmov 0.0  }
 0x1d8   :  { %2764 = vmatprep.subr.mxu1 %v14894_v59  ;;  %2645 = vmatpush2.msra.mxu0 %v18858_v24  ;;  %v1367_v46 = vadd.f32 %v1366_v23, %v1102_v1  ;;  %v1368_v59 = vpop.f32.mrf.mxu0  ;;  %v2879_v1 = vunpack.c.l.s4 %v12950_v25 }
 0x1d9   :  { %2647 = vmatprep.mubr.f32.mxu0 %v18859_v7  ;;  %2766 = vmatpush2.msra.mxu1 %v14885_v34  ;;  %v1369_v27 = vadd.f32 %v1368_v59, %v1104_v30 }
 0x1da   :  { %2649 = vmatmul.mubr.f32.vlgmr.msra.gmra.mxu0 %v18860_v32  ;;  %2768 = vmatprep.subr.mxu1 %v14917_v26  ;;  %v1503_v50 = vpop.f32.mrf.mxu1  ;;  %v2880_v30 = vunpack.c.0.s8 %v2879_v1 }
 0x1db   :  { %2784 = vmatprep.mubr.f32.mxu1 %v18859_v7  ;;  %2770 = vmatpush2.msra.mxu1 %v14920_v9  ;;  %v15394_v43 = vadd.f32 %v1503_v50, %v1367_v46 }
 0x1dc   :  { %2772 = vmatprep.subr.mxu1 %v14944_v8  ;;  %v1505_v34 = vpop.f32.mrf.mxu1  ;;  %12299 = vmatprep.subr.mxu0 %v12948_v42  ;;  %v15506_v61 = vsub.s32 %v2880_v30, %v15315_v16 }
 0x1dd   :  { %2774 = vmatpush2.msra.mxu1 %v14936_v51  ;;  %2796 = vrot.lane.b32.xlu1 %v15394_v43, %s12945_s2  ;;  %v15404_v8 = vadd.f32 %v1505_v34, %v1369_v27 }
 0x1de   :  { %2776 = vmatprep.subr.mxu1 %v14962_v53  ;;  %2793 = vrot.lane.b32.xlu0 %v15394_v43, %s12946_s3  ;;  %v12947_v53 = vmov 1983009808  }
 0x1df   :  { %2778 = vmatpush2.msra.mxu1 %v14972_v4  ;;  %v2815_v51 = vunpack.c.l.s4 %v12947_v53  ;;  %12301 = vmatprep.mubr.msk.f32.mxu0 %vm12949_vm0, %v12948_v42 }
 0x1e0   :  { %2780 = vmatprep.subr.mxu1 %v14979_v52 }
 0x1e1   :  { %2782 = vmatpush2.msra.mxu1 %v14989_v2  ;;  %2803 = vrot.lane.b32.xlu1 %v15404_v8, %s12946_s3  ;;  %v2816_v26 = vunpack.c.0.s8 %v2815_v51 }
 0x1e2   :  { %2786 = vmatmul.mubr.f32.vlgmr.msra.gmra.mxu1 %v18860_v32  ;;  %2799 = vrot.lane.b32.xlu0 %v15394_v43, %s12939_s22 }
 0x1e3   :  { %v15416_v4 = vsub.s32 %v2816_v26, %v15315_v16  ;;  %12304 = vmatprep.subr.mxu1 %v12948_v42  ;;  %12306 = vmatprep.mubr.msk.f32.mxu1 %vm12949_vm0, %v12948_v42 }
 0x217   :  { %v1648_v63 = vpop.f32.mrf.mxu0 }
 0x218   :  { %v1649_v18 = vadd.f32 %v1648_v63, %v215_v28 }
 0x219   :  { %v1650_v37 = vpop.f32.mrf.mxu0 }
 0x21a   :  { %v1651_v58 = vadd.f32 %v1650_v37, %v219_v40 }
 0x21f   :  { %v2041_v48 = vpop.f32.mrf.mxu1 }
 0x220   :  { %v2042_v10 = vadd.f32 %v2041_v48, %v1649_v18 }
 0x221   :  { %v2043_v33 = vpop.f32.mrf.mxu1 }
 0x222   :  { %v2044_v56 = vadd.f32 %v2043_v33, %v1651_v58 }
 0x24f   :  { %v15411_v52 = vpop.permute.xlu1 %2796 }
 0x250   :  { %v15413_v9 = vpop.permute.xlu0 %2793  ;;  %v2813_v2 = vcombine.high %v15394_v43, %v15411_v52  ;;  %v2812_v34 = vcombine.low %v15394_v43, %v15411_v52 }
 0x252   :  { %v15425_v13 = vrot.slane %v2813_v2, %v15416_v4  ;;  %v2820_v37 = vrot.slane %v2812_v34, %v15416_v4 }
 0x253   :  { %v2804_v12 = vpop.permute.xlu1 %2803 }
 0x254   :  { %v15420_v17 = vpop.permute.xlu0 %2799 }
 0x255   :  { %v2829_v39 = vcombine.high %v15413_v9, %v15420_v17  ;;  %v2828_v44 = vcombine.low %v15413_v9, %v15420_v17 }
 0x257   :  { %v15428_v31 = vrot.slane %v2829_v39, %v15416_v4  ;;  %v2836_v26 = vrot.slane %v2828_v44, %v15416_v4 }
 0x258   :  { %v2244_v11 = vpop.f32.mrf.mxu0 }
 0x259   :  { %v2892_v20 = vcombine.low %v15425_v13, %v15428_v31  ;;  %v2893_v29 = vcombine.high %v15425_v13, %v15428_v31  ;;  %v2245_v47 = vadd.f32 %v2244_v11, %v2042_v10  ;;  %v2876_v58 = vcombine.low %v2820_v37, %v2836_v26 }
 0x25a   :  { %v2246_v0 = vpop.f32.mrf.mxu0 }
 0x25b   :  { %v2247_v41 = vadd.f32 %v2246_v0, %v2044_v56  ;;  %v2884_v56 = vrot.slane %v2876_v58, %v15506_v61 }
 0x261   :  { %v2385_v15 = vpop.f32.mrf.mxu1 }
 0x262   :  { %v2386_v54 = vadd.f32 %v2385_v15, %v2245_v47 }
 0x263   :  { %v2387_v36 = vpop.f32.mrf.mxu1 }
 0x264   :  { %v2388_v19 = vadd.f32 %v2387_v36, %v2247_v41 }
 0x29a   :  { %v2650_v60 = vpop.f32.mrf.mxu0 }
 0x29b   :  { %v2651_v55 = vadd.f32 %v2650_v60, %v2386_v54 }
 0x29c   :  { %v2652_v6 = vpop.f32.mrf.mxu0 }
 0x29d   :  { %v2653_v45 = vadd.f32 %v2652_v6, %v2388_v19  ;;  %v15533_v6 = vrot.slane %v2893_v29, %v15506_v61 }
 0x2a2   :  { %v2787_v5 = vpop.f32.mrf.mxu1 }
 0x2a3   :  { %v15438_v3 = vadd.f32 %v2787_v5, %v2651_v55  ;;  %v15527_v55 = vrot.slane %v2892_v20, %v15506_v61 }
 0x2a4   :  { %v2789_v35 = vpop.f32.mrf.mxu1 }
 0x2a5   :  { %2955 = vrot.lane.b32.xlu1 %v15438_v3, %s12939_s22  ;;  %2949 = vrot.lane.b32.xlu0 %v15438_v3, %s12946_s3  ;;  %v15444_v14 = vadd.f32 %v2789_v35, %v2653_v45 }
 0x2a9   :  { %2959 = vrot.lane.b32.xlu1 %v15444_v14, %s12946_s3  ;;  %2952 = vrot.lane.b32.xlu0 %v15438_v3, %s12945_s2 }
 0x2ad   :  { %2965 = vrot.lane.b32.xlu1 %v15444_v14, %s12939_s22  ;;  %2962 = vrot.lane.b32.xlu0 %v15444_v14, %s12945_s2 }
 0x2b1   :  { %2809 = vrot.lane.b32.xlu1 %v15404_v8, %s12939_s22  ;;  %2806 = vrot.lane.b32.xlu0 %v15404_v8, %s12945_s2 }
 0x2b5   :  { %3105 = vrot.lane.b32.xlu1 %v15460_v38, %s12946_s3 }
 0x317   :  { %v15468_v57 = vpop.permute.xlu1 %2955  ;;  %v15470_v24 = vpop.permute.xlu0 %2949 }
 0x318   :  { %v2984_v21 = vcombine.low %v15470_v24, %v15468_v57 }
 0x31a   :  { %v15492_v27 = vrot.slane %v2984_v21, %v15416_v4 }
 0x31b   :  { %v15472_v7 = vpop.permute.xlu1 %2959  ;;  %v15474_v23 = vpop.permute.xlu0 %2952 }
 0x31c   :  { %v2968_v32 = vcombine.low %v15438_v3, %v15474_v23 }
 0x31e   :  { %v15483_v46 = vrot.slane %v2968_v32, %v15416_v4 }
 0x31f   :  { %v15485_v59 = vpop.permute.xlu1 %2965  ;;  %v15487_v50 = vpop.permute.xlu0 %2962 }
 0x320   :  { %v3016_v53 = vcombine.low %v15472_v7, %v15485_v59  ;;  %v3000_v51 = vcombine.low %v15444_v14, %v15487_v50  ;;  %v3032_v9 = vcombine.low %v15483_v46, %v15492_v27 }
 0x322   :  { %v3024_v2 = vrot.slane %v3016_v53, %v15416_v4  ;;  %v3008_v17 = vrot.slane %v3000_v51, %v15416_v4  ;;  %v3040_v10 = vrot.slane %v3032_v9, %v15506_v61  ;;  %v3033_v53 = vcombine.high %v15483_v46, %v15492_v27 }
 0x323   :  { %v2810_v39 = vpop.permute.xlu1 %2809  ;;  %v2807_v43 = vpop.permute.xlu0 %2806  ;;  %v2877_v9 = vcombine.high %v2820_v37, %v2836_v26 }
 0x324   :  { %v2860_v52 = vcombine.low %v2804_v12, %v2810_v39  ;;  %v2861_v62 = vcombine.high %v2804_v12, %v2810_v39  ;;  %v2844_v63 = vcombine.low %v15404_v8, %v2807_v43  ;;  %v2845_v28 = vcombine.high %v15404_v8, %v2807_v43 }
 0x325   :  { %v3064_v48 = vcombine.low %v3008_v17, %v3024_v2  ;;  %v3065_v29 = vcombine.high %v3008_v17, %v3024_v2  ;;  %v15564_v46 = vrot.slane %v3033_v53, %v15506_v61 }
 0x326   :  { %v2868_v18 = vrot.slane %v2860_v52, %v15416_v4  ;;  %v2875_v40 = vrot.slane %v2861_v62, %v15416_v4  ;;  %v2852_v11 = vrot.slane %v2844_v63, %v15416_v4  ;;  %v2859_v33 = vrot.slane %v2845_v28, %v15416_v4 }
 0x327   :  { %v3072_v0 = vrot.slane %v3064_v48, %v15506_v61  ;;  %v15556_v2 = vrot.slane %v3065_v29, %v15506_v61  ;;  %v15567_v28 = vrot.slane %v2877_v9, %v15506_v61 }
 0x328   :  { %v2908_v8 = vcombine.low %v2852_v11, %v2868_v18  ;;  %v2924_v15 = vcombine.low %v2859_v33, %v2875_v40  ;;  %v2925_v47 = vcombine.high %v2859_v33, %v2875_v40  ;;  %v2909_v44 = vcombine.high %v2852_v11, %v2868_v18 }
 0x329   :  { %v3096_v60 = vcombine.low %v3040_v10, %v3072_v0  ;;  %v3097_v5 = vcombine.high %v3040_v10, %v3072_v0  ;;  %v3098_v48 = vcombine.low %v15564_v46, %v15556_v2 }
 0x32a   :  { %v2916_v54 = vrot.slane %v2908_v8, %v15506_v61  ;;  %v15518_v36 = vrot.slane %v2924_v15, %v15506_v61  ;;  %v15521_v41 = vrot.slane %v2925_v47, %v15506_v61  ;;  %v15561_v62 = vrot.slane %v2909_v44, %v15506_v61 }
 0x32b   :  { %v3265_v19 = vsel %vm3260_vm1, %v3096_v60, 0  ;;  %v3717_v21 = vsel %vm3260_vm1, %v3097_v5, 0  ;;  %v4169_v10 = vsel %vm3260_vm1, %v3098_v48, 0  ;;  %v3017_v8 = vcombine.high %v15472_v7, %v15485_v59 }
 0x32c   :  { %v2940_v35 = vcombine.low %v2884_v56, %v2916_v54  ;;  %v2941_v45 = vcombine.high %v2884_v56, %v2916_v54  ;;  %v2944_v12 = vcombine.low %v15527_v55, %v15518_v36  ;;  %v2945_v25 = vcombine.high %v15527_v55, %v15518_v36 }
 0x32d   :  { %v2946_v20 = vcombine.low %v15533_v6, %v15521_v41  ;;  %v2947_v1 = vcombine.high %v15533_v6, %v15521_v41  ;;  %v3298_v13 = vand.u32 4294901760, %v3265_v19  ;;  %v15553_v43 = vand.u32 4294901760, %v3717_v21 }
 0x32e   :  { %v3262_v31 = vsel %vm3260_vm1, %v2940_v35, 0  ;;  %v3714_v34 = vsel %vm3260_vm1, %v2941_v45, 0  ;;  %v2942_v11 = vcombine.low %v15567_v28, %v15561_v62  ;;  %v15596_v47 = vand.u32 4294901760, %v4169_v10 }
 0x32f   :  { %v15545_v32 = vand.u32 4294901760, %v3262_v31  ;;  %12300 = vmatpush3.xpose.msra.mxu0 %v3298_v13  ;;  %v3375_v30 = vsub.f32 %v3265_v19, %v3298_v13  ;;  %v15558_v52 = vand.u32 4294901760, %v3714_v34  ;;  %v15570_v37 = vsub.f32 %v3717_v21, %v15553_v43 }
 0x330   :  { %12309 = vmatprep.subr.mxu0 %v12948_v42  ;;  %v4166_v0 = vsel %vm3260_vm1, %v2942_v11, 0  ;;  %v3001_v60 = vcombine.high %v15444_v14, %v15487_v50  ;;  %v2969_v7 = vcombine.high %v15438_v3, %v15474_v23  ;;  %v2985_v14 = vcombine.high %v15470_v24, %v15468_v57 }
 0x331   :  { %v3334_v51 = vsub.f32 %v3262_v31, %v15545_v32  ;;  %v3376_v39 = vand.u32 4294901760, %v3375_v30  ;;  %v15575_v40 = vsub.f32 %v3714_v34, %v15558_v52  ;;  %v3828_v33 = vand.u32 4294901760, %v15570_v37 }
 0x332   :  { %v15602_v54 = vand.u32 4294901760, %v4166_v0  ;;  %v15613_v59 = vrot.slane %v3017_v8, %v15416_v4  ;;  %v15619_v5 = vsub.f32 %v4169_v10, %v15596_v47  ;;  %v15622_v3 = vrot.slane %v3001_v60, %v15416_v4 }
 0x333   :  { %v3335_v17 = vand.u32 4294901760, %v3334_v51  ;;  %v3377_v63 = vsub.f32 %v3375_v30, %v3376_v39  ;;  %v3787_v58 = vand.u32 4294901760, %v15575_v40  ;;  %v3829_v15 = vsub.f32 %v15570_v37, %v3828_v33 }
 0x334   :  { %v3099_v23 = vcombine.high %v15564_v46, %v15556_v2  ;;  %v15629_v24 = vsub.f32 %v4166_v0, %v15602_v54  ;;  %v2943_v19 = vcombine.high %v15567_v28, %v15561_v62  ;;  %v15636_v35 = vrot.slane %v2969_v7, %v15416_v4 }
 0x335   :  { %v3336_v27 = vsub.f32 %v3334_v51, %v3335_v17  ;;  %v3378_v26 = vand.u32 4294901760, %v3377_v63  ;;  %v3788_v56 = vsub.f32 %v15575_v40, %v3787_v58  ;;  %v3830_v50 = vand.u32 4294901760, %v3829_v15 }
 0x336   :  { %v4280_v45 = vand.u32 4294901760, %v15619_v5  ;;  %v3080_v31 = vcombine.low %v15622_v3, %v15613_v59  ;;  %v4239_v29 = vand.u32 4294901760, %v15629_v24  ;;  %v4618_v21 = vsel %vm3260_vm1, %v2943_v19, 0 }
 0x337   :  { %v3337_v18 = vand.u32 4294901760, %v3336_v27  ;;  %12305 = vmatpush3.xpose.msra.mxu1 %v3378_v26  ;;  %v3789_v57 = vand.u32 4294901760, %v3788_v56  ;;  %v15670_v9 = vand.u32 4294901760, %v4618_v21  ;;  %v5070_v28 = vsel %vm3260_vm1, %v2944_v12, 0 }
 0x338   :  { %12314 = vmatprep.subr.mxu1 %v12948_v42  ;;  %v15666_v53 = vrot.slane %v3080_v31, %v15506_v61  ;;  %v3081_v0 = vcombine.high %v15622_v3, %v15613_v59  ;;  %v5974_v19 = vsel %vm3260_vm1, %v2946_v20, 0 }
 0x339   :  { %12302 = vmatmul.mubr.f32.vlgmr.msra.gmra.mxu0 %v3337_v18  ;;  %v4690_v63 = vsub.f32 %v4618_v21, %v15670_v9  ;;  %v15709_v18 = vand.u32 4294901760, %v5070_v28  ;;  %v15794_v31 = vand.u32 4294901760, %v5974_v19 }
 0x33a   :  { %12310 = vmatpush3.xpose.msra.mxu0 %v3375_v30  ;;  %12311 = vmatprep.mubr.msk.f32.mxu0 %vm12949_vm0, %v12948_v42  ;;  %v4281_v30 = vsub.f32 %v15619_v5, %v4280_v45  ;;  %v15753_v7 = vrot.slane %v3081_v0, %v15506_v61 }
 0x33b   :  { %12307 = vmatmul.mubr.f32.vlgmr.msra.gmra.mxu1 %v15545_v32  ;;  %12319 = vmatprep.subr.mxu0 %v12948_v42 }
 0x33c   :  { %12315 = vmatpush3.xpose.msra.mxu1 %v3298_v13  ;;  %12316 = vmatprep.mubr.msk.f32.mxu1 %vm12949_vm0, %v12948_v42  ;;  %v4282_v2 = vand.u32 4294901760, %v4281_v30 }
 0x33d   :  { %12324 = vmatprep.subr.mxu1 %v12948_v42  ;;  %12312 = vmatmul.mubr.f32.vlgmr.msra.gmra.mxu0 %v3334_v51  ;;  %v4240_v51 = vsub.f32 %v15629_v24, %v4239_v29 }
 0x33e   :  { %12320 = vmatpush3.xpose.msra.mxu0 %v3376_v39  ;;  %12321 = vmatprep.mubr.msk.f32.mxu0 %vm12949_vm0, %v12948_v42 }
 0x33f   :  { %12317 = vmatmul.mubr.f32.vlgmr.msra.gmra.mxu1 %v3335_v17  ;;  %12329 = vmatprep.subr.mxu0 %v12948_v42 }
 0x340   :  { %12325 = vmatpush3.xpose.msra.mxu1 %v3298_v13  ;;  %12326 = vmatprep.mubr.msk.f32.mxu1 %vm12949_vm0, %v12948_v42  ;;  %v15644_v13 = vrot.slane %v2985_v14, %v15416_v4 }
 0x341   :  { %12334 = vmatprep.subr.mxu1 %v12948_v42  ;;  %12322 = vmatmul.mubr.f32.vlgmr.msra.gmra.mxu0 %v15545_v32 }
 0x342   :  { %12330 = vmatpush3.xpose.msra.mxu0 %v15553_v43  ;;  %12331 = vmatprep.mubr.msk.f32.mxu0 %vm12949_vm0, %v12948_v42  ;;  %v3048_v44 = vcombine.low %v15636_v35, %v15644_v13  ;;  %v3049_v60 = vcombine.high %v15636_v35, %v15644_v13 }
 0x343   :  { %12327 = vmatmul.mubr.f32.vlgmr.msra.gmra.mxu1 %v15545_v32  ;;  %12339 = vmatprep.subr.mxu0 %v12948_v42  ;;  %v4621_v32 = vsel %vm3260_vm1, %v3099_v23, 0 }
 0x344   :  { %12335 = vmatpush3.xpose.msra.mxu1 %v3830_v50  ;;  %12336 = vmatprep.mubr.msk.f32.mxu1 %vm12949_vm0, %v12948_v42  ;;  %v15663_v34 = vand.u32 4294901760, %v4621_v32  ;;  %v3056_v39 = vrot.slane %v3048_v44, %v15506_v61  ;;  %v6046_v44 = vsub.f32 %v5974_v19, %v15794_v31 }
 0x345   :  { %12344 = vmatprep.subr.mxu1 %v12948_v42  ;;  %12332 = vmatmul.mubr.f32.vlgmr.msra.gmra.mxu0 %v3789_v57 }
 0x346   :  { %12340 = vmatpush3.xpose.msra.mxu0 %v15570_v37  ;;  %12341 = vmatprep.mubr.msk.f32.mxu0 %vm12949_vm0, %v12948_v42  ;;  %v4731_v17 = vsub.f32 %v4621_v32, %v15663_v34  ;;  %v3100_v62 = vcombine.low %v3056_v39, %v15666_v53  ;;  %v3101_v11 = vcombine.high %v3056_v39, %v15666_v53 }
 0x347   :  { %12337 = vmatmul.mubr.f32.vlgmr.msra.gmra.mxu1 %v15558_v52  ;;  %12349 = vmatprep.subr.mxu0 %v12948_v42 }
 0x348   :  { %12345 = vmatpush3.xpose.msra.mxu1 %v15553_v43  ;;  %12346 = vmatprep.mubr.msk.f32.mxu1 %vm12949_vm0, %v12948_v42  ;;  %v4732_v46 = vand.u32 4294901760, %v4731_v17  ;;  %v5073_v27 = vsel %vm3260_vm1, %v3100_v62, 0  ;;  %v5525_v15 = vsel %vm3260_vm1, %v3101_v11, 0 }
 0x349   :  { %12354 = vmatprep.subr.mxu1 %v12948_v42  ;;  %12342 = vmatmul.mubr.f32.vlgmr.msra.gmra.mxu0 %v15575_v40  ;;  %v15706_v37 = vand.u32 4294901760, %v5073_v27 }
 0x34a   :  { %12350 = vmatpush3.xpose.msra.mxu0 %v3828_v33  ;;  %12351 = vmatprep.mubr.msk.f32.mxu0 %vm12949_vm0, %v12948_v42  ;;  %v4733_v26 = vsub.f32 %v4731_v17, %v4732_v46 }
 0x34b   :  { %12347 = vmatmul.mubr.f32.vlgmr.msra.gmra.mxu1 %v3787_v58  ;;  %12359 = vmatprep.subr.mxu0 %v12948_v42  ;;  %v15720_v40 = vsub.f32 %v5073_v27, %v15706_v37  ;;  %v5142_v58 = vsub.f32 %v5070_v28, %v15709_v18 }
 0x34c   :  { %12355 = vmatpush3.xpose.msra.mxu1 %v15553_v43  ;;  %12356 = vmatprep.mubr.msk.f32.mxu1 %vm12949_vm0, %v12948_v42  ;;  %v4241_v43 = vand.u32 4294901760, %v4240_v51  ;;  %v4734_v12 = vand.u32 4294901760, %v4733_v26  ;;  %v6426_v51 = vsel %vm3260_vm1, %v2947_v1, 0 }
 0x34d   :  { %12364 = vmatprep.subr.mxu1 %v12948_v42  ;;  %12352 = vmatmul.mubr.f32.vlgmr.msra.gmra.mxu0 %v15558_v52  ;;  %v5184_v10 = vand.u32 4294901760, %v15720_v40  ;;  %v5143_v8 = vand.u32 4294901760, %v5142_v58 }
 0x34e   :  { %12360 = vmatpush3.xpose.msra.mxu0 %v15596_v47  ;;  %12361 = vmatprep.mubr.msk.f32.mxu0 %vm12949_vm0, %v12948_v42 }
 0x34f   :  { %12357 = vmatmul.mubr.f32.vlgmr.msra.gmra.mxu1 %v15558_v52  ;;  %12369 = vmatprep.subr.mxu0 %v12948_v42  ;;  %v4691_v52 = vand.u32 4294901760, %v4690_v63  ;;  %v5185_v56 = vsub.f32 %v15720_v40, %v5184_v10  ;;  %v5144_v36 = vsub.f32 %v5142_v58, %v5143_v8 }
 0x350   :  { %12365 = vmatpush3.xpose.msra.mxu1 %v4282_v2  ;;  %12366 = vmatprep.mubr.msk.f32.mxu1 %vm12949_vm0, %v12948_v42 }
 0x351   :  { %12374 = vmatprep.subr.mxu1 %v12948_v42  ;;  %12362 = vmatmul.mubr.f32.vlgmr.msra.gmra.mxu0 %v4241_v43  ;;  %v4692_v48 = vsub.f32 %v4690_v63, %v4691_v52  ;;  %v5186_v14 = vand.u32 4294901760, %v5185_v56 }
 0x352   :  { %12370 = vmatpush3.xpose.msra.mxu0 %v15619_v5  ;;  %12371 = vmatprep.mubr.msk.f32.mxu0 %vm12949_vm0, %v12948_v42  ;;  %v5145_v5 = vand.u32 4294901760, %v5144_v36 }
 0x353   :  { %12367 = vmatmul.mubr.f32.vlgmr.msra.gmra.mxu1 %v15602_v54  ;;  %12379 = vmatprep.subr.mxu0 %v12948_v42  ;;  %v4693_v33 = vand.u32 4294901760, %v4692_v48 }
 0x354   :  { %12375 = vmatpush3.xpose.msra.mxu1 %v15596_v47  ;;  %12376 = vmatprep.mubr.msk.f32.mxu1 %vm12949_vm0, %v12948_v42 }
 0x355   :  { %12384 = vmatprep.subr.mxu1 %v12948_v42  ;;  %12372 = vmatmul.mubr.f32.vlgmr.msra.gmra.mxu0 %v15629_v24 }
 0x356   :  { %12380 = vmatpush3.xpose.msra.mxu0 %v4280_v45  ;;  %12381 = vmatprep.mubr.msk.f32.mxu0 %vm12949_vm0, %v12948_v42 }
 0x357   :  { %12377 = vmatmul.mubr.f32.vlgmr.msra.gmra.mxu1 %v4239_v29  ;;  %12389 = vmatprep.subr.mxu0 %v12948_v42 }
 0x358   :  { %12385 = vmatpush3.xpose.msra.mxu1 %v15596_v47  ;;  %12386 = vmatprep.mubr.msk.f32.mxu1 %vm12949_vm0, %v12948_v42  ;;  %v5522_v47 = vsel %vm3260_vm1, %v2945_v25, 0  ;;  %v3063_v25 = vrot.slane %v3049_v60, %v15506_v61 }
 0x359   :  { %12394 = vmatprep.subr.mxu1 %v12948_v42  ;;  %12382 = vmatmul.mubr.f32.vlgmr.msra.gmra.mxu0 %v15602_v54  ;;  %v15756_v55 = vand.u32 4294901760, %v5522_v47 }
 0x35a   :  { %12390 = vmatpush3.xpose.msra.mxu0 %v15663_v34  ;;  %12391 = vmatprep.mubr.msk.f32.mxu0 %vm12949_vm0, %v12948_v42  ;;  %v3102_v50 = vcombine.low %v3063_v25, %v15753_v7  ;;  %v3103_v32 = vcombine.high %v3063_v25, %v15753_v7 }
 0x35b   :  { %12387 = vmatmul.mubr.f32.vlgmr.msra.gmra.mxu1 %v15602_v54  ;;  %12399 = vmatprep.subr.mxu0 %v12948_v42  ;;  %v15750_v54 = vand.u32 4294901760, %v5525_v15  ;;  %v5594_v3 = vsub.f32 %v5522_v47, %v15756_v55 }
 0x35c   :  { %12395 = vmatpush3.xpose.msra.mxu1 %v4734_v12  ;;  %12396 = vmatprep.mubr.msk.f32.mxu1 %vm12949_vm0, %v12948_v42  ;;  %v5977_v24 = vsel %vm3260_vm1, %v3102_v50, 0  ;;  %v6429_v53 = vsel %vm3260_vm1, %v3103_v32, 0 }
 0x35d   :  { %12404 = vmatprep.subr.mxu1 %v12948_v42  ;;  %12392 = vmatmul.mubr.f32.vlgmr.msra.gmra.mxu0 %v4693_v33  ;;  %v5635_v59 = vsub.f32 %v5525_v15, %v15750_v54  ;;  %v5595_v57 = vand.u32 4294901760, %v5594_v3  ;;  %v15791_v45 = vand.u32 4294901760, %v5977_v24  ;;  %v6462_v39 = vand.u32 4294901760, %v6429_v53 }
 0x35e   :  { %12400 = vmatpush3.xpose.msra.mxu0 %v4731_v17  ;;  %12401 = vmatprep.mubr.msk.f32.mxu0 %vm12949_vm0, %v12948_v42  ;;  %v15828_v17 = vand.u32 4294901760, %v6426_v51 }
 0x35f   :  { %12397 = vmatmul.mubr.f32.vlgmr.msra.gmra.mxu1 %v15670_v9  ;;  %12409 = vmatprep.subr.mxu0 %v12948_v42  ;;  %v5636_v23 = vand.u32 4294901760, %v5635_v59  ;;  %v5596_v13 = vsub.f32 %v5594_v3, %v5595_v57  ;;  %v6087_v29 = vsub.f32 %v5977_v24, %v15791_v45  ;;  %v6539_v6 = vsub.f32 %v6429_v53, %v6462_v39 }
 0x360   :  { %12405 = vmatpush3.xpose.msra.mxu1 %v15663_v34  ;;  %12406 = vmatprep.mubr.msk.f32.mxu1 %vm12949_vm0, %v12948_v42  ;;  %v6498_v62 = vsub.f32 %v6426_v51, %v15828_v17 }
 0x361   :  { %12414 = vmatprep.subr.mxu1 %v12948_v42  ;;  %12402 = vmatmul.mubr.f32.vlgmr.msra.gmra.mxu0 %v4690_v63  ;;  %v5637_v35 = vsub.f32 %v5635_v59, %v5636_v23  ;;  %v5597_v21 = vand.u32 4294901760, %v5596_v13  ;;  %v6088_v30 = vand.u32 4294901760, %v6087_v29  ;;  %v6540_v43 = vand.u32 4294901760, %v6539_v6 }
 0x362   :  { %12410 = vmatpush3.xpose.msra.mxu0 %v4732_v46  ;;  %12411 = vmatprep.mubr.msk.f32.mxu0 %vm12949_vm0, %v12948_v42  ;;  %v6499_v63 = vand.u32 4294901760, %v6498_v62 }
 0x363   :  { %12407 = vmatmul.mubr.f32.vlgmr.msra.gmra.mxu1 %v4691_v52  ;;  %12419 = vmatprep.subr.mxu0 %v12948_v42  ;;  %v5638_v20 = vand.u32 4294901760, %v5637_v35  ;;  %v6541_v46 = vsub.f32 %v6539_v6, %v6540_v43 }
 0x364   :  { %12415 = vmatpush3.xpose.msra.mxu1 %v15663_v34  ;;  %12416 = vmatprep.mubr.msk.f32.mxu1 %vm12949_vm0, %v12948_v42  ;;  %v6047_v34 = vand.u32 4294901760, %v6046_v44  ;;  %v6500_v52 = vsub.f32 %v6498_v62, %v6499_v63 }
 0x365   :  { %12424 = vmatprep.subr.mxu1 %v12948_v42  ;;  %12412 = vmatmul.mubr.f32.vlgmr.msra.gmra.mxu0 %v15670_v9  ;;  %v6542_v27 = vand.u32 4294901760, %v6541_v46 }
 0x366   :  { %12420 = vmatpush3.xpose.msra.mxu0 %v15706_v37  ;;  %12421 = vmatprep.mubr.msk.f32.mxu0 %vm12949_vm0, %v12948_v42  ;;  %v6048_v2 = vsub.f32 %v6046_v44, %v6047_v34  ;;  %v6501_v28 = vand.u32 4294901760, %v6500_v52 }
 0x367   :  { %12417 = vmatmul.mubr.f32.vlgmr.msra.gmra.mxu1 %v15670_v9  ;;  %12429 = vmatprep.subr.mxu0 %v12948_v42  ;;  %v6089_v9 = vsub.f32 %v6087_v29, %v6088_v30 }
 0x368   :  { %12425 = vmatpush3.xpose.msra.mxu1 %v5186_v14  ;;  %12426 = vmatprep.mubr.msk.f32.mxu1 %vm12949_vm0, %v12948_v42  ;;  %v6049_v1 = vand.u32 4294901760, %v6048_v2 }
 0x369   :  { %12434 = vmatprep.subr.mxu1 %v12948_v42  ;;  %12422 = vmatmul.mubr.f32.vlgmr.msra.gmra.mxu0 %v5145_v5  ;;  %v6090_v41 = vand.u32 4294901760, %v6089_v9 }
 0x36a   :  { %12430 = vmatpush3.xpose.msra.mxu0 %v15720_v40  ;;  %12431 = vmatprep.mubr.msk.f32.mxu0 %vm12949_vm0, %v12948_v42 }
 0x36b   :  { %12427 = vmatmul.mubr.f32.vlgmr.msra.gmra.mxu1 %v15709_v18  ;;  %12439 = vmatprep.subr.mxu0 %v12948_v42 }
 0x36c   :  { %12435 = vmatpush3.xpose.msra.mxu1 %v15706_v37  ;;  %12436 = vmatprep.mubr.msk.f32.mxu1 %vm12949_vm0, %v12948_v42 }
 0x36d   :  { %12444 = vmatprep.subr.mxu1 %v12948_v42  ;;  %12432 = vmatmul.mubr.f32.vlgmr.msra.gmra.mxu0 %v5142_v58 }
 0x36e   :  { %12440 = vmatpush3.xpose.msra.mxu0 %v5184_v10  ;;  %12441 = vmatprep.mubr.msk.f32.mxu0 %vm12949_vm0, %v12948_v42 }
 0x36f   :  { %12437 = vmatmul.mubr.f32.vlgmr.msra.gmra.mxu1 %v5143_v8  ;;  %12449 = vmatprep.subr.mxu0 %v12948_v42 }
 0x370   :  { %12445 = vmatpush3.xpose.msra.mxu1 %v15706_v37  ;;  %12446 = vmatprep.mubr.msk.f32.mxu1 %vm12949_vm0, %v12948_v42 }
 0x371   :  { %12454 = vmatprep.subr.mxu1 %v12948_v42  ;;  %12442 = vmatmul.mubr.f32.vlgmr.msra.gmra.mxu0 %v15709_v18 }
 0x372   :  { %12450 = vmatpush3.xpose.msra.mxu0 %v15750_v54  ;;  %12451 = vmatprep.mubr.msk.f32.mxu0 %vm12949_vm0, %v12948_v42 }
 0x373   :  { %12447 = vmatmul.mubr.f32.vlgmr.msra.gmra.mxu1 %v15709_v18  ;;  %12459 = vmatprep.subr.mxu0 %v12948_v42 }
 0x374   :  { %12455 = vmatpush3.xpose.msra.mxu1 %v5638_v20  ;;  %12456 = vmatprep.mubr.msk.f32.mxu1 %vm12949_vm0, %v12948_v42 }
 0x375   :  { %12464 = vmatprep.subr.mxu1 %v12948_v42  ;;  %12452 = vmatmul.mubr.f32.vlgmr.msra.gmra.mxu0 %v5597_v21 }
 0x376   :  { %12460 = vmatpush3.xpose.msra.mxu0 %v5635_v59  ;;  %12461 = vmatprep.mubr.msk.f32.mxu0 %vm12949_vm0, %v12948_v42 }
 0x377   :  { %12457 = vmatmul.mubr.f32.vlgmr.msra.gmra.mxu1 %v15756_v55  ;;  %12469 = vmatprep.subr.mxu0 %v12948_v42 }
 0x378   :  { %12465 = vmatpush3.xpose.msra.mxu1 %v15750_v54  ;;  %12466 = vmatprep.mubr.msk.f32.mxu1 %vm12949_vm0, %v12948_v42 }
 0x379   :  { %12474 = vmatprep.subr.mxu1 %v12948_v42  ;;  %12462 = vmatmul.mubr.f32.vlgmr.msra.gmra.mxu0 %v5594_v3 }
 0x37a   :  { %12470 = vmatpush3.xpose.msra.mxu0 %v5636_v23  ;;  %12471 = vmatprep.mubr.msk.f32.mxu0 %vm12949_vm0, %v12948_v42 }
 0x37b   :  { %12467 = vmatmul.mubr.f32.vlgmr.msra.gmra.mxu1 %v5595_v57  ;;  %12479 = vmatprep.subr.mxu0 %v12948_v42 }
 0x37c   :  { %12475 = vmatpush3.xpose.msra.mxu1 %v15750_v54  ;;  %12476 = vmatprep.mubr.msk.f32.mxu1 %vm12949_vm0, %v12948_v42 }
 0x37d   :  { %12484 = vmatprep.subr.mxu1 %v12948_v42  ;;  %12472 = vmatmul.mubr.f32.vlgmr.msra.gmra.mxu0 %v15756_v55 }
 0x37e   :  { %12480 = vmatpush3.xpose.msra.mxu0 %v15791_v45  ;;  %12481 = vmatprep.mubr.msk.f32.mxu0 %vm12949_vm0, %v12948_v42 }
 0x37f   :  { %12477 = vmatmul.mubr.f32.vlgmr.msra.gmra.mxu1 %v15756_v55  ;;  %12489 = vmatprep.subr.mxu0 %v12948_v42 }
 0x380   :  { %12485 = vmatpush3.xpose.msra.mxu1 %v6090_v41  ;;  %12486 = vmatprep.mubr.msk.f32.mxu1 %vm12949_vm0, %v12948_v42 }
 0x381   :  { %12494 = vmatprep.subr.mxu1 %v12948_v42  ;;  %12482 = vmatmul.mubr.f32.vlgmr.msra.gmra.mxu0 %v6049_v1 }
 0x382   :  { %12490 = vmatpush3.xpose.msra.mxu0 %v6087_v29  ;;  %12491 = vmatprep.mubr.msk.f32.mxu0 %vm12949_vm0, %v12948_v42 }
 0x383   :  { %12487 = vmatmul.mubr.f32.vlgmr.msra.gmra.mxu1 %v15794_v31  ;;  %12499 = vmatprep.subr.mxu0 %v12948_v42 }
 0x384   :  { %12495 = vmatpush3.xpose.msra.mxu1 %v15791_v45  ;;  %12496 = vmatprep.mubr.msk.f32.mxu1 %vm12949_vm0, %v12948_v42 }
 0x385   :  { %12504 = vmatprep.subr.mxu1 %v12948_v42  ;;  %12492 = vmatmul.mubr.f32.vlgmr.msra.gmra.mxu0 %v6046_v44 }
 0x386   :  { %12500 = vmatpush3.xpose.msra.mxu0 %v6088_v30  ;;  %12501 = vmatprep.mubr.msk.f32.mxu0 %vm12949_vm0, %v12948_v42 }
 0x387   :  { %12497 = vmatmul.mubr.f32.vlgmr.msra.gmra.mxu1 %v6047_v34  ;;  %12509 = vmatprep.subr.mxu0 %v12948_v42 }
 0x388   :  { %12505 = vmatpush3.xpose.msra.mxu1 %v15791_v45  ;;  %12506 = vmatprep.mubr.msk.f32.mxu1 %vm12949_vm0, %v12948_v42 }
 0x389   :  { %12514 = vmatprep.subr.mxu1 %v12948_v42  ;;  %12502 = vmatmul.mubr.f32.vlgmr.msra.gmra.mxu0 %v15794_v31 }
 0x38a   :  { %12510 = vmatpush3.xpose.msra.mxu0 %v6462_v39  ;;  %12511 = vmatprep.mubr.msk.f32.mxu0 %vm12949_vm0, %v12948_v42 }
 0x38b   :  { %12507 = vmatmul.mubr.f32.vlgmr.msra.gmra.mxu1 %v15794_v31  ;;  %12519 = vmatprep.subr.mxu0 %v12948_v42 }
 0x38c   :  { %12515 = vmatpush3.xpose.msra.mxu1 %v6542_v27  ;;  %12516 = vmatprep.mubr.msk.f32.mxu1 %vm12949_vm0, %v12948_v42 }
 0x38d   :  { %12524 = vmatprep.subr.mxu1 %v12948_v42  ;;  %12512 = vmatmul.mubr.f32.vlgmr.msra.gmra.mxu0 %v6501_v28 }
 0x38e   :  { %12520 = vmatpush3.xpose.msra.mxu0 %v6539_v6  ;;  %12521 = vmatprep.mubr.msk.f32.mxu0 %vm12949_vm0, %v12948_v42 }
 0x38f   :  { %12517 = vmatmul.mubr.f32.vlgmr.msra.gmra.mxu1 %v15828_v17  ;;  %12529 = vmatprep.subr.mxu0 %v12948_v42 }
 0x390   :  { %12525 = vmatpush3.xpose.msra.mxu1 %v6462_v39  ;;  %12526 = vmatprep.mubr.msk.f32.mxu1 %vm12949_vm0, %v12948_v42 }
 0x391   :  { %12534 = vmatprep.subr.mxu1 %v12948_v42  ;;  %12522 = vmatmul.mubr.f32.vlgmr.msra.gmra.mxu0 %v6498_v62 }
 0x392   :  { %12530 = vmatpush3.xpose.msra.mxu0 %v6540_v43  ;;  %12531 = vmatprep.mubr.msk.f32.mxu0 %vm12949_vm0, %v12948_v42 }
 0x393   :  { %12527 = vmatmul.mubr.f32.vlgmr.msra.gmra.mxu1 %v6499_v63  ;;  %12539 = vmatprep.subr.mxu0 %v12948_v42 }
 0x394   :  { %12535 = vmatpush3.xpose.msra.mxu1 %v6462_v39  ;;  %12536 = vmatprep.mubr.msk.f32.mxu1 %vm12949_vm0, %v12948_v42 }
 0x395   :  { %12532 = vmatmul.mubr.f32.vlgmr.msra.gmra.mxu0 %v15828_v17  ;;  %12544 = vmatprep.subr.mxu1 %v12948_v42 }
 0x396   :  { %12541 = vmatprep.mubr.msk.f32.mxu0 %vm12949_vm0, %v12948_v42 }
 0x397   :  { %12537 = vmatmul.mubr.f32.vlgmr.msra.gmra.mxu1 %v15828_v17 }
 0x398   :  { %12546 = vmatprep.mubr.msk.f32.mxu1 %vm12949_vm0, %v12948_v42 }
 0x3f9   :  { %v3339_v26 = vpop.f32.mrf.mxu0 }
 0x3fb   :  { %v3415_v37 = vpop.f32.mrf.mxu1  ;;  %v12303_v48 = vpop.f32.mrf.mxu0 }
 0x3fc   :  { %v3416_v18 = vadd.f32 %v3415_v37, %v3339_v26 }
 0x3fd   :  { %v12308_v12 = vpop.f32.mrf.mxu1  ;;  %v3489_v40 = vpop.f32.mrf.mxu0 }
 0x3fe   :  { %v3490_v11 = vadd.f32 %v3489_v40, %v3416_v18 }
 0x3ff   :  { %v3563_v33 = vpop.f32.mrf.mxu1  ;;  %v12313_v58 = vpop.f32.mrf.mxu0 }
 0x400   :  { %v3564_v10 = vadd.f32 %v3563_v33, %v3490_v11 }
 0x401   :  { %v12318_v0 = vpop.f32.mrf.mxu1  ;;  %v3637_v8 = vpop.f32.mrf.mxu0 }
 0x402   :  { %v3638_v15 = vadd.f32 %v3637_v8, %v3564_v10 }
 0x403   :  { %v3709_v47 = vpop.f32.mrf.mxu1  ;;  %v12323_v60 = vpop.f32.mrf.mxu0 }
 0x404   :  { %v15886_v56 = vadd.f32 %v3709_v47, %v3638_v15 }
 0x405   :  { %v12328_v54 = vpop.f32.mrf.mxu1  ;;  %v3791_v7 = vpop.f32.mrf.mxu0 }
 0x406   :  { %v6878_v36 = vsel %vm6877_vm2, %v15886_v56, -inf }
 0x407   :  { %v3867_v55 = vpop.f32.mrf.mxu1  ;;  %6879 = vmax.xlane.f32.xlu0 %v6878_v36  ;;  %v12333_v25 = vpop.f32.mrf.mxu0 }
 0x408   :  { %v3868_v14 = vadd.f32 %v3867_v55, %v3791_v7 }
 0x409   :  { %v12338_v59 = vpop.f32.mrf.mxu1  ;;  %v3941_v50 = vpop.f32.mrf.mxu0 }
 0x40a   :  { %v3942_v5 = vadd.f32 %v3941_v50, %v3868_v14 }
 0x40b   :  { %v4015_v3 = vpop.f32.mrf.mxu1  ;;  %v12343_v23 = vpop.f32.mrf.mxu0 }
 0x40c   :  { %v4016_v57 = vadd.f32 %v4015_v3, %v3942_v5 }
 0x40d   :  { %v12348_v24 = vpop.f32.mrf.mxu1  ;;  %v4089_v19 = vpop.f32.mrf.mxu0 }
 0x40e   :  { %v4090_v35 = vadd.f32 %v4089_v19, %v4016_v57 }
 0x40f   :  { %v4161_v45 = vpop.f32.mrf.mxu1  ;;  %v12353_v13 = vpop.f32.mrf.mxu0 }
 0x410   :  { %v15890_v31 = vadd.f32 %v4161_v45, %v4090_v35 }
 0x411   :  { %v12358_v20 = vpop.f32.mrf.mxu1  ;;  %v4243_v29 = vpop.f32.mrf.mxu0 }
 0x412   :  { %v6881_v32 = vsel %vm6877_vm2, %v15890_v31, -inf }
 0x413   :  { %v4319_v21 = vpop.f32.mrf.mxu1  ;;  %6882 = vmax.xlane.f32.xlu1 %v6881_v32  ;;  %v12363_v44 = vpop.f32.mrf.mxu0 }
 0x414   :  { %v4320_v30 = vadd.f32 %v4319_v21, %v4243_v29 }
 0x415   :  { %v12368_v34 = vpop.f32.mrf.mxu1  ;;  %v4393_v53 = vpop.f32.mrf.mxu0 }
 0x416   :  { %v4394_v51 = vadd.f32 %v4393_v53, %v4320_v30 }
 0x417   :  { %v4467_v9 = vpop.f32.mrf.mxu1  ;;  %v12373_v39 = vpop.f32.mrf.mxu0 }
 0x418   :  { %v4468_v2 = vadd.f32 %v4467_v9, %v4394_v51 }
 0x419   :  { %v12378_v17 = vpop.f32.mrf.mxu1  ;;  %v4541_v41 = vpop.f32.mrf.mxu0 }
 0x41a   :  { %v4542_v6 = vadd.f32 %v4541_v41, %v4468_v2 }
 0x41b   :  { %v4613_v1 = vpop.f32.mrf.mxu1  ;;  %v12383_v62 = vpop.f32.mrf.mxu0 }
 0x41c   :  { %v15894_v43 = vadd.f32 %v4613_v1, %v4542_v6 }
 0x41d   :  { %v12388_v63 = vpop.f32.mrf.mxu1  ;;  %v4695_v46 = vpop.f32.mrf.mxu0 }
 0x41e   :  { %v6884_v52 = vsel %vm6877_vm2, %v15894_v43, -inf }
 0x41f   :  { %v4771_v27 = vpop.f32.mrf.mxu1  ;;  %6885 = vmax.xlane.f32.xlu0 %v6884_v52  ;;  %v12393_v28 = vpop.f32.mrf.mxu0 }
 0x420   :  { %v4772_v26 = vadd.f32 %v4771_v27, %v4695_v46 }
 0x421   :  { %v12398_v37 = vpop.f32.mrf.mxu1  ;;  %v4845_v48 = vpop.f32.mrf.mxu0 }
 0x422   :  { %v4846_v18 = vadd.f32 %v4845_v48, %v4772_v26 }
 0x423   :  { %v4919_v12 = vpop.f32.mrf.mxu1  ;;  %v12403_v40 = vpop.f32.mrf.mxu0 }
 0x424   :  { %3111 = vrot.lane.b32.xlu1 %v15460_v38, %s12939_s22  ;;  %v4920_v11 = vadd.f32 %v4919_v12, %v4846_v18 }
 0x425   :  { %v12408_v33 = vpop.f32.mrf.mxu1  ;;  %v4993_v58 = vpop.f32.mrf.mxu0 }
 0x426   :  { %v4994_v10 = vadd.f32 %v4993_v58, %v4920_v11 }
 0x427   :  { %v5065_v0 = vpop.f32.mrf.mxu1  ;;  %v12413_v8 = vpop.f32.mrf.mxu0 }
 0x428   :  { %v15900_v15 = vadd.f32 %v5065_v0, %v4994_v10 }
 0x429   :  { %v12418_v47 = vpop.f32.mrf.mxu1  ;;  %v5147_v60 = vpop.f32.mrf.mxu0 }
 0x42a   :  { %v6887_v54 = vsel %vm6877_vm2, %v15900_v15, -inf }
 0x42b   :  { %v5223_v7 = vpop.f32.mrf.mxu1  ;;  %6888 = vmax.xlane.f32.xlu0 %v6887_v54  ;;  %v12423_v36 = vpop.f32.mrf.mxu0 }
 0x42c   :  { %v5224_v57 = vadd.f32 %v5223_v7, %v5147_v60 }
 0x42d   :  { %v12428_v55 = vpop.f32.mrf.mxu1  ;;  %v5297_v25 = vpop.f32.mrf.mxu0 }
 0x42e   :  { %v5298_v35 = vadd.f32 %v5297_v25, %v5224_v57 }
 0x42f   :  { %v5371_v14 = vpop.f32.mrf.mxu1  ;;  %v12433_v59 = vpop.f32.mrf.mxu0 }
 0x430   :  { %v5372_v32 = vadd.f32 %v5371_v14, %v5298_v35 }
 0x431   :  { %v12438_v50 = vpop.f32.mrf.mxu1  ;;  %v5445_v5 = vpop.f32.mrf.mxu0 }
 0x432   :  { %v5446_v53 = vadd.f32 %v5445_v5, %v5372_v32  ;;  %v15910_v50 = vld [vmem:[#allocation2 + $0x8] sm:$0xff] }
 0x433   :  { %v5517_v3 = vpop.f32.mrf.mxu1  ;;  %v12443_v23 = vpop.f32.mrf.mxu0 }
 0x434   :  { %v15906_v6 = vadd.f32 %v5517_v3, %v5446_v53 }
 0x435   :  { %v12448_v24 = vpop.f32.mrf.mxu1  ;;  %v5599_v19 = vpop.f32.mrf.mxu0 }
 0x436   :  { %v6890_v52 = vsel %vm6877_vm2, %v15906_v6, -inf }
 0x437   :  { %v5675_v45 = vpop.f32.mrf.mxu1  ;;  %v12453_v13 = vpop.f32.mrf.mxu0 }
 0x438   :  { %v5676_v48 = vadd.f32 %v5675_v45, %v5599_v19 }
 0x439   :  { %v12458_v20 = vpop.f32.mrf.mxu1  ;;  %v5749_v29 = vpop.f32.mrf.mxu0 }
 0x43a   :  { %v5750_v12 = vadd.f32 %v5749_v29, %v5676_v48 }
 0x43b   :  { %v5823_v21 = vpop.f32.mrf.mxu1  ;;  %v12463_v44 = vpop.f32.mrf.mxu0 }
 0x43c   :  { %v5824_v0 = vadd.f32 %v5823_v21, %v5750_v12 }
 0x43d   :  { %v12468_v30 = vpop.f32.mrf.mxu1  ;;  %v5897_v34 = vpop.f32.mrf.mxu0 }
 0x43e   :  { %v5898_v36 = vadd.f32 %v5897_v34, %v5824_v0  ;;  %v3106_v30 = vpop.permute.xlu1 %3105 }
 0x43f   :  { %v5969_v51 = vpop.f32.mrf.mxu1  ;;  %v12473_v9 = vpop.f32.mrf.mxu0 }
 0x440   :  { %v15914_v3 = vadd.f32 %v5969_v51, %v5898_v36 }
 0x441   :  { %v12478_v39 = vpop.f32.mrf.mxu1  ;;  %3108 = vrot.lane.b32.xlu0 %v15460_v38, %s12945_s2  ;;  %v6051_v2 = vpop.f32.mrf.mxu0 }
 0x442   :  { %v6893_v23 = vsel %vm6877_vm2, %v15914_v3, -inf }
 0x443   :  { %v6127_v17 = vpop.f32.mrf.mxu1  ;;  %v12483_v41 = vpop.f32.mrf.mxu0 }
 0x444   :  { %v6128_v19 = vadd.f32 %v6127_v17, %v6051_v2 }
 0x445   :  { %v12488_v1 = vpop.f32.mrf.mxu1  ;;  %v6201_v62 = vpop.f32.mrf.mxu0 }
 0x446   :  { %v6202_v35 = vadd.f32 %v6201_v62, %v6128_v19 }
 0x447   :  { %v6275_v63 = vpop.f32.mrf.mxu1  ;;  %v12493_v46 = vpop.f32.mrf.mxu0 }
 0x448   :  { %6891 = vmax.xlane.f32.xlu1 %v6890_v52  ;;  %v6276_v45 = vadd.f32 %v6275_v63, %v6202_v35  ;;  %v12828_v46 = vld [vmem:[#allocation2] sm:$0xff] }
 0x449   :  { %v12498_v27 = vpop.f32.mrf.mxu1  ;;  %v6349_v28 = vpop.f32.mrf.mxu0 }
 0x44a   :  { %v6350_v13 = vadd.f32 %v6349_v28, %v6276_v45 }
 0x44b   :  { %v6421_v26 = vpop.f32.mrf.mxu1  ;;  %v12503_v37 = vpop.f32.mrf.mxu0 }
 0x44c   :  { %v15922_v20 = vadd.f32 %v6421_v26, %v6350_v13 }
 0x44d   :  { %v12508_v18 = vpop.f32.mrf.mxu1  ;;  %v6503_v38 = vpop.f32.mrf.mxu0 }
 0x44e   :  { %v6896_v29 = vsel %vm6877_vm2, %v15922_v20, -inf }
 0x44f   :  { %v6579_v40 = vpop.f32.mrf.mxu1  ;;  %v12513_v11 = vpop.f32.mrf.mxu0 }
 0x450   :  { %v6580_v33 = vadd.f32 %v6579_v40, %v6503_v38 }
 0x451   :  { %v12518_v58 = vpop.f32.mrf.mxu1  ;;  %v6653_v10 = vpop.f32.mrf.mxu0 }
 0x452   :  { %v6654_v47 = vadd.f32 %v6653_v10, %v6580_v33 }
 0x453   :  { %v6727_v8 = vpop.f32.mrf.mxu1  ;;  %v12523_v60 = vpop.f32.mrf.mxu0 }
 0x454   :  { %v6728_v25 = vadd.f32 %v6727_v8, %v6654_v47 }
 0x455   :  { %v12528_v54 = vpop.f32.mrf.mxu1  ;;  %v6801_v7 = vpop.f32.mrf.mxu0 }
 0x456   :  { %v6802_v5 = vadd.f32 %v6801_v7, %v6728_v25 }
 0x457   :  { %v6873_v55 = vpop.f32.mrf.mxu1  ;;  %v12533_v14 = vpop.f32.mrf.mxu0 }
 0x458   :  { %v15918_v57 = vadd.f32 %v6873_v55, %v6802_v5 }
 0x459   :  { %v12538_v59 = vpop.f32.mrf.mxu1  ;;  %3115 = vrot.lane.b32.xlu1 %v15910_v50, %s12946_s3 }
 0x45a   :  { %v6899_v24 = vsel %vm6877_vm2, %v15918_v57, -inf }
 0x460   :  { %6894 = vmax.xlane.f32.xlu0 %v6893_v23 }
 0x464   :  { %6900 = vmax.xlane.f32.xlu0 %v6899_v24 }
 0x47d   :  { %6897 = vmax.xlane.f32.xlu1 %v6896_v29 }
 0x490   :  { %v6880_v32 = vpop.xlane.xlu0 %6879 }
 0x491   :  { %v6902_v21 = vsub.f32 %v15886_v56, %v6880_v32 }
 0x493   :  { %v6910_v44 = vmul.f32 1.442695, %v6902_v21 }
 0x495   :  { %12794 = vpow2.f32 %v6910_v44 }
 0x49c   :  { %v6883_v34 = vpop.xlane.xlu1 %6882 }
 0x49d   :  { %v6903_v53 = vsub.f32 %v15890_v31, %v6883_v34 }
 0x49f   :  { %v6912_v51 = vmul.f32 1.442695, %v6903_v53 }
 0x4a0   :  { %v3112_v9 = vpop.permute.xlu1 %3111 }
 0x4a1   :  { %12796 = vpow2.f32 %v6912_v51  ;;  %v3140_v39 = vcombine.low %v3106_v30, %v3112_v9  ;;  %v3141_v2 = vcombine.high %v3106_v30, %v3112_v9 }
 0x4a2   :  { %v15928_v17 = vpop.eup %12794 }
 0x4a3   :  { %v6926_v41 = vsel %vm6877_vm2, %v15928_v17, 0.0  ;;  %v15939_v28 = vrot.slane %v3140_v39, %v15416_v4  ;;  %v15942_v26 = vrot.slane %v3141_v2, %v15416_v4 }
 0x4a4   :  { %6927 = vadd.xlane.f32.xlu1 %v6926_v41 }
 0x4a8   :  { %v6886_v62 = vpop.xlane.xlu0 %6885 }
 0x4a9   :  { %v6904_v58 = vsub.f32 %v15894_v43, %v6886_v62 }
 0x4ab   :  { %v6914_v10 = vmul.f32 1.442695, %v6904_v58 }
 0x4ae   :  { %v15932_v1 = vpop.eup %12796 }
 0x4af   :  { %v6929_v56 = vsel %vm6877_vm2, %v15932_v1, 0.0 }
 0x4b0   :  { %6930 = vadd.xlane.f32.xlu0 %v6929_v56 }
 0x4b4   :  { %v6889_v63 = vpop.xlane.xlu0 %6888 }
 0x4b5   :  { %3121 = vrot.lane.b32.xlu1 %v15910_v50, %s12939_s22  ;;  %v6905_v11 = vsub.f32 %v15900_v15, %v6889_v63 }
 0x4b7   :  { %v6916_v33 = vmul.f32 1.442695, %v6905_v11 }
 0x4b8   :  { %v3109_v31 = vpop.permute.xlu0 %3108 }
 0x4b9   :  { %v3124_v52 = vcombine.low %v12828_v46, %v3109_v31  ;;  %v3125_v27 = vcombine.high %v12828_v46, %v3109_v31  ;;  %12798 = vpow2.f32 %v6916_v33 }
 0x4ba   :  { %12800 = vpow2.f32 %v6914_v10 }
 0x4bb   :  { %v15945_v37 = vrot.slane %v3124_v52, %v15416_v4  ;;  %v15948_v48 = vrot.slane %v3125_v27, %v15416_v4 }
 0x4bd   :  { %v3188_v18 = vcombine.low %v15945_v37, %v15939_v28  ;;  %v3189_v38 = vcombine.high %v15945_v37, %v15939_v28  ;;  %v3204_v12 = vcombine.low %v15948_v48, %v15942_v26  ;;  %v3205_v40 = vcombine.high %v15948_v48, %v15942_v26 }
 0x4bf   :  { %v3219_v58 = vrot.slane %v3205_v40, %v15506_v61 }
 0x4c6   :  { %3118 = vrot.lane.b32.xlu0 %v15910_v50, %s12945_s2  ;;  %v15963_v60 = vpop.eup %12798 }
 0x4c7   :  { %v6935_v54 = vsel %vm6877_vm2, %v15963_v60, 0.0  ;;  %v15967_v15 = vpop.eup %12800 }
 0x4c8   :  { %v6932_v7 = vsel %vm6877_vm2, %v15967_v15, 0.0 }
 0x4d1   :  { %v6892_v0 = vpop.xlane.xlu1 %6891 }
 0x4d2   :  { %v6906_v8 = vsub.f32 %v15906_v6, %v6892_v0 }
 0x4d4   :  { %v6918_v47 = vmul.f32 1.442695, %v6906_v8 }
 0x4d6   :  { %12802 = vpow2.f32 %v6918_v47  ;;  %v3196_v47 = vrot.slane %v3188_v18, %v15506_v61 }
 0x4d9   :  { %6936 = vadd.xlane.f32.xlu1 %v6935_v54 }
 0x4e3   :  { %v15971_v36 = vpop.eup %12802 }
 0x4e4   :  { %v6938_v43 = vsel %vm6877_vm2, %v15971_v36, 0.0 }
 0x4e5   :  { %6933 = vadd.xlane.f32.xlu0 %v6932_v7 }
 0x4e9   :  { %v6895_v6 = vpop.xlane.xlu0 %6894  ;;  %6939 = vadd.xlane.f32.xlu0 %v6938_v43 }
 0x4ea   :  { %v6907_v55 = vsub.f32 %v15914_v3, %v6895_v6  ;;  %v3116_v3 = vpop.permute.xlu1 %3115 }
 0x4ec   :  { %v6920_v25 = vmul.f32 1.442695, %v6907_v55 }
 0x4ed   :  { %v6901_v14 = vpop.xlane.xlu0 %6900 }
 0x4ee   :  { %12804 = vpow2.f32 %v6920_v25  ;;  %v6909_v59 = vsub.f32 %v15918_v57, %v6901_v14 }
 0x4f0   :  { %v6924_v5 = vmul.f32 1.442695, %v6909_v59 }
 0x4f2   :  { %12806 = vpow2.f32 %v6924_v5 }
 0x4fb   :  { %v15977_v23 = vpop.eup %12804 }
 0x4fc   :  { %v6941_v24 = vsel %vm6877_vm2, %v15977_v23, 0.0 }
 0x4fd   :  { %6942 = vadd.xlane.f32.xlu0 %v6941_v24 }
 0x4ff   :  { %v15981_v19 = vpop.eup %12806 }
 0x500   :  { %v6947_v35 = vsel %vm6877_vm2, %v15981_v19, 0.0 }
 0x501   :  { %6948 = vadd.xlane.f32.xlu0 %v6947_v35 }
 0x506   :  { %v6898_v45 = vpop.xlane.xlu1 %6897 }
 0x507   :  { %v6908_v13 = vsub.f32 %v15922_v20, %v6898_v45 }
 0x509   :  { %v6922_v29 = vmul.f32 1.442695, %v6908_v13 }
 0x50b   :  { %12808 = vpow2.f32 %v6922_v29 }
 0x518   :  { %v15986_v57 = vpop.eup %12808 }
 0x519   :  { %v6944_v32 = vsel %vm6877_vm2, %v15986_v57, 0.0 }
 0x51a   :  { %6945 = vadd.xlane.f32.xlu1 %v6944_v32 }
 0x52d   :  { %v6928_v21 = vpop.xlane.xlu1 %6927 }
 0x52e   :  { %12810 = vrcp.f32 %v6928_v21  ;;  %v3203_v21 = vrot.slane %v3189_v38, %v15506_v61 }
 0x531   :  { %v3122_v44 = vpop.permute.xlu1 %3121 }
 0x532   :  { %v3173_v30 = vcombine.high %v3116_v3, %v3122_v44  ;;  %v3172_v9 = vcombine.low %v3116_v3, %v3122_v44 }
 0x534   :  { %v3180_v62 = vrot.slane %v3172_v9, %v15416_v4  ;;  %v3187_v63 = vrot.slane %v3173_v30, %v15416_v4 }
 0x539   :  { %v6931_v34 = vpop.xlane.xlu0 %6930 }
 0x53a   :  { %12812 = vrcp.f32 %v6931_v34 }
 0x53b   :  { %v12811_v53 = vpop.eup %12810 }
 0x53c   :  { %v6951_v51 = vmul.f32 %v12811_v53, %v15928_v17 }
 0x53d   :  { %v3119_v39 = vpop.permute.xlu0 %3118 }
 0x53e   :  { %v3156_v20 = vcombine.low %v15910_v50, %v3119_v39  ;;  %v3157_v2 = vcombine.high %v15910_v50, %v3119_v39  ;;  %v6967_v41 = vsel %vm6877_vm2, %v6951_v51, 0  ;;  %v3212_v50 = vrot.slane %v3204_v12, %v15506_v61 }
 0x53f   :  { %v15994_v56 = vand.u32 4294901760, %v6967_v41 }
 0x540   :  { %v3164_v31 = vrot.slane %v3156_v20, %v15416_v4  ;;  %v3171_v46 = vrot.slane %v3157_v2, %v15416_v4 }
 0x541   :  { %v7036_v17 = vsub.f32 %v6967_v41, %v15994_v56 }
 0x542   :  { %v3220_v52 = vcombine.low %v3164_v31, %v3180_v62  ;;  %v3236_v27 = vcombine.low %v3171_v46, %v3187_v63  ;;  %v3237_v11 = vcombine.high %v3171_v46, %v3187_v63  ;;  %v3221_v5 = vcombine.high %v3164_v31, %v3180_v62 }
 0x543   :  { %v7037_v33 = vand.u32 4294901760, %v7036_v17 }
 0x544   :  { %v3228_v10 = vrot.slane %v3220_v52, %v15506_v61  ;;  %v3244_v0 = vrot.slane %v3236_v27, %v15506_v61  ;;  %v3251_v8 = vrot.slane %v3237_v11, %v15506_v61  ;;  %v16036_v45 = vrot.slane %v3221_v5, %v15506_v61 }
 0x545   :  { %v7038_v43 = vsub.f32 %v7036_v17, %v7037_v33 }
 0x546   :  { %v16016_v54 = vcombine.low %v3212_v50, %v3244_v0  ;;  %v16018_v12 = vcombine.high %v3212_v50, %v3244_v0  ;;  %v16020_v7 = vcombine.low %v3219_v58, %v3251_v8  ;;  %v16022_v48 = vcombine.high %v3219_v58, %v3251_v8 }
 0x547   :  { %v12813_v26 = vpop.eup %12812  ;;  %v3252_v40 = vcombine.low %v3196_v47, %v3228_v10  ;;  %v3253_v6 = vcombine.high %v3196_v47, %v3228_v10  ;;  %v7039_v14 = vand.u32 4294901760, %v7038_v43  ;;  %v3254_v53 = vcombine.low %v3203_v21, %v16036_v45 }
 0x548   :  { %v6953_v55 = vmul.f32 %v12813_v26, %v15932_v1  ;;  %v3255_v62 = vcombine.high %v3203_v21, %v16036_v45 }
 0x549   :  { %v7000_v25 = vand.u32 4294901760, %v3252_v40  ;;  %v16026_v24 = vand.u32 4294901760, %v3253_v6  ;;  %v16056_v38 = vand.u32 4294901760, %v3254_v53 }
 0x54a   :  { %v7416_v59 = vsel %vm6877_vm2, %v6953_v55, 0  ;;  %v8347_v31 = vand.u32 4294901760, %v3255_v62 }
 0x54b   :  { %12540 = vmatpush3.msra.mxu0 %v7000_v25  ;;  %v7077_v18 = vsub.f32 %v3252_v40, %v7000_v25  ;;  %v16028_v35 = vand.u32 4294901760, %v7416_v59  ;;  %v7526_v32 = vsub.f32 %v3253_v6, %v16026_v24  ;;  %v16065_v9 = vsub.f32 %v3254_v53, %v16056_v38 }
 0x54c   :  { %12542 = vmatmul.mubr.f32.vlgmr.msra.gmra.mxu0 %v7039_v14  ;;  %12549 = vmatprep.subr.mxu0 %v12948_v42  ;;  %v16098_v52 = vsub.f32 %v3255_v62, %v8347_v31  ;;  %v16185_v53 = vand.u32 4294901760, %v16020_v7 }
 0x54d   :  { %12550 = vmatpush3.msra.mxu0 %v7077_v18  ;;  %12551 = vmatprep.mubr.msk.f32.mxu0 %vm12949_vm0, %v12948_v42  ;;  %v7078_v3 = vand.u32 4294901760, %v7077_v18  ;;  %v7485_v1 = vsub.f32 %v7416_v59, %v16028_v35  ;;  %v7527_v34 = vand.u32 4294901760, %v7526_v32  ;;  %v7976_v39 = vand.u32 4294901760, %v16065_v9 }
 0x54e   :  { %12559 = vmatprep.subr.mxu0 %v12948_v42  ;;  %v8425_v58 = vand.u32 4294901760, %v16098_v52 }
 0x54f   :  { %v7079_v13 = vsub.f32 %v7077_v18, %v7078_v3  ;;  %v7486_v29 = vand.u32 4294901760, %v7485_v1  ;;  %v7528_v37 = vsub.f32 %v7526_v32, %v7527_v34  ;;  %v7977_v20 = vsub.f32 %v16065_v9, %v7976_v39 }
 0x550   :  { %12552 = vmatmul.mubr.f32.vlgmr.msra.gmra.mxu0 %v7036_v17  ;;  %v8426_v47 = vsub.f32 %v16098_v52, %v8425_v58 }
 0x551   :  { %12560 = vmatpush3.msra.mxu0 %v7078_v3  ;;  %v7080_v44 = vand.u32 4294901760, %v7079_v13  ;;  %12561 = vmatprep.mubr.msk.f32.mxu0 %vm12949_vm0, %v12948_v42  ;;  %v7487_v30 = vsub.f32 %v7485_v1, %v7486_v29  ;;  %v7529_v51 = vand.u32 4294901760, %v7528_v37  ;;  %v7978_v2 = vand.u32 4294901760, %v7977_v20 }
 0x552   :  { %12569 = vmatprep.subr.mxu0 %v12948_v42  ;;  %v8427_v14 = vand.u32 4294901760, %v8426_v47 }
 0x553   :  { %12545 = vmatpush3.msra.mxu1 %v7080_v44  ;;  %v7488_v28 = vand.u32 4294901760, %v7487_v30 }
 0x554   :  { %12547 = vmatmul.mubr.f32.vlgmr.msra.gmra.mxu1 %v15994_v56  ;;  %12554 = vmatprep.subr.mxu1 %v12948_v42 }
 0x555   :  { %12562 = vmatmul.mubr.f32.vlgmr.msra.gmra.mxu0 %v15994_v56  ;;  %12555 = vmatpush3.msra.mxu1 %v7000_v25 }
 0x556   :  { %12570 = vmatpush3.msra.mxu0 %v16026_v24  ;;  %12556 = vmatprep.mubr.msk.f32.mxu1 %vm12949_vm0, %v12948_v42 }
 0x557   :  { %12564 = vmatprep.subr.mxu1 %v12948_v42  ;;  %12571 = vmatprep.mubr.msk.f32.mxu0 %vm12949_vm0, %v12948_v42 }
 0x558   :  { %12579 = vmatprep.subr.mxu0 %v12948_v42  ;;  %12557 = vmatmul.mubr.f32.vlgmr.msra.gmra.mxu1 %v7037_v33 }
 0x559   :  { %12565 = vmatpush3.msra.mxu1 %v7000_v25  ;;  %12572 = vmatmul.mubr.f32.vlgmr.msra.gmra.mxu0 %v7488_v28 }
 0x55a   :  { %12580 = vmatpush3.msra.mxu0 %v7526_v32  ;;  %12566 = vmatprep.mubr.msk.f32.mxu1 %vm12949_vm0, %v12948_v42 }
 0x55b   :  { %12574 = vmatprep.subr.mxu1 %v12948_v42  ;;  %12581 = vmatprep.mubr.msk.f32.mxu0 %vm12949_vm0, %v12948_v42 }
 0x55c   :  { %12589 = vmatprep.subr.mxu0 %v12948_v42  ;;  %12567 = vmatmul.mubr.f32.vlgmr.msra.gmra.mxu1 %v15994_v56 }
 0x55d   :  { %12575 = vmatpush3.msra.mxu1 %v7529_v51  ;;  %12582 = vmatmul.mubr.f32.vlgmr.msra.gmra.mxu0 %v7485_v1 }
 0x55e   :  { %12590 = vmatpush3.msra.mxu0 %v7527_v34  ;;  %12576 = vmatprep.mubr.msk.f32.mxu1 %vm12949_vm0, %v12948_v42 }
 0x55f   :  { %12584 = vmatprep.subr.mxu1 %v12948_v42  ;;  %12591 = vmatprep.mubr.msk.f32.mxu0 %vm12949_vm0, %v12948_v42 }
 0x560   :  { %12599 = vmatprep.subr.mxu0 %v12948_v42  ;;  %12577 = vmatmul.mubr.f32.vlgmr.msra.gmra.mxu1 %v16028_v35 }
 0x561   :  { %12585 = vmatpush3.msra.mxu1 %v16026_v24  ;;  %12592 = vmatmul.mubr.f32.vlgmr.msra.gmra.mxu0 %v16028_v35 }
 0x562   :  { %12600 = vmatpush3.msra.mxu0 %v16056_v38  ;;  %12586 = vmatprep.mubr.msk.f32.mxu1 %vm12949_vm0, %v12948_v42  ;;  %v6937_v41 = vpop.xlane.xlu1 %6936 }
 0x563   :  { %12594 = vmatprep.subr.mxu1 %v12948_v42  ;;  %12601 = vmatprep.mubr.msk.f32.mxu0 %vm12949_vm0, %v12948_v42  ;;  %12814 = vrcp.f32 %v6937_v41 }
 0x564   :  { %12587 = vmatmul.mubr.f32.vlgmr.msra.gmra.mxu1 %v7486_v29  ;;  %12609 = vmatprep.subr.mxu0 %v12948_v42 }
 0x565   :  { %12595 = vmatpush3.msra.mxu1 %v16026_v24  ;;  %12596 = vmatprep.mubr.msk.f32.mxu1 %vm12949_vm0, %v12948_v42 }
 0x566   :  { %12604 = vmatprep.subr.mxu1 %v12948_v42 }
 0x568   :  { %12597 = vmatmul.mubr.f32.vlgmr.msra.gmra.mxu1 %v16028_v35  ;;  %v16145_v35 = vand.u32 4294901760, %v16018_v12 }
 0x569   :  { %12605 = vmatpush3.msra.mxu1 %v7978_v2  ;;  %12606 = vmatprep.mubr.msk.f32.mxu1 %vm12949_vm0, %v12948_v42 }
 0x56a   :  { %12614 = vmatprep.subr.mxu1 %v12948_v42  ;;  %v16159_v29 = vsub.f32 %v16018_v12, %v16145_v35 }
 0x56c   :  { %v9323_v44 = vand.u32 4294901760, %v16159_v29 }
 0x56e   :  { %v6934_v56 = vpop.xlane.xlu0 %6933  ;;  %v9324_v28 = vsub.f32 %v16159_v29, %v9323_v44 }
 0x56f   :  { %12816 = vrcp.f32 %v6934_v56 }
 0x570   :  { %v12815_v46 = vpop.eup %12814 }
 0x571   :  { %v6957_v11 = vmul.f32 %v12815_v46, %v15963_v60  ;;  %v16112_v60 = vand.u32 4294901760, %v16016_v54 }
 0x572   :  { %v6940_v63 = vpop.xlane.xlu0 %6939 }
 0x573   :  { %12818 = vrcp.f32 %v6940_v63  ;;  %v8314_v10 = vsel %vm6877_vm2, %v6957_v11, 0  ;;  %v16124_v25 = vsub.f32 %v16016_v54, %v16112_v60 }
 0x575   :  { %v8874_v54 = vand.u32 4294901760, %v16124_v25 }
 0x577   :  { %v8875_v3 = vsub.f32 %v16124_v25, %v8874_v54 }
 0x579   :  { %v8876_v32 = vand.u32 4294901760, %v8875_v3 }
 0x57c   :  { %v12817_v17 = vpop.eup %12816 }
 0x57d   :  { %v6955_v27 = vmul.f32 %v12817_v17, %v15967_v15  ;;  %v16109_v15 = vand.u32 4294901760, %v8314_v10 }
 0x57f   :  { %v7865_v50 = vsel %vm6877_vm2, %v6955_v27, 0  ;;  %v8383_v55 = vsub.f32 %v8314_v10, %v16109_v15 }
 0x580   :  { %v7933_v33 = vand.u32 4294901760, %v7865_v50  ;;  %v12819_v43 = vpop.eup %12818 }
 0x581   :  { %v6959_v59 = vmul.f32 %v12819_v43, %v15971_v36  ;;  %v8384_v5 = vand.u32 4294901760, %v8383_v55 }
 0x582   :  { %v7934_v0 = vsub.f32 %v7865_v50, %v7933_v33  ;;  %12607 = vmatmul.mubr.f32.vlgmr.msra.gmra.mxu1 %v7933_v33 }
 0x583   :  { %12615 = vmatpush3.msra.mxu1 %v16056_v38  ;;  %12616 = vmatprep.mubr.msk.f32.mxu1 %vm12949_vm0, %v12948_v42  ;;  %v8763_v36 = vsel %vm6877_vm2, %v6959_v59, 0  ;;  %v8385_v18 = vsub.f32 %v8383_v55, %v8384_v5 }
 0x584   :  { %12624 = vmatprep.subr.mxu1 %v12948_v42  ;;  %v7935_v8 = vand.u32 4294901760, %v7934_v0  ;;  %v16142_v24 = vand.u32 4294901760, %v8763_v36 }
 0x585   :  { %v8386_v45 = vand.u32 4294901760, %v8385_v18 }
 0x586   :  { %12617 = vmatmul.mubr.f32.vlgmr.msra.gmra.mxu1 %v7935_v8  ;;  %v6943_v26 = vpop.xlane.xlu0 %6942  ;;  %v7936_v40 = vsub.f32 %v7934_v0, %v7935_v8  ;;  %v8832_v13 = vsub.f32 %v8763_v36, %v16142_v24 }
 0x587   :  { %12625 = vmatpush3.msra.mxu1 %v16056_v38  ;;  %12820 = vrcp.f32 %v6943_v26  ;;  %12626 = vmatprep.mubr.msk.f32.mxu1 %vm12949_vm0, %v12948_v42 }
 0x588   :  { %12634 = vmatprep.subr.mxu1 %v12948_v42  ;;  %v7937_v6 = vand.u32 4294901760, %v7936_v40  ;;  %v8833_v12 = vand.u32 4294901760, %v8832_v13 }
 0x58a   :  { %12602 = vmatmul.mubr.f32.vlgmr.msra.gmra.mxu0 %v7937_v6  ;;  %12627 = vmatmul.mubr.f32.vlgmr.msra.gmra.mxu1 %v7933_v33  ;;  %v8834_v30 = vsub.f32 %v8832_v13, %v8833_v12  ;;  %v6949_v37 = vpop.xlane.xlu0 %6948 }
 0x58b   :  { %12610 = vmatpush3.msra.mxu0 %v16065_v9  ;;  %12635 = vmatpush3.msra.mxu1 %v8427_v14  ;;  %v16202_v9 = vsub.f32 %v16020_v7, %v16185_v53  ;;  %12822 = vrcp.f32 %v6949_v37 }
 0x58c   :  { %12611 = vmatprep.mubr.msk.f32.mxu0 %vm12949_vm0, %v12948_v42  ;;  %12619 = vmatprep.subr.mxu0 %v12948_v42  ;;  %v8835_v38 = vand.u32 4294901760, %v8834_v30 }
 0x58d   :  { %12636 = vmatprep.mubr.msk.f32.mxu1 %vm12949_vm0, %v12948_v42  ;;  %12644 = vmatprep.subr.mxu1 %v12948_v42  ;;  %v9772_v2 = vand.u32 4294901760, %v16202_v9 }
 0x58e   :  { %12612 = vmatmul.mubr.f32.vlgmr.msra.gmra.mxu0 %v7934_v0  ;;  %12637 = vmatmul.mubr.f32.vlgmr.msra.gmra.mxu1 %v16109_v15 }
 0x58f   :  { %12620 = vmatpush3.msra.mxu0 %v7976_v39  ;;  %12645 = vmatpush3.msra.mxu1 %v8347_v31  ;;  %v9325_v39 = vand.u32 4294901760, %v9324_v28  ;;  %v9773_v56 = vsub.f32 %v16202_v9, %v9772_v2 }
 0x590   :  { %12621 = vmatprep.mubr.msk.f32.mxu0 %vm12949_vm0, %v12948_v42  ;;  %12629 = vmatprep.subr.mxu0 %v12948_v42 }
 0x591   :  { %12646 = vmatprep.mubr.msk.f32.mxu1 %vm12949_vm0, %v12948_v42  ;;  %12654 = vmatprep.subr.mxu1 %v12948_v42  ;;  %v9774_v63 = vand.u32 4294901760, %v9773_v56  ;;  %v10756_v56 = vld [vmem:[#allocation8 + $0xf0] sm:$0xff] }
 0x592   :  { %12622 = vmatmul.mubr.f32.vlgmr.msra.gmra.mxu0 %v7933_v33  ;;  %12647 = vmatmul.mubr.f32.vlgmr.msra.gmra.mxu1 %v8384_v5 }
 0x593   :  { %12630 = vmatpush3.msra.mxu0 %v8347_v31  ;;  %12655 = vmatpush3.msra.mxu1 %v8347_v31  ;;  %v10143_v31 = vand.u32 4294901760, %v16022_v48 }
 0x594   :  { %v12821_v1 = vpop.eup %12820  ;;  %12631 = vmatprep.mubr.msk.f32.mxu0 %vm12949_vm0, %v12948_v42  ;;  %12639 = vmatprep.subr.mxu0 %v12948_v42 }
 0x595   :  { %12656 = vmatprep.mubr.msk.f32.mxu1 %vm12949_vm0, %v12948_v42  ;;  %12664 = vmatprep.subr.mxu1 %v12948_v42  ;;  %v6961_v21 = vmul.f32 %v12821_v1, %v15977_v23 }
 0x596   :  { %12632 = vmatmul.mubr.f32.vlgmr.msra.gmra.mxu0 %v8386_v45  ;;  %12657 = vmatmul.mubr.f32.vlgmr.msra.gmra.mxu1 %v16109_v15 }
 0x597   :  { %12640 = vmatpush3.msra.mxu0 %v16098_v52  ;;  %12665 = vmatpush3.msra.mxu1 %v8876_v32  ;;  %v9212_v23 = vsel %vm6877_vm2, %v6961_v21, 0  ;;  %v16248_v52 = vsub.f32 %v16022_v48, %v10143_v31 }
 0x598   :  { %12641 = vmatprep.mubr.msk.f32.mxu0 %vm12949_vm0, %v12948_v42  ;;  %12649 = vmatprep.subr.mxu0 %v12948_v42  ;;  %v16182_v34 = vand.u32 4294901760, %v9212_v23  ;;  %v12823_v46 = vpop.eup %12822 }
 0x599   :  { %12666 = vmatprep.mubr.msk.f32.mxu1 %vm12949_vm0, %v12948_v42  ;;  %12674 = vmatprep.subr.mxu1 %v12948_v42  ;;  %v6965_v11 = vmul.f32 %v12823_v46, %v15981_v19  ;;  %v10221_v48 = vand.u32 4294901760, %v16248_v52 }
 0x59a   :  { %12642 = vmatmul.mubr.f32.vlgmr.msra.gmra.mxu0 %v8383_v55  ;;  %12667 = vmatmul.mubr.f32.vlgmr.msra.gmra.mxu1 %v16142_v24  ;;  %v9281_v51 = vsub.f32 %v9212_v23, %v16182_v34 }
 0x59b   :  { %12650 = vmatpush3.msra.mxu0 %v8425_v58  ;;  %12675 = vmatpush3.msra.mxu1 %v16112_v60  ;;  %v10110_v58 = vsel %vm6877_vm2, %v6965_v11, 0  ;;  %v10222_v0 = vsub.f32 %v16248_v52, %v10221_v48 }
 0x59c   :  { %12651 = vmatprep.mubr.msk.f32.mxu0 %vm12949_vm0, %v12948_v42  ;;  %12659 = vmatprep.subr.mxu0 %v12948_v42  ;;  %v9282_v7 = vand.u32 4294901760, %v9281_v51  ;;  %v10178_v10 = vand.u32 4294901760, %v10110_v58 }
 0x59d   :  { %12676 = vmatprep.mubr.msk.f32.mxu1 %vm12949_vm0, %v12948_v42  ;;  %12684 = vmatprep.subr.mxu1 %v12948_v42  ;;  %v10223_v47 = vand.u32 4294901760, %v10222_v0 }
 0x59e   :  { %12652 = vmatmul.mubr.f32.vlgmr.msra.gmra.mxu0 %v16109_v15  ;;  %12677 = vmatmul.mubr.f32.vlgmr.msra.gmra.mxu1 %v8833_v12  ;;  %v9283_v41 = vsub.f32 %v9281_v51, %v9282_v7 }
 0x59f   :  { %12660 = vmatpush3.msra.mxu0 %v16112_v60  ;;  %12685 = vmatpush3.msra.mxu1 %v16112_v60  ;;  %v10179_v60 = vsub.f32 %v10110_v58, %v10178_v10  ;;  %v10750_v58 = vld [vmem:[#allocation8 + $0xc0] sm:$0xff] }
 0x5a0   :  { %12661 = vmatprep.mubr.msk.f32.mxu0 %vm12949_vm0, %v12948_v42  ;;  %12669 = vmatprep.subr.mxu0 %v12948_v42  ;;  %v9284_v62 = vand.u32 4294901760, %v9283_v41  ;;  %v10757_v41 = vld [vmem:[#allocation8 + $0xf8] sm:$0xff] }
 0x5a1   :  { %12686 = vmatprep.mubr.msk.f32.mxu1 %vm12949_vm0, %v12948_v42  ;;  %12694 = vmatprep.subr.mxu1 %v12948_v42  ;;  %v10180_v43 = vand.u32 4294901760, %v10179_v60 }
 0x5a2   :  { %12662 = vmatmul.mubr.f32.vlgmr.msra.gmra.mxu0 %v8835_v38  ;;  %12687 = vmatmul.mubr.f32.vlgmr.msra.gmra.mxu1 %v16142_v24 }
 0x5a3   :  { %12670 = vmatpush3.msra.mxu0 %v16124_v25  ;;  %12695 = vmatpush3.msra.mxu1 %v9325_v39  ;;  %v6946_v20 = vpop.xlane.xlu1 %6945  ;;  %v10181_v26 = vsub.f32 %v10179_v60, %v10180_v43 }
 0x5a4   :  { %12824 = vrcp.f32 %v6946_v20  ;;  %12671 = vmatprep.mubr.msk.f32.mxu0 %vm12949_vm0, %v12948_v42  ;;  %12679 = vmatprep.subr.mxu0 %v12948_v42 }
 0x5a5   :  { %12696 = vmatprep.mubr.msk.f32.mxu1 %vm12949_vm0, %v12948_v42  ;;  %12704 = vmatprep.subr.mxu1 %v12948_v42  ;;  %v10182_v40 = vand.u32 4294901760, %v10181_v26 }
 0x5a6   :  { %12672 = vmatmul.mubr.f32.vlgmr.msra.gmra.mxu0 %v8832_v13  ;;  %12697 = vmatmul.mubr.f32.vlgmr.msra.gmra.mxu1 %v16182_v34 }
 0x5a7   :  { %12680 = vmatpush3.msra.mxu0 %v8874_v54  ;;  %12705 = vmatpush3.msra.mxu1 %v16145_v35 }
 0x5a8   :  { %12681 = vmatprep.mubr.msk.f32.mxu0 %vm12949_vm0, %v12948_v42  ;;  %12689 = vmatprep.subr.mxu0 %v12948_v42 }
 0x5a9   :  { %12706 = vmatprep.mubr.msk.f32.mxu1 %vm12949_vm0, %v12948_v42  ;;  %12714 = vmatprep.subr.mxu1 %v12948_v42 }
 0x5aa   :  { %12682 = vmatmul.mubr.f32.vlgmr.msra.gmra.mxu0 %v16142_v24  ;;  %12707 = vmatmul.mubr.f32.vlgmr.msra.gmra.mxu1 %v9282_v7 }
 0x5ab   :  { %12690 = vmatpush3.msra.mxu0 %v16145_v35  ;;  %12715 = vmatpush3.msra.mxu1 %v16145_v35 }
 0x5ac   :  { %12691 = vmatprep.mubr.msk.f32.mxu0 %vm12949_vm0, %v12948_v42  ;;  %12699 = vmatprep.subr.mxu0 %v12948_v42 }
 0x5ad   :  { %12716 = vmatprep.mubr.msk.f32.mxu1 %vm12949_vm0, %v12948_v42  ;;  %12724 = vmatprep.subr.mxu1 %v12948_v42 }
 0x5ae   :  { %12692 = vmatmul.mubr.f32.vlgmr.msra.gmra.mxu0 %v9284_v62  ;;  %12717 = vmatmul.mubr.f32.vlgmr.msra.gmra.mxu1 %v16182_v34  ;;  %v10755_v62 = vld [vmem:[#allocation8 + $0xe8] sm:$0xff] }
 0x5af   :  { %12700 = vmatpush3.msra.mxu0 %v16159_v29  ;;  %12725 = vmatpush3.msra.mxu1 %v9774_v63  ;;  %v16304_v63 = vand.u32 4294901760, %v10757_v41  ;;  %v16308_v46 = vand.u32 4294901760, %v10755_v62 }
 0x5b0   :  { %12701 = vmatprep.mubr.msk.f32.mxu0 %vm12949_vm0, %v12948_v42  ;;  %12709 = vmatprep.subr.mxu0 %v12948_v42 }
 0x5b1   :  { %v12825_v17 = vpop.eup %12824  ;;  %12726 = vmatprep.mubr.msk.f32.mxu1 %vm12949_vm0, %v12948_v42  ;;  %12734 = vmatprep.subr.mxu1 %v12948_v42 }
 0x5b2   :  { %12702 = vmatmul.mubr.f32.vlgmr.msra.gmra.mxu0 %v9281_v51  ;;  %v6963_v27 = vmul.f32 %v12825_v17, %v15986_v57  ;;  %v10754_v17 = vld [vmem:[#allocation8 + $0xe0] sm:$0xff] }
 0x5b3   :  { %12710 = vmatpush3.msra.mxu0 %v9323_v44  ;;  %12711 = vmatprep.mubr.msk.f32.mxu0 %vm12949_vm0, %v12948_v42  ;;  %v16310_v11 = vand.u32 4294901760, %v10754_v17 }
 0x5b4   :  { %12719 = vmatprep.subr.mxu0 %v12948_v42  ;;  %v9661_v50 = vsel %vm6877_vm2, %v6963_v27, 0  ;;  %v10752_v27 = vld [vmem:[#allocation8 + $0xd0] sm:$0xff] }
 0x5b5   :  { %v9729_v33 = vand.u32 4294901760, %v9661_v50 }
 0x5b6   :  { %12712 = vmatmul.mubr.f32.vlgmr.msra.gmra.mxu0 %v16182_v34 }
 0x5b7   :  { %12720 = vmatpush3.msra.mxu0 %v16185_v53  ;;  %v9730_v19 = vsub.f32 %v9661_v50, %v9729_v33  ;;  %12727 = vmatmul.mubr.f32.vlgmr.msra.gmra.mxu1 %v9729_v33 }
 0x5b8   :  { %12735 = vmatpush3.msra.mxu1 %v16185_v53  ;;  %12736 = vmatprep.mubr.msk.f32.mxu1 %vm12949_vm0, %v12948_v42 }
 0x5b9   :  { %12744 = vmatprep.subr.mxu1 %v12948_v42  ;;  %v9731_v57 = vand.u32 4294901760, %v9730_v19  ;;  %12721 = vmatprep.mubr.msk.f32.mxu0 %vm12949_vm0, %v12948_v42 }
 0x5ba   :  { %12729 = vmatprep.subr.mxu0 %v12948_v42 }
 0x5bb   :  { %12737 = vmatmul.mubr.f32.vlgmr.msra.gmra.mxu1 %v9731_v57  ;;  %v9732_v8 = vsub.f32 %v9730_v19, %v9731_v57 }
 0x5bc   :  { %12745 = vmatpush3.msra.mxu1 %v16185_v53  ;;  %12746 = vmatprep.mubr.msk.f32.mxu1 %vm12949_vm0, %v12948_v42 }
 0x5bd   :  { %12754 = vmatprep.subr.mxu1 %v12948_v42  ;;  %v9733_v15 = vand.u32 4294901760, %v9732_v8  ;;  %v16329_v8 = vsub.f32 %v10754_v17, %v16310_v11 }
 0x5bf   :  { %12722 = vmatmul.mubr.f32.vlgmr.msra.gmra.mxu0 %v9733_v15  ;;  %12747 = vmatmul.mubr.f32.vlgmr.msra.gmra.mxu1 %v9729_v33 }
 0x5c0   :  { %12730 = vmatpush3.msra.mxu0 %v16202_v9  ;;  %12755 = vmatpush3.msra.mxu1 %v10223_v47  ;;  %v16337_v47 = vand.u32 4294901760, %v10750_v58 }
 0x5c1   :  { %12731 = vmatprep.mubr.msk.f32.mxu0 %vm12949_vm0, %v12948_v42  ;;  %12739 = vmatprep.subr.mxu0 %v12948_v42 }
 0x5c2   :  { %12756 = vmatprep.mubr.msk.f32.mxu1 %vm12949_vm0, %v12948_v42  ;;  %12764 = vmatprep.subr.mxu1 %v12948_v42 }
 0x5c3   :  { %12732 = vmatmul.mubr.f32.vlgmr.msra.gmra.mxu0 %v9730_v19  ;;  %12757 = vmatmul.mubr.f32.vlgmr.msra.gmra.mxu1 %v10178_v10  ;;  %v16317_v19 = vsub.f32 %v10757_v41, %v16304_v63  ;;  %v10742_v41 = vld [vmem:[#allocation8 + $0x80] sm:$0xff] }
 0x5c4   :  { %12740 = vmatpush3.msra.mxu0 %v9772_v2  ;;  %12765 = vmatpush3.msra.mxu1 %v10143_v31 }
 0x5c5   :  { %12741 = vmatprep.mubr.msk.f32.mxu0 %vm12949_vm0, %v12948_v42  ;;  %12749 = vmatprep.subr.mxu0 %v12948_v42 }
 0x5c6   :  { %12766 = vmatprep.mubr.msk.f32.mxu1 %vm12949_vm0, %v12948_v42  ;;  %12774 = vmatprep.subr.mxu1 %v12948_v42 }
 0x5c7   :  { %12742 = vmatmul.mubr.f32.vlgmr.msra.gmra.mxu0 %v9729_v33  ;;  %12767 = vmatmul.mubr.f32.vlgmr.msra.gmra.mxu1 %v10180_v43  ;;  %v16314_v33 = vand.u32 4294901760, %v10752_v27  ;;  %v17875_v43 = vand.u32 4294901760, %v16317_v19 }
 0x5c8   :  { %12750 = vmatpush3.msra.mxu0 %v10143_v31  ;;  %12775 = vmatpush3.msra.mxu1 %v10143_v31  ;;  %v16306_v31 = vand.u32 4294901760, %v10756_v56 }
 0x5c9   :  { %12751 = vmatprep.mubr.msk.f32.mxu0 %vm12949_vm0, %v12948_v42  ;;  %12759 = vmatprep.subr.mxu0 %v12948_v42 }
 0x5ca   :  { %12776 = vmatprep.mubr.msk.f32.mxu1 %vm12949_vm0, %v12948_v42  ;;  %v16320_v57 = vsub.f32 %v10756_v56, %v16306_v31 }
 0x5cb   :  { %12752 = vmatmul.mubr.f32.vlgmr.msra.gmra.mxu0 %v10182_v40  ;;  %12777 = vmatmul.mubr.f32.vlgmr.msra.gmra.mxu1 %v10178_v10 }
 0x5cc   :  { %12760 = vmatpush3.msra.mxu0 %v16248_v52  ;;  %12761 = vmatprep.mubr.msk.f32.mxu0 %vm12949_vm0, %v12948_v42  ;;  %v10753_v52 = vld [vmem:[#allocation8 + $0xd8] sm:$0xff]  ;;  %v17873_v26 = vand.u32 4294901760, %v16320_v57 }
 0x5cd   :  { %12769 = vmatprep.subr.mxu0 %v12948_v42  ;;  %v16312_v50 = vand.u32 4294901760, %v10753_v52 }
 0x5cf   :  { %12762 = vmatmul.mubr.f32.vlgmr.msra.gmra.mxu0 %v10179_v60  ;;  %v16332_v15 = vsub.f32 %v10753_v52, %v16312_v50  ;;  %v16335_v60 = vsub.f32 %v10752_v27, %v16314_v33 }
 0x5d0   :  { %12770 = vmatpush3.msra.mxu0 %v10221_v48  ;;  %12771 = vmatprep.mubr.msk.f32.mxu0 %vm12949_vm0, %v12948_v42  ;;  %v10751_v48 = vld [vmem:[#allocation8 + $0xc8] sm:$0xff] }
 0x5d1   :  { %v16325_v0 = vand.u32 4294901760, %v10751_v48  ;;  %10803 = vmatprep.subr.mxu0 %v16304_v63 }
 0x5d3   :  { %12772 = vmatmul.mubr.f32.vlgmr.msra.gmra.mxu0 %v10178_v10  ;;  %v16323_v10 = vsub.f32 %v10755_v62, %v16308_v46 }
 0x5d4   :  { %10805 = vmatpush1.msra.mxu0 %v16306_v31 }
 0x5d5   :  { %v17872_v40 = vand.u32 4294901760, %v16323_v10  ;;  %10807 = vmatprep.subr.mxu0 %v16308_v46 }
 0x5d6   :  { %10809 = vmatpush1.msra.mxu0 %v16310_v11 }
 0x5d7   :  { %10811 = vmatprep.subr.mxu0 %v16312_v50 }
 0x5d8   :  { %10813 = vmatpush1.msra.mxu0 %v16314_v33 }
 0x5d9   :  { %10815 = vmatprep.subr.mxu0 %v16325_v0 }
 0x5da   :  { %10817 = vmatpush1.msra.mxu0 %v16337_v47 }
 0x60c   :  { %v7041_v6 = vpop.f32.mrf.mxu0 }
 0x60e   :  { %v12543_v55 = vpop.f32.mrf.mxu0 }
 0x60f   :  { %v17871_v55 = vand.u32 4294901760, %v16329_v8 }
 0x610   :  { %v7191_v25 = vpop.f32.mrf.mxu0 }
 0x612   :  { %v12553_v14 = vpop.f32.mrf.mxu0 }
 0x613   :  { %v17868_v14 = vand.u32 4294901760, %v16335_v60 }
 0x614   :  { %v7117_v59 = vpop.f32.mrf.mxu1 }
 0x615   :  { %v7118_v5 = vadd.f32 %v7117_v59, %v7041_v6  ;;  %v7339_v54 = vpop.f32.mrf.mxu0  ;;  %v16344_v6 = vsub.f32 %v10751_v48, %v16325_v0  ;;  %v16351_v59 = vsub.f32 %v10750_v58, %v16337_v47 }
 0x616   :  { %v12548_v36 = vpop.f32.mrf.mxu1 }
 0x617   :  { %v12563_v18 = vpop.f32.mrf.mxu0  ;;  %v7192_v24 = vadd.f32 %v7191_v25, %v7118_v5  ;;  %v17869_v25 = vand.u32 4294901760, %v16332_v15  ;;  %v10950_v5 = vsub.f32 %v16317_v19, %v17875_v43  ;;  %v10962_v36 = vsub.f32 %v16323_v10, %v17872_v40  ;;  %v10734_v40 = vld [vmem:[#allocation8 + $0x40] sm:$0xff] }
 0x618   :  { %v7265_v35 = vpop.f32.mrf.mxu1  ;;  %v17867_v18 = vand.u32 4294901760, %v16344_v6 }
 0x619   :  { %v7266_v3 = vadd.f32 %v7265_v35, %v7192_v24  ;;  %v7490_v1 = vpop.f32.mrf.mxu0  ;;  %v10968_v24 = vsub.f32 %v16329_v8, %v17871_v55  ;;  %v10974_v35 = vsub.f32 %v16332_v15, %v17869_v25  ;;  %v16468_v55 = vand.u32 4294901760, %v10739_v22 }
 0x61a   :  { %v12558_v45 = vpop.f32.mrf.mxu1 }
 0x61b   :  { %v12573_v13 = vpop.f32.mrf.mxu0  ;;  %v7340_v29 = vadd.f32 %v7339_v54, %v7266_v3  ;;  %v10956_v54 = vsub.f32 %v16320_v57, %v17873_v26  ;;  %v10980_v3 = vsub.f32 %v16335_v60, %v17868_v14  ;;  %v10749_v45 = vld [vmem:[#allocation8 + $0xb8] sm:$0xff]  ;;  %18871 = vst [vmem:[#allocation43_spill] sm:$0xff] %v16468_v55  ;;  %v16483_v43 = vsub.f32 %v10739_v22, %v16468_v55 }
 0x61c   :  { %v7411_v32 = vpop.f32.mrf.mxu1  ;;  %v10748_v13 = vld [vmem:[#allocation8 + $0xb0] sm:$0xff] }
 0x61d   :  { %v16300_v21 = vadd.f32 %v7411_v32, %v7340_v29  ;;  %v7640_v42 = vpop.f32.mrf.mxu0  ;;  %v10747_v29 = vld [vmem:[#allocation8 + $0xa8] sm:$0xff]  ;;  %v10951_v32 = vand.u32 4294901760, %v10950_v5  ;;  %18877 = vst [vmem:[#allocation53_spill] sm:$0xff] %v16483_v43 }
 0x61e   :  { %v12568_v12 = vpop.f32.mrf.mxu1 }
 0x61f   :  { %v12583_v44 = vpop.f32.mrf.mxu0  ;;  %v10963_v12 = vand.u32 4294901760, %v10962_v36  ;;  %10952 = vmatprep.subr.mxu1 %v10951_v32 }
 0x620   :  { %v7566_v23 = vpop.f32.mrf.mxu1  ;;  %v10986_v44 = vsub.f32 %v16344_v6, %v17867_v18 }
 0x621   :  { %v7567_v30 = vadd.f32 %v7566_v23, %v7490_v1  ;;  %v7788_v34 = vpop.f32.mrf.mxu0  ;;  %v17866_v1 = vand.u32 4294901760, %v16351_v59  ;;  %v10746_v23 = vld [vmem:[#allocation8 + $0xa0] sm:$0xff] }
 0x622   :  { %v12578_v53 = vpop.f32.mrf.mxu1  ;;  %v16390_v62 = vand.u32 4294901760, %v10746_v23 }
 0x623   :  { %v12593_v28 = vpop.f32.mrf.mxu0  ;;  %v7641_v37 = vadd.f32 %v7640_v42, %v7567_v30  ;;  %v10957_v42 = vand.u32 4294901760, %v10956_v54  ;;  %v10745_v30 = vld [vmem:[#allocation8 + $0x98] sm:$0xff]  ;;  %v10969_v53 = vand.u32 4294901760, %v10968_v24 }
 0x624   :  { %v7714_v38 = vpop.f32.mrf.mxu1  ;;  %v10975_v28 = vand.u32 4294901760, %v10974_v35  ;;  %v16392_v17 = vand.u32 4294901760, %v10745_v30  ;;  %v16409_v54 = vsub.f32 %v10746_v23, %v16390_v62  ;;  %v16417_v35 = vand.u32 4294901760, %v10742_v41 }
 0x625   :  { %v7715_v51 = vadd.f32 %v7714_v38, %v7641_v37  ;;  %v10981_v37 = vand.u32 4294901760, %v10980_v3  ;;  %v10992_v38 = vsub.f32 %v16351_v59, %v17866_v1  ;;  %10958 = vmatpush1.msra.mxu1 %v10957_v42 }
 0x626   :  { %v12588_v9 = vpop.f32.mrf.mxu1  ;;  %10964 = vmatprep.subr.mxu1 %v10963_v12  ;;  %18864 = vst [vmem:[#allocation62_spill] sm:$0xff] %v16409_v54  ;;  %v16412_v36 = vsub.f32 %v10745_v30, %v16392_v17  ;;  %v17861_v32 = vand.u32 4294901760, %v16409_v54 }
 0x627   :  { %v7789_v39 = vadd.f32 %v7788_v34, %v7715_v51  ;;  %v10744_v34 = vld [vmem:[#allocation8 + $0x90] sm:$0xff]  ;;  %v10743_v51 = vld [vmem:[#allocation8 + $0x88] sm:$0xff]  ;;  %v10987_v9 = vand.u32 4294901760, %v10986_v44  ;;  %v10993_v56 = vand.u32 4294901760, %v10992_v38  ;;  %10970 = vmatpush1.msra.mxu1 %v10969_v53  ;;  %v16431_v44 = vsub.f32 %v10742_v41, %v16417_v35 }
 0x628   :  { %v7860_v20 = vpop.f32.mrf.mxu1  ;;  %v16394_v52 = vand.u32 4294901760, %v10744_v34  ;;  %v16405_v5 = vand.u32 4294901760, %v10743_v51  ;;  %18865 = vst [vmem:[#allocation64_spill] sm:$0xff] %v16412_v36  ;;  %10976 = vmatprep.subr.mxu1 %v10975_v28  ;;  %v17863_v42 = vand.u32 4294901760, %v16412_v36  ;;  %v11016_v28 = vsub.f32 %v16409_v54, %v17861_v32  ;;  %v10740_v41 = vld [vmem:[#allocation8 + $0x70] sm:$0xff] }
 0x629   :  { %v16302_v7 = vadd.f32 %v7860_v20, %v7789_v39  ;;  %v16384_v39 = vand.u32 4294901760, %v10749_v45  ;;  %v16386_v20 = vand.u32 4294901760, %v10748_v13  ;;  %10982 = vmatpush1.msra.mxu1 %v10981_v37  ;;  %18868 = vst [vmem:[#allocation82_spill] sm:$0xff] %v16431_v44  ;;  %v10728_v54 = vld [vmem:[#allocation8 + $0x10] sm:$0xff] }
 0x62a   :  { %v12598_v2 = vpop.f32.mrf.mxu1  ;;  %v16415_v24 = vsub.f32 %v10744_v34, %v16394_v52  ;;  %10988 = vmatprep.subr.mxu1 %v10987_v9  ;;  %v11022_v37 = vsub.f32 %v16412_v36, %v17863_v42  ;;  %v10741_v9 = vld [vmem:[#allocation8 + $0x78] sm:$0xff]  ;;  %v11017_v1 = vand.u32 4294901760, %v11016_v28 }
 0x62b   :  { %v16388_v2 = vand.u32 4294901760, %v10747_v29  ;;  %v16397_v27 = vsub.f32 %v10749_v45, %v16384_v39  ;;  %v16400_v48 = vsub.f32 %v10748_v13, %v16386_v20  ;;  %10819 = vmatprep.subr.mxu0 %v16384_v39  ;;  %10994 = vmatpush1.msra.mxu1 %v10993_v56  ;;  %v10737_v42 = vld [vmem:[#allocation8 + $0x58] sm:$0xff] }
 0x62c   :  { %18866 = vst [vmem:[#allocation72_spill] sm:$0xff] %v16415_v24  ;;  %10821 = vmatpush1.msra.mxu0 %v16386_v20  ;;  %v17865_v12 = vand.u32 4294901760, %v16415_v24  ;;  %v11023_v18 = vand.u32 4294901760, %v11022_v37 }
 0x62d   :  { %18861 = vst [vmem:[#allocation113_spill] sm:$0xff] %v16397_v27  ;;  %18862 = vst [vmem:[#allocation56_spill] sm:$0xff] %v16400_v48  ;;  %v16403_v58 = vsub.f32 %v10747_v29, %v16388_v2  ;;  %v17864_v3 = vand.u32 4294901760, %v16397_v27  ;;  %v17862_v45 = vand.u32 4294901760, %v16400_v48  ;;  %v16424_v29 = vsub.f32 %v10743_v51, %v16405_v5  ;;  %10823 = vmatprep.subr.mxu0 %v16388_v2 }
 0x62e   :  { %10825 = vmatpush1.msra.mxu0 %v16390_v62  ;;  %v11028_v38 = vsub.f32 %v16415_v24, %v17865_v12  ;;  %v17874_v51 = vand.u32 4294901760, %v16431_v44  ;;  %v10731_v24 = vld [vmem:[#allocation8 + $0x28] sm:$0xff] }
 0x62f   :  { %18863 = vst [vmem:[#allocation52_spill] sm:$0xff] %v16403_v58  ;;  %v17860_v13 = vand.u32 4294901760, %v16403_v58  ;;  %18867 = vst [vmem:[#allocation70_spill] sm:$0xff] %v16424_v29  ;;  %v10998_v23 = vsub.f32 %v16397_v27, %v17864_v3  ;;  %v11004_v30 = vsub.f32 %v16400_v48, %v17862_v45  ;;  %v17870_v53 = vand.u32 4294901760, %v16424_v29  ;;  %10827 = vmatprep.subr.mxu0 %v16392_v17  ;;  %v10738_v45 = vld [vmem:[#allocation8 + $0x60] sm:$0xff]  ;;  %v10736_v3 = vld [vmem:[#allocation8 + $0x50] sm:$0xff] }
 0x630   :  { %10829 = vmatpush1.msra.mxu0 %v16394_v52  ;;  %v11029_v14 = vand.u32 4294901760, %v11028_v38  ;;  %v11040_v25 = vsub.f32 %v16431_v44, %v17874_v51  ;;  %v16470_v37 = vand.u32 4294901760, %v10738_v45  ;;  %v16472_v38 = vand.u32 4294901760, %v10737_v42 }
 0x631   :  { %v11010_v34 = vsub.f32 %v16403_v58, %v17860_v13  ;;  %v10999_v56 = vand.u32 4294901760, %v10998_v23  ;;  %v11005_v49 = vand.u32 4294901760, %v11004_v30  ;;  %v11034_v32 = vsub.f32 %v16424_v29, %v17870_v53  ;;  %10831 = vmatprep.subr.mxu0 %v16405_v5  ;;  %v10735_v23 = vld [vmem:[#allocation8 + $0x48] sm:$0xff] }
 0x632   :  { %10833 = vmatpush1.msra.mxu0 %v16417_v35  ;;  %v16466_v53 = vand.u32 4294901760, %v10740_v41  ;;  %v11041_v28 = vand.u32 4294901760, %v11040_v25  ;;  %18872 = vst [vmem:[#allocation74_spill] sm:$0xff] %v16470_v37  ;;  %18873 = vst [vmem:[#allocation96_spill] sm:$0xff] %v16472_v38  ;;  %v16474_v51 = vand.u32 4294901760, %v10736_v3  ;;  %v16485_v16 = vand.u32 4294901760, %v10735_v23 }
 0x633   :  { %v11011_v13 = vand.u32 4294901760, %v11010_v34  ;;  %11000 = vmatprep.subr.mxu1 %v10999_v56  ;;  %v11035_v30 = vand.u32 4294901760, %v11034_v32  ;;  %v16464_v34 = vand.u32 4294901760, %v10741_v9  ;;  %v16494_v25 = vsub.f32 %v10737_v42, %v16472_v38 }
 0x634   :  { %18870 = vst [vmem:[#allocation58_spill] sm:$0xff] %v16466_v53  ;;  %11006 = vmatpush1.msra.mxu1 %v11005_v49  ;;  %18874 = vst [vmem:[#allocation19_spill] sm:$0xff] %v16474_v51  ;;  %v16480_v32 = vsub.f32 %v10740_v41, %v16466_v53 }
 0x635   :  { %18869 = vst [vmem:[#allocation94_spill] sm:$0xff] %v16464_v34  ;;  %11012 = vmatprep.subr.mxu1 %v11011_v13  ;;  %v16477_v56 = vsub.f32 %v10741_v9, %v16464_v34  ;;  %18878 = vst [vmem:[#allocation27_spill] sm:$0xff] %v16485_v16  ;;  %10835 = vmatprep.subr.mxu0 %v16464_v34  ;;  %v16497_v13 = vsub.f32 %v10736_v3, %v16474_v51  ;;  %v16499_v9 = vand.u32 4294901760, %v10734_v40 }
 0x636   :  { %18876 = vst [vmem:[#allocation24_spill] sm:$0xff] %v16480_v32  ;;  %11018 = vmatpush1.msra.mxu1 %v11017_v1  ;;  %18880 = vst [vmem:[#allocation69_spill] sm:$0xff] %v16494_v25  ;;  %10837 = vmatpush1.msra.mxu0 %v16466_v53  ;;  %v17883_v41 = vand.u32 4294901760, %v16480_v32  ;;  %v17886_v1 = vand.u32 4294901760, %v16483_v43 }
 0x637   :  { %18875 = vst [vmem:[#allocation45_spill] sm:$0xff] %v16477_v56  ;;  %18881 = vst [vmem:[#allocation38_spill] sm:$0xff] %v16497_v13  ;;  %11024 = vmatprep.subr.mxu1 %v11023_v18  ;;  %v17882_v22 = vand.u32 4294901760, %v16477_v56  ;;  %10839 = vmatprep.subr.mxu0 %v16468_v55  ;;  %v16513_v18 = vsub.f32 %v10734_v40, %v16499_v9 }
 0x638   :  { %18882 = vst [vmem:[#allocation73_spill] sm:$0xff] %v16499_v9  ;;  %11030 = vmatpush1.msra.mxu1 %v11029_v14  ;;  %10841 = vmatpush1.msra.mxu0 %v16470_v37  ;;  %v11052_v14 = vsub.f32 %v16480_v32, %v17883_v41  ;;  %v18886_v32 = vand.u32 4294901760, %v16497_v13 }
 0x639   :  { %18884 = vst [vmem:[#allocation44_spill] sm:$0xff] %v16513_v18  ;;  %11036 = vmatprep.subr.mxu1 %v11035_v30  ;;  %10843 = vmatprep.subr.mxu0 %v16472_v38 }
 0x63a   :  { %11042 = vmatpush1.msra.mxu1 %v11041_v28  ;;  %10845 = vmatpush1.msra.mxu0 %v16474_v51  ;;  %v11053_v36 = vand.u32 4294901760, %v11052_v14 }
 0x63b   :  { %10847 = vmatprep.subr.mxu0 %v16485_v16 }
 0x63c   :  { %10849 = vmatpush1.msra.mxu0 %v16499_v9 }
 0x642   :  { %v8015_v12 = vpop.f32.mrf.mxu1 }
 0x644   :  { %v12608_v26 = vpop.f32.mrf.mxu1 }
 0x645   :  { %v16491_v26 = vsub.f32 %v10738_v45, %v16470_v37  ;;  %v16506_v45 = vsub.f32 %v10735_v23, %v16485_v16  ;;  %v11046_v23 = vsub.f32 %v16477_v56, %v17882_v22  ;;  %v18885_v22 = vand.u32 4294901760, %v16494_v25  ;;  %v10732_v56 = vld [vmem:[#allocation8 + $0x30] sm:$0xff] }
 0x646   :  { %v16488_v49 = vpop.f32.mrf.mxu1 }
 0x647   :  { %18879 = vst [vmem:[#allocation61_spill] sm:$0xff] %v16491_v26  ;;  %18883 = vst [vmem:[#allocation77_spill] sm:$0xff] %v16506_v45  ;;  %v17899_v3 = vand.u32 4294901760, %v16491_v26  ;;  %v11070_v41 = vsub.f32 %v16494_v25, %v18885_v22  ;;  %v11047_v38 = vand.u32 4294901760, %v11046_v23  ;;  %v18887_v29 = vand.u32 4294901760, %v16506_v45 }
 0x648   :  { %v12618_v42 = vpop.f32.mrf.mxu1 }
 0x649   :  { %v11058_v42 = vsub.f32 %v16483_v43, %v17886_v1  ;;  %v11064_v30 = vsub.f32 %v16491_v26, %v17899_v3  ;;  %v11076_v1 = vsub.f32 %v16497_v13, %v18886_v32  ;;  %v10733_v43 = vld [vmem:[#allocation8 + $0x38] sm:$0xff]  ;;  %v10730_v3 = vld [vmem:[#allocation8 + $0x20] sm:$0xff]  ;;  %v11071_v32 = vand.u32 4294901760, %v11070_v41  ;;  %11048 = vmatprep.subr.mxu1 %v11047_v38 }
 0x64a   :  { %v7939_v40 = vpop.f32.mrf.mxu0  ;;  %v16527_v44 = vpop.f32.mrf.mxu1  ;;  %v10729_v26 = vld [vmem:[#allocation8 + $0x18] sm:$0xff]  ;;  %v11082_v58 = vsub.f32 %v16506_v45, %v18887_v29  ;;  %v16548_v14 = vand.u32 4294901760, %v10733_v43  ;;  %11054 = vmatpush1.msra.mxu1 %v11053_v36  ;;  %v16560_v38 = vand.u32 4294901760, %v10728_v54 }
 0x64b   :  { %v8016_v28 = vadd.f32 %v8015_v12, %v7939_v40  ;;  %v11059_v37 = vand.u32 4294901760, %v11058_v42  ;;  %v11065_v55 = vand.u32 4294901760, %v11064_v30  ;;  %v11077_v13 = vand.u32 4294901760, %v11076_v1 }
 0x64c   :  { %v12603_v22 = vpop.f32.mrf.mxu0  ;;  %v12628_v25 = vpop.f32.mrf.mxu1  ;;  %v18888_v12 = vand.u32 4294901760, %v16513_v18  ;;  %18889 = vst [vmem:[#allocation81_spill] sm:$0xff] %v16548_v14  ;;  %v16550_v42 = vand.u32 4294901760, %v10732_v56  ;;  %v16552_v40 = vand.u32 4294901760, %v10731_v24  ;;  %v11083_v1 = vand.u32 4294901760, %v11082_v58  ;;  %18894 = vst [vmem:[#allocation89_spill] sm:$0xff] %v16560_v38  ;;  %10851 = vmatprep.subr.mxu0 %v16548_v14 }
 0x64d   :  { %v16556_v30 = vand.u32 4294901760, %v10730_v3  ;;  %v16558_v29 = vand.u32 4294901760, %v10729_v26  ;;  %v10727_v22 = vld [vmem:[#allocation8 + $0x8] sm:$0xff]  ;;  %11060 = vmatprep.subr.mxu1 %v11059_v37 }
 0x64e   :  { %v11088_v23 = vsub.f32 %v16513_v18, %v18888_v12  ;;  %18890 = vst [vmem:[#allocation46_spill] sm:$0xff] %v16550_v42  ;;  %18891 = vst [vmem:[#allocation87_spill] sm:$0xff] %v16552_v40  ;;  %v8089_v25 = vpop.f32.mrf.mxu0  ;;  %v16554_v41 = vpop.f32.mrf.mxu1  ;;  %v16563_v18 = vsub.f32 %v10733_v43, %v16548_v14  ;;  %v16566_v9 = vsub.f32 %v10732_v56, %v16550_v42  ;;  %11066 = vmatpush1.msra.mxu1 %v11065_v55 }
 0x64f   :  { %18892 = vst [vmem:[#allocation54_spill] sm:$0xff] %v16556_v30  ;;  %18893 = vst [vmem:[#allocation90_spill] sm:$0xff] %v16558_v29  ;;  %v8090_v45 = vadd.f32 %v8089_v25, %v8016_v28  ;;  %v16570_v16 = vsub.f32 %v10731_v24, %v16552_v40  ;;  %v16573_v51 = vsub.f32 %v10730_v3, %v16556_v30  ;;  %11072 = vmatprep.subr.mxu1 %v11071_v32 }
 0x650   :  { %v11089_v12 = vand.u32 4294901760, %v11088_v23  ;;  %18895 = vst [vmem:[#allocation99_spill] sm:$0xff] %v16563_v18  ;;  %18896 = vst [vmem:[#allocation95_spill] sm:$0xff] %v16566_v9  ;;  %v12613_v36 = vpop.f32.mrf.mxu0  ;;  %v12638_v58 = vpop.f32.mrf.mxu1  ;;  %v16576_v37 = vsub.f32 %v10729_v26, %v16558_v29  ;;  %v16579_v43 = vsub.f32 %v10728_v54, %v16560_v38  ;;  %v17923_v28 = vand.u32 4294901760, %v16563_v18  ;;  %10853 = vmatpush1.msra.mxu0 %v16550_v42  ;;  %v10785_v42 = vld [vmem:[#allocation8 + $0x1d8] sm:$0xff] }
 0x651   :  { %18897 = vst [vmem:[#allocation102_spill] sm:$0xff] %v16570_v16  ;;  %18898 = vst [vmem:[#allocation100_spill] sm:$0xff] %v16573_v51  ;;  %v8164_v56 = vadd.f32 %v16488_v49, %v8090_v45  ;;  %v17922_v23 = vand.u32 4294901760, %v16566_v9  ;;  %v16584_v55 = vand.u32 4294901760, %v10727_v22  ;;  %11078 = vmatpush1.msra.mxu1 %v11077_v13  ;;  %v17924_v26 = vand.u32 4294901760, %v16570_v16  ;;  %10855 = vmatprep.subr.mxu0 %v16552_v40 }
 0x652   :  { %18899 = vst [vmem:[#allocation86_spill] sm:$0xff] %v16576_v37  ;;  %18900 = vst [vmem:[#allocation110_spill] sm:$0xff] %v16579_v43  ;;  %v8237_v24 = vpop.f32.mrf.mxu0  ;;  %v16587_v3 = vpop.f32.mrf.mxu1  ;;  %v17933_v25 = vand.u32 4294901760, %v16576_v37  ;;  %11084 = vmatprep.subr.mxu1 %v11083_v1  ;;  %v11094_v32 = vsub.f32 %v16563_v18, %v17923_v28  ;;  %v18903_v1 = vand.u32 4294901760, %v16573_v51  ;;  %v10726_v28 = vld [vmem:[#allocation8] sm:$0xff]  ;;  %v10787_v18 = vld [vmem:[#allocation8 + $0x1e8] sm:$0xff]  ;;  %10857 = vmatpush1.msra.mxu0 %v16556_v30 }
 0x653   :  { %18901 = vst [vmem:[#allocation88_spill] sm:$0xff] %v16584_v55  ;;  %v8238_v45 = vadd.f32 %v8237_v24, %v8164_v56  ;;  %v11100_v13 = vsub.f32 %v16566_v9, %v17922_v23  ;;  %v16601_v36 = vsub.f32 %v10727_v22, %v16584_v55  ;;  %11090 = vmatpush1.msra.mxu1 %v11089_v12  ;;  %v18904_v23 = vand.u32 4294901760, %v16579_v43  ;;  %v10788_v9 = vld [vmem:[#allocation8 + $0x1f0] sm:$0xff] }
 0x654   :  { %v12623_v58 = vpop.f32.mrf.mxu0  ;;  %v12648_v54 = vpop.f32.mrf.mxu1  ;;  %v11106_v49 = vsub.f32 %v16570_v16, %v17924_v26  ;;  %v11112_v56 = vsub.f32 %v16573_v51, %v18903_v1  ;;  %v11118_v24 = vsub.f32 %v16576_v37, %v17933_v25  ;;  %v11095_v12 = vand.u32 4294901760, %v11094_v32  ;;  %v10789_v16 = vld [vmem:[#allocation8 + $0x1f8] sm:$0xff]  ;;  %10859 = vmatprep.subr.mxu0 %v16558_v29 }
 0x655   :  { %18902 = vst [vmem:[#allocation114_spill] sm:$0xff] %v16601_v36  ;;  %v11124_v22 = vsub.f32 %v16579_v43, %v18904_v23  ;;  %v16616_v54 = vadd.f32 %v16527_v44, %v8238_v45  ;;  %v11101_v58 = vand.u32 4294901760, %v11100_v13  ;;  %v17946_v26 = vand.u32 4294901760, %v16601_v36  ;;  %v10786_v23 = vld [vmem:[#allocation8 + $0x1e0] sm:$0xff]  ;;  %10861 = vmatpush1.msra.mxu0 %v16560_v38 }
 0x656   :  { %v8388_v1 = vpop.f32.mrf.mxu0  ;;  %v16620_v51 = vpop.f32.mrf.mxu1  ;;  %v11107_v25 = vand.u32 4294901760, %v11106_v49  ;;  %v11113_v37 = vand.u32 4294901760, %v11112_v56  ;;  %v11119_v40 = vand.u32 4294901760, %v11118_v24  ;;  %11096 = vmatprep.subr.mxu1 %v11095_v12  ;;  %v16630_v49 = vand.u32 4294901760, %v10726_v28  ;;  %v10784_v12 = vld [vmem:[#allocation8 + $0x1d0] sm:$0xff]  ;;  %10863 = vmatprep.subr.mxu0 %v16584_v55 }
 0x657   :  { %v10558_v44 = vcombine.low %v16300_v21, %v16616_v54  ;;  %v11125_v32 = vand.u32 4294901760, %v11124_v22  ;;  %v11130_v13 = vsub.f32 %v16601_v36, %v17946_v26  ;;  %11102 = vmatpush1.msra.mxu1 %v11101_v58  ;;  %v16632_v56 = vand.u32 4294901760, %v10789_v16 }
 0x658   :  { %v12633_v43 = vpop.f32.mrf.mxu0  ;;  %v12658_v30 = vpop.f32.mrf.mxu1  ;;  %18905 = vst [vmem:[#allocation104_spill] sm:$0xff] %v16630_v49  ;;  %v16634_v24 = vand.u32 4294901760, %v10788_v9  ;;  %v16636_v29 = vand.u32 4294901760, %v10787_v18  ;;  %v8465_v26 = vadd.f32 %v16554_v41, %v8388_v1  ;;  %11108 = vmatprep.subr.mxu1 %v11107_v25  ;;  %v16649_v36 = vsub.f32 %v10726_v28, %v16630_v49  ;;  %10865 = vmatpush1.msra.mxu0 %v16630_v49  ;;  %v10780_v49 = vld [vmem:[#allocation8 + $0x1b0] sm:$0xff] }
 0x659   :  { %18906 = vst [vmem:[#allocation106_spill] sm:$0xff] %v16632_v56  ;;  %v16640_v22 = vrot.slane %v10558_v44, %v15416_v4  ;;  %v11131_v30 = vand.u32 4294901760, %v11130_v13  ;;  %v16643_v43 = vand.u32 4294901760, %v10786_v23  ;;  %11114 = vmatpush1.msra.mxu1 %v11113_v37  ;;  %v16652_v38 = vsub.f32 %v10789_v16, %v16632_v56  ;;  %10867 = vmatprep.subr.mxu0 %v16632_v56  ;;  %v10781_v56 = vld [vmem:[#allocation8 + $0x1b8] sm:$0xff] }
 0x65a   :  { %18907 = vst [vmem:[#allocation108_spill] sm:$0xff] %v16634_v24  ;;  %18908 = vst [vmem:[#allocation109_spill] sm:$0xff] %v16636_v29  ;;  %v8538_v58 = vpop.f32.mrf.mxu0  ;;  %v16646_v45 = vpop.f32.mrf.mxu1  ;;  %v16655_v44 = vsub.f32 %v10788_v9, %v16634_v24  ;;  %v16658_v41 = vsub.f32 %v10787_v18, %v16636_v29  ;;  %11120 = vmatprep.subr.mxu1 %v11119_v40  ;;  %v16663_v13 = vand.u32 4294901760, %v10785_v42  ;;  %v16665_v37 = vand.u32 4294901760, %v10784_v12 }
 0x65b   :  { %18909 = vst [vmem:[#allocation15_spill] sm:$0xff] %v16643_v43  ;;  %18910 = vst [vmem:[#allocation78_spill] sm:$0xff] %v16649_v36  ;;  %v8539_v25 = vadd.f32 %v8538_v58, %v8465_v26  ;;  %v16661_v1 = vsub.f32 %v10786_v23, %v16643_v43  ;;  %11126 = vmatpush1.msra.mxu1 %v11125_v32  ;;  %v17955_v9 = vand.u32 4294901760, %v16649_v36  ;;  %v17958_v55 = vand.u32 4294901760, %v16652_v38 }
 0x65c   :  { %18911 = vst [vmem:[#allocation33_spill] sm:$0xff] %v16652_v38  ;;  %18912 = vst [vmem:[#allocation16_spill] sm:$0xff] %v16655_v44  ;;  %v12643_v28 = vpop.f32.mrf.mxu0  ;;  %v12668_v16 = vpop.f32.mrf.mxu1  ;;  %v17965_v18 = vand.u32 4294901760, %v16655_v44  ;;  %11132 = vmatprep.subr.mxu1 %v11131_v30  ;;  %v16676_v58 = vsub.f32 %v10785_v42, %v16663_v13  ;;  %v16679_v32 = vsub.f32 %v10784_v12, %v16665_v37  ;;  %10869 = vmatpush2.msra.mxu0 %v16634_v24 }
 0x65d   :  { %18913 = vst [vmem:[#allocation92_spill] sm:$0xff] %v16658_v41  ;;  %18914 = vst [vmem:[#allocation35_spill] sm:$0xff] %v16661_v1  ;;  %v8613_v26 = vadd.f32 %v16587_v3, %v8539_v25  ;;  %v11136_v40 = vsub.f32 %v16649_v36, %v17955_v9  ;;  %v11142_v3 = vsub.f32 %v16652_v38, %v17958_v55  ;;  %v18919_v12 = vand.u32 4294901760, %v16658_v41  ;;  %v10783_v25 = vld [vmem:[#allocation8 + $0x1c8] sm:$0xff]  ;;  %v10782_v38 = vld [vmem:[#allocation8 + $0x1c0] sm:$0xff] }
 0x65e   :  { %18915 = vst [vmem:[#allocation41_spill] sm:$0xff] %v16663_v13  ;;  %18916 = vst [vmem:[#allocation17_spill] sm:$0xff] %v16665_v37  ;;  %v8686_v28 = vpop.f32.mrf.mxu0  ;;  %v16682_v16 = vpop.f32.mrf.mxu1  ;;  %v11148_v42 = vsub.f32 %v16655_v44, %v17965_v18  ;;  %10871 = vmatprep.subr.mxu0 %v16636_v29  ;;  %v18920_v24 = vand.u32 4294901760, %v16661_v1  ;;  %v17977_v36 = vand.u32 4294901760, %v16676_v58  ;;  %v17976_v55 = vand.u32 4294901760, %v16679_v32 }
 0x65f   :  { %18917 = vst [vmem:[#allocation39_spill] sm:$0xff] %v16676_v58  ;;  %18918 = vst [vmem:[#allocation37_spill] sm:$0xff] %v16679_v32  ;;  %v11154_v30 = vsub.f32 %v16658_v41, %v18919_v12  ;;  %v8687_v23 = vadd.f32 %v8686_v28, %v8613_v26  ;;  %10873 = vmatpush2.msra.mxu0 %v16643_v43  ;;  %v11137_v12 = vand.u32 4294901760, %v11136_v40  ;;  %v11143_v41 = vand.u32 4294901760, %v11142_v3 }
 0x660   :  { %v11160_v9 = vsub.f32 %v16661_v1, %v18920_v24  ;;  %v12653_v18 = vpop.f32.mrf.mxu0  ;;  %v12678_v44 = vpop.f32.mrf.mxu1  ;;  %v11149_v14 = vand.u32 4294901760, %v11148_v42  ;;  %10875 = vmatprep.subr.mxu0 %v16663_v13  ;;  %v11166_v28 = vsub.f32 %v16676_v58, %v17977_v36  ;;  %v11172_v1 = vsub.f32 %v16679_v32, %v17976_v55  ;;  %v10779_v36 = vld [vmem:[#allocation8 + $0x1a8] sm:$0xff] }
 0x661   :  { %v11155_v29 = vand.u32 4294901760, %v11154_v30  ;;  %v8759_v26 = vadd.f32 %v16620_v51, %v8687_v23  ;;  %10877 = vmatpush2.msra.mxu0 %v16665_v37  ;;  %11138 = vmatpush1.msra.mxu1 %v11137_v12  ;;  %v16716_v40 = vand.u32 4294901760, %v10783_v25  ;;  %v16718_v3 = vand.u32 4294901760, %v10782_v38 }
 0x662   :  { %v11161_v24 = vand.u32 4294901760, %v11160_v9  ;;  %v16712_v44 = vpop.f32.mrf.mxu0  ;;  %v16714_v18 = vpop.f32.mrf.mxu1  ;;  %v16720_v51 = vand.u32 4294901760, %v10781_v56  ;;  %v16722_v9 = vand.u32 4294901760, %v10780_v49  ;;  %v18925_v23 = vcombine.high %v16300_v21, %v16616_v54  ;;  %11144 = vmatprep.subr.mxu1 %v11143_v41  ;;  %v10778_v54 = vld [vmem:[#allocation8 + $0x1a0] sm:$0xff] }
 0x663   :  { %18921 = vst [vmem:[#allocation21_spill] sm:$0xff] %v16716_v40  ;;  %18922 = vst [vmem:[#allocation60_spill] sm:$0xff] %v16718_v3  ;;  %v10574_v30 = vcombine.low %v16302_v7, %v8759_v26  ;;  %v10575_v55 = vcombine.high %v16302_v7, %v8759_v26  ;;  %v11167_v12 = vand.u32 4294901760, %v11166_v28  ;;  %11150 = vmatpush2.msra.mxu1 %v11149_v14  ;;  %v11173_v37 = vand.u32 4294901760, %v11172_v1 }
 0x664   :  { %18923 = vst [vmem:[#allocation49_spill] sm:$0xff] %v16720_v51  ;;  %18924 = vst [vmem:[#allocation68_spill] sm:$0xff] %v16722_v9  ;;  %v16728_v42 = vrot.slane %v18925_v23, %v15416_v4  ;;  %v12663_v32 = vpop.f32.mrf.mxu0  ;;  %v12688_v58 = vpop.f32.mrf.mxu1  ;;  %v16733_v13 = vsub.f32 %v10783_v25, %v16716_v40  ;;  %v16736_v43 = vsub.f32 %v10782_v38, %v16718_v3  ;;  %10879 = vmatprep.subr.mxu0 %v16716_v40 }
 0x665   :  { %v16739_v21 = vsub.f32 %v10781_v56, %v16720_v51  ;;  %v16743_v7 = vrot.slane %v10574_v30, %v15416_v4  ;;  %v16746_v41 = vrot.slane %v10575_v55, %v15416_v4  ;;  %11156 = vmatprep.subr.mxu1 %v11155_v29  ;;  %v16749_v14 = vsub.f32 %v10780_v49, %v16722_v9  ;;  %v10777_v49 = vld [vmem:[#allocation8 + $0x198] sm:$0xff]  ;;  %v10776_v29 = vld [vmem:[#allocation8 + $0x190] sm:$0xff] }
 0x666   :  { %18926 = vst [vmem:[#allocation47_spill] sm:$0xff] %v16733_v13  ;;  %18927 = vst [vmem:[#allocation66_spill] sm:$0xff] %v16736_v43  ;;  %10881 = vmatpush2.msra.mxu0 %v16718_v3  ;;  %v16752_v38 = vpop.f32.mrf.mxu0  ;;  %v16754_v1 = vpop.f32.mrf.mxu1  ;;  %11162 = vmatpush2.msra.mxu1 %v11161_v24  ;;  %v17990_v56 = vand.u32 4294901760, %v16733_v13  ;;  %v17993_v58 = vand.u32 4294901760, %v16736_v43  ;;  %v16759_v25 = vand.u32 4294901760, %v10779_v36  ;;  %v16768_v26 = vand.u32 4294901760, %v10778_v54 }
 0x667   :  { %18928 = vst [vmem:[#allocation25_spill] sm:$0xff] %v16739_v21  ;;  %18929 = vst [vmem:[#allocation51_spill] sm:$0xff] %v16749_v14  ;;  %v17996_v32 = vand.u32 4294901760, %v16739_v21  ;;  %10883 = vmatprep.subr.mxu0 %v16720_v51  ;;  %11168 = vmatprep.subr.mxu1 %v11167_v12  ;;  %v16795_v3 = vand.u32 4294901760, %v10777_v49 }
 0x668   :  { %18930 = vst [vmem:[#allocation76_spill] sm:$0xff] %v16759_v25  ;;  %18931 = vst [vmem:[#allocation57_spill] sm:$0xff] %v16768_v26  ;;  %v12673_v24 = vpop.f32.mrf.mxu0  ;;  %v12698_v28 = vpop.f32.mrf.mxu1  ;;  %11174 = vmatpush2.msra.mxu1 %v11173_v37  ;;  %v11178_v30 = vsub.f32 %v16733_v13, %v17990_v56  ;;  %v11184_v55 = vsub.f32 %v16736_v43, %v17993_v58  ;;  %10885 = vmatpush2.msra.mxu0 %v16722_v9  ;;  %v18007_v58 = vand.u32 4294901760, %v16749_v14 }
 0x669   :  { %v11190_v12 = vsub.f32 %v16739_v21, %v17996_v32  ;;  %v10775_v24 = vld [vmem:[#allocation8 + $0x188] sm:$0xff]  ;;  %v10774_v28 = vld [vmem:[#allocation8 + $0x180] sm:$0xff]  ;;  %10887 = vmatprep.subr.mxu0 %v16759_v25  ;;  %v16789_v43 = vsub.f32 %v10779_v36, %v16759_v25  ;;  %v16792_v32 = vsub.f32 %v10778_v54, %v16768_v26  ;;  %18934 = vst [vmem:[#allocation29_spill] sm:$0xff] %v16795_v3  ;;  %v10773_v54 = vld [vmem:[#allocation8 + $0x178] sm:$0xff] }
 0x66a   :  { %v16782_v23 = vpop.f32.mrf.mxu0  ;;  %v16784_v37 = vpop.f32.mrf.mxu1  ;;  %v11179_v51 = vand.u32 4294901760, %v11178_v30  ;;  %v11185_v56 = vand.u32 4294901760, %v11184_v55  ;;  %10889 = vmatpush2.msra.mxu0 %v16768_v26  ;;  %v16797_v30 = vand.u32 4294901760, %v10776_v29  ;;  %v16799_v55 = vand.u32 4294901760, %v10775_v24 }
 0x66b   :  { %v11191_v13 = vand.u32 4294901760, %v11190_v12  ;;  %18932 = vst [vmem:[#allocation55_spill] sm:$0xff] %v16789_v43  ;;  %18933 = vst [vmem:[#allocation80_spill] sm:$0xff] %v16792_v32  ;;  %v16801_v12 = vand.u32 4294901760, %v10774_v28  ;;  %v11196_v36 = vsub.f32 %v16749_v14, %v18007_v58  ;;  %v10772_v14 = vld [vmem:[#allocation8 + $0x170] sm:$0xff]  ;;  %v18942_v40 = vand.u32 4294901760, %v16789_v43  ;;  %10891 = vmatprep.subr.mxu0 %v16795_v3 }
 0x66c   :  { %v12683_v21 = vpop.f32.mrf.mxu0  ;;  %v12708_v9 = vpop.f32.mrf.mxu1  ;;  %11180 = vmatprep.subr.mxu1 %v11179_v51  ;;  %18935 = vst [vmem:[#allocation59_spill] sm:$0xff] %v16797_v30  ;;  %18936 = vst [vmem:[#allocation18_spill] sm:$0xff] %v16799_v55  ;;  %v16816_v25 = vsub.f32 %v10776_v29, %v16797_v30  ;;  %10893 = vmatpush2.msra.mxu0 %v16797_v30  ;;  %v16836_v27 = vand.u32 4294901760, %v10773_v54 }
 0x66d   :  { %18937 = vst [vmem:[#allocation65_spill] sm:$0xff] %v16801_v12  ;;  %11186 = vmatpush2.msra.mxu1 %v11185_v56  ;;  %v16813_v9 = vsub.f32 %v10777_v49, %v16795_v3  ;;  %v16819_v56 = vsub.f32 %v10775_v24, %v16799_v55  ;;  %v16822_v58 = vsub.f32 %v10774_v28, %v16801_v12  ;;  %v11197_v26 = vand.u32 4294901760, %v11196_v36 }
 0x66e   :  { %v16808_v21 = vpop.f32.mrf.mxu0  ;;  %v16810_v51 = vpop.f32.mrf.mxu1  ;;  %11192 = vmatprep.subr.mxu1 %v11191_v13  ;;  %18939 = vst [vmem:[#allocation63_spill] sm:$0xff] %v16816_v25  ;;  %v11202_v53 = vsub.f32 %v16789_v43, %v18942_v40  ;;  %v18943_v13 = vand.u32 4294901760, %v16792_v32  ;;  %v18025_v28 = vand.u32 4294901760, %v16816_v25  ;;  %18944 = vst [vmem:[#allocation22_spill] sm:$0xff] %v16836_v27  ;;  %10895 = vmatprep.subr.mxu0 %v16799_v55 }
 0x66f   :  { %18938 = vst [vmem:[#allocation20_spill] sm:$0xff] %v16813_v9  ;;  %18940 = vst [vmem:[#allocation34_spill] sm:$0xff] %v16819_v56  ;;  %v18024_v24 = vand.u32 4294901760, %v16813_v9  ;;  %v18030_v34 = vand.u32 4294901760, %v16819_v56  ;;  %11198 = vmatpush2.msra.mxu1 %v11197_v26  ;;  %v18946_v26 = vand.u32 4294901760, %v16822_v58  ;;  %10897 = vmatpush2.msra.mxu0 %v16801_v12 }
 0x670   :  { %18941 = vst [vmem:[#allocation67_spill] sm:$0xff] %v16822_v58  ;;  %v11208_v49 = vsub.f32 %v16792_v32, %v18943_v13  ;;  %v12693_v29 = vpop.f32.mrf.mxu0  ;;  %v12718_v48 = vpop.f32.mrf.mxu1  ;;  %v11203_v40 = vand.u32 4294901760, %v11202_v53  ;;  %v16838_v13 = vand.u32 4294901760, %v10772_v14  ;;  %v11220_v36 = vsub.f32 %v16816_v25, %v18025_v28  ;;  %10899 = vmatprep.subr.mxu0 %v16836_v27 }
 0x671   :  { %v11214_v29 = vsub.f32 %v16813_v9, %v18024_v24  ;;  %v11226_v53 = vsub.f32 %v16819_v56, %v18030_v34  ;;  %v16855_v32 = vsub.f32 %v10773_v54, %v16836_v27 }
 0x672   :  { %v11209_v43 = vand.u32 4294901760, %v11208_v49  ;;  %18945 = vst [vmem:[#allocation40_spill] sm:$0xff] %v16838_v13  ;;  %v9436_v48 = vpop.f32.mrf.mxu0  ;;  %v11232_v49 = vsub.f32 %v16822_v58, %v18946_v26  ;;  %11204 = vmatprep.subr.mxu1 %v11203_v40  ;;  %v16858_v24 = vsub.f32 %v10772_v14, %v16838_v13  ;;  %v11221_v9 = vand.u32 4294901760, %v11220_v36  ;;  %10901 = vmatpush2.msra.mxu0 %v16838_v13 }
 0x673   :  { %18947 = vst [vmem:[#allocation71_spill] sm:$0xff] %v16855_v32  ;;  %v11215_v25 = vand.u32 4294901760, %v11214_v29  ;;  %v11227_v34 = vand.u32 4294901760, %v11226_v53  ;;  %v18043_v26 = vand.u32 4294901760, %v16855_v32 }
 0x674   :  { %18948 = vst [vmem:[#allocation23_spill] sm:$0xff] %v16858_v24  ;;  %v12703_v28 = vpop.f32.mrf.mxu0  ;;  %11210 = vmatpush2.msra.mxu1 %v11209_v43  ;;  %v11233_v56 = vand.u32 4294901760, %v11232_v49  ;;  %v18046_v40 = vand.u32 4294901760, %v16858_v24 }
 0x675   :  { %11216 = vmatprep.subr.mxu1 %v11215_v25  ;;  %v11238_v14 = vsub.f32 %v16855_v32, %v18043_v26 }
 0x676   :  { %v9584_v58 = vpop.f32.mrf.mxu0  ;;  %11222 = vmatpush2.msra.mxu1 %v11221_v9  ;;  %v11244_v43 = vsub.f32 %v16858_v24, %v18046_v40  ;;  %v8914_v40 = vadd.f32 %v16646_v45, %v16712_v44 }
 0x677   :  { %v9811_v54 = vpop.f32.mrf.mxu1  ;;  %11228 = vmatprep.subr.mxu1 %v11227_v34  ;;  %v11239_v29 = vand.u32 4294901760, %v11238_v14  ;;  %v9363_v14 = vadd.f32 %v16754_v1, %v16808_v21 }
 0x678   :  { %v12713_v28 = vpop.f32.mrf.mxu0  ;;  %11234 = vmatpush2.msra.mxu1 %v11233_v56  ;;  %v11245_v53 = vand.u32 4294901760, %v11244_v43  ;;  %v8988_v56 = vadd.f32 %v16752_v38, %v8914_v40 }
 0x679   :  { %v12728_v36 = vpop.f32.mrf.mxu1  ;;  %11240 = vmatprep.subr.mxu1 %v11239_v29 }
 0x67a   :  { %11246 = vmatpush2.msra.mxu1 %v11245_v53  ;;  %v9437_v53 = vadd.f32 %v9436_v48, %v9363_v14 }
 0x67b   :  { %v9959_v49 = vpop.f32.mrf.mxu1 }
 0x67c   :  { %v9511_v45 = vadd.f32 %v16784_v37, %v9437_v53  ;;  %v10771_v53 = vld [vmem:[#allocation8 + $0x168] sm:$0xff] }
 0x67d   :  { %v12738_v25 = vpop.f32.mrf.mxu1 }
 0x67e   :  { %v9585_v21 = vadd.f32 %v9584_v58, %v9511_v45 }
 0x67f   :  { %v9735_v13 = vpop.f32.mrf.mxu0  ;;  %v10105_v9 = vpop.f32.mrf.mxu1 }
 0x680   :  { %v9812_v55 = vadd.f32 %v9811_v54, %v9735_v13  ;;  %v9062_v13 = vadd.f32 %v16682_v16, %v8988_v56  ;;  %v9657_v56 = vadd.f32 %v16810_v51, %v9585_v21 }
 0x681   :  { %v12723_v27 = vpop.f32.mrf.mxu0  ;;  %v12748_v12 = vpop.f32.mrf.mxu1 }
 0x682   :  { %v9136_v38 = vadd.f32 %v16782_v23, %v9062_v13  ;;  %v16880_v23 = vand.u32 4294901760, %v10771_v53 }
 0x683   :  { %v9885_v26 = vpop.f32.mrf.mxu0  ;;  %v10260_v32 = vpop.f32.mrf.mxu1 }
 0x684   :  { %v9886_v28 = vadd.f32 %v9885_v26, %v9812_v55  ;;  %18949 = vst [vmem:[#allocation42_spill] sm:$0xff] %v16880_v23  ;;  %10903 = vmatprep.subr.mxu0 %v16880_v23 }
 0x685   :  { %v12733_v34 = vpop.f32.mrf.mxu0  ;;  %v12758_v36 = vpop.f32.mrf.mxu1 }
 0x686   :  { %v9960_v25 = vadd.f32 %v9959_v49, %v9886_v28  ;;  %v9208_v28 = vadd.f32 %v16714_v18, %v9136_v38  ;;  %v18952_v18 = vcombine.low %v16728_v42, %v16746_v41 }
 0x687   :  { %v10033_v43 = vpop.f32.mrf.mxu0  ;;  %v10408_v29 = vpop.f32.mrf.mxu1 }
 0x688   :  { %v10034_v44 = vadd.f32 %v10033_v43, %v9960_v25  ;;  %v10770_v25 = vld [vmem:[#allocation8 + $0x160] sm:$0xff] }
 0x689   :  { %v12743_v27 = vpop.f32.mrf.mxu0  ;;  %v12768_v12 = vpop.f32.mrf.mxu1  ;;  %v16882_v13 = vand.u32 4294901760, %v10770_v25 }
 0x68a   :  { %v10106_v36 = vadd.f32 %v10105_v9, %v10034_v44  ;;  %v10768_v9 = vld [vmem:[#allocation8 + $0x150] sm:$0xff]  ;;  %v16895_v44 = vsub.f32 %v10771_v53, %v16880_v23 }
 0x68b   :  { %v10184_v54 = vpop.f32.mrf.mxu0  ;;  %v10554_v24 = vpop.f32.mrf.mxu1  ;;  %18950 = vst [vmem:[#allocation75_spill] sm:$0xff] %v16882_v13  ;;  %v16892_v51 = vand.u32 4294901760, %v10768_v9  ;;  %10905 = vmatpush2.msra.mxu0 %v16882_v13 }
 0x68c   :  { %v10261_v34 = vadd.f32 %v10260_v32, %v10184_v54  ;;  %v10590_v27 = vcombine.low %v9208_v28, %v10106_v36  ;;  %v10591_v37 = vcombine.high %v9208_v28, %v10106_v36  ;;  %v10769_v32 = vld [vmem:[#allocation8 + $0x158] sm:$0xff]  ;;  %18954 = vst [vmem:[#allocation28_spill] sm:$0xff] %v16895_v44  ;;  %v18052_v21 = vand.u32 4294901760, %v16895_v44 }
 0x68d   :  { %v12753_v55 = vpop.f32.mrf.mxu0  ;;  %v12778_v26 = vpop.f32.mrf.mxu1  ;;  %v16884_v58 = vand.u32 4294901760, %v10769_v32  ;;  %18953 = vst [vmem:[#allocation48_spill] sm:$0xff] %v16892_v51  ;;  %v16907_v38 = vsub.f32 %v10768_v9, %v16892_v51  ;;  %v18959_v28 = vcombine.high %v16728_v42, %v16746_v41 }
 0x68e   :  { %v10598_v55 = vrot.slane %v10590_v27, %v15416_v4  ;;  %v10605_v26 = vrot.slane %v10591_v37, %v15416_v4  ;;  %v11250_v53 = vsub.f32 %v16895_v44, %v18052_v21  ;;  %v10759_v44 = vld [vmem:[#allocation8 + $0x108] sm:$0xff] }
 0x68f   :  { %v10334_v40 = vpop.f32.mrf.mxu0  ;;  %18951 = vst [vmem:[#allocation26_spill] sm:$0xff] %v16884_v58  ;;  %18957 = vst [vmem:[#allocation83_spill] sm:$0xff] %v16907_v38  ;;  %10907 = vmatprep.subr.mxu0 %v16884_v58 }
 0x690   :  { %v10335_v1 = vadd.f32 %v10334_v40, %v10261_v34  ;;  %v16904_v34 = vsub.f32 %v10769_v32, %v16884_v58  ;;  %10909 = vmatpush2.msra.mxu0 %v16892_v51 }
 0x691   :  { %v12763_v48 = vpop.f32.mrf.mxu0 }
 0x692   :  { %v10409_v49 = vadd.f32 %v10408_v29, %v10335_v1  ;;  %v16890_v29 = vrot.slane %v18952_v18, %v15506_v61  ;;  %18956 = vst [vmem:[#allocation50_spill] sm:$0xff] %v16904_v34  ;;  %v18958_v48 = vcombine.low %v16640_v22, %v16743_v7 }
 0x693   :  { %v10482_v14 = vpop.f32.mrf.mxu0 }
 0x694   :  { %v10483_v16 = vadd.f32 %v10482_v14, %v10409_v49  ;;  %v16919_v49 = vrot.slane %v18958_v48, %v15506_v61  ;;  %v10653_v14 = vrot.slane %v18959_v28, %v15506_v61  ;;  %v10765_v28 = vld [vmem:[#allocation8 + $0x138] sm:$0xff] }
 0x695   :  { %v12773_v43 = vpop.f32.mrf.mxu0 }
 0x696   :  { %v10555_v12 = vadd.f32 %v10554_v24, %v10483_v16  ;;  %v16898_v24 = vsub.f32 %v10770_v25, %v16882_v13  ;;  %v18050_v16 = vand.u32 4294901760, %v16904_v34 }
 0x698   :  { %v10606_v54 = vcombine.low %v9657_v56, %v10555_v12  ;;  %v10607_v45 = vcombine.high %v9657_v56, %v10555_v12  ;;  %18955 = vst [vmem:[#allocation79_spill] sm:$0xff] %v16898_v24  ;;  %v18051_v36 = vand.u32 4294901760, %v16898_v24  ;;  %v11262_v42 = vsub.f32 %v16904_v34, %v18050_v16 }
 0x69a   :  { %v10614_v40 = vrot.slane %v10606_v54, %v15416_v4  ;;  %v10621_v1 = vrot.slane %v10607_v45, %v15416_v4  ;;  %v18049_v4 = vand.u32 4294901760, %v16907_v38  ;;  %v11256_v25 = vsub.f32 %v16898_v24, %v18051_v36  ;;  %v10767_v54 = vld [vmem:[#allocation8 + $0x148] sm:$0xff]  ;;  %v10766_v45 = vld [vmem:[#allocation8 + $0x140] sm:$0xff] }
 0x69b   :  { %v11263_v48 = vand.u32 4294901760, %v11262_v42  ;;  %v16968_v36 = vand.u32 4294901760, %v10767_v54  ;;  %v16970_v21 = vand.u32 4294901760, %v10766_v45 }
 0x69c   :  { %v10670_v56 = vcombine.low %v10605_v26, %v10621_v1  ;;  %v10654_v27 = vcombine.low %v10598_v55, %v10614_v40  ;;  %v10671_v37 = vcombine.high %v10605_v26, %v10621_v1  ;;  %v10655_v43 = vcombine.high %v10598_v55, %v10614_v40 }
 0x69d   :  { %v11268_v41 = vsub.f32 %v16907_v38, %v18049_v4  ;;  %v18960_v55 = vcombine.high %v16640_v22, %v16743_v7  ;;  %v11251_v40 = vand.u32 4294901760, %v11250_v53  ;;  %v11257_v1 = vand.u32 4294901760, %v11256_v25  ;;  %v10761_v7 = vld [vmem:[#allocation8 + $0x118] sm:$0xff]  ;;  %v10760_v53 = vld [vmem:[#allocation8 + $0x110] sm:$0xff]  ;;  %18961 = vst [vmem:[#allocation30_spill] sm:$0xff] %v16968_v36  ;;  %18962 = vst [vmem:[#allocation91_spill] sm:$0xff] %v16970_v21  ;;  %10911 = vmatprep.subr.mxu0 %v16968_v36 }
 0x69e   :  { %v16941_v32 = vrot.slane %v10670_v56, %v15506_v61  ;;  %v16944_v12 = vrot.slane %v10654_v27, %v15506_v61  ;;  %v10685_v9 = vrot.slane %v10671_v37, %v15506_v61  ;;  %v16948_v18 = vrot.slane %v10655_v43, %v15506_v61  ;;  %v10764_v56 = vld [vmem:[#allocation8 + $0x130] sm:$0xff]  ;;  %v10763_v27 = vld [vmem:[#allocation8 + $0x128] sm:$0xff]  ;;  %10913 = vmatpush2.msra.mxu0 %v16970_v21 }
 0x69f   :  { %v16954_v26 = vrot.slane %v18960_v55, %v15506_v61  ;;  %v10762_v61 = vld [vmem:[#allocation8 + $0x120] sm:$0xff]  ;;  %11252 = vmatprep.subr.mxu1 %v11251_v40  ;;  %v11269_v16 = vand.u32 4294901760, %v11268_v41  ;;  %v16972_v43 = vand.u32 4294901760, %v10765_v28  ;;  %v16974_v22 = vand.u32 4294901760, %v10764_v56 }
 0x6a0   :  { %v10691_v37 = vcombine.high %v16890_v29, %v16941_v32  ;;  %v10687_v4 = vcombine.high %v16919_v49, %v16944_v12  ;;  %v10692_v25 = vcombine.low %v10653_v14, %v10685_v9  ;;  %v10693_v42 = vcombine.high %v10653_v14, %v10685_v9  ;;  %11258 = vmatpush2.msra.mxu1 %v11257_v1 }
 0x6a1   :  { %v10688_v55 = vcombine.low %v16954_v26, %v16948_v18  ;;  %18963 = vst [vmem:[#allocation32_spill] sm:$0xff] %v16972_v43  ;;  %18964 = vst [vmem:[#allocation85_spill] sm:$0xff] %v16974_v22  ;;  %v16976_v38 = vand.u32 4294901760, %v10763_v27  ;;  %v16978_v14 = vand.u32 4294901760, %v10762_v61  ;;  %v16980_v9 = vand.u32 4294901760, %v10761_v7  ;;  %11264 = vmatprep.subr.mxu1 %v11263_v48  ;;  %10915 = vmatprep.subr.mxu0 %v16972_v43 }
 0x6a2   :  { %10707 = vrot.lane.b32.xlu1 %v10691_v37, %s12939_s22  ;;  %10695 = vrot.lane.b32.xlu0 %v10687_v4, %s12939_s22  ;;  %v16982_v41 = vand.u32 4294901760, %v10760_v53  ;;  %v16985_v4 = vsub.f32 %v10767_v54, %v16968_v36  ;;  %v16988_v40 = vsub.f32 %v10766_v45, %v16970_v21  ;;  %v16991_v37 = vsub.f32 %v10765_v28, %v16972_v43 }
 0x6a3   :  { %18965 = vst [vmem:[#allocation31_spill] sm:$0xff] %v16976_v38  ;;  %18966 = vst [vmem:[#allocation97_spill] sm:$0xff] %v16978_v14  ;;  %v16994_v1 = vsub.f32 %v10764_v56, %v16974_v22  ;;  %11270 = vmatpush2.msra.mxu1 %v11269_v16  ;;  %v16997_v34 = vsub.f32 %v10763_v27, %v16976_v38  ;;  %v17000_v24 = vsub.f32 %v10762_v61, %v16978_v14 }
 0x6a4   :  { %18967 = vst [vmem:[#allocation93_spill] sm:$0xff] %v16980_v9  ;;  %18968 = vst [vmem:[#allocation36_spill] sm:$0xff] %v16985_v4  ;;  %v17003_v48 = vsub.f32 %v10761_v7, %v16980_v9  ;;  %v17006_v54 = vsub.f32 %v10760_v53, %v16982_v41  ;;  %v18059_v45 = vand.u32 4294901760, %v16985_v4  ;;  %v18064_v16 = vand.u32 4294901760, %v16988_v40  ;;  %10917 = vmatpush2.msra.mxu0 %v16974_v22 }
 0x6a5   :  { %18969 = vst [vmem:[#allocation107_spill] sm:$0xff] %v16988_v40  ;;  %18970 = vst [vmem:[#allocation98_spill] sm:$0xff] %v16991_v37  ;;  %v18065_v28 = vand.u32 4294901760, %v16991_v37  ;;  %v18070_v56 = vand.u32 4294901760, %v16994_v1  ;;  %v18974_v53 = vand.u32 4294901760, %v16997_v34  ;;  %10919 = vmatprep.subr.mxu0 %v16976_v38 }
 0x6a6   :  { %18971 = vst [vmem:[#allocation111_spill] sm:$0xff] %v16994_v1  ;;  %18972 = vst [vmem:[#allocation105_spill] sm:$0xff] %v16997_v34  ;;  %10711 = vrot.lane.b32.xlu1 %v10692_v25, %s12945_s2  ;;  %10715 = vrot.lane.b32.xlu0 %v10693_v42, %s12946_s3  ;;  %v11274_v25 = vsub.f32 %v16985_v4, %v18059_v45  ;;  %v11280_v42 = vsub.f32 %v16988_v40, %v18064_v16  ;;  %v18975_v45 = vand.u32 4294901760, %v17000_v24  ;;  %v10758_v16 = vld [vmem:[#allocation8 + $0x100] sm:$0xff] }
 0x6a7   :  { %18973 = vst [vmem:[#allocation115_spill] sm:$0xff] %v17000_v24  ;;  %v11286_v27 = vsub.f32 %v16991_v37, %v18065_v28  ;;  %v11292_v7 = vsub.f32 %v16994_v1, %v18070_v56  ;;  %v11298_v61 = vsub.f32 %v16997_v34, %v18974_v53  ;;  %v18976_v56 = vand.u32 4294901760, %v17003_v48  ;;  %10921 = vmatpush2.msra.mxu0 %v16978_v14 }
 0x6a8   :  { %v11304_v4 = vsub.f32 %v17000_v24, %v18975_v45  ;;  %v11275_v28 = vand.u32 4294901760, %v11274_v25  ;;  %v11281_v37 = vand.u32 4294901760, %v11280_v42  ;;  %v18977_v34 = vand.u32 4294901760, %v17006_v54  ;;  %10923 = vmatprep.subr.mxu0 %v16980_v9 }
 0x6a9   :  { %v11287_v40 = vand.u32 4294901760, %v11286_v27  ;;  %v11310_v1 = vsub.f32 %v17003_v48, %v18976_v56  ;;  %v11293_v53 = vand.u32 4294901760, %v11292_v7  ;;  %v10689_v24 = vcombine.high %v16954_v26, %v16948_v18  ;;  %10925 = vmatpush2.msra.mxu0 %v16982_v41 }
 0x6aa   :  { %10699 = vrot.lane.b32.xlu1 %v10688_v55, %s12945_s2  ;;  %v11316_v45 = vsub.f32 %v17006_v54, %v18977_v34  ;;  %11276 = vmatprep.subr.mxu1 %v11275_v28  ;;  %v11299_v55 = vand.u32 4294901760, %v11298_v61  ;;  %v17050_v25 = vand.u32 4294901760, %v10759_v44  ;;  %v17052_v27 = vand.u32 4294901760, %v10758_v16 }
 0x6ab   :  { %11282 = vmatpush2.msra.mxu1 %v11281_v37  ;;  %v11305_v56 = vand.u32 4294901760, %v11304_v4  ;;  %v11311_v34 = vand.u32 4294901760, %v11310_v1  ;;  %v18978_v61 = vcombine.low %v16890_v29, %v16941_v32 }
 0x6ac   :  { %11288 = vmatprep.subr.mxu1 %v11287_v40  ;;  %v17058_v7 = vsub.f32 %v10759_v44, %v17050_v25  ;;  %v17061_v18 = vsub.f32 %v10758_v16, %v17052_v27  ;;  %v11317_v26 = vand.u32 4294901760, %v11316_v45  ;;  %10927 = vmatprep.subr.mxu0 %v17050_v25 }
 0x6ad   :  { %11294 = vmatpush2.msra.mxu1 %v11293_v53  ;;  %10929 = vmatpush2.msra.mxu0 %v17052_v27 }
 0x6ae   :  { %10703 = vrot.lane.b32.xlu1 %v10689_v24, %s12946_s3  ;;  %11300 = vmatprep.subr.mxu1 %v11299_v55  ;;  %v18078_v37 = vand.u32 4294901760, %v17058_v7  ;;  %v18077_v4 = vand.u32 4294901760, %v17061_v18 }
 0x6af   :  { %11306 = vmatpush2.msra.mxu1 %v11305_v56  ;;  %11342 = vmatprep.subr.mxu0 %v16317_v19 }
 0x6b0   :  { %11312 = vmatprep.subr.mxu1 %v11311_v34  ;;  %v11322_v44 = vsub.f32 %v17058_v7, %v18078_v37  ;;  %v11328_v24 = vsub.f32 %v17061_v18, %v18077_v4  ;;  %v18996_v37 = vld [vmem:[#allocation73_spill] sm:$0xff] }
 0x6b1   :  { %11318 = vmatpush2.msra.mxu1 %v11317_v26 }
 0x6b2   :  { %v11323_v40 = vand.u32 4294901760, %v11322_v44  ;;  %v11329_v1 = vand.u32 4294901760, %v11328_v24  ;;  %v18979_v24 = vcombine.low %v16919_v49, %v16944_v12 }
 0x6b4   :  { %11324 = vmatprep.subr.mxu1 %v11323_v40 }
 0x6b5   :  { %11330 = vmatpush2.msra.mxu1 %v11329_v1 }
 0x6b6   :  { %11544 = vmatprep.subr.mxu1 %v16304_v63 }
 0x714   :  { %v10708_v16 = vpop.permute.xlu1 %10707  ;;  %v10696_v28 = vpop.permute.xlu0 %10695 }
 0x715   :  { %v10723_v42 = vsel %vm3260_vm1, %v18978_v61, %v10708_v16  ;;  %v10718_v40 = vsel %vm3260_vm1, %v18979_v24, %v10696_v28  ;;  %v18986_v24 = vld [vmem:[#allocation43_spill] sm:$0xff] }
 0x718   :  { %v10712_v53 = vpop.permute.xlu1 %10711  ;;  %v10716_v45 = vpop.permute.xlu0 %10715 }
 0x719   :  { %v10724_v55 = vsel %vm10719_vm3, %v10723_v42, %v10712_v53 }
 0x71a   :  { %v10725_v56 = vsel %vm10721_vm4, %v10724_v55, %v10716_v45  ;;  %v18981_v45 = vld [vmem:[#allocation113_spill] sm:$0xff]  ;;  %v18982_v55 = vld [vmem:[#allocation94_spill] sm:$0xff] }
 0x71b   :  { %v17080_v34 = vand.u32 4294901760, %v10725_v56 }
 0x71c   :  { %v10700_v26 = vpop.permute.xlu1 %10699 }
 0x71d   :  { %v10931_v44 = vsub.f32 %v10725_v56, %v17080_v34  ;;  %11332 = vmatprep.mubr.f32.mxu1 %v17080_v34  ;;  %v10720_v29 = vsel %vm10719_vm3, %v10718_v40, %v10700_v26  ;;  %v18983_v56 = vld [vmem:[#allocation56_spill] sm:$0xff]  ;;  %v18984_v26 = vld [vmem:[#allocation58_spill] sm:$0xff] }
 0x71e   :  { %v18987_v40 = vld [vmem:[#allocation62_spill] sm:$0xff] }
 0x71f   :  { %v10932_v1 = vand.u32 4294901760, %v10931_v44 }
 0x720   :  { %v10704_v32 = vpop.permute.xlu1 %10703 }
 0x721   :  { %v10722_v16 = vsel %vm10721_vm4, %v10720_v29, %v10704_v32  ;;  %v10933_v61 = vsub.f32 %v10931_v44, %v10932_v1  ;;  %v18989_v29 = vld [vmem:[#allocation64_spill] sm:$0xff] }
 0x722   :  { %v17088_v4 = vand.u32 4294901760, %v10722_v16  ;;  %v18990_v32 = vld [vmem:[#allocation96_spill] sm:$0xff] }
 0x723   :  { %v10934_v42 = vand.u32 4294901760, %v10933_v61  ;;  %v18992_v61 = vld [vmem:[#allocation19_spill] sm:$0xff] }
 0x724   :  { %18980 = vst [vmem:[#allocation84_spill] sm:$0xff] %v17088_v4  ;;  %v17091_v53 = vsub.f32 %v10722_v16, %v17088_v4  ;;  %11334 = vmatmul.mubr.f32.vlgmr.msra.gmra.mxu1 %v17088_v4  ;;  %v18991_v16 = vld [vmem:[#allocation72_spill] sm:$0xff]  ;;  %v18998_v4 = vld [vmem:[#allocation81_spill] sm:$0xff] }
 0x725   :  { %11546 = vmatpush1.msra.mxu1 %v16306_v31  ;;  %10935 = vmatprep.mubr.f32.mxu0 %v10934_v42  ;;  %v18993_v42 = vld [vmem:[#allocation70_spill] sm:$0xff] }
 0x726   :  { %v18079_v49 = vand.u32 4294901760, %v17091_v53  ;;  %11548 = vmatprep.subr.mxu1 %v16308_v46  ;;  %11674 = vmatprep.mubr.f32.mxu1 %v10932_v1  ;;  %v18988_v1 = vld [vmem:[#allocation74_spill] sm:$0xff] }
 0x727   :  { %11550 = vmatpush1.msra.mxu1 %v16310_v11 }
 0x728   :  { %v10939_v12 = vsub.f32 %v17091_v53, %v18079_v49  ;;  %11552 = vmatprep.subr.mxu1 %v16312_v50  ;;  %v18997_v49 = vld [vmem:[#allocation45_spill] sm:$0xff] }
 0x729   :  { %11554 = vmatpush1.msra.mxu1 %v16314_v33 }
 0x72a   :  { %11556 = vmatprep.subr.mxu1 %v16325_v0  ;;  %v10940_v28 = vand.u32 4294901760, %v10939_v12  ;;  %v18994_v12 = vld [vmem:[#allocation27_spill] sm:$0xff] }
 0x72b   :  { %11558 = vmatpush1.msra.mxu1 %v16337_v47 }
 0x72c   :  { %11560 = vmatprep.subr.mxu1 %v16384_v39  ;;  %10941 = vmatmul.mubr.f32.vlgmr.msra.gmra.mxu0 %v10940_v28  ;;  %v18995_v28 = vld [vmem:[#allocation82_spill] sm:$0xff] }
 0x72d   :  { %11345 = vmatpush1.msra.mxu0 %v16320_v57  ;;  %11562 = vmatpush1.msra.mxu1 %v16386_v20 }
 0x72e   :  { %11348 = vmatprep.subr.mxu0 %v16323_v10  ;;  %11534 = vmatprep.mubr.f32.mxu0 %v10931_v44  ;;  %v18985_v44 = vld [vmem:[#allocation52_spill] sm:$0xff] }
 0x72f   :  { %11564 = vmatprep.subr.mxu1 %v16388_v2  ;;  %11351 = vmatpush1.msra.mxu0 %v16329_v8 }
 0x730   :  { %11566 = vmatpush1.msra.mxu1 %v16390_v62  ;;  %11354 = vmatprep.subr.mxu0 %v16332_v15 }
 0x731   :  { %11568 = vmatprep.subr.mxu1 %v16392_v17  ;;  %11357 = vmatpush1.msra.mxu0 %v16335_v60 }
 0x732   :  { %11570 = vmatpush1.msra.mxu1 %v16394_v52  ;;  %11360 = vmatprep.subr.mxu0 %v16344_v6 }
 0x733   :  { %11572 = vmatprep.subr.mxu1 %v16405_v5  ;;  %11363 = vmatpush1.msra.mxu0 %v16351_v59 }
 0x734   :  { %11574 = vmatpush1.msra.mxu1 %v16417_v35  ;;  %11366 = vmatprep.subr.mxu0 %v18981_v45 }
 0x735   :  { %11576 = vmatprep.subr.mxu1 %v18982_v55  ;;  %11369 = vmatpush1.msra.mxu0 %v18983_v56 }
 0x736   :  { %11578 = vmatpush1.msra.mxu1 %v18984_v26  ;;  %11372 = vmatprep.subr.mxu0 %v18985_v44 }
 0x737   :  { %11580 = vmatprep.subr.mxu1 %v18986_v24  ;;  %11375 = vmatpush1.msra.mxu0 %v18987_v40 }
 0x738   :  { %11582 = vmatpush1.msra.mxu1 %v18988_v1  ;;  %11378 = vmatprep.subr.mxu0 %v18989_v29  ;;  %v18999_v1 = vld [vmem:[#allocation24_spill] sm:$0xff]  ;;  %v19000_v29 = vld [vmem:[#allocation46_spill] sm:$0xff] }
 0x739   :  { %11584 = vmatprep.subr.mxu1 %v18990_v32  ;;  %11381 = vmatpush1.msra.mxu0 %v18991_v16  ;;  %v19001_v32 = vld [vmem:[#allocation53_spill] sm:$0xff]  ;;  %v19002_v16 = vld [vmem:[#allocation87_spill] sm:$0xff] }
 0x73a   :  { %11586 = vmatpush1.msra.mxu1 %v18992_v61  ;;  %11384 = vmatprep.subr.mxu0 %v18993_v42  ;;  %v19003_v61 = vld [vmem:[#allocation61_spill] sm:$0xff]  ;;  %v19004_v42 = vld [vmem:[#allocation54_spill] sm:$0xff] }
 0x73b   :  { %11588 = vmatprep.subr.mxu1 %v18994_v12  ;;  %11387 = vmatpush1.msra.mxu0 %v18995_v28  ;;  %v19005_v12 = vld [vmem:[#allocation69_spill] sm:$0xff]  ;;  %v19006_v28 = vld [vmem:[#allocation90_spill] sm:$0xff] }
 0x73c   :  { %11590 = vmatpush1.msra.mxu1 %v18996_v37  ;;  %11390 = vmatprep.subr.mxu0 %v18997_v49  ;;  %v19007_v37 = vld [vmem:[#allocation38_spill] sm:$0xff]  ;;  %v19008_v49 = vld [vmem:[#allocation89_spill] sm:$0xff] }
 0x73d   :  { %11592 = vmatprep.subr.mxu1 %v18998_v4  ;;  %11393 = vmatpush1.msra.mxu0 %v18999_v1  ;;  %v19009_v4 = vld [vmem:[#allocation77_spill] sm:$0xff]  ;;  %v19010_v1 = vld [vmem:[#allocation88_spill] sm:$0xff] }
 0x73e   :  { %11594 = vmatpush1.msra.mxu1 %v19000_v29  ;;  %11396 = vmatprep.subr.mxu0 %v19001_v32  ;;  %v19011_v29 = vld [vmem:[#allocation44_spill] sm:$0xff] }
 0x73f   :  { %11596 = vmatprep.subr.mxu1 %v19002_v16  ;;  %11399 = vmatpush1.msra.mxu0 %v19003_v61  ;;  %v19012_v32 = vld [vmem:[#allocation104_spill] sm:$0xff]  ;;  %v19013_v16 = vld [vmem:[#allocation99_spill] sm:$0xff]  ;;  %v19014_v61 = vld [vmem:[#allocation106_spill] sm:$0xff] }
 0x740   :  { %11598 = vmatpush1.msra.mxu1 %v19004_v42  ;;  %11402 = vmatprep.subr.mxu0 %v19005_v12  ;;  %v19015_v42 = vld [vmem:[#allocation95_spill] sm:$0xff]  ;;  %v19016_v12 = vld [vmem:[#allocation108_spill] sm:$0xff] }
 0x741   :  { %11600 = vmatprep.subr.mxu1 %v19006_v28  ;;  %11405 = vmatpush1.msra.mxu0 %v19007_v37  ;;  %v19017_v28 = vld [vmem:[#allocation102_spill] sm:$0xff]  ;;  %v19018_v37 = vld [vmem:[#allocation109_spill] sm:$0xff] }
 0x742   :  { %11602 = vmatpush1.msra.mxu1 %v19008_v49  ;;  %11408 = vmatprep.subr.mxu0 %v19009_v4  ;;  %v19019_v49 = vld [vmem:[#allocation100_spill] sm:$0xff]  ;;  %v19020_v4 = vld [vmem:[#allocation15_spill] sm:$0xff] }
 0x743   :  { %11604 = vmatprep.subr.mxu1 %v19010_v1  ;;  %11411 = vmatpush1.msra.mxu0 %v19011_v29  ;;  %v19021_v1 = vld [vmem:[#allocation86_spill] sm:$0xff]  ;;  %v19022_v29 = vld [vmem:[#allocation41_spill] sm:$0xff] }
 0x744   :  { %11606 = vmatpush1.msra.mxu1 %v19012_v32  ;;  %11414 = vmatprep.subr.mxu0 %v19013_v16  ;;  %v19023_v32 = vld [vmem:[#allocation110_spill] sm:$0xff]  ;;  %v19024_v16 = vld [vmem:[#allocation17_spill] sm:$0xff] }
 0x745   :  { %11608 = vmatprep.subr.mxu1 %v19014_v61  ;;  %11417 = vmatpush1.msra.mxu0 %v19015_v42  ;;  %v19025_v61 = vld [vmem:[#allocation114_spill] sm:$0xff]  ;;  %v19026_v42 = vld [vmem:[#allocation21_spill] sm:$0xff] }
 0x746   :  { %11610 = vmatpush2.msra.mxu1 %v19016_v12  ;;  %11420 = vmatprep.subr.mxu0 %v19017_v28  ;;  %v19027_v12 = vld [vmem:[#allocation78_spill] sm:$0xff]  ;;  %v19028_v28 = vld [vmem:[#allocation60_spill] sm:$0xff] }
 0x747   :  { %11612 = vmatprep.subr.mxu1 %v19018_v37  ;;  %11423 = vmatpush1.msra.mxu0 %v19019_v49  ;;  %v19029_v37 = vld [vmem:[#allocation33_spill] sm:$0xff] }
 0x748   :  { %11614 = vmatpush2.msra.mxu1 %v19020_v4  ;;  %11426 = vmatprep.subr.mxu0 %v19021_v1  ;;  %v19030_v49 = vld [vmem:[#allocation49_spill] sm:$0xff]  ;;  %v19031_v4 = vld [vmem:[#allocation16_spill] sm:$0xff] }
 0x749   :  { %11616 = vmatprep.subr.mxu1 %v19022_v29  ;;  %11429 = vmatpush1.msra.mxu0 %v19023_v32  ;;  %v19032_v1 = vld [vmem:[#allocation68_spill] sm:$0xff] }
 0x74a   :  { %11618 = vmatpush2.msra.mxu1 %v19024_v16  ;;  %11432 = vmatprep.subr.mxu0 %v19025_v61  ;;  %v19033_v29 = vld [vmem:[#allocation92_spill] sm:$0xff]  ;;  %v19035_v16 = vld [vmem:[#allocation35_spill] sm:$0xff]  ;;  %v19036_v61 = vld [vmem:[#allocation57_spill] sm:$0xff] }
 0x74b   :  { %11620 = vmatprep.subr.mxu1 %v19026_v42  ;;  %11435 = vmatpush1.msra.mxu0 %v19027_v12  ;;  %v19034_v32 = vld [vmem:[#allocation76_spill] sm:$0xff]  ;;  %v19037_v42 = vld [vmem:[#allocation39_spill] sm:$0xff] }
 0x74c   :  { %11622 = vmatpush2.msra.mxu1 %v19028_v28  ;;  %11438 = vmatprep.subr.mxu0 %v19029_v37  ;;  %v19038_v28 = vld [vmem:[#allocation37_spill] sm:$0xff] }
 0x74d   :  { %11624 = vmatprep.subr.mxu1 %v19030_v49  ;;  %11441 = vmatpush2.msra.mxu0 %v19031_v4  ;;  %v19039_v49 = vld [vmem:[#allocation47_spill] sm:$0xff]  ;;  %v19040_v4 = vld [vmem:[#allocation18_spill] sm:$0xff] }
 0x74e   :  { %11626 = vmatpush2.msra.mxu1 %v19032_v1  ;;  %11444 = vmatprep.subr.mxu0 %v19033_v29  ;;  %v19041_v1 = vld [vmem:[#allocation66_spill] sm:$0xff]  ;;  %v19042_v29 = vld [vmem:[#allocation65_spill] sm:$0xff] }
 0x74f   :  { %11628 = vmatprep.subr.mxu1 %v19034_v32  ;;  %11447 = vmatpush2.msra.mxu0 %v19035_v16  ;;  %v19043_v32 = vld [vmem:[#allocation25_spill] sm:$0xff]  ;;  %v19044_v16 = vld [vmem:[#allocation22_spill] sm:$0xff] }
 0x750   :  { %11630 = vmatpush2.msra.mxu1 %v19036_v61  ;;  %11450 = vmatprep.subr.mxu0 %v19037_v42  ;;  %v19045_v61 = vld [vmem:[#allocation51_spill] sm:$0xff]  ;;  %v19046_v42 = vld [vmem:[#allocation40_spill] sm:$0xff] }
 0x751   :  { %11632 = vmatprep.subr.mxu1 %v16795_v3  ;;  %11453 = vmatpush2.msra.mxu0 %v19038_v28  ;;  %v19047_v3 = vld [vmem:[#allocation55_spill] sm:$0xff] }
 0x752   :  { %11634 = vmatpush2.msra.mxu1 %v16797_v30  ;;  %11456 = vmatprep.subr.mxu0 %v19039_v49  ;;  %v19048_v30 = vld [vmem:[#allocation80_spill] sm:$0xff] }
 0x753   :  { %11636 = vmatprep.subr.mxu1 %v19040_v4  ;;  %11459 = vmatpush2.msra.mxu0 %v19041_v1  ;;  %v19049_v4 = vld [vmem:[#allocation20_spill] sm:$0xff] }
 0x754   :  { %11638 = vmatpush2.msra.mxu1 %v19042_v29  ;;  %11462 = vmatprep.subr.mxu0 %v19043_v32  ;;  %v19050_v29 = vld [vmem:[#allocation63_spill] sm:$0xff] }
 0x755   :  { %11640 = vmatprep.subr.mxu1 %v19044_v16  ;;  %11465 = vmatpush2.msra.mxu0 %v19045_v61  ;;  %v19051_v16 = vld [vmem:[#allocation34_spill] sm:$0xff] }
 0x756   :  { %11642 = vmatpush2.msra.mxu1 %v19046_v42  ;;  %11468 = vmatprep.subr.mxu0 %v19047_v3  ;;  %v19052_v42 = vld [vmem:[#allocation67_spill] sm:$0xff] }
 0x757   :  { %11644 = vmatprep.subr.mxu1 %v16880_v23  ;;  %11471 = vmatpush2.msra.mxu0 %v19048_v30  ;;  %v19053_v23 = vld [vmem:[#allocation71_spill] sm:$0xff] }
 0x758   :  { %11646 = vmatpush2.msra.mxu1 %v16882_v13  ;;  %11474 = vmatprep.subr.mxu0 %v19049_v4  ;;  %v19054_v13 = vld [vmem:[#allocation23_spill] sm:$0xff] }
 0x759   :  { %11648 = vmatprep.subr.mxu1 %v16884_v58  ;;  %11477 = vmatpush2.msra.mxu0 %v19050_v29  ;;  %v19055_v58 = vld [vmem:[#allocation28_spill] sm:$0xff] }
 0x75a   :  { %11650 = vmatpush2.msra.mxu1 %v16892_v51  ;;  %11480 = vmatprep.subr.mxu0 %v19051_v16  ;;  %v19056_v51 = vld [vmem:[#allocation79_spill] sm:$0xff] }
 0x75b   :  { %11652 = vmatprep.subr.mxu1 %v16968_v36  ;;  %11483 = vmatpush2.msra.mxu0 %v19052_v42  ;;  %v19057_v36 = vld [vmem:[#allocation50_spill] sm:$0xff] }
 0x75c   :  { %11654 = vmatpush2.msra.mxu1 %v16970_v21  ;;  %11486 = vmatprep.subr.mxu0 %v19053_v23  ;;  %v19058_v21 = vld [vmem:[#allocation83_spill] sm:$0xff] }
 0x75d   :  { %11656 = vmatprep.subr.mxu1 %v16972_v43  ;;  %11489 = vmatpush2.msra.mxu0 %v19054_v13  ;;  %v19059_v43 = vld [vmem:[#allocation36_spill] sm:$0xff] }
 0x75e   :  { %11658 = vmatpush2.msra.mxu1 %v16974_v22  ;;  %11492 = vmatprep.subr.mxu0 %v19055_v58  ;;  %v19060_v22 = vld [vmem:[#allocation107_spill] sm:$0xff] }
 0x75f   :  { %11660 = vmatprep.subr.mxu1 %v16976_v38  ;;  %11495 = vmatpush2.msra.mxu0 %v19056_v51  ;;  %v19061_v38 = vld [vmem:[#allocation98_spill] sm:$0xff] }
 0x760   :  { %11662 = vmatpush2.msra.mxu1 %v16978_v14  ;;  %11498 = vmatprep.subr.mxu0 %v19057_v36  ;;  %v19062_v14 = vand.u32 4294901760, %v17091_v53 }
 0x761   :  { %11664 = vmatprep.subr.mxu1 %v16980_v9  ;;  %11501 = vmatpush2.msra.mxu0 %v19058_v21  ;;  %v19063_v9 = vld [vmem:[#allocation111_spill] sm:$0xff] }
 0x762   :  { %11666 = vmatpush2.msra.mxu1 %v16982_v41  ;;  %11504 = vmatprep.subr.mxu0 %v19059_v43  ;;  %v19064_v43 = vld [vmem:[#allocation105_spill] sm:$0xff] }
 0x763   :  { %11668 = vmatprep.subr.mxu1 %v17050_v25  ;;  %11507 = vmatpush2.msra.mxu0 %v19060_v22  ;;  %v19065_v22 = vld [vmem:[#allocation115_spill] sm:$0xff] }
 0x764   :  { %11670 = vmatpush2.msra.mxu1 %v17052_v27  ;;  %11510 = vmatprep.subr.mxu0 %v19061_v38 }
 0x765   :  { %11678 = vmatmul.mubr.f32.vlgmr.msra.gmra.mxu1 %v19062_v14  ;;  %11950 = vmatprep.subr.mxu1 %v16304_v63  ;;  %v19066_v63 = vand.u32 4294901760, %v16317_v19  ;;  %v19072_v19 = vand.u32 4294901760, %v16344_v6  ;;  %v19090_v14 = vld [vmem:[#allocation73_spill] sm:$0xff] }
 0x766   :  { %11513 = vmatpush2.msra.mxu0 %v19063_v9  ;;  %11952 = vmatpush1.msra.mxu1 %v16306_v31  ;;  %v19067_v31 = vand.u32 4294901760, %v16320_v57  ;;  %v19073_v57 = vand.u32 4294901760, %v16351_v59  ;;  %v19081_v59 = vld [vmem:[#allocation96_spill] sm:$0xff] }
 0x767   :  { %12078 = vmatprep.mubr.f32.mxu1 %v17080_v34  ;;  %11516 = vmatprep.subr.mxu0 %v19064_v43 }
 0x768   :  { %11954 = vmatprep.subr.mxu1 %v16308_v46  ;;  %11519 = vmatpush2.msra.mxu0 %v19065_v22  ;;  %v19068_v46 = vand.u32 4294901760, %v16323_v10  ;;  %v19074_v10 = vand.u32 4294901760, %v18981_v45  ;;  %v19093_v45 = vld [vmem:[#allocation81_spill] sm:$0xff] }
 0x769   :  { %11956 = vmatpush1.msra.mxu1 %v16310_v11  ;;  %11522 = vmatprep.subr.mxu0 %v17003_v48  ;;  %v19069_v11 = vand.u32 4294901760, %v16329_v8  ;;  %v19076_v8 = vand.u32 4294901760, %v18985_v44  ;;  %v19097_v44 = vld [vmem:[#allocation53_spill] sm:$0xff] }
 0x76a   :  { %11958 = vmatprep.subr.mxu1 %v16312_v50  ;;  %11525 = vmatpush2.msra.mxu0 %v17006_v54  ;;  %v19070_v50 = vand.u32 4294901760, %v16332_v15  ;;  %v19077_v15 = vand.u32 4294901760, %v18987_v40  ;;  %v19099_v40 = vld [vmem:[#allocation87_spill] sm:$0xff] }
 0x76b   :  { %11960 = vmatpush1.msra.mxu1 %v16314_v33  ;;  %11528 = vmatprep.subr.mxu0 %v17058_v7  ;;  %v19071_v33 = vand.u32 4294901760, %v16335_v60  ;;  %v19078_v60 = vld [vmem:[#allocation74_spill] sm:$0xff] }
 0x76c   :  { %11962 = vmatprep.subr.mxu1 %v16325_v0  ;;  %11531 = vmatpush2.msra.mxu0 %v17061_v18  ;;  %v19075_v0 = vand.u32 4294901760, %v18983_v56 }
 0x76d   :  { %11964 = vmatpush1.msra.mxu1 %v16337_v47  ;;  %11537 = vmatmul.mubr.f32.vlgmr.msra.gmra.mxu0 %v17091_v53  ;;  %v19079_v47 = vld [vmem:[#allocation64_spill] sm:$0xff] }
 0x76e   :  { %11687 = vmatprep.subr.mxu0 %v19066_v63  ;;  %11966 = vmatprep.subr.mxu1 %v16384_v39  ;;  %v19080_v6 = vand.u32 4294901760, %v19079_v47  ;;  %v19082_v39 = vld [vmem:[#allocation72_spill] sm:$0xff]  ;;  %v19100_v63 = vld [vmem:[#allocation61_spill] sm:$0xff] }
 0x76f   :  { %11691 = vmatpush1.msra.mxu0 %v19067_v31  ;;  %11941 = vmatprep.mubr.f32.mxu0 %v17080_v34  ;;  %v19091_v34 = vld [vmem:[#allocation45_spill] sm:$0xff]  ;;  %v19101_v31 = vand.u32 4294901760, %v19100_v63 }
 0x770   :  { %11968 = vmatpush1.msra.mxu1 %v16386_v20  ;;  %11695 = vmatprep.subr.mxu0 %v19068_v46  ;;  %v19083_v20 = vand.u32 4294901760, %v19082_v39  ;;  %v19092_v53 = vand.u32 4294901760, %v19091_v34  ;;  %v19102_v46 = vld [vmem:[#allocation54_spill] sm:$0xff] }
 0x771   :  { %11970 = vmatprep.subr.mxu1 %v16388_v2  ;;  %11699 = vmatpush1.msra.mxu0 %v19069_v11  ;;  %v19084_v2 = vld [vmem:[#allocation19_spill] sm:$0xff]  ;;  %v19103_v11 = vld [vmem:[#allocation69_spill] sm:$0xff] }
 0x772   :  { %11972 = vmatpush1.msra.mxu1 %v16390_v62  ;;  %11703 = vmatprep.subr.mxu0 %v19070_v50  ;;  %v19085_v62 = vld [vmem:[#allocation70_spill] sm:$0xff]  ;;  %v19104_v50 = vand.u32 4294901760, %v19103_v11  ;;  %v19137_v11 = vld [vmem:[#allocation60_spill] sm:$0xff] }
 0x773   :  { %11974 = vmatprep.subr.mxu1 %v16392_v17  ;;  %11707 = vmatpush1.msra.mxu0 %v19071_v33  ;;  %v19086_v17 = vand.u32 4294901760, %v19085_v62  ;;  %v19105_v33 = vld [vmem:[#allocation90_spill] sm:$0xff] }
 0x774   :  { %11976 = vmatpush1.msra.mxu1 %v16394_v52  ;;  %11711 = vmatprep.subr.mxu0 %v19072_v19  ;;  %v19087_v52 = vld [vmem:[#allocation27_spill] sm:$0xff]  ;;  %v19106_v19 = vld [vmem:[#allocation38_spill] sm:$0xff] }
 0x775   :  { %11978 = vmatprep.subr.mxu1 %v16405_v5  ;;  %11715 = vmatpush1.msra.mxu0 %v19073_v57  ;;  %v19088_v5 = vld [vmem:[#allocation82_spill] sm:$0xff]  ;;  %v19107_v57 = vand.u32 4294901760, %v19106_v19  ;;  %v19140_v19 = vld [vmem:[#allocation16_spill] sm:$0xff] }
 0x776   :  { %11980 = vmatpush1.msra.mxu1 %v16417_v35  ;;  %11719 = vmatprep.subr.mxu0 %v19074_v10  ;;  %v19089_v35 = vand.u32 4294901760, %v19088_v5  ;;  %v19108_v10 = vld [vmem:[#allocation89_spill] sm:$0xff] }
 0x777   :  { %11982 = vmatprep.subr.mxu1 %v18982_v55  ;;  %11723 = vmatpush1.msra.mxu0 %v19075_v0  ;;  %v19094_v55 = vld [vmem:[#allocation24_spill] sm:$0xff]  ;;  %v19109_v0 = vld [vmem:[#allocation77_spill] sm:$0xff] }
 0x778   :  { %11984 = vmatpush1.msra.mxu1 %v18984_v26  ;;  %11727 = vmatprep.subr.mxu0 %v19076_v8  ;;  %v19095_v56 = vand.u32 4294901760, %v19094_v55  ;;  %v19096_v26 = vld [vmem:[#allocation46_spill] sm:$0xff]  ;;  %v19110_v8 = vand.u32 4294901760, %v19109_v0  ;;  %v19143_v0 = vld [vmem:[#allocation92_spill] sm:$0xff] }
 0x779   :  { %11986 = vmatprep.subr.mxu1 %v18986_v24  ;;  %11731 = vmatpush1.msra.mxu0 %v19077_v15  ;;  %v19098_v24 = vand.u32 4294901760, %v19097_v44  ;;  %v19111_v15 = vld [vmem:[#allocation88_spill] sm:$0xff] }
 0x77a   :  { %11988 = vmatpush1.msra.mxu1 %v19078_v60  ;;  %11735 = vmatprep.subr.mxu0 %v19080_v6  ;;  %v19112_v60 = vld [vmem:[#allocation44_spill] sm:$0xff] }
 0x77b   :  { %11990 = vmatprep.subr.mxu1 %v19081_v59  ;;  %11739 = vmatpush1.msra.mxu0 %v19083_v20  ;;  %v19113_v47 = vand.u32 4294901760, %v19112_v60  ;;  %v19114_v6 = vld [vmem:[#allocation104_spill] sm:$0xff]  ;;  %v19115_v59 = vld [vmem:[#allocation99_spill] sm:$0xff]  ;;  %v19117_v20 = vld [vmem:[#allocation106_spill] sm:$0xff] }
 0x77c   :  { %11992 = vmatpush1.msra.mxu1 %v19084_v2  ;;  %11743 = vmatprep.subr.mxu0 %v19086_v17  ;;  %v19116_v39 = vand.u32 4294901760, %v19115_v59  ;;  %v19118_v2 = vld [vmem:[#allocation95_spill] sm:$0xff]  ;;  %v19120_v17 = vld [vmem:[#allocation108_spill] sm:$0xff]  ;;  %v19151_v59 = vld [vmem:[#allocation29_spill] sm:$0xff] }
 0x77d   :  { %11994 = vmatprep.subr.mxu1 %v19087_v52  ;;  %11747 = vmatpush1.msra.mxu0 %v19089_v35  ;;  %v19119_v62 = vand.u32 4294901760, %v19118_v2  ;;  %v19121_v52 = vld [vmem:[#allocation102_spill] sm:$0xff]  ;;  %v19123_v35 = vld [vmem:[#allocation109_spill] sm:$0xff]  ;;  %v19146_v60 = vld [vmem:[#allocation35_spill] sm:$0xff]  ;;  %v19154_v2 = vand.u32 4294901760, %v19039_v49  ;;  %v19162_v49 = vand.u32 4294901760, %v19047_v3 }
 0x77e   :  { %11996 = vmatpush1.msra.mxu1 %v19090_v14  ;;  %11751 = vmatprep.subr.mxu0 %v19092_v53  ;;  %v19122_v5 = vand.u32 4294901760, %v19121_v52  ;;  %v19124_v14 = vld [vmem:[#allocation100_spill] sm:$0xff]  ;;  %v19126_v53 = vld [vmem:[#allocation15_spill] sm:$0xff]  ;;  %v19157_v52 = vld [vmem:[#allocation65_spill] sm:$0xff]  ;;  %v19170_v3 = vand.u32 4294901760, %v19051_v16  ;;  %v19178_v16 = vand.u32 4294901760, %v19055_v58 }
 0x77f   :  { %11998 = vmatprep.subr.mxu1 %v19093_v45  ;;  %11755 = vmatpush1.msra.mxu0 %v19095_v56  ;;  %v19125_v34 = vand.u32 4294901760, %v19124_v14  ;;  %v19127_v45 = vld [vmem:[#allocation86_spill] sm:$0xff]  ;;  %v19129_v56 = vld [vmem:[#allocation41_spill] sm:$0xff]  ;;  %v19161_v14 = vld [vmem:[#allocation40_spill] sm:$0xff] }
 0x780   :  { %12000 = vmatpush1.msra.mxu1 %v19096_v26  ;;  %11759 = vmatprep.subr.mxu0 %v19098_v24  ;;  %v19128_v55 = vand.u32 4294901760, %v19127_v45  ;;  %v19130_v26 = vld [vmem:[#allocation110_spill] sm:$0xff]  ;;  %v19132_v24 = vld [vmem:[#allocation17_spill] sm:$0xff] }
 0x781   :  { %12002 = vmatprep.subr.mxu1 %v19099_v40  ;;  %11763 = vmatpush1.msra.mxu0 %v19101_v31  ;;  %v19131_v44 = vand.u32 4294901760, %v19130_v26  ;;  %v19133_v40 = vld [vmem:[#allocation114_spill] sm:$0xff]  ;;  %v19135_v31 = vld [vmem:[#allocation21_spill] sm:$0xff]  ;;  %v19173_v26 = vld [vmem:[#allocation91_spill] sm:$0xff] }
 0x782   :  { %12004 = vmatpush1.msra.mxu1 %v19102_v46  ;;  %11767 = vmatprep.subr.mxu0 %v19104_v50  ;;  %v19134_v63 = vand.u32 4294901760, %v19133_v40  ;;  %v19136_v46 = vand.u32 4294901760, %v19027_v12  ;;  %v19138_v50 = vand.u32 4294901760, %v19029_v37  ;;  %v19147_v12 = vand.u32 4294901760, %v19146_v60  ;;  %v19167_v45 = vld [vmem:[#allocation26_spill] sm:$0xff]  ;;  %v19179_v40 = vld [vmem:[#allocation31_spill] sm:$0xff] }
 0x783   :  { %12006 = vmatprep.subr.mxu1 %v19105_v33  ;;  %11771 = vmatpush1.msra.mxu0 %v19107_v57  ;;  %v19139_v33 = vld [vmem:[#allocation49_spill] sm:$0xff]  ;;  %v19141_v57 = vand.u32 4294901760, %v19140_v19  ;;  %v19195_v19 = vand.u32 4294901760, %v17006_v54 }
 0x784   :  { %12008 = vmatpush1.msra.mxu1 %v19108_v10  ;;  %11775 = vmatprep.subr.mxu0 %v19110_v8  ;;  %v19142_v10 = vld [vmem:[#allocation68_spill] sm:$0xff]  ;;  %v19144_v8 = vand.u32 4294901760, %v19143_v0 }
 0x785   :  { %12010 = vmatprep.subr.mxu1 %v19111_v15  ;;  %11779 = vmatpush1.msra.mxu0 %v19113_v47  ;;  %v19145_v15 = vld [vmem:[#allocation76_spill] sm:$0xff]  ;;  %v19148_v47 = vld [vmem:[#allocation57_spill] sm:$0xff] }
 0x786   :  { %12012 = vmatpush1.msra.mxu1 %v19114_v6  ;;  %11783 = vmatprep.subr.mxu0 %v19116_v39  ;;  %v19149_v6 = vld [vmem:[#allocation39_spill] sm:$0xff]  ;;  %v19152_v39 = vand.u32 4294901760, %v19038_v28  ;;  %v19160_v28 = vand.u32 4294901760, %v19045_v61  ;;  %v19168_v61 = vand.u32 4294901760, %v19050_v29  ;;  %v19176_v29 = vand.u32 4294901760, %v19054_v13 }
 0x787   :  { %12014 = vmatprep.subr.mxu1 %v19117_v20  ;;  %11787 = vmatpush1.msra.mxu0 %v19119_v62  ;;  %v19150_v37 = vand.u32 4294901760, %v19149_v6  ;;  %v19153_v20 = vld [vmem:[#allocation59_spill] sm:$0xff]  ;;  %v19155_v62 = vld [vmem:[#allocation18_spill] sm:$0xff]  ;;  %v19184_v13 = vand.u32 4294901760, %v19058_v21  ;;  %v19191_v21 = vand.u32 4294901760, %v19063_v9  ;;  %v19198_v9 = vld [vmem:[#allocation112_spill] sm:$0xff] }
 0x788   :  { %12016 = vmatpush2.msra.mxu1 %v19120_v17  ;;  %11791 = vmatprep.subr.mxu0 %v19122_v5  ;;  %v19156_v17 = vand.u32 4294901760, %v19041_v1  ;;  %v19158_v5 = vand.u32 4294901760, %v19043_v32  ;;  %v19164_v1 = vand.u32 4294901760, %v19048_v30  ;;  %v19166_v32 = vand.u32 4294901760, %v19049_v4 }
 0x789   :  { %12018 = vmatprep.subr.mxu1 %v19123_v35  ;;  %11795 = vmatpush1.msra.mxu0 %v19125_v34  ;;  %v19159_v35 = vld [vmem:[#allocation22_spill] sm:$0xff]  ;;  %v19172_v30 = vand.u32 4294901760, %v19052_v42  ;;  %v19174_v4 = vand.u32 4294901760, %v19053_v23  ;;  %v19180_v42 = vand.u32 4294901760, %v19056_v51  ;;  %v19182_v23 = vand.u32 4294901760, %v19057_v36 }
 0x78a   :  { %12020 = vmatpush2.msra.mxu1 %v19126_v53  ;;  %11799 = vmatprep.subr.mxu0 %v19128_v55  ;;  %v19163_v34 = vld [vmem:[#allocation42_spill] sm:$0xff]  ;;  %v19165_v53 = vld [vmem:[#allocation75_spill] sm:$0xff]  ;;  %v19169_v55 = vld [vmem:[#allocation48_spill] sm:$0xff]  ;;  %v19189_v36 = vand.u32 4294901760, %v19061_v38  ;;  %v19196_v38 = vand.u32 4294901760, %v17058_v7 }
 0x78b   :  { %12022 = vmatprep.subr.mxu1 %v19129_v56  ;;  %11803 = vmatpush1.msra.mxu0 %v19131_v44  ;;  %v19171_v56 = vld [vmem:[#allocation30_spill] sm:$0xff]  ;;  %v19175_v44 = vld [vmem:[#allocation32_spill] sm:$0xff] }
 0x78c   :  { %12024 = vmatpush2.msra.mxu1 %v19132_v24  ;;  %11807 = vmatprep.subr.mxu0 %v19134_v63  ;;  %v19177_v24 = vld [vmem:[#allocation85_spill] sm:$0xff] }
 0x78d   :  { %12026 = vmatprep.subr.mxu1 %v19135_v31  ;;  %11811 = vmatpush1.msra.mxu0 %v19136_v46  ;;  %v19181_v63 = vld [vmem:[#allocation97_spill] sm:$0xff]  ;;  %v19185_v46 = vld [vmem:[#allocation36_spill] sm:$0xff] }
 0x78e   :  { %12028 = vmatpush2.msra.mxu1 %v19137_v11  ;;  %11815 = vmatprep.subr.mxu0 %v19138_v50  ;;  %v19183_v31 = vld [vmem:[#allocation93_spill] sm:$0xff]  ;;  %v19186_v58 = vand.u32 4294901760, %v19185_v46  ;;  %v19187_v11 = vld [vmem:[#allocation107_spill] sm:$0xff]  ;;  %v19190_v50 = vld [vmem:[#allocation84_spill] sm:$0xff] }
 0x78f   :  { %12030 = vmatprep.subr.mxu1 %v19139_v33  ;;  %11819 = vmatpush2.msra.mxu0 %v19141_v57  ;;  %v19188_v51 = vand.u32 4294901760, %v19187_v11  ;;  %v19193_v33 = vand.u32 4294901760, %v19065_v22  ;;  %v19199_v57 = vsub.s32 0, %v19198_v9 }
 0x790   :  { %12032 = vmatpush2.msra.mxu1 %v19142_v10  ;;  %11823 = vmatprep.subr.mxu0 %v19144_v8  ;;  %v19200_v10 = vsub.s32 1, %v19198_v9 }
 0x791   :  { %12034 = vmatprep.subr.mxu1 %v19145_v15  ;;  %11827 = vmatpush2.msra.mxu0 %v19147_v12 }
 0x792   :  { %12036 = vmatpush2.msra.mxu1 %v19148_v47  ;;  %11831 = vmatprep.subr.mxu0 %v19150_v37 }
 0x793   :  { %12038 = vmatprep.subr.mxu1 %v19151_v59  ;;  %11835 = vmatpush2.msra.mxu0 %v19152_v39 }
 0x794   :  { %12040 = vmatpush2.msra.mxu1 %v19153_v20  ;;  %11839 = vmatprep.subr.mxu0 %v19154_v2 }
 0x795   :  { %12042 = vmatprep.subr.mxu1 %v19155_v62  ;;  %11843 = vmatpush2.msra.mxu0 %v19156_v17 }
 0x796   :  { %12044 = vmatpush2.msra.mxu1 %v19157_v52  ;;  %11847 = vmatprep.subr.mxu0 %v19158_v5 }
 0x797   :  { %12046 = vmatprep.subr.mxu1 %v19159_v35  ;;  %11851 = vmatpush2.msra.mxu0 %v19160_v28 }
 0x798   :  { %12048 = vmatpush2.msra.mxu1 %v19161_v14  ;;  %11855 = vmatprep.subr.mxu0 %v19162_v49 }
 0x799   :  { %12050 = vmatprep.subr.mxu1 %v19163_v34  ;;  %11859 = vmatpush2.msra.mxu0 %v19164_v1 }
 0x79a   :  { %12052 = vmatpush2.msra.mxu1 %v19165_v53  ;;  %11863 = vmatprep.subr.mxu0 %v19166_v32 }
 0x79b   :  { %12054 = vmatprep.subr.mxu1 %v19167_v45  ;;  %11867 = vmatpush2.msra.mxu0 %v19168_v61 }
 0x79c   :  { %12056 = vmatpush2.msra.mxu1 %v19169_v55  ;;  %11871 = vmatprep.subr.mxu0 %v19170_v3 }
 0x79d   :  { %12058 = vmatprep.subr.mxu1 %v19171_v56  ;;  %11875 = vmatpush2.msra.mxu0 %v19172_v30 }
 0x79e   :  { %12060 = vmatpush2.msra.mxu1 %v19173_v26  ;;  %11879 = vmatprep.subr.mxu0 %v19174_v4 }
 0x79f   :  { %12062 = vmatprep.subr.mxu1 %v19175_v44  ;;  %11883 = vmatpush2.msra.mxu0 %v19176_v29 }
 0x7a0   :  { %12064 = vmatpush2.msra.mxu1 %v19177_v24  ;;  %11887 = vmatprep.subr.mxu0 %v19178_v16 }
 0x7a1   :  { %12066 = vmatprep.subr.mxu1 %v19179_v40  ;;  %11891 = vmatpush2.msra.mxu0 %v19180_v42 }
 0x7a2   :  { %12068 = vmatpush2.msra.mxu1 %v19181_v63  ;;  %11895 = vmatprep.subr.mxu0 %v19182_v23 }
 0x7a3   :  { %12070 = vmatprep.subr.mxu1 %v19183_v31  ;;  %11899 = vmatpush2.msra.mxu0 %v19184_v13 }
 0x7a4   :  { %12072 = vmatpush2.msra.mxu1 %v16982_v41  ;;  %11903 = vmatprep.subr.mxu0 %v19186_v58  ;;  %v19192_v41 = vand.u32 4294901760, %v19064_v43  ;;  %v10790_v43 = vld [vmem:[%s17437_s4] sm:$0x3]  ;;  %s12951_s4 = smov [#allocation10]  }
 0x7a5   :  { %12074 = vmatprep.subr.mxu1 %v17050_v25  ;;  %11907 = vmatpush2.msra.mxu0 %v19188_v51  ;;  %v19194_v25 = vand.u32 4294901760, %v17003_v48  ;;  %v10795_v48 = vrot.slane %v10790_v43, %v19199_v57  ;;  %v10799_v54 = vrot.slane %v10790_v43, %v19200_v10  ;;  %s12096_s17 = sshll.u32 %s12951_s4, 4  ;;  %s12097_s17 = int_to_ptr.vmem [resolvable:$true] %s12096_s17 }
 0x7a6   :  { %12076 = vmatpush2.msra.mxu1 %v17052_v27  ;;  %11911 = vmatprep.subr.mxu0 %v19189_v36  ;;  %v19197_v27 = vand.u32 4294901760, %v17061_v18  ;;  %s12909_s18 = scalar_lea.vmem %s12097_s17, 256  ;;  %p12914_p7 = scmp.lt.s32.totalorder %s12097_s17, %s12097_s17 }
 0x7a7   :  { %12080 = vmatmul.mubr.f32.vlgmr.msra.gmra.mxu1 %v19190_v50  ;;  %11915 = vmatpush2.msra.mxu0 %v19191_v21  ;;  %p12910_p6 = scmp.ne.s32.totalorder %s12097_s17, %s12909_s18  ;;  %p12915_p8 = scmp.lt.s32.totalorder %s12909_s18, %s12909_s18 }
 0x7a8   :  { %11919 = vmatprep.subr.mxu0 %v19192_v41 }
 0x7a9   :  { %11923 = vmatpush2.msra.mxu0 %v19193_v33  ;;  %p12916_p9 = por %p12915_p8, %p12914_p7 }
 0x7aa   :  { %11927 = vmatprep.subr.mxu0 %v19194_v25 }
 0x7ab   :  { %11931 = vmatpush2.msra.mxu0 %v19195_v19  ;;  %p12917_p10 = pnand %p12916_p9, %p12910_p6 }
 0x7ac   :  { %11935 = vmatprep.subr.mxu0 %v19196_v38 }
 0x7ad   :  { %11939 = vmatpush2.msra.mxu0 %v19197_v27 }
 0x7ae   :  { %11943 = vmatmul.mubr.f32.vlgmr.msra.gmra.mxu0 %v19190_v50 }
 0x7e4   :  { %v11335_v0 = vpop.f32.mrf.mxu1 }
 0x7e6   :  { %v11337_v18 = vpop.f32.mrf.mxu1 }
 0x7ec   :  { %v10942_v22 = vpop.f32.mrf.mxu0 }
 0x7ed   :  { %v10943_v7 = vadd.f32 %v10942_v22, %v10795_v48 }
 0x7ee   :  { %v10944_v8 = vpop.f32.mrf.mxu0 }
 0x7ef   :  { %v10945_v60 = vadd.f32 %v10944_v8, %v10799_v54  ;;  %v11336_v12 = vadd.f32 %v11335_v0, %v10943_v7 }
 0x7f1   :  { %v11338_v59 = vadd.f32 %v11337_v18, %v10945_v60 }
 0x825   :  { %v11679_v47 = vpop.f32.mrf.mxu1 }
 0x827   :  { %v11681_v20 = vpop.f32.mrf.mxu1 }
 0x82d   :  { %v11538_v15 = vpop.f32.mrf.mxu0 }
 0x82e   :  { %v11539_v37 = vadd.f32 %v11538_v15, %v11336_v12 }
 0x82f   :  { %v11540_v6 = vpop.f32.mrf.mxu0 }
 0x830   :  { %v11541_v39 = vadd.f32 %v11540_v6, %v11338_v59  ;;  %v11680_v2 = vadd.f32 %v11679_v47, %v11539_v37 }
 0x832   :  { %v11682_v5 = vadd.f32 %v11681_v20, %v11541_v39 }
 0x867   :  { %v12081_v62 = vpop.f32.mrf.mxu1 }
 0x869   :  { %v12083_v49 = vpop.f32.mrf.mxu1 }
 0x86e   :  { %v11944_v17 = vpop.f32.mrf.mxu0 }
 0x86f   :  { %v11945_v52 = vadd.f32 %v11944_v17, %v11680_v2 }
 0x870   :  { %v11946_v35 = vpop.f32.mrf.mxu0 }
 0x871   :  { %v12082_v28 = vadd.f32 %v12081_v62, %v11945_v52  ;;  %v11947_v14 = vadd.f32 %v11946_v35, %v11682_v5 }
 0x873   :  { %v12086_v34 = vmax.f32 %v12082_v28, 0.0  ;;  %v12084_v1 = vadd.f32 %v12083_v49, %v11947_v14 }
 0x875   :  { %12088 = vst [vmem:[#allocation10] sm:$0xff] %v12086_v34  ;;  %v12087_v53 = vmax.f32 %v12084_v1, 0.0 }
 0x877   :  { %12089 = vst [vmem:[#allocation10 + $0x8] sm:$0xff] %v12087_v53 }
 0x878   :  { %12920 = shalt.err (!%p12917_p10)
}
 0x879   :  { %12099 = dma.vmem_to_hbm [thread:$0]  %s12097_s17, 256, %s17438_s5, [#allocation4]  }
 0x87a   :  { %12935 = dma.done.wait [#allocation4], 256  }
 0x87b   :  { %12936 = vsyncadd [#allocation4], 4294967040 }
 0x87c   :  { %12103 = vsyncpa [#allocation3], 1 }
 0x87d   :  { %12104 = vsyncpa [#allocation6], 1 }
 0x87e   :  { %12105 = vsyncpa [#allocation9], 1 }
 0x87f   :  { %12106 = vsyncpa [#allocation4], 1 }

</bundles_post_ra>
